<compile_context>
chip_gen: v7x
topology: tpu7x:2x2x1
jax: 0.10.0
libtpu: 0.0.40
codegen_flags: <defaults>
</compile_context>

<pallas_src>
import functools

import jax
import jax.numpy as jnp
from jax.experimental import pallas as pl
from jax.experimental.pallas import tpu as pltpu

_LN_EPS = 1e-5
_GELU_C = 0.7978845608028654  # sqrt(2/pi)


def _gelu_tanh(x):
    # tanh-form GELU: transcendental lands on the EUP slot.
    return 0.5 * x * (1.0 + jnp.tanh(_GELU_C * (x + 0.044715 * x * x * x)))


def _const_index_map(nd):
    def imap(b):
        return (0,) * nd
    return imap


# ---------------------------------------------------------------------------
# Pallas kernel: SelfAttention forward for one (b_blk, S, C) batch slab
# ---------------------------------------------------------------------------
def _self_attn_kernel(b_blk, S, C, num_heads, mm_dtype,
                      x_ref,
                      ln1_g_ref, ln1_b_ref,
                      wqkv_ref, bqkv_ref,
                      wout_ref, bout_ref,
                      ln2_g_ref, ln2_b_ref,
                      wff1_ref, bff1_ref,
                      wff2_ref, bff2_ref,
                      o_ref):
    D = C // num_heads
    BS = b_blk * S
    scale = 1.0 / float(D) ** 0.5

    def layer_norm(z, g, b):
        mu = jnp.mean(z, axis=-1, keepdims=True)
        var = jnp.mean(jnp.square(z - mu), axis=-1, keepdims=True)
        return (z - mu) * jax.lax.rsqrt(var + _LN_EPS) * g + b

    def mm(a, w):
        # MXU matmul in mm_dtype (bf16 in the perf path) with f32 accumulation.
        return jnp.dot(a.astype(mm_dtype), w.astype(mm_dtype),
                       preferred_element_type=jnp.float32)

    # (b_blk, S, C) -> (b_blk*S, C): leading-dim merge; S % 8 == 0 so this is a
    # layout no-op (no VMEM shuffle).
    x = x_ref[...].reshape(BS, C)

    # --- LayerNorm + fused QKV projection over the whole folded batch ---
    x_ln = layer_norm(x, ln1_g_ref[...], ln1_b_ref[...])
    qkv = mm(x_ln, wqkv_ref[...]) + bqkv_ref[...]                       # (BS, 3C)
    q = (qkv[:, 0:C] * scale).astype(mm_dtype)
    k = qkv[:, C:2 * C].astype(mm_dtype)
    v = qkv[:, 2 * C:3 * C].astype(mm_dtype)
    w_out = wout_ref[...].astype(mm_dtype)

    # --- per-(batch, head) attention; head concat folded into out-projection:
    #       attn_b = sum_h softmax(q_h k_h^T) v_h @ W_out[hD:(h+1)D, :]
    #     so the narrow (S, D) head outputs never round-trip through VMEM.
    blocks = []
    for b in range(b_blk):
        r0 = b * S
        acc = jnp.zeros((S, C), jnp.float32)
        for h in range(num_heads):
            c0 = h * D
            qh = q[r0:r0 + S, c0:c0 + D]
            kh = k[r0:r0 + S, c0:c0 + D]
            vh = v[r0:r0 + S, c0:c0 + D]
            # q @ k^T without an explicit transpose (contract last dims).
            s = jax.lax.dot_general(qh, kh, (((1,), (1,)), ((), ())),
                                    preferred_element_type=jnp.float32)  # (S, S)
            m = jnp.max(s, axis=-1, keepdims=True)
            p = jnp.exp(s - m)
            l = jnp.sum(p, axis=-1, keepdims=True)
            p = (p * pl.reciprocal(l, approx=True)).astype(mm_dtype)     # EUP divide
            pv = jnp.dot(p, vh, preferred_element_type=jnp.float32)      # (S, D)
            acc = acc + jnp.dot(pv.astype(mm_dtype), w_out[c0:c0 + D, :],
                                preferred_element_type=jnp.float32)
        blocks.append(acc)
    attn = blocks[0] if b_blk == 1 else jnp.concatenate(blocks, axis=0)  # (BS, C)
    h1 = attn + bout_ref[...] + x                                        # residual 1

    # --- ff_self: LayerNorm -> Linear -> GELU -> Linear, + residual 2 ---
    f = layer_norm(h1, ln2_g_ref[...], ln2_b_ref[...])
    f = mm(f, wff1_ref[...]) + bff1_ref[...]
    f = _gelu_tanh(f)
    f = mm(f, wff2_ref[...]) + bff2_ref[...]
    o_ref[...] = (h1 + f).reshape(b_blk, S, C)


# ---------------------------------------------------------------------------
# wrapper
# ---------------------------------------------------------------------------
def self_attention_pallas(x_nchw, p, num_heads=4, matmul_dtype=jnp.bfloat16,
                          b_blk=None):
    B, C, H, W = x_nchw.shape
    S = H * W
    assert C % num_heads == 0
    assert S % 8 == 0

    if b_blk is None:
        # Fold batch to fill the MXU M dimension but keep >= 2 grid steps so the
        # "parallel" batch axis can shard across v7x's 2 TensorCores.
        # (Single-TC v5e/v6e: pass b_blk=B to remove the serial grid loop.)
        b_blk = B // 2 if (B % 2 == 0 and B >= 2) else 1
    assert B % b_blk == 0
    n_steps = B // b_blk

    # NCHW -> (B, S, C) token layout: C on lanes, S on sublanes (lane-dense).
    x_seq = jnp.transpose(x_nchw.reshape(B, C, S), (0, 2, 1)).astype(jnp.float32)

    mm_dt = jnp.dtype(matmul_dtype)
    # Matmul weights travel in the MXU-native dtype (halves weight DMA / VMEM);
    # LN params & biases stay f32 (all element-wise math is f32).
    weights = (p["ln1_g"], p["ln1_b"],
               p["w_qkv"].astype(mm_dt), p["b_qkv"],
               p["w_out"].astype(mm_dt), p["b_out"],
               p["ln2_g"], p["ln2_b"],
               p["w_ff1"].astype(mm_dt), p["b_ff1"],
               p["w_ff2"].astype(mm_dt), p["b_ff2"])

    x_spec = pl.BlockSpec((b_blk, S, C), lambda b: (b, 0, 0))
    out_spec = pl.BlockSpec((b_blk, S, C), lambda b: (b, 0, 0))

    # Scoped-VMEM budget from actual buffer sizes (+ headroom for in-kernel
    # temporaries); default scoped limits (16 MiB v5e / 32 MiB v6e,v7x) trip at
    # production widths. Capped at 64 MiB (v7x physical VMEM per core).
    act_bytes = b_blk * S * C * 4
    w_bytes = sum(int(w.size) * jnp.dtype(w.dtype).itemsize for w in weights)
    tmp_bytes = b_blk * S * 3 * C * 4 + num_heads * S * S * 4 + 4 * act_bytes
    vmem_limit = int(min(64 * 2 ** 20,
                         max(16 * 2 ** 20,
                             4 * (4 * act_bytes + 2 * w_bytes + tmp_bytes))))

    flops = B * (12 * S * C * C + 4 * S * S * C)
    transcendentals = B * (num_heads * S * S + 2 * S * C)
    bytes_accessed = 2 * B * S * C * 4 + n_steps * w_bytes
    cost = pl.CostEstimate(flops=flops, transcendentals=transcendentals,
                           bytes_accessed=bytes_accessed)

    kernel = functools.partial(_self_attn_kernel, b_blk, S, C, num_heads, mm_dt)

    def make_call(single_buffer_weights):
        wspecs = []
        for w in weights:
            imap = _const_index_map(w.ndim)
            if single_buffer_weights:
                # Constant index map -> weights never re-DMA'd across grid
                # steps; don't waste VMEM double-buffering them.
                wspecs.append(pl.BlockSpec(
                    w.shape, imap, pipeline_mode=pl.Buffered(buffer_count=1)))
            else:
                wspecs.append(pl.BlockSpec(w.shape, imap))
        grid_spec = pltpu.PrefetchScalarGridSpec(
            num_scalar_prefetch=0,
            grid=(n_steps,),
            in_specs=[x_spec] + wspecs,
            out_specs=out_spec,
        )
        return pl.pallas_call(
            kernel,
            out_shape=jax.ShapeDtypeStruct((B, S, C), jnp.float32),
            grid_spec=grid_spec,
            compiler_params=pltpu.CompilerParams(
                dimension_semantics=("parallel",),
                vmem_limit_bytes=vmem_limit),
            cost_estimate=cost,
        )

    try:
        out_seq = make_call(True)(x_seq, *weights)
    except Exception:
        # TODO(synk): pl.Buffered(1) single-buffering rejected by this
        # jax/libtpu combination; fall back to default double-buffered weight
        # blocks (costs only extra VMEM, not correctness).
        out_seq = make_call(False)(x_seq, *weights)

    # (B, S, C) -> NCHW
    return jnp.transpose(out_seq, (0, 2, 1)).reshape(B, C, H, W)


# ---------------------------------------------------------------------------
# deterministic parameter init (shapes follow SelfAttention.__init__)
# ---------------------------------------------------------------------------
def init_params(key, c):
    ks = jax.random.split(key, 6)
    std = 1.0 / (c ** 0.5)

    def lin(k, ci, co):
        k1, k2 = jax.random.split(k)
        w = std * jax.random.normal(k1, (ci, co), jnp.float32)
        b = 0.02 * jax.random.normal(k2, (1, co), jnp.float32)
        return w, b

    def ln(k):
        k1, k2 = jax.random.split(k)
        g = 1.0 + 0.05 * jax.random.normal(k1, (1, c), jnp.float32)
        b = 0.05 * jax.random.normal(k2, (1, c), jnp.float32)
        return g, b

    w_qkv, b_qkv = lin(ks[0], c, 3 * c)   # MHA in_proj (stored pre-transposed)
    w_out, b_out = lin(ks[1], c, c)       # MHA out_proj
    w_ff1, b_ff1 = lin(ks[2], c, c)
    w_ff2, b_ff2 = lin(ks[3], c, c)
    ln1_g, ln1_b = ln(ks[4])
    ln2_g, ln2_b = ln(ks[5])
    return dict(w_qkv=w_qkv, b_qkv=b_qkv, w_out=w_out, b_out=b_out,
                w_ff1=w_ff1, b_ff1=b_ff1, w_ff2=w_ff2, b_ff2=b_ff2,
                ln1_g=ln1_g, ln1_b=ln1_b, ln2_g=ln2_g, ln2_b=ln2_b)


# ---------------------------------------------------------------------------
# pure-JAX reference (exact-erf GELU, exact softmax) for verification
# ---------------------------------------------------------------------------
def ref_forward(x_nchw, p, num_heads=4):
    B, C, H, W = x_nchw.shape
    S = H * W
    D = C // num_heads
    x = jnp.transpose(x_nchw.reshape(B, C, S), (0, 2, 1))        # (B, S, C)

    def ln(z, g, b):
        mu = jnp.mean(z, axis=-1, keepdims=True)
        var = jnp.mean(jnp.square(z - mu), axis=-1, keepdims=True)
        return (z - mu) * jax.lax.rsqrt(var + _LN_EPS) * g + b

    x_ln = ln(x, p["ln1_g"], p["ln1_b"])
    qkv = x_ln @ p["w_qkv"] + p["b_qkv"]
    q, k, v = jnp.split(qkv, 3, axis=-1)

    def heads(z):
        return z.reshape(B, S, num_heads, D).transpose(0, 2, 1, 3)   # (B, h, S, D)

    qh, kh, vh = heads(q), heads(k), heads(v)
    s = jnp.einsum("bhqd,bhkd->bhqk", qh, kh) / (D ** 0.5)
    a = jax.nn.softmax(s, axis=-1)
    o = jnp.einsum("bhqk,bhkd->bhqd", a, vh).transpose(0, 2, 1, 3).reshape(B, S, C)
    attn = o @ p["w_out"] + p["b_out"]
    h1 = attn + x

    f = ln(h1, p["ln2_g"], p["ln2_b"])
    f = jax.nn.gelu(f @ p["w_ff1"] + p["b_ff1"], approximate=False)
    f = f @ p["w_ff2"] + p["b_ff2"]
    out = h1 + f
    return jnp.transpose(out, (0, 2, 1)).reshape(B, C, H, W)


if __name__ == "__main__":
    key = jax.random.PRNGKey(0)
    k_x, k_p = jax.random.split(key)

    # channels divisible by num_heads=4; 32 -> head_dim=8, seq=64; B=4 so the
    # default b_blk=2 exercises batch folding (M=128) with 2 parallel grid steps.
    B, C, H, W = 4, 32, 8, 8

    x = jax.random.normal(k_x, (B, C, H, W), jnp.float32)
    params = init_params(k_p, C)
    ref = ref_forward(x, params)

    # 1) f32-matmul path: tight structural verification against the reference
    #    (tolerance absorbs tanh-GELU + approx-reciprocal vs exact reference).
    out_f32 = jax.block_until_ready(
        self_attention_pallas(x, params, matmul_dtype=jnp.float32))
    assert out_f32.shape == (B, C, H, W), out_f32.shape
    err32 = float(jnp.max(jnp.abs(out_f32 - ref)))
    assert err32 < 5e-3, f"f32-path max abs err {err32}"

    # 2) default bf16-matmul (MXU-native) perf path: looser tolerance for bf16
    #    operand rounding across 4 chained matmul layers.
    out = jax.block_until_ready(self_attention_pallas(x, params))
    assert out.shape == (B, C, H, W), out.shape
    errbf = float(jnp.max(jnp.abs(out - ref)))
    assert errbf < 1e-1, f"bf16-path max abs err {errbf}"

    print("KERNEL_OK")
</pallas_src>

<mosaic_0001>
module attributes {stable_mosaic.version = 11 : i64} {
  func.func @_self_attn_kernel(%arg0: i32, %arg1: memref<2x64x32xf32, #tpu.memory_space<vmem>>, %arg2: memref<1x32xf32, #tpu.memory_space<vmem>>, %arg3: memref<1x32xf32, #tpu.memory_space<vmem>>, %arg4: memref<32x96xf32, #tpu.memory_space<vmem>>, %arg5: memref<1x96xf32, #tpu.memory_space<vmem>>, %arg6: memref<32x32xf32, #tpu.memory_space<vmem>>, %arg7: memref<1x32xf32, #tpu.memory_space<vmem>>, %arg8: memref<1x32xf32, #tpu.memory_space<vmem>>, %arg9: memref<1x32xf32, #tpu.memory_space<vmem>>, %arg10: memref<32x32xf32, #tpu.memory_space<vmem>>, %arg11: memref<1x32xf32, #tpu.memory_space<vmem>>, %arg12: memref<32x32xf32, #tpu.memory_space<vmem>>, %arg13: memref<1x32xf32, #tpu.memory_space<vmem>>, %arg14: memref<2x64x32xf32, #tpu.memory_space<vmem>>) attributes {dimension_semantics = [#tpu.dimension_semantics<parallel>], iteration_bounds = array<i64: 2>, scalar_prefetch = 0 : i64, scratch_operands = 0 : i64, tpu.core_type = #tpu.core_type<tc>, window_params = [{transform_indices = @transform_0, window_bounds = array<i64: 2, 64, 32>}, {pipeline_mode = #tpu.pipeline_mode<synchronous>, transform_indices = @transform_1, window_bounds = array<i64: 1, 32>}, {pipeline_mode = #tpu.pipeline_mode<synchronous>, transform_indices = @transform_2, window_bounds = array<i64: 1, 32>}, {pipeline_mode = #tpu.pipeline_mode<synchronous>, transform_indices = @transform_3, window_bounds = array<i64: 32, 96>}, {pipeline_mode = #tpu.pipeline_mode<synchronous>, transform_indices = @transform_4, window_bounds = array<i64: 1, 96>}, {pipeline_mode = #tpu.pipeline_mode<synchronous>, transform_indices = @transform_5, window_bounds = array<i64: 32, 32>}, {pipeline_mode = #tpu.pipeline_mode<synchronous>, transform_indices = @transform_6, window_bounds = array<i64: 1, 32>}, {pipeline_mode = #tpu.pipeline_mode<synchronous>, transform_indices = @transform_7, window_bounds = array<i64: 1, 32>}, {pipeline_mode = #tpu.pipeline_mode<synchronous>, transform_indices = @transform_8, window_bounds = array<i64: 1, 32>}, {pipeline_mode = #tpu.pipeline_mode<synchronous>, transform_indices = @transform_9, window_bounds = array<i64: 32, 32>}, {pipeline_mode = #tpu.pipeline_mode<synchronous>, transform_indices = @transform_10, window_bounds = array<i64: 1, 32>}, {pipeline_mode = #tpu.pipeline_mode<synchronous>, transform_indices = @transform_11, window_bounds = array<i64: 32, 32>}, {pipeline_mode = #tpu.pipeline_mode<synchronous>, transform_indices = @transform_12, window_bounds = array<i64: 1, 32>}, {transform_indices = @transform_13, window_bounds = array<i64: 2, 64, 32>}]} {
    %c0 = arith.constant 0 : index
    %c0_0 = arith.constant 0 : index
    %c0_1 = arith.constant 0 : index
    %0 = vector.load %arg1[%c0, %c0_0, %c0_1] : memref<2x64x32xf32, #tpu.memory_space<vmem>>, vector<2x64x32xf32>
    %1 = vector.shape_cast %0 : vector<2x64x32xf32> to vector<128x32xf32>
    %c0_2 = arith.constant 0 : index
    %c0_3 = arith.constant 0 : index
    %2 = vector.load %arg2[%c0_2, %c0_3] : memref<1x32xf32, #tpu.memory_space<vmem>>, vector<1x32xf32>
    %c0_4 = arith.constant 0 : index
    %c0_5 = arith.constant 0 : index
    %3 = vector.load %arg3[%c0_4, %c0_5] : memref<1x32xf32, #tpu.memory_space<vmem>>, vector<1x32xf32>
    %cst = arith.constant dense<0.000000e+00> : vector<128xf32>
    %4 = vector.multi_reduction <add>, %1, %cst [1] : vector<128x32xf32> to vector<128xf32>
    %5 = vector.shape_cast %4 : vector<128xf32> to vector<128x1xf32>
    %cst_6 = arith.constant 3.200000e+01 : f32
    %6 = vector.broadcast %cst_6 : f32 to vector<128x1xf32>
    %7 = arith.divf %5, %6 : vector<128x1xf32>
    %8 = vector.broadcast %7 : vector<128x1xf32> to vector<128x32xf32>
    %9 = arith.subf %1, %8 : vector<128x32xf32>
    %10 = arith.mulf %9, %9 : vector<128x32xf32>
    %cst_7 = arith.constant dense<0.000000e+00> : vector<128xf32>
    %11 = vector.multi_reduction <add>, %10, %cst_7 [1] : vector<128x32xf32> to vector<128xf32>
    %12 = vector.shape_cast %11 : vector<128xf32> to vector<128x1xf32>
    %cst_8 = arith.constant 3.200000e+01 : f32
    %13 = vector.broadcast %cst_8 : f32 to vector<128x1xf32>
    %14 = arith.divf %12, %13 : vector<128x1xf32>
    %15 = vector.broadcast %7 : vector<128x1xf32> to vector<128x32xf32>
    %16 = arith.subf %1, %15 : vector<128x32xf32>
    %cst_9 = arith.constant 9.99999974E-6 : f32
    %17 = vector.broadcast %cst_9 : f32 to vector<128x1xf32>
    %18 = arith.addf %14, %17 : vector<128x1xf32>
    %19 = math.rsqrt %18 : vector<128x1xf32>
    %20 = vector.broadcast %19 : vector<128x1xf32> to vector<128x32xf32>
    %21 = arith.mulf %16, %20 : vector<128x32xf32>
    %22 = vector.broadcast %2 : vector<1x32xf32> to vector<128x32xf32>
    %23 = arith.mulf %21, %22 : vector<128x32xf32>
    %24 = vector.broadcast %3 : vector<1x32xf32> to vector<128x32xf32>
    %25 = arith.addf %23, %24 : vector<128x32xf32>
    %c0_10 = arith.constant 0 : index
    %c0_11 = arith.constant 0 : index
    %26 = vector.load %arg4[%c0_10, %c0_11] : memref<32x96xf32, #tpu.memory_space<vmem>>, vector<32x96xf32>
    %cst_12 = arith.constant dense<0.000000e+00> : vector<128x96xf32>
    %27 = tpu.matmul %25, %26, %cst_12 {dimension_numbers = #tpu.dot_dimension_numbers<[1], [0], [0], [1], [0, 0, 1, 1], [], []>} : vector<128x32xf32>, vector<32x96xf32>, vector<128x96xf32> -> vector<128x96xf32>
    %c0_13 = arith.constant 0 : index
    %c0_14 = arith.constant 0 : index
    %28 = vector.load %arg5[%c0_13, %c0_14] : memref<1x96xf32, #tpu.memory_space<vmem>>, vector<1x96xf32>
    %29 = vector.broadcast %28 : vector<1x96xf32> to vector<128x96xf32>
    %30 = arith.addf %27, %29 : vector<128x96xf32>
    %31 = vector.extract_strided_slice %30 {offsets = [0, 0], sizes = [128, 32], strides = [1, 1]} : vector<128x96xf32> to vector<128x32xf32>
    %cst_15 = arith.constant 0.353553385 : f32
    %32 = vector.broadcast %cst_15 : f32 to vector<128x32xf32>
    %33 = arith.mulf %31, %32 : vector<128x32xf32>
    %34 = vector.extract_strided_slice %30 {offsets = [0, 32], sizes = [128, 32], strides = [1, 1]} : vector<128x96xf32> to vector<128x32xf32>
    %35 = vector.extract_strided_slice %30 {offsets = [0, 64], sizes = [128, 32], strides = [1, 1]} : vector<128x96xf32> to vector<128x32xf32>
    %c0_16 = arith.constant 0 : index
    %c0_17 = arith.constant 0 : index
    %36 = vector.load %arg6[%c0_16, %c0_17] : memref<32x32xf32, #tpu.memory_space<vmem>>, vector<32x32xf32>
    %cst_18 = arith.constant 0.000000e+00 : f32
    %37 = vector.broadcast %cst_18 : f32 to vector<64x32xf32>
    %38 = vector.extract_strided_slice %33 {offsets = [0, 0], sizes = [64, 8], strides = [1, 1]} : vector<128x32xf32> to vector<64x8xf32>
    %39 = vector.extract_strided_slice %34 {offsets = [0, 0], sizes = [64, 8], strides = [1, 1]} : vector<128x32xf32> to vector<64x8xf32>
    %40 = vector.extract_strided_slice %35 {offsets = [0, 0], sizes = [64, 8], strides = [1, 1]} : vector<128x32xf32> to vector<64x8xf32>
    %cst_19 = arith.constant dense<0.000000e+00> : vector<64x64xf32>
    %41 = tpu.matmul %38, %39, %cst_19 {dimension_numbers = #tpu.dot_dimension_numbers<[1], [1], [0], [0], [0, 0, 1, 0], [], []>} : vector<64x8xf32>, vector<64x8xf32>, vector<64x64xf32> -> vector<64x64xf32>
    %cst_20 = arith.constant dense<0xFF800000> : vector<64xf32>
    %42 = vector.multi_reduction <maximumf>, %41, %cst_20 [1] : vector<64x64xf32> to vector<64xf32>
    %43 = vector.shape_cast %42 : vector<64xf32> to vector<64x1xf32>
    %44 = vector.broadcast %43 : vector<64x1xf32> to vector<64x64xf32>
    %45 = arith.subf %41, %44 : vector<64x64xf32>
    %46 = math.exp %45 : vector<64x64xf32>
    %cst_21 = arith.constant dense<0.000000e+00> : vector<64xf32>
    %47 = vector.multi_reduction <add>, %46, %cst_21 [1] : vector<64x64xf32> to vector<64xf32>
    %48 = vector.shape_cast %47 : vector<64xf32> to vector<64x1xf32>
    %49 = tpu.reciprocal %48 {approx = true} : vector<64x1xf32> -> vector<64x1xf32>
    %50 = vector.broadcast %49 : vector<64x1xf32> to vector<64x64xf32>
    %51 = arith.mulf %46, %50 : vector<64x64xf32>
    %cst_22 = arith.constant dense<0.000000e+00> : vector<64x8xf32>
    %52 = tpu.matmul %51, %40, %cst_22 {dimension_numbers = #tpu.dot_dimension_numbers<[1], [0], [0], [1], [0, 0, 1, 1], [], []>} : vector<64x64xf32>, vector<64x8xf32>, vector<64x8xf32> -> vector<64x8xf32>
    %53 = vector.extract_strided_slice %36 {offsets = [0, 0], sizes = [8, 32], strides = [1, 1]} : vector<32x32xf32> to vector<8x32xf32>
    %cst_23 = arith.constant dense<0.000000e+00> : vector<64x32xf32>
    %54 = tpu.matmul %52, %53, %cst_23 {dimension_numbers = #tpu.dot_dimension_numbers<[1], [0], [0], [1], [0, 0, 1, 1], [], []>} : vector<64x8xf32>, vector<8x32xf32>, vector<64x32xf32> -> vector<64x32xf32>
    %55 = arith.addf %37, %54 : vector<64x32xf32>
    %56 = vector.extract_strided_slice %33 {offsets = [0, 8], sizes = [64, 8], strides = [1, 1]} : vector<128x32xf32> to vector<64x8xf32>
    %57 = vector.extract_strided_slice %34 {offsets = [0, 8], sizes = [64, 8], strides = [1, 1]} : vector<128x32xf32> to vector<64x8xf32>
    %58 = vector.extract_strided_slice %35 {offsets = [0, 8], sizes = [64, 8], strides = [1, 1]} : vector<128x32xf32> to vector<64x8xf32>
    %cst_24 = arith.constant dense<0.000000e+00> : vector<64x64xf32>
    %59 = tpu.matmul %56, %57, %cst_24 {dimension_numbers = #tpu.dot_dimension_numbers<[1], [1], [0], [0], [0, 0, 1, 0], [], []>} : vector<64x8xf32>, vector<64x8xf32>, vector<64x64xf32> -> vector<64x64xf32>
    %cst_25 = arith.constant dense<0xFF800000> : vector<64xf32>
    %60 = vector.multi_reduction <maximumf>, %59, %cst_25 [1] : vector<64x64xf32> to vector<64xf32>
    %61 = vector.shape_cast %60 : vector<64xf32> to vector<64x1xf32>
    %62 = vector.broadcast %61 : vector<64x1xf32> to vector<64x64xf32>
    %63 = arith.subf %59, %62 : vector<64x64xf32>
    %64 = math.exp %63 : vector<64x64xf32>
    %cst_26 = arith.constant dense<0.000000e+00> : vector<64xf32>
    %65 = vector.multi_reduction <add>, %64, %cst_26 [1] : vector<64x64xf32> to vector<64xf32>
    %66 = vector.shape_cast %65 : vector<64xf32> to vector<64x1xf32>
    %67 = tpu.reciprocal %66 {approx = true} : vector<64x1xf32> -> vector<64x1xf32>
    %68 = vector.broadcast %67 : vector<64x1xf32> to vector<64x64xf32>
    %69 = arith.mulf %64, %68 : vector<64x64xf32>
    %cst_27 = arith.constant dense<0.000000e+00> : vector<64x8xf32>
    %70 = tpu.matmul %69, %58, %cst_27 {dimension_numbers = #tpu.dot_dimension_numbers<[1], [0], [0], [1], [0, 0, 1, 1], [], []>} : vector<64x64xf32>, vector<64x8xf32>, vector<64x8xf32> -> vector<64x8xf32>
    %71 = vector.extract_strided_slice %36 {offsets = [8, 0], sizes = [8, 32], strides = [1, 1]} : vector<32x32xf32> to vector<8x32xf32>
    %cst_28 = arith.constant dense<0.000000e+00> : vector<64x32xf32>
    %72 = tpu.matmul %70, %71, %cst_28 {dimension_numbers = #tpu.dot_dimension_numbers<[1], [0], [0], [1], [0, 0, 1, 1], [], []>} : vector<64x8xf32>, vector<8x32xf32>, vector<64x32xf32> -> vector<64x32xf32>
    %73 = arith.addf %55, %72 : vector<64x32xf32>
    %74 = vector.extract_strided_slice %33 {offsets = [0, 16], sizes = [64, 8], strides = [1, 1]} : vector<128x32xf32> to vector<64x8xf32>
    %75 = vector.extract_strided_slice %34 {offsets = [0, 16], sizes = [64, 8], strides = [1, 1]} : vector<128x32xf32> to vector<64x8xf32>
    %76 = vector.extract_strided_slice %35 {offsets = [0, 16], sizes = [64, 8], strides = [1, 1]} : vector<128x32xf32> to vector<64x8xf32>
    %cst_29 = arith.constant dense<0.000000e+00> : vector<64x64xf32>
    %77 = tpu.matmul %74, %75, %cst_29 {dimension_numbers = #tpu.dot_dimension_numbers<[1], [1], [0], [0], [0, 0, 1, 0], [], []>} : vector<64x8xf32>, vector<64x8xf32>, vector<64x64xf32> -> vector<64x64xf32>
    %cst_30 = arith.constant dense<0xFF800000> : vector<64xf32>
    %78 = vector.multi_reduction <maximumf>, %77, %cst_30 [1] : vector<64x64xf32> to vector<64xf32>
    %79 = vector.shape_cast %78 : vector<64xf32> to vector<64x1xf32>
    %80 = vector.broadcast %79 : vector<64x1xf32> to vector<64x64xf32>
    %81 = arith.subf %77, %80 : vector<64x64xf32>
    %82 = math.exp %81 : vector<64x64xf32>
    %cst_31 = arith.constant dense<0.000000e+00> : vector<64xf32>
    %83 = vector.multi_reduction <add>, %82, %cst_31 [1] : vector<64x64xf32> to vector<64xf32>
    %84 = vector.shape_cast %83 : vector<64xf32> to vector<64x1xf32>
    %85 = tpu.reciprocal %84 {approx = true} : vector<64x1xf32> -> vector<64x1xf32>
    %86 = vector.broadcast %85 : vector<64x1xf32> to vector<64x64xf32>
    %87 = arith.mulf %82, %86 : vector<64x64xf32>
    %cst_32 = arith.constant dense<0.000000e+00> : vector<64x8xf32>
    %88 = tpu.matmul %87, %76, %cst_32 {dimension_numbers = #tpu.dot_dimension_numbers<[1], [0], [0], [1], [0, 0, 1, 1], [], []>} : vector<64x64xf32>, vector<64x8xf32>, vector<64x8xf32> -> vector<64x8xf32>
    %89 = vector.extract_strided_slice %36 {offsets = [16, 0], sizes = [8, 32], strides = [1, 1]} : vector<32x32xf32> to vector<8x32xf32>
    %cst_33 = arith.constant dense<0.000000e+00> : vector<64x32xf32>
    %90 = tpu.matmul %88, %89, %cst_33 {dimension_numbers = #tpu.dot_dimension_numbers<[1], [0], [0], [1], [0, 0, 1, 1], [], []>} : vector<64x8xf32>, vector<8x32xf32>, vector<64x32xf32> -> vector<64x32xf32>
    %91 = arith.addf %73, %90 : vector<64x32xf32>
    %92 = vector.extract_strided_slice %33 {offsets = [0, 24], sizes = [64, 8], strides = [1, 1]} : vector<128x32xf32> to vector<64x8xf32>
    %93 = vector.extract_strided_slice %34 {offsets = [0, 24], sizes = [64, 8], strides = [1, 1]} : vector<128x32xf32> to vector<64x8xf32>
    %94 = vector.extract_strided_slice %35 {offsets = [0, 24], sizes = [64, 8], strides = [1, 1]} : vector<128x32xf32> to vector<64x8xf32>
    %cst_34 = arith.constant dense<0.000000e+00> : vector<64x64xf32>
    %95 = tpu.matmul %92, %93, %cst_34 {dimension_numbers = #tpu.dot_dimension_numbers<[1], [1], [0], [0], [0, 0, 1, 0], [], []>} : vector<64x8xf32>, vector<64x8xf32>, vector<64x64xf32> -> vector<64x64xf32>
    %cst_35 = arith.constant dense<0xFF800000> : vector<64xf32>
    %96 = vector.multi_reduction <maximumf>, %95, %cst_35 [1] : vector<64x64xf32> to vector<64xf32>
    %97 = vector.shape_cast %96 : vector<64xf32> to vector<64x1xf32>
    %98 = vector.broadcast %97 : vector<64x1xf32> to vector<64x64xf32>
    %99 = arith.subf %95, %98 : vector<64x64xf32>
    %100 = math.exp %99 : vector<64x64xf32>
    %cst_36 = arith.constant dense<0.000000e+00> : vector<64xf32>
    %101 = vector.multi_reduction <add>, %100, %cst_36 [1] : vector<64x64xf32> to vector<64xf32>
    %102 = vector.shape_cast %101 : vector<64xf32> to vector<64x1xf32>
    %103 = tpu.reciprocal %102 {approx = true} : vector<64x1xf32> -> vector<64x1xf32>
    %104 = vector.broadcast %103 : vector<64x1xf32> to vector<64x64xf32>
    %105 = arith.mulf %100, %104 : vector<64x64xf32>
    %cst_37 = arith.constant dense<0.000000e+00> : vector<64x8xf32>
    %106 = tpu.matmul %105, %94, %cst_37 {dimension_numbers = #tpu.dot_dimension_numbers<[1], [0], [0], [1], [0, 0, 1, 1], [], []>} : vector<64x64xf32>, vector<64x8xf32>, vector<64x8xf32> -> vector<64x8xf32>
    %107 = vector.extract_strided_slice %36 {offsets = [24, 0], sizes = [8, 32], strides = [1, 1]} : vector<32x32xf32> to vector<8x32xf32>
    %cst_38 = arith.constant dense<0.000000e+00> : vector<64x32xf32>
    %108 = tpu.matmul %106, %107, %cst_38 {dimension_numbers = #tpu.dot_dimension_numbers<[1], [0], [0], [1], [0, 0, 1, 1], [], []>} : vector<64x8xf32>, vector<8x32xf32>, vector<64x32xf32> -> vector<64x32xf32>
    %109 = arith.addf %91, %108 : vector<64x32xf32>
    %cst_39 = arith.constant 0.000000e+00 : f32
    %110 = vector.broadcast %cst_39 : f32 to vector<64x32xf32>
    %111 = vector.extract_strided_slice %33 {offsets = [64, 0], sizes = [64, 8], strides = [1, 1]} : vector<128x32xf32> to vector<64x8xf32>
    %112 = vector.extract_strided_slice %34 {offsets = [64, 0], sizes = [64, 8], strides = [1, 1]} : vector<128x32xf32> to vector<64x8xf32>
    %113 = vector.extract_strided_slice %35 {offsets = [64, 0], sizes = [64, 8], strides = [1, 1]} : vector<128x32xf32> to vector<64x8xf32>
    %cst_40 = arith.constant dense<0.000000e+00> : vector<64x64xf32>
    %114 = tpu.matmul %111, %112, %cst_40 {dimension_numbers = #tpu.dot_dimension_numbers<[1], [1], [0], [0], [0, 0, 1, 0], [], []>} : vector<64x8xf32>, vector<64x8xf32>, vector<64x64xf32> -> vector<64x64xf32>
    %cst_41 = arith.constant dense<0xFF800000> : vector<64xf32>
    %115 = vector.multi_reduction <maximumf>, %114, %cst_41 [1] : vector<64x64xf32> to vector<64xf32>
    %116 = vector.shape_cast %115 : vector<64xf32> to vector<64x1xf32>
    %117 = vector.broadcast %116 : vector<64x1xf32> to vector<64x64xf32>
    %118 = arith.subf %114, %117 : vector<64x64xf32>
    %119 = math.exp %118 : vector<64x64xf32>
    %cst_42 = arith.constant dense<0.000000e+00> : vector<64xf32>
    %120 = vector.multi_reduction <add>, %119, %cst_42 [1] : vector<64x64xf32> to vector<64xf32>
    %121 = vector.shape_cast %120 : vector<64xf32> to vector<64x1xf32>
    %122 = tpu.reciprocal %121 {approx = true} : vector<64x1xf32> -> vector<64x1xf32>
    %123 = vector.broadcast %122 : vector<64x1xf32> to vector<64x64xf32>
    %124 = arith.mulf %119, %123 : vector<64x64xf32>
    %cst_43 = arith.constant dense<0.000000e+00> : vector<64x8xf32>
    %125 = tpu.matmul %124, %113, %cst_43 {dimension_numbers = #tpu.dot_dimension_numbers<[1], [0], [0], [1], [0, 0, 1, 1], [], []>} : vector<64x64xf32>, vector<64x8xf32>, vector<64x8xf32> -> vector<64x8xf32>
    %126 = vector.extract_strided_slice %36 {offsets = [0, 0], sizes = [8, 32], strides = [1, 1]} : vector<32x32xf32> to vector<8x32xf32>
    %cst_44 = arith.constant dense<0.000000e+00> : vector<64x32xf32>
    %127 = tpu.matmul %125, %126, %cst_44 {dimension_numbers = #tpu.dot_dimension_numbers<[1], [0], [0], [1], [0, 0, 1, 1], [], []>} : vector<64x8xf32>, vector<8x32xf32>, vector<64x32xf32> -> vector<64x32xf32>
    %128 = arith.addf %110, %127 : vector<64x32xf32>
    %129 = vector.extract_strided_slice %33 {offsets = [64, 8], sizes = [64, 8], strides = [1, 1]} : vector<128x32xf32> to vector<64x8xf32>
    %130 = vector.extract_strided_slice %34 {offsets = [64, 8], sizes = [64, 8], strides = [1, 1]} : vector<128x32xf32> to vector<64x8xf32>
    %131 = vector.extract_strided_slice %35 {offsets = [64, 8], sizes = [64, 8], strides = [1, 1]} : vector<128x32xf32> to vector<64x8xf32>
    %cst_45 = arith.constant dense<0.000000e+00> : vector<64x64xf32>
    %132 = tpu.matmul %129, %130, %cst_45 {dimension_numbers = #tpu.dot_dimension_numbers<[1], [1], [0], [0], [0, 0, 1, 0], [], []>} : vector<64x8xf32>, vector<64x8xf32>, vector<64x64xf32> -> vector<64x64xf32>
    %cst_46 = arith.constant dense<0xFF800000> : vector<64xf32>
    %133 = vector.multi_reduction <maximumf>, %132, %cst_46 [1] : vector<64x64xf32> to vector<64xf32>
    %134 = vector.shape_cast %133 : vector<64xf32> to vector<64x1xf32>
    %135 = vector.broadcast %134 : vector<64x1xf32> to vector<64x64xf32>
    %136 = arith.subf %132, %135 : vector<64x64xf32>
    %137 = math.exp %136 : vector<64x64xf32>
    %cst_47 = arith.constant dense<0.000000e+00> : vector<64xf32>
    %138 = vector.multi_reduction <add>, %137, %cst_47 [1] : vector<64x64xf32> to vector<64xf32>
    %139 = vector.shape_cast %138 : vector<64xf32> to vector<64x1xf32>
    %140 = tpu.reciprocal %139 {approx = true} : vector<64x1xf32> -> vector<64x1xf32>
    %141 = vector.broadcast %140 : vector<64x1xf32> to vector<64x64xf32>
    %142 = arith.mulf %137, %141 : vector<64x64xf32>
    %cst_48 = arith.constant dense<0.000000e+00> : vector<64x8xf32>
    %143 = tpu.matmul %142, %131, %cst_48 {dimension_numbers = #tpu.dot_dimension_numbers<[1], [0], [0], [1], [0, 0, 1, 1], [], []>} : vector<64x64xf32>, vector<64x8xf32>, vector<64x8xf32> -> vector<64x8xf32>
    %144 = vector.extract_strided_slice %36 {offsets = [8, 0], sizes = [8, 32], strides = [1, 1]} : vector<32x32xf32> to vector<8x32xf32>
    %cst_49 = arith.constant dense<0.000000e+00> : vector<64x32xf32>
    %145 = tpu.matmul %143, %144, %cst_49 {dimension_numbers = #tpu.dot_dimension_numbers<[1], [0], [0], [1], [0, 0, 1, 1], [], []>} : vector<64x8xf32>, vector<8x32xf32>, vector<64x32xf32> -> vector<64x32xf32>
    %146 = arith.addf %128, %145 : vector<64x32xf32>
    %147 = vector.extract_strided_slice %33 {offsets = [64, 16], sizes = [64, 8], strides = [1, 1]} : vector<128x32xf32> to vector<64x8xf32>
    %148 = vector.extract_strided_slice %34 {offsets = [64, 16], sizes = [64, 8], strides = [1, 1]} : vector<128x32xf32> to vector<64x8xf32>
    %149 = vector.extract_strided_slice %35 {offsets = [64, 16], sizes = [64, 8], strides = [1, 1]} : vector<128x32xf32> to vector<64x8xf32>
    %cst_50 = arith.constant dense<0.000000e+00> : vector<64x64xf32>
    %150 = tpu.matmul %147, %148, %cst_50 {dimension_numbers = #tpu.dot_dimension_numbers<[1], [1], [0], [0], [0, 0, 1, 0], [], []>} : vector<64x8xf32>, vector<64x8xf32>, vector<64x64xf32> -> vector<64x64xf32>
    %cst_51 = arith.constant dense<0xFF800000> : vector<64xf32>
    %151 = vector.multi_reduction <maximumf>, %150, %cst_51 [1] : vector<64x64xf32> to vector<64xf32>
    %152 = vector.shape_cast %151 : vector<64xf32> to vector<64x1xf32>
    %153 = vector.broadcast %152 : vector<64x1xf32> to vector<64x64xf32>
    %154 = arith.subf %150, %153 : vector<64x64xf32>
    %155 = math.exp %154 : vector<64x64xf32>
    %cst_52 = arith.constant dense<0.000000e+00> : vector<64xf32>
    %156 = vector.multi_reduction <add>, %155, %cst_52 [1] : vector<64x64xf32> to vector<64xf32>
    %157 = vector.shape_cast %156 : vector<64xf32> to vector<64x1xf32>
    %158 = tpu.reciprocal %157 {approx = true} : vector<64x1xf32> -> vector<64x1xf32>
    %159 = vector.broadcast %158 : vector<64x1xf32> to vector<64x64xf32>
    %160 = arith.mulf %155, %159 : vector<64x64xf32>
    %cst_53 = arith.constant dense<0.000000e+00> : vector<64x8xf32>
    %161 = tpu.matmul %160, %149, %cst_53 {dimension_numbers = #tpu.dot_dimension_numbers<[1], [0], [0], [1], [0, 0, 1, 1], [], []>} : vector<64x64xf32>, vector<64x8xf32>, vector<64x8xf32> -> vector<64x8xf32>
    %162 = vector.extract_strided_slice %36 {offsets = [16, 0], sizes = [8, 32], strides = [1, 1]} : vector<32x32xf32> to vector<8x32xf32>
    %cst_54 = arith.constant dense<0.000000e+00> : vector<64x32xf32>
    %163 = tpu.matmul %161, %162, %cst_54 {dimension_numbers = #tpu.dot_dimension_numbers<[1], [0], [0], [1], [0, 0, 1, 1], [], []>} : vector<64x8xf32>, vector<8x32xf32>, vector<64x32xf32> -> vector<64x32xf32>
    %164 = arith.addf %146, %163 : vector<64x32xf32>
    %165 = vector.extract_strided_slice %33 {offsets = [64, 24], sizes = [64, 8], strides = [1, 1]} : vector<128x32xf32> to vector<64x8xf32>
    %166 = vector.extract_strided_slice %34 {offsets = [64, 24], sizes = [64, 8], strides = [1, 1]} : vector<128x32xf32> to vector<64x8xf32>
    %167 = vector.extract_strided_slice %35 {offsets = [64, 24], sizes = [64, 8], strides = [1, 1]} : vector<128x32xf32> to vector<64x8xf32>
    %cst_55 = arith.constant dense<0.000000e+00> : vector<64x64xf32>
    %168 = tpu.matmul %165, %166, %cst_55 {dimension_numbers = #tpu.dot_dimension_numbers<[1], [1], [0], [0], [0, 0, 1, 0], [], []>} : vector<64x8xf32>, vector<64x8xf32>, vector<64x64xf32> -> vector<64x64xf32>
    %cst_56 = arith.constant dense<0xFF800000> : vector<64xf32>
    %169 = vector.multi_reduction <maximumf>, %168, %cst_56 [1] : vector<64x64xf32> to vector<64xf32>
    %170 = vector.shape_cast %169 : vector<64xf32> to vector<64x1xf32>
    %171 = vector.broadcast %170 : vector<64x1xf32> to vector<64x64xf32>
    %172 = arith.subf %168, %171 : vector<64x64xf32>
    %173 = math.exp %172 : vector<64x64xf32>
    %cst_57 = arith.constant dense<0.000000e+00> : vector<64xf32>
    %174 = vector.multi_reduction <add>, %173, %cst_57 [1] : vector<64x64xf32> to vector<64xf32>
    %175 = vector.shape_cast %174 : vector<64xf32> to vector<64x1xf32>
    %176 = tpu.reciprocal %175 {approx = true} : vector<64x1xf32> -> vector<64x1xf32>
    %177 = vector.broadcast %176 : vector<64x1xf32> to vector<64x64xf32>
    %178 = arith.mulf %173, %177 : vector<64x64xf32>
    %cst_58 = arith.constant dense<0.000000e+00> : vector<64x8xf32>
    %179 = tpu.matmul %178, %167, %cst_58 {dimension_numbers = #tpu.dot_dimension_numbers<[1], [0], [0], [1], [0, 0, 1, 1], [], []>} : vector<64x64xf32>, vector<64x8xf32>, vector<64x8xf32> -> vector<64x8xf32>
    %180 = vector.extract_strided_slice %36 {offsets = [24, 0], sizes = [8, 32], strides = [1, 1]} : vector<32x32xf32> to vector<8x32xf32>
    %cst_59 = arith.constant dense<0.000000e+00> : vector<64x32xf32>
    %181 = tpu.matmul %179, %180, %cst_59 {dimension_numbers = #tpu.dot_dimension_numbers<[1], [0], [0], [1], [0, 0, 1, 1], [], []>} : vector<64x8xf32>, vector<8x32xf32>, vector<64x32xf32> -> vector<64x32xf32>
    %182 = arith.addf %164, %181 : vector<64x32xf32>
    %183 = tpu.concatenate %109, %182 in 0 : vector<64x32xf32>, vector<64x32xf32> -> vector<128x32xf32>
    %c0_60 = arith.constant 0 : index
    %c0_61 = arith.constant 0 : index
    %184 = vector.load %arg7[%c0_60, %c0_61] : memref<1x32xf32, #tpu.memory_space<vmem>>, vector<1x32xf32>
    %185 = vector.broadcast %184 : vector<1x32xf32> to vector<128x32xf32>
    %186 = arith.addf %183, %185 : vector<128x32xf32>
    %187 = arith.addf %186, %1 : vector<128x32xf32>
    %c0_62 = arith.constant 0 : index
    %c0_63 = arith.constant 0 : index
    %188 = vector.load %arg8[%c0_62, %c0_63] : memref<1x32xf32, #tpu.memory_space<vmem>>, vector<1x32xf32>
    %c0_64 = arith.constant 0 : index
    %c0_65 = arith.constant 0 : index
    %189 = vector.load %arg9[%c0_64, %c0_65] : memref<1x32xf32, #tpu.memory_space<vmem>>, vector<1x32xf32>
    %cst_66 = arith.constant dense<0.000000e+00> : vector<128xf32>
    %190 = vector.multi_reduction <add>, %187, %cst_66 [1] : vector<128x32xf32> to vector<128xf32>
    %191 = vector.shape_cast %190 : vector<128xf32> to vector<128x1xf32>
    %cst_67 = arith.constant 3.200000e+01 : f32
    %192 = vector.broadcast %cst_67 : f32 to vector<128x1xf32>
    %193 = arith.divf %191, %192 : vector<128x1xf32>
    %194 = vector.broadcast %193 : vector<128x1xf32> to vector<128x32xf32>
    %195 = arith.subf %187, %194 : vector<128x32xf32>
    %196 = arith.mulf %195, %195 : vector<128x32xf32>
    %cst_68 = arith.constant dense<0.000000e+00> : vector<128xf32>
    %197 = vector.multi_reduction <add>, %196, %cst_68 [1] : vector<128x32xf32> to vector<128xf32>
    %198 = vector.shape_cast %197 : vector<128xf32> to vector<128x1xf32>
    %cst_69 = arith.constant 3.200000e+01 : f32
    %199 = vector.broadcast %cst_69 : f32 to vector<128x1xf32>
    %200 = arith.divf %198, %199 : vector<128x1xf32>
    %201 = vector.broadcast %193 : vector<128x1xf32> to vector<128x32xf32>
    %202 = arith.subf %187, %201 : vector<128x32xf32>
    %cst_70 = arith.constant 9.99999974E-6 : f32
    %203 = vector.broadcast %cst_70 : f32 to vector<128x1xf32>
    %204 = arith.addf %200, %203 : vector<128x1xf32>
    %205 = math.rsqrt %204 : vector<128x1xf32>
    %206 = vector.broadcast %205 : vector<128x1xf32> to vector<128x32xf32>
    %207 = arith.mulf %202, %206 : vector<128x32xf32>
    %208 = vector.broadcast %188 : vector<1x32xf32> to vector<128x32xf32>
    %209 = arith.mulf %207, %208 : vector<128x32xf32>
    %210 = vector.broadcast %189 : vector<1x32xf32> to vector<128x32xf32>
    %211 = arith.addf %209, %210 : vector<128x32xf32>
    %c0_71 = arith.constant 0 : index
    %c0_72 = arith.constant 0 : index
    %212 = vector.load %arg10[%c0_71, %c0_72] : memref<32x32xf32, #tpu.memory_space<vmem>>, vector<32x32xf32>
    %cst_73 = arith.constant dense<0.000000e+00> : vector<128x32xf32>
    %213 = tpu.matmul %211, %212, %cst_73 {dimension_numbers = #tpu.dot_dimension_numbers<[1], [0], [0], [1], [0, 0, 1, 1], [], []>} : vector<128x32xf32>, vector<32x32xf32>, vector<128x32xf32> -> vector<128x32xf32>
    %c0_74 = arith.constant 0 : index
    %c0_75 = arith.constant 0 : index
    %214 = vector.load %arg11[%c0_74, %c0_75] : memref<1x32xf32, #tpu.memory_space<vmem>>, vector<1x32xf32>
    %215 = vector.broadcast %214 : vector<1x32xf32> to vector<128x32xf32>
    %216 = arith.addf %213, %215 : vector<128x32xf32>
    %cst_76 = arith.constant 5.000000e-01 : f32
    %217 = vector.broadcast %cst_76 : f32 to vector<128x32xf32>
    %218 = arith.mulf %217, %216 : vector<128x32xf32>
    %cst_77 = arith.constant 4.471500e-02 : f32
    %219 = vector.broadcast %cst_77 : f32 to vector<128x32xf32>
    %220 = arith.mulf %219, %216 : vector<128x32xf32>
    %221 = arith.mulf %220, %216 : vector<128x32xf32>
    %222 = arith.mulf %221, %216 : vector<128x32xf32>
    %223 = arith.addf %216, %222 : vector<128x32xf32>
    %cst_78 = arith.constant 0.797884583 : f32
    %224 = vector.broadcast %cst_78 : f32 to vector<128x32xf32>
    %225 = arith.mulf %224, %223 : vector<128x32xf32>
    %226 = math.tanh %225 : vector<128x32xf32>
    %cst_79 = arith.constant 1.000000e+00 : f32
    %227 = vector.broadcast %cst_79 : f32 to vector<128x32xf32>
    %228 = arith.addf %227, %226 : vector<128x32xf32>
    %229 = arith.mulf %218, %228 : vector<128x32xf32>
    %c0_80 = arith.constant 0 : index
    %c0_81 = arith.constant 0 : index
    %230 = vector.load %arg12[%c0_80, %c0_81] : memref<32x32xf32, #tpu.memory_space<vmem>>, vector<32x32xf32>
    %cst_82 = arith.constant dense<0.000000e+00> : vector<128x32xf32>
    %231 = tpu.matmul %229, %230, %cst_82 {dimension_numbers = #tpu.dot_dimension_numbers<[1], [0], [0], [1], [0, 0, 1, 1], [], []>} : vector<128x32xf32>, vector<32x32xf32>, vector<128x32xf32> -> vector<128x32xf32>
    %c0_83 = arith.constant 0 : index
    %c0_84 = arith.constant 0 : index
    %232 = vector.load %arg13[%c0_83, %c0_84] : memref<1x32xf32, #tpu.memory_space<vmem>>, vector<1x32xf32>
    %233 = vector.broadcast %232 : vector<1x32xf32> to vector<128x32xf32>
    %234 = arith.addf %231, %233 : vector<128x32xf32>
    %235 = arith.addf %187, %234 : vector<128x32xf32>
    %236 = vector.shape_cast %235 : vector<128x32xf32> to vector<2x64x32xf32>
    %c0_85 = arith.constant 0 : index
    %c0_86 = arith.constant 0 : index
    %c0_87 = arith.constant 0 : index
    %237 = vector.load %arg14[%c0_85, %c0_86, %c0_87] : memref<2x64x32xf32, #tpu.memory_space<vmem>>, vector<2x64x32xf32>
    tpu.vector_store %arg14[%c0_85, %c0_86, %c0_87], %236 {strides = array<i32>} : memref<2x64x32xf32, #tpu.memory_space<vmem>>, vector<2x64x32xf32>,
    return
  }
  func.func @transform_0(%arg0: i32) -> (i32, i32, i32) {
    %c0_i32 = arith.constant 0 : i32
    %c0_i32_0 = arith.constant 0 : i32
    %c0_i32_1 = arith.constant 0 : i32
    return %arg0, %c0_i32, %c0_i32_0 : i32, i32, i32
  }
  func.func @transform_1(%arg0: i32) -> (i32, i32) {
    %c0_i32 = arith.constant 0 : i32
    %c0_i32_0 = arith.constant 0 : i32
    %c0_i32_1 = arith.constant 0 : i32
    return %c0_i32, %c0_i32_0 : i32, i32
  }
  func.func @transform_2(%arg0: i32) -> (i32, i32) {
    %c0_i32 = arith.constant 0 : i32
    %c0_i32_0 = arith.constant 0 : i32
    %c0_i32_1 = arith.constant 0 : i32
    return %c0_i32, %c0_i32_0 : i32, i32
  }
  func.func @transform_3(%arg0: i32) -> (i32, i32) {
    %c0_i32 = arith.constant 0 : i32
    %c0_i32_0 = arith.constant 0 : i32
    %c0_i32_1 = arith.constant 0 : i32
    return %c0_i32, %c0_i32_0 : i32, i32
  }
  func.func @transform_4(%arg0: i32) -> (i32, i32) {
    %c0_i32 = arith.constant 0 : i32
    %c0_i32_0 = arith.constant 0 : i32
    %c0_i32_1 = arith.constant 0 : i32
    return %c0_i32, %c0_i32_0 : i32, i32
  }
  func.func @transform_5(%arg0: i32) -> (i32, i32) {
    %c0_i32 = arith.constant 0 : i32
    %c0_i32_0 = arith.constant 0 : i32
    %c0_i32_1 = arith.constant 0 : i32
    return %c0_i32, %c0_i32_0 : i32, i32
  }
  func.func @transform_6(%arg0: i32) -> (i32, i32) {
    %c0_i32 = arith.constant 0 : i32
    %c0_i32_0 = arith.constant 0 : i32
    %c0_i32_1 = arith.constant 0 : i32
    return %c0_i32, %c0_i32_0 : i32, i32
  }
  func.func @transform_7(%arg0: i32) -> (i32, i32) {
    %c0_i32 = arith.constant 0 : i32
    %c0_i32_0 = arith.constant 0 : i32
    %c0_i32_1 = arith.constant 0 : i32
    return %c0_i32, %c0_i32_0 : i32, i32
  }
  func.func @transform_8(%arg0: i32) -> (i32, i32) {
    %c0_i32 = arith.constant 0 : i32
    %c0_i32_0 = arith.constant 0 : i32
    %c0_i32_1 = arith.constant 0 : i32
    return %c0_i32, %c0_i32_0 : i32, i32
  }
  func.func @transform_9(%arg0: i32) -> (i32, i32) {
    %c0_i32 = arith.constant 0 : i32
    %c0_i32_0 = arith.constant 0 : i32
    %c0_i32_1 = arith.constant 0 : i32
    return %c0_i32, %c0_i32_0 : i32, i32
  }
  func.func @transform_10(%arg0: i32) -> (i32, i32) {
    %c0_i32 = arith.constant 0 : i32
    %c0_i32_0 = arith.constant 0 : i32
    %c0_i32_1 = arith.constant 0 : i32
    return %c0_i32, %c0_i32_0 : i32, i32
  }
  func.func @transform_11(%arg0: i32) -> (i32, i32) {
    %c0_i32 = arith.constant 0 : i32
    %c0_i32_0 = arith.constant 0 : i32
    %c0_i32_1 = arith.constant 0 : i32
    return %c0_i32, %c0_i32_0 : i32, i32
  }
  func.func @transform_12(%arg0: i32) -> (i32, i32) {
    %c0_i32 = arith.constant 0 : i32
    %c0_i32_0 = arith.constant 0 : i32
    %c0_i32_1 = arith.constant 0 : i32
    return %c0_i32, %c0_i32_0 : i32, i32
  }
  func.func @transform_13(%arg0: i32) -> (i32, i32, i32) {
    %c0_i32 = arith.constant 0 : i32
    %c0_i32_0 = arith.constant 0 : i32
    %c0_i32_1 = arith.constant 0 : i32
    return %arg0, %c0_i32, %c0_i32_0 : i32, i32, i32
  }
}

module attributes {stable_mosaic.version = 11 : i64} {
  func.func @_self_attn_kernel(%arg0: i32, %arg1: memref<2x64x32xf32, #tpu.memory_space<vmem>>, %arg2: memref<1x32xf32, #tpu.memory_space<vmem>>, %arg3: memref<1x32xf32, #tpu.memory_space<vmem>>, %arg4: memref<32x96xf32, #tpu.memory_space<vmem>>, %arg5: memref<1x96xf32, #tpu.memory_space<vmem>>, %arg6: memref<32x32xf32, #tpu.memory_space<vmem>>, %arg7: memref<1x32xf32, #tpu.memory_space<vmem>>, %arg8: memref<1x32xf32, #tpu.memory_space<vmem>>, %arg9: memref<1x32xf32, #tpu.memory_space<vmem>>, %arg10: memref<32x32xf32, #tpu.memory_space<vmem>>, %arg11: memref<1x32xf32, #tpu.memory_space<vmem>>, %arg12: memref<32x32xf32, #tpu.memory_space<vmem>>, %arg13: memref<1x32xf32, #tpu.memory_space<vmem>>, %arg14: memref<2x64x32xf32, #tpu.memory_space<vmem>>) attributes {dimension_semantics = [#tpu.dimension_semantics<parallel>], iteration_bounds = array<i64: 2>, scalar_prefetch = 0 : i64, scratch_operands = 0 : i64, tpu.core_type = #tpu.core_type<tc>, window_params = [{transform_indices = @transform_0, window_bounds = array<i64: 2, 64, 32>}, {pipeline_mode = #tpu.pipeline_mode<synchronous>, transform_indices = @transform_1, window_bounds = array<i64: 1, 32>}, {pipeline_mode = #tpu.pipeline_mode<synchronous>, transform_indices = @transform_2, window_bounds = array<i64: 1, 32>}, {pipeline_mode = #tpu.pipeline_mode<synchronous>, transform_indices = @transform_3, window_bounds = array<i64: 32, 96>}, {pipeline_mode = #tpu.pipeline_mode<synchronous>, transform_indices = @transform_4, window_bounds = array<i64: 1, 96>}, {pipeline_mode = #tpu.pipeline_mode<synchronous>, transform_indices = @transform_5, window_bounds = array<i64: 32, 32>}, {pipeline_mode = #tpu.pipeline_mode<synchronous>, transform_indices = @transform_6, window_bounds = array<i64: 1, 32>}, {pipeline_mode = #tpu.pipeline_mode<synchronous>, transform_indices = @transform_7, window_bounds = array<i64: 1, 32>}, {pipeline_mode = #tpu.pipeline_mode<synchronous>, transform_indices = @transform_8, window_bounds = array<i64: 1, 32>}, {pipeline_mode = #tpu.pipeline_mode<synchronous>, transform_indices = @transform_9, window_bounds = array<i64: 32, 32>}, {pipeline_mode = #tpu.pipeline_mode<synchronous>, transform_indices = @transform_10, window_bounds = array<i64: 1, 32>}, {pipeline_mode = #tpu.pipeline_mode<synchronous>, transform_indices = @transform_11, window_bounds = array<i64: 32, 32>}, {pipeline_mode = #tpu.pipeline_mode<synchronous>, transform_indices = @transform_12, window_bounds = array<i64: 1, 32>}, {transform_indices = @transform_13, window_bounds = array<i64: 2, 64, 32>}]} {
    %c0 = arith.constant 0 : index
    %c0_0 = arith.constant 0 : index
    %c0_1 = arith.constant 0 : index
    %0 = vector.load %arg1[%c0, %c0_0, %c0_1] : memref<2x64x32xf32, #tpu.memory_space<vmem>>, vector<2x64x32xf32>
    %1 = vector.shape_cast %0 : vector<2x64x32xf32> to vector<128x32xf32>
    %c0_2 = arith.constant 0 : index
    %c0_3 = arith.constant 0 : index
    %2 = vector.load %arg2[%c0_2, %c0_3] : memref<1x32xf32, #tpu.memory_space<vmem>>, vector<1x32xf32>
    %c0_4 = arith.constant 0 : index
    %c0_5 = arith.constant 0 : index
    %3 = vector.load %arg3[%c0_4, %c0_5] : memref<1x32xf32, #tpu.memory_space<vmem>>, vector<1x32xf32>
    %cst = arith.constant dense<0.000000e+00> : vector<128xf32>
    %4 = vector.multi_reduction <add>, %1, %cst [1] : vector<128x32xf32> to vector<128xf32>
    %5 = vector.shape_cast %4 : vector<128xf32> to vector<128x1xf32>
    %cst_6 = arith.constant 3.200000e+01 : f32
    %6 = vector.broadcast %cst_6 : f32 to vector<128x1xf32>
    %7 = arith.divf %5, %6 : vector<128x1xf32>
    %8 = vector.broadcast %7 : vector<128x1xf32> to vector<128x32xf32>
    %9 = arith.subf %1, %8 : vector<128x32xf32>
    %10 = arith.mulf %9, %9 : vector<128x32xf32>
    %cst_7 = arith.constant dense<0.000000e+00> : vector<128xf32>
    %11 = vector.multi_reduction <add>, %10, %cst_7 [1] : vector<128x32xf32> to vector<128xf32>
    %12 = vector.shape_cast %11 : vector<128xf32> to vector<128x1xf32>
    %cst_8 = arith.constant 3.200000e+01 : f32
    %13 = vector.broadcast %cst_8 : f32 to vector<128x1xf32>
    %14 = arith.divf %12, %13 : vector<128x1xf32>
    %15 = vector.broadcast %7 : vector<128x1xf32> to vector<128x32xf32>
    %16 = arith.subf %1, %15 : vector<128x32xf32>
    %cst_9 = arith.constant 9.99999974E-6 : f32
    %17 = vector.broadcast %cst_9 : f32 to vector<128x1xf32>
    %18 = arith.addf %14, %17 : vector<128x1xf32>
    %19 = math.rsqrt %18 : vector<128x1xf32>
    %20 = vector.broadcast %19 : vector<128x1xf32> to vector<128x32xf32>
    %21 = arith.mulf %16, %20 : vector<128x32xf32>
    %22 = vector.broadcast %2 : vector<1x32xf32> to vector<128x32xf32>
    %23 = arith.mulf %21, %22 : vector<128x32xf32>
    %24 = vector.broadcast %3 : vector<1x32xf32> to vector<128x32xf32>
    %25 = arith.addf %23, %24 : vector<128x32xf32>
    %c0_10 = arith.constant 0 : index
    %c0_11 = arith.constant 0 : index
    %26 = vector.load %arg4[%c0_10, %c0_11] : memref<32x96xf32, #tpu.memory_space<vmem>>, vector<32x96xf32>
    %cst_12 = arith.constant dense<0.000000e+00> : vector<128x96xf32>
    %27 = tpu.matmul %25, %26, %cst_12 {dimension_numbers = #tpu.dot_dimension_numbers<[1], [0], [0], [1], [0, 0, 1, 1], [], []>} : vector<128x32xf32>, vector<32x96xf32>, vector<128x96xf32> -> vector<128x96xf32>
    %c0_13 = arith.constant 0 : index
    %c0_14 = arith.constant 0 : index
    %28 = vector.load %arg5[%c0_13, %c0_14] : memref<1x96xf32, #tpu.memory_space<vmem>>, vector<1x96xf32>
    %29 = vector.broadcast %28 : vector<1x96xf32> to vector<128x96xf32>
    %30 = arith.addf %27, %29 : vector<128x96xf32>
    %31 = vector.extract_strided_slice %30 {offsets = [0, 0], sizes = [128, 32], strides = [1, 1]} : vector<128x96xf32> to vector<128x32xf32>
    %cst_15 = arith.constant 0.353553385 : f32
    %32 = vector.broadcast %cst_15 : f32 to vector<128x32xf32>
    %33 = arith.mulf %31, %32 : vector<128x32xf32>
    %34 = vector.extract_strided_slice %30 {offsets = [0, 32], sizes = [128, 32], strides = [1, 1]} : vector<128x96xf32> to vector<128x32xf32>
    %35 = vector.extract_strided_slice %30 {offsets = [0, 64], sizes = [128, 32], strides = [1, 1]} : vector<128x96xf32> to vector<128x32xf32>
    %c0_16 = arith.constant 0 : index
    %c0_17 = arith.constant 0 : index
    %36 = vector.load %arg6[%c0_16, %c0_17] : memref<32x32xf32, #tpu.memory_space<vmem>>, vector<32x32xf32>
    %cst_18 = arith.constant 0.000000e+00 : f32
    %37 = vector.broadcast %cst_18 : f32 to vector<64x32xf32>
    %38 = vector.extract_strided_slice %33 {offsets = [0, 0], sizes = [64, 8], strides = [1, 1]} : vector<128x32xf32> to vector<64x8xf32>
    %39 = vector.extract_strided_slice %34 {offsets = [0, 0], sizes = [64, 8], strides = [1, 1]} : vector<128x32xf32> to vector<64x8xf32>
    %40 = vector.extract_strided_slice %35 {offsets = [0, 0], sizes = [64, 8], strides = [1, 1]} : vector<128x32xf32> to vector<64x8xf32>
    %cst_19 = arith.constant dense<0.000000e+00> : vector<64x64xf32>
    %41 = tpu.matmul %38, %39, %cst_19 {dimension_numbers = #tpu.dot_dimension_numbers<[1], [1], [0], [0], [0, 0, 1, 0], [], []>} : vector<64x8xf32>, vector<64x8xf32>, vector<64x64xf32> -> vector<64x64xf32>
    %cst_20 = arith.constant dense<0xFF800000> : vector<64xf32>
    %42 = vector.multi_reduction <maximumf>, %41, %cst_20 [1] : vector<64x64xf32> to vector<64xf32>
    %43 = vector.shape_cast %42 : vector<64xf32> to vector<64x1xf32>
    %44 = vector.broadcast %43 : vector<64x1xf32> to vector<64x64xf32>
    %45 = arith.subf %41, %44 : vector<64x64xf32>
    %46 = math.exp %45 : vector<64x64xf32>
    %cst_21 = arith.constant dense<0.000000e+00> : vector<64xf32>
    %47 = vector.multi_reduction <add>, %46, %cst_21 [1] : vector<64x64xf32> to vector<64xf32>
    %48 = vector.shape_cast %47 : vector<64xf32> to vector<64x1xf32>
    %49 = tpu.reciprocal %48 {approx = true} : vector<64x1xf32> -> vector<64x1xf32>
    %50 = vector.broadcast %49 : vector<64x1xf32> to vector<64x64xf32>
    %51 = arith.mulf %46, %50 : vector<64x64xf32>
    %cst_22 = arith.constant dense<0.000000e+00> : vector<64x8xf32>
    %52 = tpu.matmul %51, %40, %cst_22 {dimension_numbers = #tpu.dot_dimension_numbers<[1], [0], [0], [1], [0, 0, 1, 1], [], []>} : vector<64x64xf32>, vector<64x8xf32>, vector<64x8xf32> -> vector<64x8xf32>
    %53 = vector.extract_strided_slice %36 {offsets = [0, 0], sizes = [8, 32], strides = [1, 1]} : vector<32x32xf32> to vector<8x32xf32>
    %cst_23 = arith.constant dense<0.000000e+00> : vector<64x32xf32>
    %54 = tpu.matmul %52, %53, %cst_23 {dimension_numbers = #tpu.dot_dimension_numbers<[1], [0], [0], [1], [0, 0, 1, 1], [], []>} : vector<64x8xf32>, vector<8x32xf32>, vector<64x32xf32> -> vector<64x32xf32>
    %55 = arith.addf %37, %54 : vector<64x32xf32>
    %56 = vector.extract_strided_slice %33 {offsets = [0, 8], sizes = [64, 8], strides = [1, 1]} : vector<128x32xf32> to vector<64x8xf32>
    %57 = vector.extract_strided_slice %34 {offsets = [0, 8], sizes = [64, 8], strides = [1, 1]} : vector<128x32xf32> to vector<64x8xf32>
    %58 = vector.extract_strided_slice %35 {offsets = [0, 8], sizes = [64, 8], strides = [1, 1]} : vector<128x32xf32> to vector<64x8xf32>
    %cst_24 = arith.constant dense<0.000000e+00> : vector<64x64xf32>
    %59 = tpu.matmul %56, %57, %cst_24 {dimension_numbers = #tpu.dot_dimension_numbers<[1], [1], [0], [0], [0, 0, 1, 0], [], []>} : vector<64x8xf32>, vector<64x8xf32>, vector<64x64xf32> -> vector<64x64xf32>
    %cst_25 = arith.constant dense<0xFF800000> : vector<64xf32>
    %60 = vector.multi_reduction <maximumf>, %59, %cst_25 [1] : vector<64x64xf32> to vector<64xf32>
    %61 = vector.shape_cast %60 : vector<64xf32> to vector<64x1xf32>
    %62 = vector.broadcast %61 : vector<64x1xf32> to vector<64x64xf32>
    %63 = arith.subf %59, %62 : vector<64x64xf32>
    %64 = math.exp %63 : vector<64x64xf32>
    %cst_26 = arith.constant dense<0.000000e+00> : vector<64xf32>
    %65 = vector.multi_reduction <add>, %64, %cst_26 [1] : vector<64x64xf32> to vector<64xf32>
    %66 = vector.shape_cast %65 : vector<64xf32> to vector<64x1xf32>
    %67 = tpu.reciprocal %66 {approx = true} : vector<64x1xf32> -> vector<64x1xf32>
    %68 = vector.broadcast %67 : vector<64x1xf32> to vector<64x64xf32>
    %69 = arith.mulf %64, %68 : vector<64x64xf32>
    %cst_27 = arith.constant dense<0.000000e+00> : vector<64x8xf32>
    %70 = tpu.matmul %69, %58, %cst_27 {dimension_numbers = #tpu.dot_dimension_numbers<[1], [0], [0], [1], [0, 0, 1, 1], [], []>} : vector<64x64xf32>, vector<64x8xf32>, vector<64x8xf32> -> vector<64x8xf32>
    %71 = vector.extract_strided_slice %36 {offsets = [8, 0], sizes = [8, 32], strides = [1, 1]} : vector<32x32xf32> to vector<8x32xf32>
    %cst_28 = arith.constant dense<0.000000e+00> : vector<64x32xf32>
    %72 = tpu.matmul %70, %71, %cst_28 {dimension_numbers = #tpu.dot_dimension_numbers<[1], [0], [0], [1], [0, 0, 1, 1], [], []>} : vector<64x8xf32>, vector<8x32xf32>, vector<64x32xf32> -> vector<64x32xf32>
    %73 = arith.addf %55, %72 : vector<64x32xf32>
    %74 = vector.extract_strided_slice %33 {offsets = [0, 16], sizes = [64, 8], strides = [1, 1]} : vector<128x32xf32> to vector<64x8xf32>
    %75 = vector.extract_strided_slice %34 {offsets = [0, 16], sizes = [64, 8], strides = [1, 1]} : vector<128x32xf32> to vector<64x8xf32>
    %76 = vector.extract_strided_slice %35 {offsets = [0, 16], sizes = [64, 8], strides = [1, 1]} : vector<128x32xf32> to vector<64x8xf32>
    %cst_29 = arith.constant dense<0.000000e+00> : vector<64x64xf32>
    %77 = tpu.matmul %74, %75, %cst_29 {dimension_numbers = #tpu.dot_dimension_numbers<[1], [1], [0], [0], [0, 0, 1, 0], [], []>} : vector<64x8xf32>, vector<64x8xf32>, vector<64x64xf32> -> vector<64x64xf32>
    %cst_30 = arith.constant dense<0xFF800000> : vector<64xf32>
    %78 = vector.multi_reduction <maximumf>, %77, %cst_30 [1] : vector<64x64xf32> to vector<64xf32>
    %79 = vector.shape_cast %78 : vector<64xf32> to vector<64x1xf32>
    %80 = vector.broadcast %79 : vector<64x1xf32> to vector<64x64xf32>
    %81 = arith.subf %77, %80 : vector<64x64xf32>
    %82 = math.exp %81 : vector<64x64xf32>
    %cst_31 = arith.constant dense<0.000000e+00> : vector<64xf32>
    %83 = vector.multi_reduction <add>, %82, %cst_31 [1] : vector<64x64xf32> to vector<64xf32>
    %84 = vector.shape_cast %83 : vector<64xf32> to vector<64x1xf32>
    %85 = tpu.reciprocal %84 {approx = true} : vector<64x1xf32> -> vector<64x1xf32>
    %86 = vector.broadcast %85 : vector<64x1xf32> to vector<64x64xf32>
    %87 = arith.mulf %82, %86 : vector<64x64xf32>
    %cst_32 = arith.constant dense<0.000000e+00> : vector<64x8xf32>
    %88 = tpu.matmul %87, %76, %cst_32 {dimension_numbers = #tpu.dot_dimension_numbers<[1], [0], [0], [1], [0, 0, 1, 1], [], []>} : vector<64x64xf32>, vector<64x8xf32>, vector<64x8xf32> -> vector<64x8xf32>
    %89 = vector.extract_strided_slice %36 {offsets = [16, 0], sizes = [8, 32], strides = [1, 1]} : vector<32x32xf32> to vector<8x32xf32>
    %cst_33 = arith.constant dense<0.000000e+00> : vector<64x32xf32>
    %90 = tpu.matmul %88, %89, %cst_33 {dimension_numbers = #tpu.dot_dimension_numbers<[1], [0], [0], [1], [0, 0, 1, 1], [], []>} : vector<64x8xf32>, vector<8x32xf32>, vector<64x32xf32> -> vector<64x32xf32>
    %91 = arith.addf %73, %90 : vector<64x32xf32>
    %92 = vector.extract_strided_slice %33 {offsets = [0, 24], sizes = [64, 8], strides = [1, 1]} : vector<128x32xf32> to vector<64x8xf32>
    %93 = vector.extract_strided_slice %34 {offsets = [0, 24], sizes = [64, 8], strides = [1, 1]} : vector<128x32xf32> to vector<64x8xf32>
    %94 = vector.extract_strided_slice %35 {offsets = [0, 24], sizes = [64, 8], strides = [1, 1]} : vector<128x32xf32> to vector<64x8xf32>
    %cst_34 = arith.constant dense<0.000000e+00> : vector<64x64xf32>
    %95 = tpu.matmul %92, %93, %cst_34 {dimension_numbers = #tpu.dot_dimension_numbers<[1], [1], [0], [0], [0, 0, 1, 0], [], []>} : vector<64x8xf32>, vector<64x8xf32>, vector<64x64xf32> -> vector<64x64xf32>
    %cst_35 = arith.constant dense<0xFF800000> : vector<64xf32>
    %96 = vector.multi_reduction <maximumf>, %95, %cst_35 [1] : vector<64x64xf32> to vector<64xf32>
    %97 = vector.shape_cast %96 : vector<64xf32> to vector<64x1xf32>
    %98 = vector.broadcast %97 : vector<64x1xf32> to vector<64x64xf32>
    %99 = arith.subf %95, %98 : vector<64x64xf32>
    %100 = math.exp %99 : vector<64x64xf32>
    %cst_36 = arith.constant dense<0.000000e+00> : vector<64xf32>
    %101 = vector.multi_reduction <add>, %100, %cst_36 [1] : vector<64x64xf32> to vector<64xf32>
    %102 = vector.shape_cast %101 : vector<64xf32> to vector<64x1xf32>
    %103 = tpu.reciprocal %102 {approx = true} : vector<64x1xf32> -> vector<64x1xf32>
    %104 = vector.broadcast %103 : vector<64x1xf32> to vector<64x64xf32>
    %105 = arith.mulf %100, %104 : vector<64x64xf32>
    %cst_37 = arith.constant dense<0.000000e+00> : vector<64x8xf32>
    %106 = tpu.matmul %105, %94, %cst_37 {dimension_numbers = #tpu.dot_dimension_numbers<[1], [0], [0], [1], [0, 0, 1, 1], [], []>} : vector<64x64xf32>, vector<64x8xf32>, vector<64x8xf32> -> vector<64x8xf32>
    %107 = vector.extract_strided_slice %36 {offsets = [24, 0], sizes = [8, 32], strides = [1, 1]} : vector<32x32xf32> to vector<8x32xf32>
    %cst_38 = arith.constant dense<0.000000e+00> : vector<64x32xf32>
    %108 = tpu.matmul %106, %107, %cst_38 {dimension_numbers = #tpu.dot_dimension_numbers<[1], [0], [0], [1], [0, 0, 1, 1], [], []>} : vector<64x8xf32>, vector<8x32xf32>, vector<64x32xf32> -> vector<64x32xf32>
    %109 = arith.addf %91, %108 : vector<64x32xf32>
    %cst_39 = arith.constant 0.000000e+00 : f32
    %110 = vector.broadcast %cst_39 : f32 to vector<64x32xf32>
    %111 = vector.extract_strided_slice %33 {offsets = [64, 0], sizes = [64, 8], strides = [1, 1]} : vector<128x32xf32> to vector<64x8xf32>
    %112 = vector.extract_strided_slice %34 {offsets = [64, 0], sizes = [64, 8], strides = [1, 1]} : vector<128x32xf32> to vector<64x8xf32>
    %113 = vector.extract_strided_slice %35 {offsets = [64, 0], sizes = [64, 8], strides = [1, 1]} : vector<128x32xf32> to vector<64x8xf32>
    %cst_40 = arith.constant dense<0.000000e+00> : vector<64x64xf32>
    %114 = tpu.matmul %111, %112, %cst_40 {dimension_numbers = #tpu.dot_dimension_numbers<[1], [1], [0], [0], [0, 0, 1, 0], [], []>} : vector<64x8xf32>, vector<64x8xf32>, vector<64x64xf32> -> vector<64x64xf32>
    %cst_41 = arith.constant dense<0xFF800000> : vector<64xf32>
    %115 = vector.multi_reduction <maximumf>, %114, %cst_41 [1] : vector<64x64xf32> to vector<64xf32>
    %116 = vector.shape_cast %115 : vector<64xf32> to vector<64x1xf32>
    %117 = vector.broadcast %116 : vector<64x1xf32> to vector<64x64xf32>
    %118 = arith.subf %114, %117 : vector<64x64xf32>
    %119 = math.exp %118 : vector<64x64xf32>
    %cst_42 = arith.constant dense<0.000000e+00> : vector<64xf32>
    %120 = vector.multi_reduction <add>, %119, %cst_42 [1] : vector<64x64xf32> to vector<64xf32>
    %121 = vector.shape_cast %120 : vector<64xf32> to vector<64x1xf32>
    %122 = tpu.reciprocal %121 {approx = true} : vector<64x1xf32> -> vector<64x1xf32>
    %123 = vector.broadcast %122 : vector<64x1xf32> to vector<64x64xf32>
    %124 = arith.mulf %119, %123 : vector<64x64xf32>
    %cst_43 = arith.constant dense<0.000000e+00> : vector<64x8xf32>
    %125 = tpu.matmul %124, %113, %cst_43 {dimension_numbers = #tpu.dot_dimension_numbers<[1], [0], [0], [1], [0, 0, 1, 1], [], []>} : vector<64x64xf32>, vector<64x8xf32>, vector<64x8xf32> -> vector<64x8xf32>
    %126 = vector.extract_strided_slice %36 {offsets = [0, 0], sizes = [8, 32], strides = [1, 1]} : vector<32x32xf32> to vector<8x32xf32>
    %cst_44 = arith.constant dense<0.000000e+00> : vector<64x32xf32>
    %127 = tpu.matmul %125, %126, %cst_44 {dimension_numbers = #tpu.dot_dimension_numbers<[1], [0], [0], [1], [0, 0, 1, 1], [], []>} : vector<64x8xf32>, vector<8x32xf32>, vector<64x32xf32> -> vector<64x32xf32>
    %128 = arith.addf %110, %127 : vector<64x32xf32>
    %129 = vector.extract_strided_slice %33 {offsets = [64, 8], sizes = [64, 8], strides = [1, 1]} : vector<128x32xf32> to vector<64x8xf32>
    %130 = vector.extract_strided_slice %34 {offsets = [64, 8], sizes = [64, 8], strides = [1, 1]} : vector<128x32xf32> to vector<64x8xf32>
    %131 = vector.extract_strided_slice %35 {offsets = [64, 8], sizes = [64, 8], strides = [1, 1]} : vector<128x32xf32> to vector<64x8xf32>
    %cst_45 = arith.constant dense<0.000000e+00> : vector<64x64xf32>
    %132 = tpu.matmul %129, %130, %cst_45 {dimension_numbers = #tpu.dot_dimension_numbers<[1], [1], [0], [0], [0, 0, 1, 0], [], []>} : vector<64x8xf32>, vector<64x8xf32>, vector<64x64xf32> -> vector<64x64xf32>
    %cst_46 = arith.constant dense<0xFF800000> : vector<64xf32>
    %133 = vector.multi_reduction <maximumf>, %132, %cst_46 [1] : vector<64x64xf32> to vector<64xf32>
    %134 = vector.shape_cast %133 : vector<64xf32> to vector<64x1xf32>
    %135 = vector.broadcast %134 : vector<64x1xf32> to vector<64x64xf32>
    %136 = arith.subf %132, %135 : vector<64x64xf32>
    %137 = math.exp %136 : vector<64x64xf32>
    %cst_47 = arith.constant dense<0.000000e+00> : vector<64xf32>
    %138 = vector.multi_reduction <add>, %137, %cst_47 [1] : vector<64x64xf32> to vector<64xf32>
    %139 = vector.shape_cast %138 : vector<64xf32> to vector<64x1xf32>
    %140 = tpu.reciprocal %139 {approx = true} : vector<64x1xf32> -> vector<64x1xf32>
    %141 = vector.broadcast %140 : vector<64x1xf32> to vector<64x64xf32>
    %142 = arith.mulf %137, %141 : vector<64x64xf32>
    %cst_48 = arith.constant dense<0.000000e+00> : vector<64x8xf32>
    %143 = tpu.matmul %142, %131, %cst_48 {dimension_numbers = #tpu.dot_dimension_numbers<[1], [0], [0], [1], [0, 0, 1, 1], [], []>} : vector<64x64xf32>, vector<64x8xf32>, vector<64x8xf32> -> vector<64x8xf32>
    %144 = vector.extract_strided_slice %36 {offsets = [8, 0], sizes = [8, 32], strides = [1, 1]} : vector<32x32xf32> to vector<8x32xf32>
    %cst_49 = arith.constant dense<0.000000e+00> : vector<64x32xf32>
    %145 = tpu.matmul %143, %144, %cst_49 {dimension_numbers = #tpu.dot_dimension_numbers<[1], [0], [0], [1], [0, 0, 1, 1], [], []>} : vector<64x8xf32>, vector<8x32xf32>, vector<64x32xf32> -> vector<64x32xf32>
    %146 = arith.addf %128, %145 : vector<64x32xf32>
    %147 = vector.extract_strided_slice %33 {offsets = [64, 16], sizes = [64, 8], strides = [1, 1]} : vector<128x32xf32> to vector<64x8xf32>
    %148 = vector.extract_strided_slice %34 {offsets = [64, 16], sizes = [64, 8], strides = [1, 1]} : vector<128x32xf32> to vector<64x8xf32>
    %149 = vector.extract_strided_slice %35 {offsets = [64, 16], sizes = [64, 8], strides = [1, 1]} : vector<128x32xf32> to vector<64x8xf32>
    %cst_50 = arith.constant dense<0.000000e+00> : vector<64x64xf32>
    %150 = tpu.matmul %147, %148, %cst_50 {dimension_numbers = #tpu.dot_dimension_numbers<[1], [1], [0], [0], [0, 0, 1, 0], [], []>} : vector<64x8xf32>, vector<64x8xf32>, vector<64x64xf32> -> vector<64x64xf32>
    %cst_51 = arith.constant dense<0xFF800000> : vector<64xf32>
    %151 = vector.multi_reduction <maximumf>, %150, %cst_51 [1] : vector<64x64xf32> to vector<64xf32>
    %152 = vector.shape_cast %151 : vector<64xf32> to vector<64x1xf32>
    %153 = vector.broadcast %152 : vector<64x1xf32> to vector<64x64xf32>
    %154 = arith.subf %150, %153 : vector<64x64xf32>
    %155 = math.exp %154 : vector<64x64xf32>
    %cst_52 = arith.constant dense<0.000000e+00> : vector<64xf32>
    %156 = vector.multi_reduction <add>, %155, %cst_52 [1] : vector<64x64xf32> to vector<64xf32>
    %157 = vector.shape_cast %156 : vector<64xf32> to vector<64x1xf32>
    %158 = tpu.reciprocal %157 {approx = true} : vector<64x1xf32> -> vector<64x1xf32>
    %159 = vector.broadcast %158 : vector<64x1xf32> to vector<64x64xf32>
    %160 = arith.mulf %155, %159 : vector<64x64xf32>
    %cst_53 = arith.constant dense<0.000000e+00> : vector<64x8xf32>
    %161 = tpu.matmul %160, %149, %cst_53 {dimension_numbers = #tpu.dot_dimension_numbers<[1], [0], [0], [1], [0, 0, 1, 1], [], []>} : vector<64x64xf32>, vector<64x8xf32>, vector<64x8xf32> -> vector<64x8xf32>
    %162 = vector.extract_strided_slice %36 {offsets = [16, 0], sizes = [8, 32], strides = [1, 1]} : vector<32x32xf32> to vector<8x32xf32>
    %cst_54 = arith.constant dense<0.000000e+00> : vector<64x32xf32>
    %163 = tpu.matmul %161, %162, %cst_54 {dimension_numbers = #tpu.dot_dimension_numbers<[1], [0], [0], [1], [0, 0, 1, 1], [], []>} : vector<64x8xf32>, vector<8x32xf32>, vector<64x32xf32> -> vector<64x32xf32>
    %164 = arith.addf %146, %163 : vector<64x32xf32>
    %165 = vector.extract_strided_slice %33 {offsets = [64, 24], sizes = [64, 8], strides = [1, 1]} : vector<128x32xf32> to vector<64x8xf32>
    %166 = vector.extract_strided_slice %34 {offsets = [64, 24], sizes = [64, 8], strides = [1, 1]} : vector<128x32xf32> to vector<64x8xf32>
    %167 = vector.extract_strided_slice %35 {offsets = [64, 24], sizes = [64, 8], strides = [1, 1]} : vector<128x32xf32> to vector<64x8xf32>
    %cst_55 = arith.constant dense<0.000000e+00> : vector<64x64xf32>
    %168 = tpu.matmul %165, %166, %cst_55 {dimension_numbers = #tpu.dot_dimension_numbers<[1], [1], [0], [0], [0, 0, 1, 0], [], []>} : vector<64x8xf32>, vector<64x8xf32>, vector<64x64xf32> -> vector<64x64xf32>
    %cst_56 = arith.constant dense<0xFF800000> : vector<64xf32>
    %169 = vector.multi_reduction <maximumf>, %168, %cst_56 [1] : vector<64x64xf32> to vector<64xf32>
    %170 = vector.shape_cast %169 : vector<64xf32> to vector<64x1xf32>
    %171 = vector.broadcast %170 : vector<64x1xf32> to vector<64x64xf32>
    %172 = arith.subf %168, %171 : vector<64x64xf32>
    %173 = math.exp %172 : vector<64x64xf32>
    %cst_57 = arith.constant dense<0.000000e+00> : vector<64xf32>
    %174 = vector.multi_reduction <add>, %173, %cst_57 [1] : vector<64x64xf32> to vector<64xf32>
    %175 = vector.shape_cast %174 : vector<64xf32> to vector<64x1xf32>
    %176 = tpu.reciprocal %175 {approx = true} : vector<64x1xf32> -> vector<64x1xf32>
    %177 = vector.broadcast %176 : vector<64x1xf32> to vector<64x64xf32>
    %178 = arith.mulf %173, %177 : vector<64x64xf32>
    %cst_58 = arith.constant dense<0.000000e+00> : vector<64x8xf32>
    %179 = tpu.matmul %178, %167, %cst_58 {dimension_numbers = #tpu.dot_dimension_numbers<[1], [0], [0], [1], [0, 0, 1, 1], [], []>} : vector<64x64xf32>, vector<64x8xf32>, vector<64x8xf32> -> vector<64x8xf32>
    %180 = vector.extract_strided_slice %36 {offsets = [24, 0], sizes = [8, 32], strides = [1, 1]} : vector<32x32xf32> to vector<8x32xf32>
    %cst_59 = arith.constant dense<0.000000e+00> : vector<64x32xf32>
    %181 = tpu.matmul %179, %180, %cst_59 {dimension_numbers = #tpu.dot_dimension_numbers<[1], [0], [0], [1], [0, 0, 1, 1], [], []>} : vector<64x8xf32>, vector<8x32xf32>, vector<64x32xf32> -> vector<64x32xf32>
    %182 = arith.addf %164, %181 : vector<64x32xf32>
    %183 = tpu.concatenate %109, %182 in 0 : vector<64x32xf32>, vector<64x32xf32> -> vector<128x32xf32>
    %c0_60 = arith.constant 0 : index
    %c0_61 = arith.constant 0 : index
    %184 = vector.load %arg7[%c0_60, %c0_61] : memref<1x32xf32, #tpu.memory_space<vmem>>, vector<1x32xf32>
    %185 = vector.broadcast %184 : vector<1x32xf32> to vector<128x32xf32>
    %186 = arith.addf %183, %185 : vector<128x32xf32>
    %187 = arith.addf %186, %1 : vector<128x32xf32>
    %c0_62 = arith.constant 0 : index
    %c0_63 = arith.constant 0 : index
    %188 = vector.load %arg8[%c0_62, %c0_63] : memref<1x32xf32, #tpu.memory_space<vmem>>, vector<1x32xf32>
    %c0_64 = arith.constant 0 : index
    %c0_65 = arith.constant 0 : index
    %189 = vector.load %arg9[%c0_64, %c0_65] : memref<1x32xf32, #tpu.memory_space<vmem>>, vector<1x32xf32>
    %cst_66 = arith.constant dense<0.000000e+00> : vector<128xf32>
    %190 = vector.multi_reduction <add>, %187, %cst_66 [1] : vector<128x32xf32> to vector<128xf32>
    %191 = vector.shape_cast %190 : vector<128xf32> to vector<128x1xf32>
    %cst_67 = arith.constant 3.200000e+01 : f32
    %192 = vector.broadcast %cst_67 : f32 to vector<128x1xf32>
    %193 = arith.divf %191, %192 : vector<128x1xf32>
    %194 = vector.broadcast %193 : vector<128x1xf32> to vector<128x32xf32>
    %195 = arith.subf %187, %194 : vector<128x32xf32>
    %196 = arith.mulf %195, %195 : vector<128x32xf32>
    %cst_68 = arith.constant dense<0.000000e+00> : vector<128xf32>
    %197 = vector.multi_reduction <add>, %196, %cst_68 [1] : vector<128x32xf32> to vector<128xf32>
    %198 = vector.shape_cast %197 : vector<128xf32> to vector<128x1xf32>
    %cst_69 = arith.constant 3.200000e+01 : f32
    %199 = vector.broadcast %cst_69 : f32 to vector<128x1xf32>
    %200 = arith.divf %198, %199 : vector<128x1xf32>
    %201 = vector.broadcast %193 : vector<128x1xf32> to vector<128x32xf32>
    %202 = arith.subf %187, %201 : vector<128x32xf32>
    %cst_70 = arith.constant 9.99999974E-6 : f32
    %203 = vector.broadcast %cst_70 : f32 to vector<128x1xf32>
    %204 = arith.addf %200, %203 : vector<128x1xf32>
    %205 = math.rsqrt %204 : vector<128x1xf32>
    %206 = vector.broadcast %205 : vector<128x1xf32> to vector<128x32xf32>
    %207 = arith.mulf %202, %206 : vector<128x32xf32>
    %208 = vector.broadcast %188 : vector<1x32xf32> to vector<128x32xf32>
    %209 = arith.mulf %207, %208 : vector<128x32xf32>
    %210 = vector.broadcast %189 : vector<1x32xf32> to vector<128x32xf32>
    %211 = arith.addf %209, %210 : vector<128x32xf32>
    %c0_71 = arith.constant 0 : index
    %c0_72 = arith.constant 0 : index
    %212 = vector.load %arg10[%c0_71, %c0_72] : memref<32x32xf32, #tpu.memory_space<vmem>>, vector<32x32xf32>
    %cst_73 = arith.constant dense<0.000000e+00> : vector<128x32xf32>
    %213 = tpu.matmul %211, %212, %cst_73 {dimension_numbers = #tpu.dot_dimension_numbers<[1], [0], [0], [1], [0, 0, 1, 1], [], []>} : vector<128x32xf32>, vector<32x32xf32>, vector<128x32xf32> -> vector<128x32xf32>
    %c0_74 = arith.constant 0 : index
    %c0_75 = arith.constant 0 : index
    %214 = vector.load %arg11[%c0_74, %c0_75] : memref<1x32xf32, #tpu.memory_space<vmem>>, vector<1x32xf32>
    %215 = vector.broadcast %214 : vector<1x32xf32> to vector<128x32xf32>
    %216 = arith.addf %213, %215 : vector<128x32xf32>
    %cst_76 = arith.constant 5.000000e-01 : f32
    %217 = vector.broadcast %cst_76 : f32 to vector<128x32xf32>
    %218 = arith.mulf %217, %216 : vector<128x32xf32>
    %cst_77 = arith.constant 4.471500e-02 : f32
    %219 = vector.broadcast %cst_77 : f32 to vector<128x32xf32>
    %220 = arith.mulf %219, %216 : vector<128x32xf32>
    %221 = arith.mulf %220, %216 : vector<128x32xf32>
    %222 = arith.mulf %221, %216 : vector<128x32xf32>
    %223 = arith.addf %216, %222 : vector<128x32xf32>
    %cst_78 = arith.constant 0.797884583 : f32
    %224 = vector.broadcast %cst_78 : f32 to vector<128x32xf32>
    %225 = arith.mulf %224, %223 : vector<128x32xf32>
    %226 = math.tanh %225 : vector<128x32xf32>
    %cst_79 = arith.constant 1.000000e+00 : f32
    %227 = vector.broadcast %cst_79 : f32 to vector<128x32xf32>
    %228 = arith.addf %227, %226 : vector<128x32xf32>
    %229 = arith.mulf %218, %228 : vector<128x32xf32>
    %c0_80 = arith.constant 0 : index
    %c0_81 = arith.constant 0 : index
    %230 = vector.load %arg12[%c0_80, %c0_81] : memref<32x32xf32, #tpu.memory_space<vmem>>, vector<32x32xf32>
    %cst_82 = arith.constant dense<0.000000e+00> : vector<128x32xf32>
    %231 = tpu.matmul %229, %230, %cst_82 {dimension_numbers = #tpu.dot_dimension_numbers<[1], [0], [0], [1], [0, 0, 1, 1], [], []>} : vector<128x32xf32>, vector<32x32xf32>, vector<128x32xf32> -> vector<128x32xf32>
    %c0_83 = arith.constant 0 : index
    %c0_84 = arith.constant 0 : index
    %232 = vector.load %arg13[%c0_83, %c0_84] : memref<1x32xf32, #tpu.memory_space<vmem>>, vector<1x32xf32>
    %233 = vector.broadcast %232 : vector<1x32xf32> to vector<128x32xf32>
    %234 = arith.addf %231, %233 : vector<128x32xf32>
    %235 = arith.addf %187, %234 : vector<128x32xf32>
    %236 = vector.shape_cast %235 : vector<128x32xf32> to vector<2x64x32xf32>
    %c0_85 = arith.constant 0 : index
    %c0_86 = arith.constant 0 : index
    %c0_87 = arith.constant 0 : index
    %237 = vector.load %arg14[%c0_85, %c0_86, %c0_87] : memref<2x64x32xf32, #tpu.memory_space<vmem>>, vector<2x64x32xf32>
    tpu.vector_store %arg14[%c0_85, %c0_86, %c0_87], %236 {strides = array<i32>} : memref<2x64x32xf32, #tpu.memory_space<vmem>>, vector<2x64x32xf32>,
    return
  }
  func.func @transform_0(%arg0: i32) -> (i32, i32, i32) {
    %c0_i32 = arith.constant 0 : i32
    %c0_i32_0 = arith.constant 0 : i32
    %c0_i32_1 = arith.constant 0 : i32
    return %arg0, %c0_i32, %c0_i32_0 : i32, i32, i32
  }
  func.func @transform_1(%arg0: i32) -> (i32, i32) {
    %c0_i32 = arith.constant 0 : i32
    %c0_i32_0 = arith.constant 0 : i32
    %c0_i32_1 = arith.constant 0 : i32
    return %c0_i32, %c0_i32_0 : i32, i32
  }
  func.func @transform_2(%arg0: i32) -> (i32, i32) {
    %c0_i32 = arith.constant 0 : i32
    %c0_i32_0 = arith.constant 0 : i32
    %c0_i32_1 = arith.constant 0 : i32
    return %c0_i32, %c0_i32_0 : i32, i32
  }
  func.func @transform_3(%arg0: i32) -> (i32, i32) {
    %c0_i32 = arith.constant 0 : i32
    %c0_i32_0 = arith.constant 0 : i32
    %c0_i32_1 = arith.constant 0 : i32
    return %c0_i32, %c0_i32_0 : i32, i32
  }
  func.func @transform_4(%arg0: i32) -> (i32, i32) {
    %c0_i32 = arith.constant 0 : i32
    %c0_i32_0 = arith.constant 0 : i32
    %c0_i32_1 = arith.constant 0 : i32
    return %c0_i32, %c0_i32_0 : i32, i32
  }
  func.func @transform_5(%arg0: i32) -> (i32, i32) {
    %c0_i32 = arith.constant 0 : i32
    %c0_i32_0 = arith.constant 0 : i32
    %c0_i32_1 = arith.constant 0 : i32
    return %c0_i32, %c0_i32_0 : i32, i32
  }
  func.func @transform_6(%arg0: i32) -> (i32, i32) {
    %c0_i32 = arith.constant 0 : i32
    %c0_i32_0 = arith.constant 0 : i32
    %c0_i32_1 = arith.constant 0 : i32
    return %c0_i32, %c0_i32_0 : i32, i32
  }
  func.func @transform_7(%arg0: i32) -> (i32, i32) {
    %c0_i32 = arith.constant 0 : i32
    %c0_i32_0 = arith.constant 0 : i32
    %c0_i32_1 = arith.constant 0 : i32
    return %c0_i32, %c0_i32_0 : i32, i32
  }
  func.func @transform_8(%arg0: i32) -> (i32, i32) {
    %c0_i32 = arith.constant 0 : i32
    %c0_i32_0 = arith.constant 0 : i32
    %c0_i32_1 = arith.constant 0 : i32
    return %c0_i32, %c0_i32_0 : i32, i32
  }
  func.func @transform_9(%arg0: i32) -> (i32, i32) {
    %c0_i32 = arith.constant 0 : i32
    %c0_i32_0 = arith.constant 0 : i32
    %c0_i32_1 = arith.constant 0 : i32
    return %c0_i32, %c0_i32_0 : i32, i32
  }
  func.func @transform_10(%arg0: i32) -> (i32, i32) {
    %c0_i32 = arith.constant 0 : i32
    %c0_i32_0 = arith.constant 0 : i32
    %c0_i32_1 = arith.constant 0 : i32
    return %c0_i32, %c0_i32_0 : i32, i32
  }
  func.func @transform_11(%arg0: i32) -> (i32, i32) {
    %c0_i32 = arith.constant 0 : i32
    %c0_i32_0 = arith.constant 0 : i32
    %c0_i32_1 = arith.constant 0 : i32
    return %c0_i32, %c0_i32_0 : i32, i32
  }
  func.func @transform_12(%arg0: i32) -> (i32, i32) {
    %c0_i32 = arith.constant 0 : i32
    %c0_i32_0 = arith.constant 0 : i32
    %c0_i32_1 = arith.constant 0 : i32
    return %c0_i32, %c0_i32_0 : i32, i32
  }
  func.func @transform_13(%arg0: i32) -> (i32, i32, i32) {
    %c0_i32 = arith.constant 0 : i32
    %c0_i32_0 = arith.constant 0 : i32
    %c0_i32_1 = arith.constant 0 : i32
    return %arg0, %c0_i32, %c0_i32_0 : i32, i32, i32
  }
}

</mosaic_0001>

<bundles_post_ra>
// kernel: tpu_custom_call.1
= control target key start
LH: loop header
LB: loop body
LE: loop exit
PB: predicated region body
PF: predicated region fallthrough
CT: control target
= control target key end

     0   :  { %s8789_s25 = smov 0   ;;  %s10982_s0 = inlined_call_operand.vmem [shape: f32[4,64,32], index: 0, kind: input, shape index: {}]   ;;  %s10983_s1 = inlined_call_operand.vmem [shape: f32[1,32], index: 1, kind: input, shape index: {}]   ;;  %s10984_s2 = inlined_call_operand.vmem [shape: f32[1,32], index: 2, kind: input, shape index: {}]   ;;  %s10985_s3 = inlined_call_operand.vmem [shape: f32[32,96], index: 3, kind: input, shape index: {}]   ;;  %s10986_s4 = inlined_call_operand.vmem [shape: f32[1,96], index: 4, kind: input, shape index: {}]   ;;  %s10987_s5 = inlined_call_operand.vmem [shape: f32[32,32], index: 5, kind: input, shape index: {}]   ;;  %s10988_s6 = inlined_call_operand.vmem [shape: f32[1,32], index: 6, kind: input, shape index: {}]   ;;  %s10989_s7 = inlined_call_operand.vmem [shape: f32[1,32], index: 7, kind: input, shape index: {}]   ;;  %s10990_s8 = inlined_call_operand.vmem [shape: f32[1,32], index: 8, kind: input, shape index: {}]   ;;  %s10991_s9 = inlined_call_operand.vmem [shape: f32[32,32], index: 9, kind: input, shape index: {}]   ;;  %s10992_s10 = inlined_call_operand.vmem [shape: f32[1,32], index: 10, kind: input, shape index: {}]   ;;  %s10993_s11 = inlined_call_operand.vmem [shape: f32[32,32], index: 11, kind: input, shape index: {}]   ;;  %s10994_s12 = inlined_call_operand.vmem [shape: f32[1,32], index: 12, kind: input, shape index: {}]   ;;  %s10995_s13 = inlined_call_operand.vmem [shape: f32[4,64,32], index: 13, kind: output, shape index: {}]  }
   0x1 LB: > { %s6226_s26 = sadd.s32 4294967295, %s8706_s25   ;;  %p6230_p0 = scmp.ge.s32.totalorder %s8706_s25, 1  ;;  %s8706_s25 = sphi %s8789_s25, %s23_s25  }
   0x2   : > { %p389_p1 = scmp.lt.s32.totalorder %s8706_s25, 3 }
   0x4   : > { %p390_p2 = pnand %p6230_p0, %p389_p1 }
   0x5   : > { %s6231_s27 = sshll.u32 (!%p390_p2), %s6226_s26, 1  ;;  %vm467_vm0 = vcmask (!%p390_p2), 261120   ;;  %vm969_vm1 = vcmask (!%p390_p2), 64512   ;;  %s8708_s16 = smov (!%p390_p2), 96   ;;  %vm1115_vm3 = vcmask (!%p390_p2), 523264  }
   0x6   : > { %393 = sbr.rel (%p390_p2) target bundleno = 4035 (0xfc3), region = 72  ;;  %p436_p3 = scmp.lt.s32.totalorder (!%p390_p2), %s6231_s27, 3  ;;  %vm9140_vm2 = vmpackc.low (!%p390_p2), %vm969_vm1, %vm969_vm1 }
   0x7   : > { %s8709_s17 = smov (!%p390_p2), 88   ;;  %s8710_s18 = smov (!%p390_p2), 120  }
   0x8   : > { %s8711_s19 = smov (!%p390_p2), 80   ;;  %s8712_s20 = smov (!%p390_p2), 112  }
   0x9   : > { %s8713_s21 = smov (!%p390_p2), 64   ;;  %s8714_s22 = smov (!%p390_p2), 56  }
   0xa   : > { %s8715_s23 = smov (!%p390_p2), 72   ;;  %s8716_s24 = smov (!%p390_p2), 104  }
   0xb   : > { %s8717_s26 = smov (!%p390_p2), 48  }
   0xd   : > { %s11001_s27 = smov (!%p436_p3, %s6231_s27), 3 }
   0xe   : > { %s10996_s28 = sshll.u32 %s11001_s27, 6 }
   0xf   : > { %s8805_s14 = scalar_lea.vmem %s10982_s0, %s10996_s28  ;;  %s8718_s28 = smov 40  }
  0x10   : > { %v449_v0 = vld [vmem:[%s8805_s14] sm:$0xff]  ;;  %v451_v1 = vld [vmem:[%s8805_s14 + $0x10] sm:$0xff]  ;;  %v450_v2 = vld [vmem:[%s8805_s14 + $0x8] sm:$0xff] }
  0x11   : > { %v468_v3 = vsel %vm467_vm0, %v449_v0, 0.0  ;;  %v474_v4 = vsel %vm467_vm0, %v451_v1, 0.0  ;;  %v452_v5 = vld [vmem:[%s8805_s14 + $0x18] sm:$0xff]  ;;  %v471_v6 = vsel %vm467_vm0, %v450_v2, 0.0  ;;  %v453_v8 = vld [vmem:[%s8805_s14 + $0x20] sm:$0xff]  ;;  %v454_v9 = vld [vmem:[%s8805_s14 + $0x28] sm:$0xff] }
  0x12   : > { %469 = vadd.xlane.f32.xlu0 %v468_v3  ;;  %475 = vadd.xlane.f32.xlu1 %v474_v4  ;;  %v477_v7 = vsel %vm467_vm0, %v452_v5, 0.0  ;;  %v480_v10 = vsel %vm467_vm0, %v453_v8, 0.0  ;;  %v483_v11 = vsel %vm467_vm0, %v454_v9, 0.0  ;;  %v455_v12 = vld [vmem:[%s8805_s14 + $0x30] sm:$0xff]  ;;  %v456_v13 = vld [vmem:[%s8805_s14 + $0x38] sm:$0xff]  ;;  %v8862_v54 = vld [vmem:[%s8805_s14 + $0x40] sm:$0xff] }
  0x13   : > { %v486_v14 = vsel %vm467_vm0, %v455_v12, 0.0  ;;  %v489_v15 = vsel %vm467_vm0, %v456_v13, 0.0  ;;  %v492_v57 = vsel %vm467_vm0, %v8862_v54, 0.0  ;;  %v8869_v58 = vld [vmem:[%s8805_s14 + $0x48] sm:$0xff]  ;;  %v8872_v59 = vld [vmem:[%s8805_s14 + $0x50] sm:$0xff]  ;;  %v8879_v62 = vld [vmem:[%s8805_s14 + $0x58] sm:$0xff] }
  0x14   : > { %v495_v60 = vsel %vm467_vm0, %v8869_v58, 0.0  ;;  %v498_v61 = vsel %vm467_vm0, %v8872_v59, 0.0  ;;  %v8882_v63 = vld [vmem:[%s8805_s14 + $0x60] sm:$0xff]  ;;  %v8892_v3 = vld [vmem:[%s8805_s14 + $0x70] sm:$0xff] }
  0x16   : > { %472 = vadd.xlane.f32.xlu0 %v471_v6  ;;  %478 = vadd.xlane.f32.xlu1 %v477_v7  ;;  %v8899_v6 = vld [vmem:[%s8805_s14 + $0x78] sm:$0xff] }
  0x17   : > { %v513_v7 = vsel %vm467_vm0, %v8899_v6, 0.0 }
  0x1a   : > { %481 = vadd.xlane.f32.xlu0 %v480_v10  ;;  %484 = vadd.xlane.f32.xlu1 %v483_v11  ;;  %v723_v11 = vld [vmem:[%s10985_s3 + $0x10] sm:$0xff] }
  0x1e   : > { %487 = vadd.xlane.f32.xlu0 %v486_v14  ;;  %490 = vadd.xlane.f32.xlu1 %v489_v15 }
  0x9f   : > { %v470_v16 = vpop.xlane.xlu0 %469  ;;  %v476_v17 = vpop.xlane.xlu1 %475 }
  0xa0   : > { %v517_v18 = vmul.f32 0.03125, %v470_v16  ;;  %v519_v19 = vmul.f32 0.03125, %v476_v17 }
  0xa2   : > { %v8823_v20 = vsub.f32 %v449_v0, %v517_v18  ;;  %v8825_v21 = vsub.f32 %v451_v1, %v519_v19  ;;  %v501_v0 = vsel %vm467_vm0, %v8879_v62, 0.0  ;;  %v504_v1 = vsel %vm467_vm0, %v8882_v63, 0.0 }
  0xa3   : > { %v473_v22 = vpop.xlane.xlu0 %472  ;;  %v479_v23 = vpop.xlane.xlu1 %478 }
  0xa4   : > { %v518_v24 = vmul.f32 0.03125, %v473_v22  ;;  %v520_v25 = vmul.f32 0.03125, %v479_v23  ;;  %v549_v26 = vmul.f32 %v8823_v20, %v8823_v20  ;;  %v551_v27 = vmul.f32 %v8825_v21, %v8825_v21 }
  0xa6   : > { %v8831_v28 = vsub.f32 %v450_v2, %v518_v24  ;;  %v8833_v29 = vsub.f32 %v452_v5, %v520_v25  ;;  %v565_v30 = vsel %vm467_vm0, %v549_v26, 0.0  ;;  %v571_v33 = vsel %vm467_vm0, %v551_v27, 0.0  ;;  %v8889_v2 = vld [vmem:[%s8805_s14 + $0x68] sm:$0xff] }
  0xa7   : > { %566 = vadd.xlane.f32.xlu0 %v565_v30  ;;  %v482_v31 = vpop.xlane.xlu0 %481  ;;  %v485_v32 = vpop.xlane.xlu1 %484  ;;  %v507_v4 = vsel %vm467_vm0, %v8889_v2, 0.0  ;;  %v510_v5 = vsel %vm467_vm0, %v8892_v3, 0.0 }
  0xa8   : > { %v521_v34 = vmul.f32 0.03125, %v482_v31  ;;  %v522_v35 = vmul.f32 0.03125, %v485_v32  ;;  %v550_v36 = vmul.f32 %v8831_v28, %v8831_v28  ;;  %v552_v37 = vmul.f32 %v8833_v29, %v8833_v29 }
  0xaa   : > { %v8841_v38 = vsub.f32 %v453_v8, %v521_v34  ;;  %v8843_v39 = vsub.f32 %v454_v9, %v522_v35  ;;  %v568_v40 = vsel %vm467_vm0, %v550_v36, 0.0  ;;  %v574_v43 = vsel %vm467_vm0, %v552_v37, 0.0  ;;  %v721_v8 = vld [vmem:[%s10985_s3] sm:$0xff]  ;;  %v722_v9 = vld [vmem:[%s10985_s3 + $0x8] sm:$0xff] }
  0xab   : > { %572 = vadd.xlane.f32.xlu0 %v571_v33  ;;  %569 = vadd.xlane.f32.xlu1 %v568_v40  ;;  %v488_v41 = vpop.xlane.xlu0 %487  ;;  %v491_v42 = vpop.xlane.xlu1 %490  ;;  %v7597_v10 = vpack.c.bf16 %v722_v9, %v721_v8 }
  0xac   : > { %v523_v44 = vmul.f32 0.03125, %v488_v41  ;;  %v524_v45 = vmul.f32 0.03125, %v491_v42  ;;  %v553_v46 = vmul.f32 %v8841_v38, %v8841_v38  ;;  %v554_v47 = vmul.f32 %v8843_v39, %v8843_v39  ;;  %v8918_v42 = vld [vmem:[%s10983_s1] ss:$0 sm:$0xff] }
  0xad   : > { %7598 = vmatprep.subr.bf16.mxu1 %v7597_v10 }
  0xae   : > { %v8851_v48 = vsub.f32 %v455_v12, %v523_v44  ;;  %v8853_v49 = vsub.f32 %v456_v13, %v524_v45  ;;  %v577_v50 = vsel %vm467_vm0, %v553_v46, 0.0  ;;  %v580_v51 = vsel %vm467_vm0, %v554_v47, 0.0  ;;  %7600 = vmatpush3.bf16.msra.mxu1 %v7597_v10  ;;  %v724_v12 = vld [vmem:[%s10985_s3 + $0x18] sm:$0xff]  ;;  %v8924_v47 = vld [vmem:[%s10984_s2] ss:$0 sm:$0xff] }
  0xaf   : > { %575 = vadd.xlane.f32.xlu1 %v574_v43  ;;  %578 = vadd.xlane.f32.xlu0 %v577_v50  ;;  %v7601_v13 = vpack.c.bf16 %v724_v12, %v723_v11 }
  0xb0   : > { %v555_v52 = vmul.f32 %v8851_v48, %v8851_v48  ;;  %v556_v53 = vmul.f32 %v8853_v49, %v8853_v49 }
  0xb1   : > { %7602 = vmatprep.subr.bf16.mxu1 %v7601_v13 }
  0xb2   : > { %v583_v55 = vsel %vm467_vm0, %v555_v52, 0.0  ;;  %v586_v56 = vsel %vm467_vm0, %v556_v53, 0.0  ;;  %7604 = vmatpush3.bf16.msra.mxu1 %v7601_v13 }
  0xb3   : > { %581 = vadd.xlane.f32.xlu1 %v580_v51  ;;  %584 = vadd.xlane.f32.xlu0 %v583_v55 }
  0xb7   : > { %587 = vadd.xlane.f32.xlu1 %v586_v56  ;;  %493 = vadd.xlane.f32.xlu0 %v492_v57 }
  0xbb   : > { %496 = vadd.xlane.f32.xlu1 %v495_v60  ;;  %499 = vadd.xlane.f32.xlu0 %v498_v61 }
  0xbf   : > { %502 = vadd.xlane.f32.xlu1 %v501_v0  ;;  %505 = vadd.xlane.f32.xlu0 %v504_v1 }
  0xc3   : > { %508 = vadd.xlane.f32.xlu1 %v507_v4  ;;  %511 = vadd.xlane.f32.xlu0 %v510_v5 }
  0xc7   : > { %514 = vadd.xlane.f32.xlu1 %v513_v7 }
 0x134   : > { %v567_v14 = vpop.xlane.xlu0 %566 }
 0x135   : > { %v613_v15 = vmul.f32 0.03125, %v567_v14 }
 0x137   : > { %v629_v16 = vadd.f32 1e-05, %v613_v15 }
 0x138   : > { %v570_v17 = vpop.xlane.xlu1 %569  ;;  %v573_v18 = vpop.xlane.xlu0 %572 }
 0x139   : > { %8328 = vrsqrt.f32 %v629_v16  ;;  %v614_v19 = vmul.f32 0.03125, %v570_v17  ;;  %v615_v22 = vmul.f32 0.03125, %v573_v18 }
 0x13b   : > { %v630_v23 = vadd.f32 1e-05, %v614_v19  ;;  %v631_v24 = vadd.f32 1e-05, %v615_v22 }
 0x13c   : > { %v576_v25 = vpop.xlane.xlu1 %575  ;;  %v579_v26 = vpop.xlane.xlu0 %578 }
 0x13d   : > { %8330 = vrsqrt.f32 %v630_v23  ;;  %v616_v27 = vmul.f32 0.03125, %v576_v25  ;;  %v617_v30 = vmul.f32 0.03125, %v579_v26 }
 0x13e   : > { %8332 = vrsqrt.f32 %v631_v24 }
 0x13f   : > { %v632_v31 = vadd.f32 1e-05, %v616_v27  ;;  %v633_v32 = vadd.f32 1e-05, %v617_v30 }
 0x140   : > { %v582_v33 = vpop.xlane.xlu1 %581  ;;  %v585_v34 = vpop.xlane.xlu0 %584 }
 0x141   : > { %8334 = vrsqrt.f32 %v632_v31  ;;  %v618_v35 = vmul.f32 0.03125, %v582_v33  ;;  %v619_v36 = vmul.f32 0.03125, %v585_v34 }
 0x142   : > { %8336 = vrsqrt.f32 %v633_v32 }
 0x143   : > { %v8329_v37 = vpop.eup %8328  ;;  %v634_v40 = vadd.f32 1e-05, %v618_v35  ;;  %v635_v41 = vadd.f32 1e-05, %v619_v36 }
 0x144   : > { %v588_v43 = vpop.xlane.xlu1 %587  ;;  %v661_v44 = vmul.f32 %v8329_v37, %v8823_v20  ;;  %v494_v45 = vpop.xlane.xlu0 %493 }
 0x145   : > { %8338 = vrsqrt.f32 %v634_v40  ;;  %v620_v46 = vmul.f32 0.03125, %v588_v43  ;;  %v525_v50 = vmul.f32 0.03125, %v494_v45 }
 0x146   : > { %8340 = vrsqrt.f32 %v635_v41  ;;  %v683_v51 = vmul.f32 %v8918_v42, %v661_v44 }
 0x147   : > { %v8331_v52 = vpop.eup %8330  ;;  %v636_v53 = vadd.f32 1e-05, %v620_v46  ;;  %v8928_v55 = vsub.f32 %v8862_v54, %v525_v50 }
 0x148   : > { %v8333_v56 = vpop.eup %8332  ;;  %v705_v20 = vadd.f32 %v8924_v47, %v683_v51  ;;  %v662_v57 = vmul.f32 %v8331_v52, %v8831_v28  ;;  %v497_v60 = vpop.xlane.xlu1 %496 }
 0x149   : > { %v500_v61 = vpop.xlane.xlu0 %499  ;;  %8342 = vrsqrt.f32 %v636_v53  ;;  %v663_v0 = vmul.f32 %v8333_v56, %v8825_v21  ;;  %v526_v1 = vmul.f32 0.03125, %v497_v60  ;;  %v557_v54 = vmul.f32 %v8928_v55, %v8928_v55 }
 0x14a   : > { %v527_v4 = vmul.f32 0.03125, %v500_v61  ;;  %6949 = vmatprep.mubr.msk.f32.mxu1 %vm467_vm0, %v705_v20  ;;  %v684_v5 = vmul.f32 %v8918_v42, %v662_v57 }
 0x14b   : > { %v8335_v7 = vpop.eup %8334  ;;  %v685_v8 = vmul.f32 %v8918_v42, %v663_v0  ;;  %v8939_v9 = vsub.f32 %v8869_v58, %v526_v1  ;;  %v589_v13 = vsel %vm467_vm0, %v557_v54, 0.0 }
 0x14c   : > { %v8942_v28 = vsub.f32 %v8872_v59, %v527_v4  ;;  %v8337_v10 = vpop.eup %8336  ;;  %v706_v21 = vadd.f32 %v8924_v47, %v684_v5  ;;  %v664_v11 = vmul.f32 %v8335_v7, %v8833_v29  ;;  %v503_v12 = vpop.xlane.xlu1 %502  ;;  %590 = vadd.xlane.f32.xlu0 %v589_v13 }
 0x14d   : > { %v506_v14 = vpop.xlane.xlu0 %505  ;;  %v707_v15 = vadd.f32 %v8924_v47, %v685_v8  ;;  %v665_v16 = vmul.f32 %v8337_v10, %v8841_v38  ;;  %v528_v17 = vmul.f32 0.03125, %v503_v12  ;;  %v558_v18 = vmul.f32 %v8939_v9, %v8939_v9 }
 0x14e   : > { %v529_v58 = vmul.f32 0.03125, %v506_v14  ;;  %6950 = vmatmul.mubr.msk.f32.vlgmr.msra.gmra.mrb[0].mxu1 %vm467_vm0, %v706_v21  ;;  %v686_v59 = vmul.f32 %v8918_v42, %v664_v11  ;;  %v559_v29 = vmul.f32 %v8942_v28, %v8942_v28 }
 0x14f   : > { %v8339_v19 = vpop.eup %8338  ;;  %6952 = vmatprep.mubr.msk.f32.mxu1 %vm467_vm0, %v707_v15  ;;  %v687_v22 = vmul.f32 %v8918_v42, %v665_v16  ;;  %v8958_v38 = vsub.f32 %v8879_v62, %v528_v17  ;;  %v592_v27 = vsel %vm467_vm0, %v558_v18, 0.0 }
 0x150   : > { %v8961_v23 = vsub.f32 %v8882_v63, %v529_v58  ;;  %v8341_v24 = vpop.eup %8340  ;;  %v708_v25 = vadd.f32 %v8924_v47, %v686_v59  ;;  %v666_v26 = vmul.f32 %v8339_v19, %v8843_v39  ;;  %v509_v30 = vpop.xlane.xlu1 %508  ;;  %v595_v31 = vsel %vm467_vm0, %v559_v29, 0.0  ;;  %593 = vadd.xlane.f32.xlu1 %v592_v27 }
 0x151   : > { %v512_v32 = vpop.xlane.xlu0 %511  ;;  %v709_v33 = vadd.f32 %v8924_v47, %v687_v22  ;;  %v667_v34 = vmul.f32 %v8341_v24, %v8851_v48  ;;  %v530_v62 = vmul.f32 0.03125, %v509_v30  ;;  %596 = vadd.xlane.f32.xlu0 %v595_v31  ;;  %v560_v39 = vmul.f32 %v8958_v38, %v8958_v38 }
 0x152   : > { %v531_v63 = vmul.f32 0.03125, %v512_v32  ;;  %6953 = vmatmul.mubr.msk.f32.gmra.mrb[2].mxu1 %vm467_vm0, %v708_v25  ;;  %v688_v35 = vmul.f32 %v8918_v42, %v666_v26  ;;  %v561_v36 = vmul.f32 %v8961_v23, %v8961_v23 }
 0x153   : > { %v8343_v37 = vpop.eup %8342  ;;  %6955 = vmatprep.mubr.msk.f32.mxu1 %vm467_vm0, %v709_v33  ;;  %v689_v40 = vmul.f32 %v8918_v42, %v667_v34  ;;  %v8978_v48 = vsub.f32 %v8889_v2, %v530_v62  ;;  %v598_v45 = vsel %vm467_vm0, %v560_v39, 0.0 }
 0x154   : > { %v8981_v41 = vsub.f32 %v8892_v3, %v531_v63  ;;  %v710_v43 = vadd.f32 %v8924_v47, %v688_v35  ;;  %v668_v44 = vmul.f32 %v8343_v37, %v8853_v49  ;;  %v601_v46 = vsel %vm467_vm0, %v561_v36, 0.0  ;;  %v515_v50 = vpop.xlane.xlu1 %514  ;;  %599 = vadd.xlane.f32.xlu1 %v598_v45 }
 0x155   : > { %v711_v51 = vadd.f32 %v8924_v47, %v689_v40  ;;  %602 = vadd.xlane.f32.xlu0 %v601_v46  ;;  %v562_v2 = vmul.f32 %v8978_v48, %v8978_v48  ;;  %v532_v52 = vmul.f32 0.03125, %v515_v50 }
 0x156   : > { %v563_v3 = vmul.f32 %v8981_v41, %v8981_v41  ;;  %6956 = vmatmul.mubr.msk.f32.gmra.mrb[4].mxu1 %vm467_vm0, %v710_v43  ;;  %v690_v49 = vmul.f32 %v8918_v42, %v668_v44 }
 0x157   : > { %6958 = vmatprep.mubr.msk.f32.mxu1 %vm467_vm0, %v711_v51  ;;  %v604_v53 = vsel %vm467_vm0, %v562_v2, 0.0  ;;  %v8997_v56 = vsub.f32 %v8899_v6, %v532_v52 }
 0x158   : > { %v607_v20 = vsel %vm467_vm0, %v563_v3, 0.0  ;;  %v712_v57 = vadd.f32 %v8924_v47, %v690_v49  ;;  %605 = vadd.xlane.f32.xlu1 %v604_v53  ;;  %v9040_v53 = vld [vmem:[%s10986_s4] ss:$0 sm:$0xff] }
 0x159   : > { %608 = vadd.xlane.f32.xlu0 %v607_v20  ;;  %v564_v60 = vmul.f32 %v8997_v56, %v8997_v56 }
 0x15a   : > { %6959 = vmatmul.mubr.msk.f32.gmra.mrb[6].mxu1 %vm467_vm0, %v712_v57 }
 0x15b   : > { %v610_v61 = vsel %vm467_vm0, %v564_v60, 0.0 }
 0x15c   : > { %611 = vadd.xlane.f32.xlu1 %v610_v61 }
 0x1d9   : > { %v591_v0 = vpop.xlane.xlu0 %590 }
 0x1da   : > { %v621_v1 = vmul.f32 0.03125, %v591_v0 }
 0x1dc   : > { %v637_v4 = vadd.f32 1e-05, %v621_v1 }
 0x1dd   : > { %v594_v5 = vpop.xlane.xlu1 %593 }
 0x1de   : > { %v597_v6 = vpop.xlane.xlu0 %596  ;;  %8344 = vrsqrt.f32 %v637_v4  ;;  %v622_v54 = vmul.f32 0.03125, %v594_v5 }
 0x1df   : > { %v623_v7 = vmul.f32 0.03125, %v597_v6 }
 0x1e0   : > { %v638_v8 = vadd.f32 1e-05, %v622_v54 }
 0x1e1   : > { %v639_v10 = vadd.f32 1e-05, %v623_v7  ;;  %v600_v21 = vpop.xlane.xlu1 %599 }
 0x1e2   : > { %v603_v11 = vpop.xlane.xlu0 %602  ;;  %8346 = vrsqrt.f32 %v638_v8  ;;  %v624_v12 = vmul.f32 0.03125, %v600_v21 }
 0x1e3   : > { %v625_v13 = vmul.f32 0.03125, %v603_v11  ;;  %8348 = vrsqrt.f32 %v639_v10 }
 0x1e4   : > { %v640_v14 = vadd.f32 1e-05, %v624_v12 }
 0x1e5   : > { %v641_v15 = vadd.f32 1e-05, %v625_v13  ;;  %v606_v16 = vpop.xlane.xlu1 %605 }
 0x1e6   : > { %v609_v17 = vpop.xlane.xlu0 %608  ;;  %8350 = vrsqrt.f32 %v640_v14  ;;  %v626_v58 = vmul.f32 0.03125, %v606_v16 }
 0x1e7   : > { %v627_v59 = vmul.f32 0.03125, %v609_v17  ;;  %8352 = vrsqrt.f32 %v641_v15 }
 0x1e8   : > { %v8345_v18 = vpop.eup %8344  ;;  %v642_v29 = vadd.f32 1e-05, %v626_v58 }
 0x1e9   : > { %v643_v19 = vadd.f32 1e-05, %v627_v59  ;;  %v612_v22 = vpop.xlane.xlu1 %611  ;;  %v669_v24 = vmul.f32 %v8345_v18, %v8928_v55 }
 0x1ea   : > { %8354 = vrsqrt.f32 %v642_v29  ;;  %v628_v25 = vmul.f32 0.03125, %v612_v22 }
 0x1eb   : > { %8356 = vrsqrt.f32 %v643_v19  ;;  %v691_v26 = vmul.f32 %v8918_v42, %v669_v24 }
 0x1ec   : > { %v8347_v27 = vpop.eup %8346  ;;  %v644_v30 = vadd.f32 1e-05, %v628_v25 }
 0x1ed   : > { %v8349_v31 = vpop.eup %8348  ;;  %v713_v32 = vadd.f32 %v8924_v47, %v691_v26  ;;  %v670_v33 = vmul.f32 %v8347_v27, %v8939_v9 }
 0x1ee   : > { %8358 = vrsqrt.f32 %v644_v30  ;;  %v671_v34 = vmul.f32 %v8349_v31, %v8942_v28 }
 0x1ef   : > { %6961 = vmatprep.mubr.msk.f32.mxu1 %vm467_vm0, %v713_v32  ;;  %v692_v62 = vmul.f32 %v8918_v42, %v670_v33 }
 0x1f0   : > { %v8351_v55 = vpop.eup %8350  ;;  %v693_v63 = vmul.f32 %v8918_v42, %v671_v34 }
 0x1f1   : > { %v8353_v35 = vpop.eup %8352  ;;  %v714_v39 = vadd.f32 %v8924_v47, %v692_v62  ;;  %v672_v36 = vmul.f32 %v8351_v55, %v8958_v38 }
 0x1f2   : > { %v715_v37 = vadd.f32 %v8924_v47, %v693_v63  ;;  %v673_v40 = vmul.f32 %v8353_v35, %v8961_v23 }
 0x1f3   : > { %6962 = vmatmul.mubr.msk.f32.gmra.mrb[8].mxu1 %vm467_vm0, %v714_v39  ;;  %v694_v9 = vmul.f32 %v8918_v42, %v672_v36 }
 0x1f4   : > { %v8355_v28 = vpop.eup %8354  ;;  %6964 = vmatprep.mubr.msk.f32.mxu1 %vm467_vm0, %v715_v37  ;;  %v695_v43 = vmul.f32 %v8918_v42, %v673_v40 }
 0x1f5   : > { %v8357_v44 = vpop.eup %8356  ;;  %v716_v45 = vadd.f32 %v8924_v47, %v694_v9  ;;  %v674_v46 = vmul.f32 %v8355_v28, %v8978_v48 }
 0x1f6   : > { %v717_v38 = vadd.f32 %v8924_v47, %v695_v43  ;;  %v675_v50 = vmul.f32 %v8357_v44, %v8981_v41 }
 0x1f7   : > { %6965 = vmatmul.mubr.msk.f32.gmra.mrb[10].mxu1 %vm467_vm0, %v716_v45  ;;  %v696_v23 = vmul.f32 %v8918_v42, %v674_v46 }
 0x1f8   : > { %v8359_v51 = vpop.eup %8358  ;;  %6967 = vmatprep.mubr.msk.f32.mxu1 %vm467_vm0, %v717_v38  ;;  %v697_v2 = vmul.f32 %v8918_v42, %v675_v50 }
 0x1f9   : > { %v718_v52 = vadd.f32 %v8924_v47, %v696_v23  ;;  %v676_v3 = vmul.f32 %v8359_v51, %v8997_v56 }
 0x1fa   : > { %v719_v49 = vadd.f32 %v8924_v47, %v697_v2 }
 0x1fb   : > { %6968 = vmatmul.mubr.msk.f32.gmra.mrb[12].mxu1 %vm467_vm0, %v718_v52  ;;  %v698_v48 = vmul.f32 %v8918_v42, %v676_v3 }
 0x1fc   : > { %6970 = vmatprep.mubr.msk.f32.mxu1 %vm467_vm0, %v719_v49 }
 0x1fd   : > { %v720_v41 = vadd.f32 %v8924_v47, %v698_v48 }
 0x1ff   : > { %6971 = vmatmul.mubr.msk.f32.gmra.mrb[14].mxu1 %vm467_vm0, %v720_v41 }
 0x221   : > { %v6951_v20 = vpop.f32.mrb[0].mxu1 }
 0x222   : > { %v852_v56 = vadd.f32 %v6951_v20, %v9040_v53  ;;  %v846_v57 = vpop.f32.mrb[1].mxu1 }
 0x223   : > { %v847_v60 = vadd.f32 %v9040_v53, %v846_v57 }
 0x224   : > { %v9088_v17 = vmul.f32 0.35355338, %v852_v56 }
 0x225   : > { %v6954_v61 = vpop.f32.mrb[2].mxu1  ;;  %v9044_v42 = vpack.i.bf16 %v852_v56, %v847_v60  ;;  %v9046_v0 = vmul.f32 0.35355338, %v847_v60 }
 0x226   : > { %v862_v47 = vadd.f32 %v6954_v61, %v9040_v53  ;;  %v856_v1 = vpop.f32.mrb[3].mxu1 }
 0x227   : > { %v857_v4 = vadd.f32 %v9040_v53, %v856_v1  ;;  %8009 = vrot.lane.b32.xlu0 %v9044_v42, %s8708_s16  ;;  %6989 = vmatprep.mubr.msk.f32.mxu1 %vm969_vm1, %v9046_v0 }
 0x228   : > { %v9096_v59 = vmul.f32 0.35355338, %v862_v47 }
 0x229   : > { %v6957_v5 = vpop.f32.mrb[4].mxu1  ;;  %v9054_v6 = vpack.i.bf16 %v862_v47, %v857_v4  ;;  %v9076_v15 = vmul.f32 0.35355338, %v857_v4 }
 0x22a   : > { %v872_v54 = vadd.f32 %v6957_v5, %v9040_v53  ;;  %v866_v7 = vpop.f32.mrb[5].mxu1 }
 0x22b   : > { %v867_v8 = vadd.f32 %v9040_v53, %v866_v7  ;;  %8014 = vrot.lane.b32.xlu1 %v9054_v6, %s8708_s16  ;;  %8029 = vrot.lane.b32.xlu0 %v9044_v42, %s8709_s17 }
 0x22c   : > { %v9102_v18 = vmul.f32 0.35355338, %v872_v54 }
 0x22d   : > { %v6960_v10 = vpop.f32.mrb[6].mxu1  ;;  %v9062_v21 = vpack.i.bf16 %v872_v54, %v867_v8  ;;  %v9082_v16 = vmul.f32 0.35355338, %v867_v8 }
 0x22e   : > { %v882_v11 = vadd.f32 %v6960_v10, %v9040_v53  ;;  %v876_v12 = vpop.f32.mrb[7].mxu1 }
 0x22f   : > { %v877_v13 = vadd.f32 %v9040_v53, %v876_v12  ;;  %8019 = vrot.lane.b32.xlu1 %v9062_v21, %s8708_s16  ;;  %8039 = vrot.lane.b32.xlu0 %v9062_v21, %s8709_s17 }
 0x230   : > { %v9108_v29 = vmul.f32 0.35355338, %v882_v11 }
 0x231   : > { %v9070_v14 = vpack.i.bf16 %v882_v11, %v877_v13  ;;  %v9090_v58 = vmul.f32 0.35355338, %v877_v13 }
 0x233   : > { %8024 = vrot.lane.b32.xlu1 %v9070_v14, %s8708_s16  ;;  %1357 = vrot.lane.b32.xlu0 %v9046_v0, %s8710_s18 }
 0x237   : > { %8034 = vrot.lane.b32.xlu1 %v9054_v6, %s8709_s17  ;;  %1361 = vrot.lane.b32.xlu0 %v9076_v15, %s8710_s18 }
 0x23b   : > { %8044 = vrot.lane.b32.xlu1 %v9070_v14, %s8709_s17  ;;  %1365 = vrot.lane.b32.xlu0 %v9082_v16, %s8710_s18 }
 0x23f   : > { %1359 = vrot.lane.b32.xlu1 %v9088_v17, %s8710_s18  ;;  %1369 = vrot.lane.b32.xlu0 %v9090_v58, %s8710_s18 }
 0x243   : > { %1363 = vrot.lane.b32.xlu1 %v9096_v59, %s8710_s18  ;;  %8049 = vrot.lane.b32.xlu0 %v9044_v42, %s8711_s19 }
 0x247   : > { %1367 = vrot.lane.b32.xlu1 %v9102_v18, %s8710_s18  ;;  %8059 = vrot.lane.b32.xlu0 %v9062_v21, %s8711_s19 }
 0x24b   : > { %1371 = vrot.lane.b32.xlu1 %v9108_v29, %s8710_s18  ;;  %2025 = vrot.lane.b32.xlu0 %v9046_v0, %s8712_s20 }
 0x24f   : > { %8054 = vrot.lane.b32.xlu1 %v9054_v6, %s8711_s19  ;;  %2029 = vrot.lane.b32.xlu0 %v9076_v15, %s8712_s20 }
 0x253   : > { %8064 = vrot.lane.b32.xlu1 %v9070_v14, %s8711_s19  ;;  %2033 = vrot.lane.b32.xlu0 %v9082_v16, %s8712_s20 }
 0x257   : > { %2027 = vrot.lane.b32.xlu1 %v9088_v17, %s8712_s20  ;;  %8069 = vrot.lane.b32.xlu0 %v9044_v42, %s8713_s21 }
 0x25b   : > { %2031 = vrot.lane.b32.xlu1 %v9096_v59, %s8712_s20  ;;  %8079 = vrot.lane.b32.xlu0 %v9062_v21, %s8713_s21 }
 0x25f   : > { %2035 = vrot.lane.b32.xlu1 %v9102_v18, %s8712_s20  ;;  %2037 = vrot.lane.b32.xlu0 %v9090_v58, %s8712_s20 }
 0x263   : > { %2039 = vrot.lane.b32.xlu1 %v9108_v29, %s8712_s20 }
 0x267   : > { %8074 = vrot.lane.b32.xlu1 %v9054_v6, %s8713_s21 }
 0x299   : > { %v8010_v19 = vpop.permute.xlu0 %8009 }
 0x29a   : > { %v8012_v22 = vunpack.i.h.bf16 %v8010_v19  ;;  %v8011_v24 = vunpack.i.l.bf16 %v8010_v19 }
 0x29c   : > { %v7605_v26 = vpack.c.bf16 %v8012_v22, %v8011_v24 }
 0x29d   : > { %v8015_v27 = vpop.permute.xlu1 %8014  ;;  %v8030_v30 = vpop.permute.xlu0 %8029 }
 0x29e   : > { %v8017_v31 = vunpack.i.h.bf16 %v8015_v27  ;;  %v8016_v32 = vunpack.i.l.bf16 %v8015_v27  ;;  %7607 = vmatprep.subr.msk.bf16.mxu1 %vm9140_vm2, %v7605_v26  ;;  %v8032_v50 = vunpack.i.h.bf16 %v8030_v30  ;;  %v8031_v23 = vunpack.i.l.bf16 %v8030_v30 }
 0x29f   : > { %7610 = vmatpush3.bf16.xpose.msk.msra.mxu1 %vm9140_vm2, %v7605_v26 }
 0x2a0   : > { %v7611_v33 = vpack.c.bf16 %v8017_v31, %v8016_v32  ;;  %v7645_v52 = vpack.c.bf16 %v8032_v50, %v8031_v23 }
 0x2a1   : > { %v8020_v34 = vpop.permute.xlu1 %8019  ;;  %v8040_v62 = vpop.permute.xlu0 %8039 }
 0x2a2   : > { %v8022_v55 = vunpack.i.h.bf16 %v8020_v34  ;;  %v8021_v63 = vunpack.i.l.bf16 %v8020_v34  ;;  %7613 = vmatprep.subr.msk.bf16.mxu1 %vm9140_vm2, %v7611_v33  ;;  %v8042_v47 = vunpack.i.h.bf16 %v8040_v62  ;;  %v8041_v1 = vunpack.i.l.bf16 %v8040_v62 }
 0x2a4   : > { %v7617_v36 = vpack.c.bf16 %v8022_v55, %v8021_v63  ;;  %v7657_v54 = vpack.c.bf16 %v8042_v47, %v8041_v1 }
 0x2a5   : > { %v8025_v35 = vpop.permute.xlu1 %8024  ;;  %v1358_v39 = vpop.permute.xlu0 %1357 }
 0x2a6   : > { %v8027_v9 = vunpack.i.h.bf16 %v8025_v35  ;;  %v8026_v28 = vunpack.i.l.bf16 %v8025_v35 }
 0x2a7   : > { %7616 = vmatpush3.bf16.xpose.msk.msra.mxu1 %vm9140_vm2, %v7611_v33 }
 0x2a8   : > { %7619 = vmatprep.subr.msk.bf16.mxu1 %vm9140_vm2, %v7617_v36  ;;  %v7623_v45 = vpack.c.bf16 %v8027_v9, %v8026_v28 }
 0x2a9   : > { %v8035_v37 = vpop.permute.xlu1 %8034  ;;  %v9154_v40 = vpop.permute.xlu0 %1361 }
 0x2aa   : > { %v8037_v48 = vunpack.i.h.bf16 %v8035_v37  ;;  %v8036_v41 = vunpack.i.l.bf16 %v8035_v37 }
 0x2ac   : > { %v7651_v57 = vpack.c.bf16 %v8037_v48, %v8036_v41 }
 0x2ad   : > { %v8045_v43 = vpop.permute.xlu1 %8044  ;;  %v9156_v44 = vpop.permute.xlu0 %1365 }
 0x2ae   : > { %v8047_v19 = vunpack.i.h.bf16 %v8045_v43  ;;  %v8046_v22 = vunpack.i.l.bf16 %v8045_v43 }
 0x2af   : > { %7622 = vmatpush3.bf16.xpose.msk.msra.mxu1 %vm9140_vm2, %v7617_v36 }
 0x2b0   : > { %7625 = vmatprep.subr.msk.bf16.mxu1 %vm9140_vm2, %v7623_v45  ;;  %v7663_v55 = vpack.c.bf16 %v8047_v19, %v8046_v22 }
 0x2b1   : > { %v9162_v46 = vpop.permute.xlu1 %1359  ;;  %v9164_v38 = vpop.permute.xlu0 %1369 }
 0x2b5   : > { %v9166_v51 = vpop.permute.xlu1 %1363  ;;  %v9168_v2 = vpop.permute.xlu0 %8049 }
 0x2b6   : > { %v8052_v28 = vunpack.i.h.bf16 %v9168_v2  ;;  %v8051_v43 = vunpack.i.l.bf16 %v9168_v2 }
 0x2b7   : > { %7628 = vmatpush3.bf16.xpose.msk.msra.mxu1 %vm9140_vm2, %v7623_v45 }
 0x2b8   : > { %7647 = vmatprep.subr.msk.bf16.mxu1 %vm9140_vm2, %v7645_v52 }
 0x2b9   : > { %v9174_v3 = vpop.permute.xlu1 %1367  ;;  %v9176_v49 = vpop.permute.xlu0 %8059 }
 0x2bd   : > { %v9178_v20 = vpop.permute.xlu1 %1371  ;;  %v9180_v56 = vpop.permute.xlu0 %2025 }
 0x2be   : > { %6990 = vmatmul.mubr.msk.f32.vlgmr.msra.gmra.mrb[16].mxu1 %vm969_vm1, %v9088_v17 }
 0x2bf   : > { %6992 = vmatprep.mubr.msk.f32.mxu1 %vm969_vm1, %v9076_v15  ;;  %7650 = vmatpush3.bf16.xpose.msk.msra.mxu1 %vm9140_vm2, %v7645_v52 }
 0x2c0   : > { %7653 = vmatprep.subr.msk.bf16.mxu1 %vm9140_vm2, %v7651_v57 }
 0x2c1   : > { %v9190_v60 = vpop.permute.xlu1 %8054  ;;  %v9192_v61 = vpop.permute.xlu0 %2029 }
 0x2c2   : > { %6993 = vmatmul.mubr.msk.f32.gmra.mrb[18].mxu1 %vm969_vm1, %v9096_v59  ;;  %v8056_v19 = vunpack.i.l.bf16 %v9190_v60 }
 0x2c3   : > { %6995 = vmatprep.mubr.msk.f32.mxu1 %vm969_vm1, %v9082_v16 }
 0x2c5   : > { %v9198_v4 = vpop.permute.xlu1 %8064  ;;  %v9200_v5 = vpop.permute.xlu0 %2033 }
 0x2c6   : > { %6996 = vmatmul.mubr.msk.f32.gmra.mrb[20].mxu1 %vm969_vm1, %v9102_v18  ;;  %v6963_v7 = vpop.f32.mrb[8].mxu1 }
 0x2c7   : > { %6998 = vmatprep.mubr.msk.f32.mxu1 %vm969_vm1, %v9090_v58  ;;  %7656 = vmatpush3.bf16.xpose.msk.msra.mxu1 %vm9140_vm2, %v7651_v57  ;;  %v9211_v8 = vadd.f32 %v6963_v7, %v9040_v53  ;;  %v886_v10 = vpop.f32.mrb[9].mxu1  ;;  %v7685_v57 = vpack.c.bf16 %v8052_v28, %v8051_v43 }
 0x2c8   : > { %7659 = vmatprep.subr.msk.bf16.mxu1 %vm9140_vm2, %v7657_v54  ;;  %v9216_v13 = vadd.f32 %v9040_v53, %v886_v10 }
 0x2c9   : > { %v9213_v11 = vpop.permute.xlu1 %2027  ;;  %v8070_v12 = vpop.permute.xlu0 %8069 }
 0x2ca   : > { %6999 = vmatmul.mubr.msk.f32.gmra.mrb[22].mxu1 %vm969_vm1, %v9108_v29  ;;  %v8072_v24 = vunpack.i.h.bf16 %v8070_v12  ;;  %v8071_v26 = vunpack.i.l.bf16 %v8070_v12  ;;  %v6966_v27 = vpop.f32.mrb[10].mxu1  ;;  %v9223_v30 = vpack.i.bf16 %v9211_v8, %v9216_v13 }
 0x2cb   : > { %7045 = vmatprep.mubr.msk.f32.mxu1 %vm969_vm1, %v1358_v39  ;;  %v9226_v32 = vadd.f32 %v6966_v27, %v9040_v53  ;;  %v896_v33 = vpop.f32.mrb[11].mxu1 }
 0x2cc   : > { %v7629_v31 = vpack.c.bf16 %v8072_v24, %v8071_v26  ;;  %v9231_v62 = vadd.f32 %v9040_v53, %v896_v33 }
 0x2cd   : > { %v9228_v34 = vpop.permute.xlu1 %2031  ;;  %v8080_v47 = vpop.permute.xlu0 %8079 }
 0x2ce   : > { %7630 = vmatprep.subr.bf16.mxu0 %v7629_v31  ;;  %v6969_v63 = vpop.f32.mrb[12].mxu1  ;;  %v9237_v35 = vpack.i.bf16 %v9226_v32, %v9231_v62  ;;  %v8081_v7 = vunpack.i.l.bf16 %v8080_v47 }
 0x2cf   : > { %7632 = vmatpush3.bf16.msra.mxu0 %v7629_v31  ;;  %7662 = vmatpush3.bf16.xpose.msk.msra.mxu1 %vm9140_vm2, %v7657_v54  ;;  %v9242_v39 = vadd.f32 %v6969_v63, %v9040_v53  ;;  %v906_v36 = vpop.f32.mrb[13].mxu1  ;;  %v8082_v54 = vunpack.i.h.bf16 %v8080_v47 }
 0x2d0   : > { %7665 = vmatprep.subr.msk.bf16.mxu1 %vm9140_vm2, %v7663_v55  ;;  %v9245_v9 = vadd.f32 %v9040_v53, %v906_v36 }
 0x2d1   : > { %v2036_v37 = vpop.permute.xlu1 %2035  ;;  %v7637_v24 = vpack.c.bf16 %v8082_v54, %v8081_v7 }
 0x2d2   : > { %v6972_v45 = vpop.f32.mrb[14].mxu1  ;;  %v9251_v50 = vpack.i.bf16 %v9242_v39, %v9245_v9 }
 0x2d3   : > { %v9254_v23 = vadd.f32 %v6972_v45, %v9040_v53  ;;  %v916_v52 = vpop.f32.mrb[15].mxu1 }
 0x2d4   : > { %v9257_v41 = vadd.f32 %v9040_v53, %v916_v52  ;;  %v8057_v53 = vunpack.i.h.bf16 %v9190_v60  ;;  %v8062_v60 = vunpack.i.h.bf16 %v9176_v49 }
 0x2d5   : > { %v2040_v48 = vpop.permute.xlu1 %2039 }
 0x2d6   : > { %v9263_v2 = vpack.i.bf16 %v9254_v23, %v9257_v41  ;;  %v7691_v26 = vpack.c.bf16 %v8057_v53, %v8056_v19 }
 0x2d7   : > { %7668 = vmatpush3.bf16.xpose.msk.msra.mxu1 %vm9140_vm2, %v7663_v55 }
 0x2d8   : > { %7687 = vmatprep.subr.msk.bf16.mxu1 %vm9140_vm2, %v7685_v57 }
 0x2d9   : > { %v8075_v1 = vpop.permute.xlu1 %8074 }
 0x2da   : > { %v8077_v10 = vunpack.i.h.bf16 %v8075_v1  ;;  %v8076_v12 = vunpack.i.l.bf16 %v8075_v1 }
 0x2dc   : > { %v7633_v22 = vpack.c.bf16 %v8077_v10, %v8076_v12 }
 0x2de   : > { %7634 = vmatprep.subr.bf16.mxu0 %v7633_v22  ;;  %7046 = vmatmul.mubr.msk.f32.vlgmr.msra.gmra.mrb[24].mxu1 %vm969_vm1, %v9162_v46  ;;  %v8061_v46 = vunpack.i.l.bf16 %v9176_v49 }
 0x2df   : > { %7636 = vmatpush3.bf16.msra.mxu0 %v7633_v22  ;;  %7048 = vmatprep.mubr.msk.f32.mxu1 %vm969_vm1, %v9154_v40 }
 0x2e0   : > { %7690 = vmatpush3.bf16.xpose.msk.msra.mxu1 %vm9140_vm2, %v7685_v57  ;;  %7638 = vmatprep.subr.bf16.mxu0 %v7637_v24  ;;  %v7697_v40 = vpack.c.bf16 %v8062_v60, %v8061_v46 }
 0x2e1   : > { %7693 = vmatprep.subr.msk.bf16.mxu1 %vm9140_vm2, %v7691_v26 }
 0x2e2   : > { %7049 = vmatmul.mubr.msk.f32.gmra.mrb[26].mxu1 %vm969_vm1, %v9166_v51  ;;  %v8067_v51 = vunpack.i.h.bf16 %v9198_v4 }
 0x2e3   : > { %7640 = vmatpush3.bf16.msra.mxu0 %v7637_v24  ;;  %7051 = vmatprep.mubr.msk.f32.mxu1 %vm969_vm1, %v9156_v44  ;;  %v8066_v44 = vunpack.i.l.bf16 %v9198_v4 }
 0x2e6   : > { %7052 = vmatmul.mubr.msk.f32.gmra.mrb[28].mxu1 %vm969_vm1, %v9174_v3  ;;  %v7703_v3 = vpack.c.bf16 %v8067_v51, %v8066_v44 }
 0x2e7   : > { %7054 = vmatprep.mubr.msk.f32.mxu1 %vm969_vm1, %v9164_v38  ;;  %v2038_v38 = vpop.permute.xlu0 %2037 }
 0x2e8   : > { %7696 = vmatpush3.bf16.xpose.msk.msra.mxu1 %vm9140_vm2, %v7691_v26 }
 0x2e9   : > { %7699 = vmatprep.subr.msk.bf16.mxu1 %vm9140_vm2, %v7697_v40 }
 0x2ea   : > { %7055 = vmatmul.mubr.msk.f32.gmra.mrb[30].mxu1 %vm969_vm1, %v9178_v20 }
 0x2eb   : > { %7129 = vmatprep.mubr.msk.f32.mxu1 %vm969_vm1, %v9180_v56 }
 0x2f0   : > { %7702 = vmatpush3.bf16.xpose.msk.msra.mxu1 %vm9140_vm2, %v7697_v40 }
 0x2f1   : > { %7705 = vmatprep.subr.msk.bf16.mxu1 %vm9140_vm2, %v7703_v3 }
 0x2f8   : > { %7708 = vmatpush3.bf16.xpose.msk.msra.mxu1 %vm9140_vm2, %v7703_v3 }
 0x2ff   : > { %7130 = vmatmul.mubr.msk.f32.vlgmr.msra.gmra.mrb[32].mxu1 %vm969_vm1, %v9213_v11 }
 0x300   : > { %7132 = vmatprep.mubr.msk.f32.mxu1 %vm969_vm1, %v9192_v61 }
 0x303   : > { %7133 = vmatmul.mubr.msk.f32.gmra.mrb[34].mxu1 %vm969_vm1, %v9228_v34 }
 0x304   : > { %7135 = vmatprep.mubr.msk.f32.mxu1 %vm969_vm1, %v9200_v5 }
 0x307   : > { %7136 = vmatmul.mubr.msk.f32.gmra.mrb[36].mxu1 %vm969_vm1, %v2036_v37 }
 0x308   : > { %7138 = vmatprep.mubr.msk.f32.mxu1 %vm969_vm1, %v2038_v38 }
 0x30b   : > { %7139 = vmatmul.mubr.msk.f32.gmra.mrb[38].mxu1 %vm969_vm1, %v2040_v48 }
 0x391   : > { %v9314_v49 = vpop.f32.mrb[16].mxu1 }
 0x392   : > { %v9316_v20 = vpop.f32.mrb[17].mxu1  ;;  %v1119_v56 = vsel %vm1115_vm3, %v9314_v49, -inf }
 0x393   : > { %1120 = vmax.xlane.f32.xlu1 %v1119_v56  ;;  %v1116_v61 = vsel %vm1115_vm3, %v9316_v20, -inf }
 0x394   : > { %1117 = vmax.xlane.f32.xlu0 %v1116_v61 }
 0x395   : > { %v9322_v4 = vpop.f32.mrb[18].mxu1 }
 0x396   : > { %v9324_v5 = vpop.f32.mrb[19].mxu1  ;;  %v1125_v11 = vsel %vm1115_vm3, %v9322_v4, -inf }
 0x397   : > { %1126 = vmax.xlane.f32.xlu1 %v1125_v11  ;;  %v1122_v27 = vsel %vm1115_vm3, %v9324_v5, -inf }
 0x398   : > { %1123 = vmax.xlane.f32.xlu0 %v1122_v27 }
 0x399   : > { %v9330_v31 = vpop.f32.mrb[20].mxu1 }
 0x39a   : > { %v9332_v33 = vpop.f32.mrb[21].mxu1  ;;  %v1131_v34 = vsel %vm1115_vm3, %v9330_v31, -inf }
 0x39b   : > { %v1128_v37 = vsel %vm1115_vm3, %v9332_v33, -inf }
 0x39c   : > { %1132 = vmax.xlane.f32.xlu0 %v1131_v34 }
 0x39d   : > { %v9336_v55 = vpop.f32.mrb[22].mxu1 }
 0x39e   : > { %v9338_v63 = vpop.f32.mrb[23].mxu1  ;;  %v1137_v36 = vsel %vm1115_vm3, %v9336_v55, -inf }
 0x39f   : > { %1138 = vmax.xlane.f32.xlu1 %v1137_v36  ;;  %v1134_v28 = vsel %vm1115_vm3, %v9338_v63, -inf }
 0x3a0   : > { %1129 = vmax.xlane.f32.xlu0 %v1128_v37 }
 0x3a4   : > { %1135 = vmax.xlane.f32.xlu0 %v1134_v28 }
 0x3b1   : > { %v9346_v43 = vpop.f32.mrb[24].mxu1 }
 0x3b2   : > { %v9348_v45 = vpop.f32.mrb[25].mxu1  ;;  %v1529_v52 = vsel %vm1115_vm3, %v9346_v43, -inf }
 0x3b3   : > { %1530 = vmax.xlane.f32.xlu1 %v1529_v52  ;;  %v1526_v48 = vsel %vm1115_vm3, %v9348_v45, -inf }
 0x3b4   : > { %1527 = vmax.xlane.f32.xlu0 %v1526_v48 }
 0x3b5   : > { %v9354_v57 = vpop.f32.mrb[26].mxu1 }
 0x3b6   : > { %v9356_v47 = vpop.f32.mrb[27].mxu1  ;;  %v1535_v1 = vsel %vm1115_vm3, %v9354_v57, -inf }
 0x3b7   : > { %1536 = vmax.xlane.f32.xlu1 %v1535_v1  ;;  %v1532_v54 = vsel %vm1115_vm3, %v9356_v47, -inf }
 0x3b8   : > { %1533 = vmax.xlane.f32.xlu0 %v1532_v54 }
 0x3b9   : > { %v9362_v7 = vpop.f32.mrb[28].mxu1 }
 0x3ba   : > { %v9364_v10 = vpop.f32.mrb[29].mxu1  ;;  %v1541_v12 = vsel %vm1115_vm3, %v9362_v7, -inf }
 0x3bb   : > { %1542 = vmax.xlane.f32.xlu1 %v1541_v12  ;;  %v1538_v53 = vsel %vm1115_vm3, %v9364_v10, -inf }
 0x3bc   : > { %1539 = vmax.xlane.f32.xlu0 %v1538_v53 }
 0x3bd   : > { %v9370_v19 = vpop.f32.mrb[30].mxu1 }
 0x3be   : > { %v9372_v22 = vpop.f32.mrb[31].mxu1  ;;  %v1547_v24 = vsel %vm1115_vm3, %v9370_v19, -inf }
 0x3bf   : > { %1548 = vmax.xlane.f32.xlu1 %v1547_v24  ;;  %v1544_v56 = vsel %vm1115_vm3, %v9372_v22, -inf }
 0x3d0   : > { %8084 = vrot.lane.b32.xlu1 %v9070_v14, %s8713_s21 }
 0x3d2   : > { %v9378_v26 = vpop.f32.mrb[32].mxu1  ;;  %8089 = vrot.lane.b32.xlu0 %v9044_v42, %s8714_s22 }
 0x3d3   : > { %v9382_v60 = vpop.f32.mrb[33].mxu1 }
 0x3d6   : > { %v9384_v46 = vpop.f32.mrb[34].mxu1 }
 0x3d7   : > { %v9386_v40 = vpop.f32.mrb[35].mxu1 }
 0x3da   : > { %v9388_v51 = vpop.f32.mrb[36].mxu1 }
 0x3db   : > { %v9390_v44 = vpop.f32.mrb[37].mxu1 }
 0x3de   : > { %v9392_v3 = vpop.f32.mrb[38].mxu1 }
 0x3df   : > { %v9394_v38 = vpop.f32.mrb[39].mxu1 }
 0x3f1   : > { %1545 = vmax.xlane.f32.xlu0 %v1544_v56 }
 0x407   : > { %8094 = vrot.lane.b32.xlu0 %v9054_v6, %s8714_s22 }
 0x420   : > { %v1121_v61 = vpop.xlane.xlu1 %1120 }
 0x421   : > { %v1141_v11 = vsub.f32 %v9314_v49, %v1121_v61  ;;  %v1118_v27 = vpop.xlane.xlu0 %1117 }
 0x422   : > { %v1140_v34 = vsub.f32 %v9316_v20, %v1118_v27 }
 0x423   : > { %v1150_v36 = vmul.f32 1.442695, %v1141_v11 }
 0x424   : > { %v1148_v37 = vmul.f32 1.442695, %v1140_v34  ;;  %v1127_v28 = vpop.xlane.xlu1 %1126 }
 0x425   : > { %8360 = vpow2.f32 %v1150_v36  ;;  %v1143_v52 = vsub.f32 %v9322_v4, %v1127_v28  ;;  %v1124_v48 = vpop.xlane.xlu0 %1123 }
 0x426   : > { %8362 = vpow2.f32 %v1148_v37  ;;  %v1142_v1 = vsub.f32 %v9324_v5, %v1124_v48 }
 0x427   : > { %v1154_v54 = vmul.f32 1.442695, %v1143_v52 }
 0x428   : > { %v1152_v12 = vmul.f32 1.442695, %v1142_v1 }
 0x429   : > { %8364 = vpow2.f32 %v1154_v54  ;;  %v1133_v53 = vpop.xlane.xlu0 %1132 }
 0x42a   : > { %8366 = vpow2.f32 %v1152_v12  ;;  %v1145_v49 = vsub.f32 %v9330_v31, %v1133_v53 }
 0x42c   : > { %v1158_v24 = vmul.f32 1.442695, %v1145_v49  ;;  %v1139_v56 = vpop.xlane.xlu1 %1138 }
 0x42d   : > { %v1147_v20 = vsub.f32 %v9336_v55, %v1139_v56  ;;  %v1130_v61 = vpop.xlane.xlu0 %1129 }
 0x42e   : > { %8368 = vpow2.f32 %v1158_v24  ;;  %v1144_v11 = vsub.f32 %v9332_v33, %v1130_v61 }
 0x42f   : > { %v9407_v4 = vpop.eup %8360  ;;  %v1162_v27 = vmul.f32 1.442695, %v1147_v20 }
 0x430   : > { %v9409_v34 = vpop.eup %8362  ;;  %v1156_v5 = vmul.f32 1.442695, %v1144_v11  ;;  %v1167_v36 = vsel %vm1115_vm3, %v9407_v4, 0.0 }
 0x431   : > { %8370 = vpow2.f32 %v1162_v27  ;;  %1168 = vadd.xlane.f32.xlu1 %v1167_v36  ;;  %v1136_v31 = vpop.xlane.xlu0 %1135  ;;  %v1164_v37 = vsel %vm1115_vm3, %v9409_v34, 0.0 }
 0x432   : > { %8372 = vpow2.f32 %v1156_v5  ;;  %v1146_v55 = vsub.f32 %v9338_v63, %v1136_v31  ;;  %1165 = vadd.xlane.f32.xlu0 %v1164_v37 }
 0x433   : > { %v9416_v33 = vpop.eup %8364 }
 0x434   : > { %v9418_v28 = vpop.eup %8366  ;;  %v1160_v52 = vmul.f32 1.442695, %v1146_v55  ;;  %v1173_v48 = vsel %vm1115_vm3, %v9416_v33, 0.0 }
 0x435   : > { %1174 = vadd.xlane.f32.xlu1 %v1173_v48  ;;  %v1170_v1 = vsel %vm1115_vm3, %v9418_v28, 0.0 }
 0x436   : > { %8374 = vpow2.f32 %v1160_v52  ;;  %1171 = vadd.xlane.f32.xlu0 %v1170_v1 }
 0x438   : > { %v9424_v54 = vpop.eup %8368 }
 0x439   : > { %v1179_v63 = vsel %vm1115_vm3, %v9424_v54, 0.0 }
 0x43a   : > { %1180 = vadd.xlane.f32.xlu1 %v1179_v63 }
 0x43b   : > { %v9428_v12 = vpop.eup %8370 }
 0x43c   : > { %v9430_v53 = vpop.eup %8372  ;;  %v1185_v49 = vsel %vm1115_vm3, %v9428_v12, 0.0 }
 0x43d   : > { %v1176_v24 = vsel %vm1115_vm3, %v9430_v53, 0.0 }
 0x43e   : > { %1186 = vadd.xlane.f32.xlu1 %v1185_v49  ;;  %1177 = vadd.xlane.f32.xlu0 %v1176_v24 }
 0x440   : > { %v9436_v56 = vpop.eup %8374  ;;  %v1531_v20 = vpop.xlane.xlu1 %1530 }
 0x441   : > { %v1551_v61 = vsub.f32 %v9346_v43, %v1531_v20  ;;  %v1528_v11 = vpop.xlane.xlu0 %1527  ;;  %v1182_v27 = vsel %vm1115_vm3, %v9436_v56, 0.0 }
 0x442   : > { %v1550_v5 = vsub.f32 %v9348_v45, %v1528_v11  ;;  %1183 = vadd.xlane.f32.xlu1 %v1182_v27 }
 0x443   : > { %v1560_v36 = vmul.f32 1.442695, %v1551_v61 }
 0x444   : > { %v1558_v31 = vmul.f32 1.442695, %v1550_v5  ;;  %v1537_v37 = vpop.xlane.xlu1 %1536 }
 0x445   : > { %8376 = vpow2.f32 %v1560_v36  ;;  %v1553_v55 = vsub.f32 %v9354_v57, %v1537_v37  ;;  %v1534_v52 = vpop.xlane.xlu0 %1533 }
 0x446   : > { %8378 = vpow2.f32 %v1558_v31  ;;  %v1552_v48 = vsub.f32 %v9356_v47, %v1534_v52 }
 0x447   : > { %v1564_v1 = vmul.f32 1.442695, %v1553_v55 }
 0x448   : > { %v1562_v63 = vmul.f32 1.442695, %v1552_v48  ;;  %v1543_v43 = vpop.xlane.xlu1 %1542 }
 0x449   : > { %8380 = vpow2.f32 %v1564_v1  ;;  %v1555_v49 = vsub.f32 %v9362_v7, %v1543_v43  ;;  %v1540_v24 = vpop.xlane.xlu0 %1539 }
 0x44a   : > { %v1554_v45 = vsub.f32 %v9364_v10, %v1540_v24  ;;  %8382 = vpow2.f32 %v1562_v63 }
 0x44b   : > { %v1568_v20 = vmul.f32 1.442695, %v1555_v49 }
 0x44c   : > { %v1566_v61 = vmul.f32 1.442695, %v1554_v45  ;;  %v1549_v11 = vpop.xlane.xlu1 %1548 }
 0x44d   : > { %v1557_v27 = vsub.f32 %v9370_v19, %v1549_v11  ;;  %v8090_v57 = vpop.permute.xlu0 %8089 }
 0x44e   : > { %8384 = vpow2.f32 %v1566_v61  ;;  %v8092_v31 = vunpack.i.h.bf16 %v8090_v57  ;;  %v8091_v10 = vunpack.i.l.bf16 %v8090_v57 }
 0x44f   : > { %v9447_v5 = vpop.eup %8376  ;;  %8386 = vpow2.f32 %v1568_v20  ;;  %v1572_v47 = vmul.f32 1.442695, %v1557_v27 }
 0x450   : > { %v9449_v36 = vpop.eup %8378  ;;  %v8085_v37 = vpop.permute.xlu1 %8084  ;;  %v1577_v7 = vsel %vm1115_vm3, %v9447_v5, 0.0  ;;  %v9461_v49 = vpack.c.bf16 %v8092_v31, %v8091_v10 }
 0x451   : > { %v8087_v55 = vunpack.i.h.bf16 %v8085_v37  ;;  %v8086_v52 = vunpack.i.l.bf16 %v8085_v37  ;;  %1578 = vadd.xlane.f32.xlu1 %v1577_v7  ;;  %v1574_v19 = vsel %vm1115_vm3, %v9449_v36, 0.0  ;;  %8388 = vpow2.f32 %v1572_v47 }
 0x452   : > { %1575 = vadd.xlane.f32.xlu0 %v1574_v19 }
 0x453   : > { %v9455_v48 = vpop.eup %8380  ;;  %v7641_v1 = vpack.c.bf16 %v8087_v55, %v8086_v52 }
 0x454   : > { %v1583_v63 = vsel %vm1115_vm3, %v9455_v48, 0.0  ;;  %v9459_v43 = vpop.eup %8382 }
 0x455   : > { %7642 = vmatprep.subr.bf16.mxu0 %v7641_v1  ;;  %1584 = vadd.xlane.f32.xlu1 %v1583_v63  ;;  %v1580_v45 = vsel %vm1115_vm3, %v9459_v43, 0.0 }
 0x456   : > { %7644 = vmatpush3.bf16.msra.mxu0 %v7641_v1 }
 0x457   : > { %7670 = vmatprep.subr.bf16.mxu0 %v9461_v49 }
 0x458   : > { %v9464_v24 = vpop.eup %8384 }
 0x459   : > { %v9468_v20 = vpop.eup %8386  ;;  %1581 = vadd.xlane.f32.xlu1 %v1580_v45  ;;  %v1586_v61 = vsel %vm1115_vm3, %v9464_v24, 0.0 }
 0x45a   : > { %1587 = vadd.xlane.f32.xlu0 %v1586_v61  ;;  %v1589_v11 = vsel %vm1115_vm3, %v9468_v20, 0.0 }
 0x45b   : > { %v9474_v27 = vpop.eup %8388 }
 0x45c   : > { %v1595_v57 = vsel %vm1115_vm3, %v9474_v27, 0.0 }
 0x45d   : > { %1590 = vadd.xlane.f32.xlu1 %v1589_v11 }
 0x461   : > { %1596 = vadd.xlane.f32.xlu1 %v1595_v57 }
 0x470   : > { %8104 = vrot.lane.b32.xlu0 %v9070_v14, %s8714_s22 }
 0x474   : > { %8109 = vrot.lane.b32.xlu0 %v9044_v42, %s8715_s23 }
 0x478   : > { %8114 = vrot.lane.b32.xlu0 %v9054_v6, %s8715_s23 }
 0x47c   : > { %8119 = vrot.lane.b32.xlu0 %v9062_v21, %s8715_s23 }
 0x47e   : > { %v1546_v47 = vpop.xlane.xlu0 %1545 }
 0x47f   : > { %v1556_v31 = vsub.f32 %v9372_v22, %v1546_v47 }
 0x480   : > { %2572 = vrot.lane.b32.xlu0 %v9046_v0, %s8716_s24  ;;  %v2194_v0 = vsel %vm1115_vm3, %v9382_v60, -inf }
 0x481   : > { %v1570_v37 = vmul.f32 1.442695, %v1556_v31 }
 0x483   : > { %8390 = vpow2.f32 %v1570_v37 }
 0x484   : > { %2576 = vrot.lane.b32.xlu0 %v9076_v15, %s8716_s24  ;;  %v2200_v15 = vsel %vm1115_vm3, %v9386_v40, -inf }
 0x488   : > { %2580 = vrot.lane.b32.xlu0 %v9082_v16, %s8716_s24  ;;  %v2203_v16 = vsel %vm1115_vm3, %v9384_v46, -inf }
 0x48c   : > { %2584 = vrot.lane.b32.xlu0 %v9090_v58, %s8716_s24  ;;  %v2212_v58 = vsel %vm1115_vm3, %v9394_v38, -inf }
 0x48d   : > { %v9495_v7 = vpop.eup %8390 }
 0x48e   : > { %v1592_v22 = vsel %vm1115_vm3, %v9495_v7, 0.0 }
 0x48f   : > { %1593 = vadd.xlane.f32.xlu1 %v1592_v22 }
 0x4a0   : > { %8099 = vrot.lane.b32.xlu1 %v9062_v21, %s8714_s22 }
 0x4a4   : > { %8124 = vrot.lane.b32.xlu1 %v9070_v14, %s8715_s23 }
 0x4a8   : > { %2574 = vrot.lane.b32.xlu1 %v9088_v17, %s8716_s24  ;;  %v2206_v17 = vsel %vm1115_vm3, %v9390_v44, -inf }
 0x4ab   : > { %2195 = vmax.xlane.f32.xlu0 %v2194_v0 }
 0x4ac   : > { %2578 = vrot.lane.b32.xlu1 %v9096_v59, %s8716_s24  ;;  %v8095_v59 = vpop.permute.xlu0 %8094 }
 0x4ad   : > { %v8097_v63 = vunpack.i.h.bf16 %v8095_v59  ;;  %v8096_v45 = vunpack.i.l.bf16 %v8095_v59  ;;  %v2209_v59 = vsel %vm1115_vm3, %v9388_v51, -inf }
 0x4af   : > { %2201 = vmax.xlane.f32.xlu0 %v2200_v15  ;;  %v7673_v22 = vpack.c.bf16 %v8097_v63, %v8096_v45 }
 0x4b0   : > { %2582 = vrot.lane.b32.xlu1 %v9102_v18, %s8716_s24 }
 0x4b3   : > { %2204 = vmax.xlane.f32.xlu0 %v2203_v16 }
 0x4b4   : > { %2586 = vrot.lane.b32.xlu1 %v9108_v29, %s8716_s24 }
 0x4b7   : > { %2207 = vmax.xlane.f32.xlu0 %v2206_v17 }
 0x4bb   : > { %2213 = vmax.xlane.f32.xlu0 %v2212_v58 }
 0x4be   : > { %v1169_v10 = vpop.xlane.xlu1 %1168 }
 0x4bf   : > { %8392 = vrcp.f32 %v1169_v10  ;;  %v1166_v55 = vpop.xlane.xlu0 %1165 }
 0x4c0   : > { %8394 = vrcp.f32 %v1166_v55 }
 0x4c2   : > { %v1175_v18 = vpop.xlane.xlu1 %1174 }
 0x4c3   : > { %8396 = vrcp.f32 %v1175_v18  ;;  %v1172_v52 = vpop.xlane.xlu0 %1171 }
 0x4c4   : > { %8398 = vrcp.f32 %v1172_v52 }
 0x4c7   : > { %v1181_v19 = vpop.xlane.xlu1 %1180 }
 0x4c8   : > { %8400 = vrcp.f32 %v1181_v19 }
 0x4c9   : > { %v8393_v1 = vpop.eup %8392 }
 0x4ca   : > { %v8395_v29 = vpop.eup %8394  ;;  %v1197_v47 = vmul.f32 %v8393_v1, %v9407_v4 }
 0x4cb   : > { %v1187_v61 = vpop.xlane.xlu1 %1186  ;;  %v1178_v11 = vpop.xlane.xlu0 %1177  ;;  %v1196_v57 = vmul.f32 %v8395_v29, %v9409_v34 }
 0x4cc   : > { %8402 = vrcp.f32 %v1178_v11 }
 0x4cd   : > { %v8397_v31 = vpop.eup %8396  ;;  %7017 = vmatprep.mubr.msk.f32.mxu0 %vm1115_vm3, %v1196_v57  ;;  %8404 = vrcp.f32 %v1187_v61 }
 0x4ce   : > { %v8399_v37 = vpop.eup %8398  ;;  %7018 = vmatmul.mubr.msk.f32.vlgmr.msra.gmra.mrb[0].mxu0 %vm1115_vm3, %v1197_v47  ;;  %v1199_v34 = vmul.f32 %v8397_v31, %v9416_v33 }
 0x4cf   : > { %7672 = vmatpush3.bf16.msra.mxu0 %v9461_v49  ;;  %v1184_v0 = vpop.xlane.xlu1 %1183  ;;  %v1198_v15 = vmul.f32 %v8399_v37, %v9418_v28  ;;  %v2197_v49 = vsel %vm1115_vm3, %v9378_v26, -inf }
 0x4d0   : > { %8406 = vrcp.f32 %v1184_v0  ;;  %7674 = vmatprep.subr.bf16.mxu0 %v7673_v22 }
 0x4d1   : > { %8129 = vrot.lane.b32.xlu0 %v9044_v42, %s8717_s26  ;;  %7020 = vmatprep.mubr.msk.f32.mxu0 %vm1115_vm3, %v1198_v15 }
 0x4d2   : > { %7021 = vmatmul.mubr.msk.f32.gmra.mrb[2].mxu0 %vm1115_vm3, %v1199_v34  ;;  %v8401_v4 = vpop.eup %8400 }
 0x4d3   : > { %7676 = vmatpush3.bf16.msra.mxu0 %v7673_v22  ;;  %v1201_v33 = vmul.f32 %v8401_v4, %v9424_v54  ;;  %v2215_v54 = vsel %vm1115_vm3, %v9392_v3, -inf }
 0x4d6   : > { %v8403_v16 = vpop.eup %8402 }
 0x4d7   : > { %v1200_v28 = vmul.f32 %v8403_v16, %v9430_v53  ;;  %v8405_v17 = vpop.eup %8404 }
 0x4d8   : > { %2198 = vmax.xlane.f32.xlu1 %v2197_v49  ;;  %v1203_v55 = vmul.f32 %v8405_v17, %v9428_v12 }
 0x4d9   : > { %7023 = vmatprep.mubr.msk.f32.mxu0 %vm1115_vm3, %v1200_v28 }
 0x4da   : > { %v8407_v58 = vpop.eup %8406  ;;  %7024 = vmatmul.mubr.msk.f32.gmra.mrb[4].mxu0 %vm1115_vm3, %v1201_v33 }
 0x4db   : > { %v1202_v10 = vmul.f32 %v8407_v58, %v9436_v56 }
 0x4dc   : > { %2210 = vmax.xlane.f32.xlu1 %v2209_v59 }
 0x4dd   : > { %7026 = vmatprep.mubr.msk.f32.mxu0 %vm1115_vm3, %v1202_v10 }
 0x4de   : > { %7027 = vmatmul.mubr.msk.f32.gmra.mrb[6].mxu0 %vm1115_vm3, %v1203_v55  ;;  %v1579_v0 = vpop.xlane.xlu1 %1578 }
 0x4df   : > { %v1576_v53 = vpop.xlane.xlu0 %1575 }
 0x4e0   : > { %8408 = vrcp.f32 %v1576_v53  ;;  %2216 = vmax.xlane.f32.xlu1 %v2215_v54 }
 0x4e1   : > { %8410 = vrcp.f32 %v1579_v0 }
 0x4e2   : > { %v1585_v15 = vpop.xlane.xlu1 %1584 }
 0x4e6   : > { %v1582_v34 = vpop.xlane.xlu1 %1581 }
 0x4e7   : > { %v1588_v18 = vpop.xlane.xlu0 %1587  ;;  %8412 = vrcp.f32 %v1582_v34 }
 0x4e8   : > { %8414 = vrcp.f32 %v1585_v15 }
 0x4e9   : > { %8416 = vrcp.f32 %v1588_v18 }
 0x4ea   : > { %v8409_v52 = vpop.eup %8408  ;;  %v1591_v4 = vpop.xlane.xlu1 %1590 }
 0x4eb   : > { %v8105_v19 = vpop.permute.xlu0 %8104  ;;  %v1606_v1 = vmul.f32 %v8409_v52, %v9449_v36  ;;  %8418 = vrcp.f32 %v1591_v4 }
 0x4ec   : > { %v8107_v17 = vunpack.i.h.bf16 %v8105_v19  ;;  %v8106_v33 = vunpack.i.l.bf16 %v8105_v19 }
 0x4ed   : > { %7073 = vmatprep.mubr.msk.f32.mxu0 %vm1115_vm3, %v1606_v1 }
 0x4ee   : > { %v1597_v16 = vpop.xlane.xlu1 %1596  ;;  %v7681_v52 = vpack.c.bf16 %v8107_v17, %v8106_v33 }
 0x4ef   : > { %v8110_v56 = vpop.permute.xlu0 %8109 }
 0x4f0   : > { %v8112_v29 = vunpack.i.h.bf16 %v8110_v56  ;;  %v8111_v63 = vunpack.i.l.bf16 %v8110_v56  ;;  %v8411_v56 = vpop.eup %8410 }
 0x4f1   : > { %8134 = vrot.lane.b32.xlu1 %v9054_v6, %s8717_s26  ;;  %v1607_v18 = vmul.f32 %v8411_v56, %v9447_v5 }
 0x4f2   : > { %v7725_v12 = vpack.c.bf16 %v8112_v29, %v8111_v63  ;;  %v8413_v63 = vpop.eup %8412 }
 0x4f3   : > { %v8115_v45 = vpop.permute.xlu0 %8114 }
 0x4f4   : > { %v8117_v61 = vunpack.i.h.bf16 %v8115_v45  ;;  %v8116_v11 = vunpack.i.l.bf16 %v8115_v45  ;;  %7727 = vmatprep.subr.msk.bf16.mxu1 %vm9140_vm2, %v7725_v12  ;;  %v1608_v45 = vmul.f32 %v8413_v63, %v9459_v43 }
 0x4f5   : > { %7730 = vmatpush3.bf16.xpose.msk.msra.mxu1 %vm9140_vm2, %v7725_v12  ;;  %v8415_v12 = vpop.eup %8414 }
 0x4f6   : > { %v7731_v57 = vpack.c.bf16 %v8117_v61, %v8116_v11  ;;  %v8417_v61 = vpop.eup %8416 }
 0x4f7   : > { %v8120_v36 = vpop.permute.xlu0 %8119 }
 0x4f8   : > { %v8122_v47 = vunpack.i.h.bf16 %v8120_v36  ;;  %v8121_v31 = vunpack.i.l.bf16 %v8120_v36  ;;  %7733 = vmatprep.subr.msk.bf16.mxu1 %vm9140_vm2, %v7731_v57  ;;  %v8419_v36 = vpop.eup %8418 }
 0x4f9   : > { %v1611_v5 = vmul.f32 %v8419_v36, %v9468_v20  ;;  %v9652_v36 = vmul.f32 0.35355338, %v9257_v41 }
 0x4fa   : > { %v7737_v22 = vpack.c.bf16 %v8122_v47, %v8121_v31  ;;  %v1610_v31 = vmul.f32 %v8417_v61, %v9464_v24  ;;  %v9639_v61 = vmul.f32 0.35355338, %v9231_v62 }
 0x4fb   : > { %v2573_v37 = vpop.permute.xlu0 %2572 }
 0x4fc   : > { %7199 = vmatprep.mubr.msk.f32.mxu1 %vm969_vm1, %v2573_v37 }
 0x4fd   : > { %7736 = vmatpush3.bf16.xpose.msk.msra.mxu1 %vm9140_vm2, %v7731_v57  ;;  %v1609_v57 = vmul.f32 %v8415_v12, %v9455_v48 }
 0x4fe   : > { %7739 = vmatprep.subr.msk.bf16.mxu1 %vm9140_vm2, %v7737_v22 }
 0x4ff   : > { %v2577_v29 = vpop.permute.xlu0 %2576 }
 0x503   : > { %v2581_v11 = vpop.permute.xlu0 %2580 }
 0x505   : > { %7742 = vmatpush3.bf16.xpose.msk.msra.mxu1 %vm9140_vm2, %v7737_v22 }
 0x507   : > { %v2585_v22 = vpop.permute.xlu0 %2584 }
 0x51c   : > { %v1594_v49 = vpop.xlane.xlu1 %1593 }
 0x51d   : > { %8420 = vrcp.f32 %v1594_v49 }
 0x51e   : > { %8422 = vrcp.f32 %v1597_v16  ;;  %v9589_v16 = vmul.f32 0.35355338, %v9216_v13 }
 0x520   : > { %v8100_v28 = vpop.permute.xlu1 %8099 }
 0x521   : > { %v8102_v58 = vunpack.i.h.bf16 %v8100_v28  ;;  %v8101_v59 = vunpack.i.l.bf16 %v8100_v28 }
 0x523   : > { %v7677_v10 = vpack.c.bf16 %v8102_v58, %v8101_v59 }
 0x524   : > { %v8125_v55 = vpop.permute.xlu1 %8124 }
 0x525   : > { %v8127_v53 = vunpack.i.h.bf16 %v8125_v55  ;;  %v8126_v54 = vunpack.i.l.bf16 %v8125_v55  ;;  %7678 = vmatprep.subr.bf16.mxu0 %v7677_v10 }
 0x526   : > { %7680 = vmatpush3.bf16.msra.mxu0 %v7677_v10 }
 0x527   : > { %v7743_v1 = vpack.c.bf16 %v8127_v53, %v8126_v54  ;;  %7682 = vmatprep.subr.bf16.mxu0 %v7681_v52  ;;  %v8421_v37 = vpop.eup %8420 }
 0x528   : > { %v2575_v19 = vpop.permute.xlu1 %2574  ;;  %v8423_v43 = vpop.eup %8422  ;;  %v1612_v0 = vmul.f32 %v8421_v37, %v9495_v7 }
 0x529   : > { %7745 = vmatprep.subr.msk.bf16.mxu1 %vm9140_vm2, %v7743_v1  ;;  %v1613_v24 = vmul.f32 %v8423_v43, %v9474_v27 }
 0x52a   : > { %7684 = vmatpush3.bf16.msra.mxu0 %v7681_v52  ;;  %7748 = vmatpush3.bf16.xpose.msk.msra.mxu1 %vm9140_vm2, %v7743_v1 }
 0x52c   : > { %v2579_v47 = vpop.permute.xlu1 %2578 }
 0x52d   : > { %7074 = vmatmul.mubr.msk.f32.vlgmr.msra.gmra.mrb[8].mxu0 %vm1115_vm3, %v1607_v18 }
 0x52e   : > { %7076 = vmatprep.mubr.msk.f32.mxu0 %vm1115_vm3, %v1608_v45  ;;  %v942_v45 = vld [vmem:[%s10987_s5 + $0x8] sm:$0xff] }
 0x52f   : > { %7085 = vmatprep.subr.mxu0 %v942_v45 }
 0x530   : > { %v2583_v48 = vpop.permute.xlu1 %2582  ;;  %7086 = vmatpush3.msra.mxu0 %v942_v45 }
 0x531   : > { %7077 = vmatmul.mubr.msk.f32.gmra.mrb[10].mxu0 %vm1115_vm3, %v1609_v57  ;;  %7200 = vmatmul.mubr.msk.f32.vlgmr.msra.gmra.mrb[40].mxu1 %vm969_vm1, %v2575_v19  ;;  %v9647_v57 = vmul.f32 0.35355338, %v9245_v9 }
 0x532   : > { %7079 = vmatprep.mubr.msk.f32.mxu0 %vm1115_vm3, %v1610_v31  ;;  %7202 = vmatprep.mubr.msk.f32.mxu1 %vm969_vm1, %v2577_v29 }
 0x534   : > { %v2587_v7 = vpop.permute.xlu1 %2586 }
 0x535   : > { %7080 = vmatmul.mubr.msk.f32.gmra.mrb[12].mxu0 %vm1115_vm3, %v1611_v5  ;;  %7203 = vmatmul.mubr.msk.f32.gmra.mrb[42].mxu1 %vm969_vm1, %v2579_v47 }
 0x536   : > { %7082 = vmatprep.mubr.msk.f32.mxu0 %vm1115_vm3, %v1612_v0  ;;  %7205 = vmatprep.mubr.msk.f32.mxu1 %vm969_vm1, %v2581_v11  ;;  %v941_v11 = vld [vmem:[%s10987_s5] sm:$0xff] }
 0x537   : > { %7099 = vmatprep.subr.mxu0 %v941_v11 }
 0x538   : > { %v2196_v15 = vpop.xlane.xlu0 %2195 }
 0x539   : > { %v2218_v34 = vsub.f32 %v9382_v60, %v2196_v15  ;;  %7083 = vmatmul.mubr.msk.f32.gmra.mrb[14].mxu0 %vm1115_vm3, %v1613_v24  ;;  %7206 = vmatmul.mubr.msk.f32.gmra.mrb[44].mxu1 %vm969_vm1, %v2583_v48 }
 0x53a   : > { %7208 = vmatprep.mubr.msk.f32.mxu1 %vm969_vm1, %v2585_v22 }
 0x53b   : > { %v2226_v20 = vmul.f32 1.442695, %v2218_v34 }
 0x53c   : > { %v2202_v4 = vpop.xlane.xlu0 %2201 }
 0x53d   : > { %8424 = vpow2.f32 %v2226_v20  ;;  %v2220_v49 = vsub.f32 %v9386_v40, %v2202_v4  ;;  %7209 = vmatmul.mubr.msk.f32.gmra.mrb[46].mxu1 %vm969_vm1, %v2587_v7 }
 0x53e   : > { %7269 = vmatprep.mubr.msk.f32.mxu1 %vm969_vm1, %v9589_v16 }
 0x53f   : > { %v2230_v60 = vmul.f32 1.442695, %v2220_v49  ;;  %v9693_v49 = vmul.f32 0.35355338, %v9211_v8 }
 0x540   : > { %v2205_v27 = vpop.xlane.xlu0 %2204 }
 0x541   : > { %8426 = vpow2.f32 %v2230_v60 }
 0x544   : > { %v2208_v28 = vpop.xlane.xlu0 %2207 }
 0x545   : > { %v2222_v17 = vsub.f32 %v9390_v44, %v2208_v28  ;;  %v2221_v44 = vsub.f32 %v9384_v46, %v2205_v27  ;;  %v9698_v27 = vmul.f32 0.35355338, %v9226_v32 }
 0x547   : > { %v9596_v33 = vpop.eup %8424  ;;  %v2234_v58 = vmul.f32 1.442695, %v2222_v17  ;;  %v2232_v52 = vmul.f32 1.442695, %v2221_v44  ;;  %v9705_v17 = vmul.f32 0.35355338, %v9242_v39 }
 0x548   : > { %v2242_v13 = vsel %vm1115_vm3, %v9596_v33, 0.0  ;;  %v2214_v31 = vpop.xlane.xlu0 %2213 }
 0x549   : > { %8428 = vpow2.f32 %v2234_v58  ;;  %2243 = vadd.xlane.f32.xlu0 %v2242_v13  ;;  %v2224_v37 = vsub.f32 %v9394_v38, %v2214_v31  ;;  %v9712_v58 = vmul.f32 0.35355338, %v9254_v23 }
 0x54b   : > { %v9600_v40 = vpop.eup %8426  ;;  %v2238_v22 = vmul.f32 1.442695, %v2224_v37 }
 0x54c   : > { %v2248_v59 = vsel %vm1115_vm3, %v9600_v40, 0.0  ;;  %v8130_v4 = vpop.permute.xlu0 %8129 }
 0x54d   : > { %2249 = vadd.xlane.f32.xlu0 %v2248_v59  ;;  %v8132_v39 = vunpack.i.h.bf16 %v8130_v4 }
 0x553   : > { %v9604_v10 = vpop.eup %8428 }
 0x554   : > { %v2254_v55 = vsel %vm1115_vm3, %v9604_v10, 0.0 }
 0x555   : > { %2255 = vadd.xlane.f32.xlu0 %v2254_v55 }
 0x565   : > { %v2199_v53 = vpop.xlane.xlu1 %2198 }
 0x566   : > { %v2219_v54 = vsub.f32 %v9378_v26, %v2199_v53  ;;  %v8131_v53 = vunpack.i.l.bf16 %v8130_v4 }
 0x568   : > { %v2228_v1 = vmul.f32 1.442695, %v2219_v54 }
 0x569   : > { %v2211_v56 = vpop.xlane.xlu1 %2210 }
 0x56a   : > { %8430 = vpow2.f32 %v2228_v1  ;;  %v2223_v29 = vsub.f32 %v9388_v51, %v2211_v56  ;;  %v7709_v56 = vpack.c.bf16 %v8132_v39, %v8131_v53 }
 0x56b   : > { %8139 = vrot.lane.b32.xlu0 %v9062_v21, %s8717_s26  ;;  %8432 = vpow2.f32 %v2232_v52 }
 0x56c   : > { %v2236_v63 = vmul.f32 1.442695, %v2223_v29 }
 0x56d   : > { %v2217_v62 = vpop.xlane.xlu1 %2216 }
 0x56e   : > { %8434 = vpow2.f32 %v2236_v63  ;;  %v2225_v47 = vsub.f32 %v9392_v3, %v2217_v62 }
 0x56f   : > { %8149 = vrot.lane.b32.xlu0 %v9223_v30, %s8708_s16 }
 0x570   : > { %v2240_v9 = vmul.f32 1.442695, %v2225_v47 }
 0x571   : > { %v8135_v54 = vpop.permute.xlu1 %8134 }
 0x572   : > { %8436 = vpow2.f32 %v2240_v9  ;;  %v8136_v39 = vunpack.i.l.bf16 %v8135_v54 }
 0x573   : > { %8159 = vrot.lane.b32.xlu0 %v9251_v50, %s8708_s16  ;;  %8438 = vpow2.f32 %v2238_v22 }
 0x574   : > { %v9617_v46 = vpop.eup %8430 }
 0x575   : > { %v2245_v26 = vsel %vm1115_vm3, %v9617_v46, 0.0  ;;  %v9621_v19 = vpop.eup %8432 }
 0x576   : > { %2246 = vadd.xlane.f32.xlu1 %v2245_v26  ;;  %v2251_v51 = vsel %vm1115_vm3, %v9621_v19, 0.0 }
 0x577   : > { %8169 = vrot.lane.b32.xlu0 %v9223_v30, %s8709_s17 }
 0x578   : > { %v9627_v18 = vpop.eup %8434 }
 0x579   : > { %v2257_v12 = vsel %vm1115_vm3, %v9627_v18, 0.0 }
 0x57a   : > { %2252 = vadd.xlane.f32.xlu1 %v2251_v51 }
 0x57b   : > { %8179 = vrot.lane.b32.xlu0 %v9251_v50, %s8709_s17 }
 0x57c   : > { %v9670_v24 = vpop.eup %8436 }
 0x57d   : > { %v2263_v38 = vsel %vm1115_vm3, %v9670_v24, 0.0  ;;  %v9678_v34 = vpop.eup %8438 }
 0x57e   : > { %2258 = vadd.xlane.f32.xlu1 %v2257_v12  ;;  %v2260_v7 = vsel %vm1115_vm3, %v9678_v34, 0.0 }
 0x57f   : > { %3529 = vrot.lane.b32.xlu0 %v9589_v16, %s8710_s18 }
 0x583   : > { %3533 = vrot.lane.b32.xlu0 %v9639_v61, %s8710_s18 }
 0x587   : > { %3537 = vrot.lane.b32.xlu0 %v9647_v57, %s8710_s18 }
 0x58b   : > { %3541 = vrot.lane.b32.xlu0 %v9652_v36, %s8710_s18 }
 0x58f   : > { %8144 = vrot.lane.b32.xlu1 %v9070_v14, %s8717_s26 }
 0x5a1   : > { %v9660_v5 = vpop.f32.mrb[0].mxu0 }
 0x5a2   : > { %v9662_v43 = vpop.f32.mrb[1].mxu0 }
 0x5a5   : > { %v9664_v41 = vpop.f32.mrb[2].mxu0 }
 0x5a6   : > { %v9666_v0 = vpop.f32.mrb[3].mxu0 }
 0x5ad   : > { %v9668_v48 = vpop.f32.mrb[4].mxu0 }
 0x5ae   : > { %v9672_v3 = vpop.f32.mrb[5].mxu0 }
 0x5b1   : > { %v9674_v15 = vpop.f32.mrb[6].mxu0 }
 0x5b2   : > { %v9680_v20 = vpop.f32.mrb[7].mxu0 }
 0x5b3   : > { %2264 = vadd.xlane.f32.xlu1 %v2263_v38 }
 0x5b7   : > { %2261 = vadd.xlane.f32.xlu1 %v2260_v7 }
 0x5c8   : > { %8154 = vrot.lane.b32.xlu1 %v9237_v35, %s8708_s16 }
 0x5cc   : > { %8164 = vrot.lane.b32.xlu1 %v9263_v2, %s8708_s16 }
 0x5d0   : > { %8174 = vrot.lane.b32.xlu1 %v9237_v35, %s8709_s17 }
 0x5d4   : > { %8184 = vrot.lane.b32.xlu1 %v9263_v2, %s8709_s17 }
 0x5d6   : > { %v2244_v60 = vpop.xlane.xlu0 %2243 }
 0x5d7   : > { %8440 = vrcp.f32 %v2244_v60 }
 0x5d8   : > { %3531 = vrot.lane.b32.xlu1 %v9693_v49, %s8710_s18 }
 0x5da   : > { %v9702_v28 = vpop.xlane.xlu0 %2249 }
 0x5dc   : > { %3535 = vrot.lane.b32.xlu1 %v9698_v27, %s8710_s18 }
 0x5e0   : > { %3539 = vrot.lane.b32.xlu1 %v9705_v17, %s8710_s18 }
 0x5e2   : > { %v9709_v8 = vpop.xlane.xlu0 %2255 }
 0x5e4   : > { %3543 = vrot.lane.b32.xlu1 %v9712_v58, %s8710_s18 }
 0x5e6   : > { %v9716_v32 = vpop.permute.xlu0 %8139 }
 0x5ea   : > { %v8150_v13 = vpop.permute.xlu0 %8149 }
 0x5eb   : > { %v8152_v59 = vunpack.i.h.bf16 %v8150_v13  ;;  %v8151_v55 = vunpack.i.l.bf16 %v8150_v13 }
 0x5ed   : > { %v7765_v44 = vpack.c.bf16 %v8152_v59, %v8151_v55 }
 0x5ef   : > { %7767 = vmatprep.subr.msk.bf16.mxu1 %vm9140_vm2, %v7765_v44 }
 0x5f0   : > { %7770 = vmatpush3.bf16.xpose.msk.msra.mxu1 %vm9140_vm2, %v7765_v44  ;;  %v8137_v44 = vunpack.i.h.bf16 %v8135_v54  ;;  %v8142_v54 = vunpack.i.h.bf16 %v9716_v32 }
 0x600   : > { %v7075_v23 = vpop.f32.mrb[8].mxu0 }
 0x601   : > { %v1728_v52 = vpop.f32.mrb[9].mxu0 }
 0x602   : > { %7087 = vmatprep.mubr.msk.f32.mxu0 %vm969_vm1, %v1728_v52 }
 0x603   : > { %v2247_v1 = vpop.xlane.xlu1 %2246  ;;  %7088 = vmatmul.mubr.msk.f32.vlgmr.msra.gmra.mrb[16].mxu0 %vm969_vm1, %v7075_v23 }
 0x604   : > { %7100 = vmatpush3.msra.mxu0 %v941_v11  ;;  %v7078_v29 = vpop.f32.mrb[10].mxu0  ;;  %v9724_v63 = vpop.f32.mrb[40].mxu1  ;;  %8442 = vrcp.f32 %v2247_v1 }
 0x605   : > { %7710 = vmatprep.subr.bf16.mxu0 %v7709_v56  ;;  %v1738_v26 = vpop.f32.mrb[11].mxu0  ;;  %v9726_v51 = vpop.f32.mrb[41].mxu1  ;;  %v2744_v62 = vsel %vm1115_vm3, %v9724_v63, -inf  ;;  %8444 = vrcp.f32 %v9702_v28 }
 0x606   : > { %7090 = vmatprep.mubr.msk.f32.mxu0 %vm969_vm1, %v1738_v26  ;;  %v2741_v12 = vsel %vm1115_vm3, %v9726_v51, -inf  ;;  %v8141_v26 = vunpack.i.l.bf16 %v9716_v32 }
 0x607   : > { %v2253_v45 = vpop.xlane.xlu1 %2252  ;;  %2742 = vmax.xlane.f32.xlu0 %v2741_v12  ;;  %7091 = vmatmul.mubr.msk.f32.gmra.mrb[18].mxu0 %vm969_vm1, %v7078_v29 }
 0x608   : > { %2745 = vmax.xlane.f32.xlu1 %v2744_v62  ;;  %v7081_v11 = vpop.f32.mrb[12].mxu0  ;;  %v9734_v47 = vpop.f32.mrb[42].mxu1  ;;  %8446 = vrcp.f32 %v2253_v45 }
 0x609   : > { %v1748_v31 = vpop.f32.mrb[13].mxu0  ;;  %v9736_v37 = vpop.f32.mrb[43].mxu1  ;;  %v2750_v55 = vsel %vm1115_vm3, %v9734_v47, -inf  ;;  %8448 = vrcp.f32 %v9709_v8 }
 0x60a   : > { %7093 = vmatprep.mubr.msk.f32.mxu0 %vm969_vm1, %v1748_v31  ;;  %v2747_v9 = vsel %vm1115_vm3, %v9736_v37, -inf }
 0x60b   : > { %2748 = vmax.xlane.f32.xlu0 %v2747_v9  ;;  %7094 = vmatmul.mubr.msk.f32.gmra.mrb[20].mxu0 %vm969_vm1, %v7081_v11  ;;  %v2259_v59 = vpop.xlane.xlu1 %2258 }
 0x60c   : > { %v7084_v22 = vpop.f32.mrb[14].mxu0  ;;  %v9742_v38 = vpop.f32.mrb[44].mxu1  ;;  %8450 = vrcp.f32 %v2259_v59 }
 0x60d   : > { %v1758_v7 = vpop.f32.mrb[15].mxu0  ;;  %v9744_v4 = vpop.f32.mrb[45].mxu1  ;;  %v2756_v13 = vsel %vm1115_vm3, %v9742_v38, -inf }
 0x60e   : > { %2757 = vmax.xlane.f32.xlu1 %v2756_v13  ;;  %7096 = vmatprep.mubr.msk.f32.mxu0 %vm969_vm1, %v1758_v7  ;;  %v2753_v29 = vsel %vm1115_vm3, %v9744_v4, -inf }
 0x60f   : > { %2751 = vmax.xlane.f32.xlu0 %v2750_v55  ;;  %7097 = vmatmul.mubr.msk.f32.gmra.mrb[22].mxu0 %vm969_vm1, %v7084_v22  ;;  %v8145_v60 = vpop.permute.xlu1 %8144 }
 0x610   : > { %7101 = vmatprep.mubr.msk.f32.mxu0 %vm969_vm1, %v9662_v43  ;;  %v9754_v53 = vpop.f32.mrb[46].mxu1  ;;  %v7713_v43 = vpack.c.bf16 %v8137_v44, %v8136_v39  ;;  %v8147_v62 = vunpack.i.h.bf16 %v8145_v60  ;;  %v8146_v11 = vunpack.i.l.bf16 %v8145_v60 }
 0x611   : > { %v9756_v23 = vpop.f32.mrb[47].mxu1  ;;  %v2762_v52 = vsel %vm1115_vm3, %v9754_v53, -inf }
 0x612   : > { %2763 = vmax.xlane.f32.xlu1 %v2762_v52  ;;  %v2759_v12 = vsel %vm1115_vm3, %v9756_v23, -inf  ;;  %v7721_v28 = vpack.c.bf16 %v8147_v62, %v8146_v11 }
 0x613   : > { %2754 = vmax.xlane.f32.xlu0 %v2753_v29  ;;  %7102 = vmatmul.mubr.msk.f32.vlgmr.msra.gmra.mrb[16].mxu0 %vm969_vm1, %v9660_v5  ;;  %v7717_v5 = vpack.c.bf16 %v8142_v54, %v8141_v26 }
 0x614   : > { %7712 = vmatpush3.bf16.msra.mxu0 %v7709_v56  ;;  %7104 = vmatprep.mubr.msk.f32.mxu0 %vm969_vm1, %v9666_v0  ;;  %v8441_v0 = vpop.eup %8440 }
 0x615   : > { %7714 = vmatprep.subr.bf16.mxu0 %v7713_v43  ;;  %v2274_v32 = vmul.f32 %v8441_v0, %v9596_v33 }
 0x617   : > { %2760 = vmax.xlane.f32.xlu0 %v2759_v12  ;;  %7105 = vmatmul.mubr.msk.f32.gmra.mrb[18].mxu0 %vm969_vm1, %v9664_v41  ;;  %v8443_v41 = vpop.eup %8442 }
 0x618   : > { %7716 = vmatpush3.bf16.msra.mxu0 %v7713_v43  ;;  %7107 = vmatprep.mubr.msk.f32.mxu0 %vm969_vm1, %v9672_v3  ;;  %v8445_v1 = vpop.eup %8444  ;;  %v2275_v3 = vmul.f32 %v8443_v41, %v9617_v46  ;;  %v8160_v46 = vpop.permute.xlu0 %8159 }
 0x619   : > { %7718 = vmatprep.subr.bf16.mxu0 %v7717_v5  ;;  %v2276_v8 = vmul.f32 %v8445_v1, %v9600_v40  ;;  %v8161_v45 = vunpack.i.l.bf16 %v8160_v46 }
 0x61b   : > { %7108 = vmatmul.mubr.msk.f32.gmra.mrb[20].mxu0 %vm969_vm1, %v9668_v48  ;;  %v8447_v48 = vpop.eup %8446 }
 0x61c   : > { %7720 = vmatpush3.bf16.msra.mxu0 %v7717_v5  ;;  %7110 = vmatprep.mubr.msk.f32.mxu0 %vm969_vm1, %v9680_v20  ;;  %v8449_v56 = vpop.eup %8448  ;;  %v2277_v33 = vmul.f32 %v8447_v48, %v9621_v19  ;;  %v8170_v29 = vpop.permute.xlu0 %8169 }
 0x61d   : > { %7722 = vmatprep.subr.bf16.mxu0 %v7721_v28  ;;  %v2278_v20 = vmul.f32 %v8449_v56, %v9604_v10  ;;  %v8172_v54 = vunpack.i.h.bf16 %v8170_v29  ;;  %v8171_v26 = vunpack.i.l.bf16 %v8170_v29 }
 0x61f   : > { %7111 = vmatmul.mubr.msk.f32.gmra.mrb[22].mxu0 %vm969_vm1, %v9674_v15  ;;  %v8451_v15 = vpop.eup %8450  ;;  %v7805_v43 = vpack.c.bf16 %v8172_v54, %v8171_v26 }
 0x620   : > { %7724 = vmatpush3.bf16.msra.mxu0 %v7721_v28  ;;  %7157 = vmatprep.mubr.msk.f32.mxu0 %vm1115_vm3, %v2274_v32  ;;  %v2279_v40 = vmul.f32 %v8451_v15, %v9627_v18  ;;  %v8162_v18 = vunpack.i.h.bf16 %v8160_v46  ;;  %v8180_v62 = vpop.permute.xlu0 %8179 }
 0x621   : > { %v8182_v11 = vunpack.i.h.bf16 %v8180_v62  ;;  %v8181_v5 = vunpack.i.l.bf16 %v8180_v62 }
 0x622   : > { %v7777_v7 = vpack.c.bf16 %v8162_v18, %v8161_v45 }
 0x623   : > { %8194 = vrot.lane.b32.xlu1 %v9054_v6, %s8718_s28  ;;  %7158 = vmatmul.mubr.msk.f32.vlgmr.msra.gmra.mrb[24].mxu0 %vm1115_vm3, %v2275_v3  ;;  %v943_v6 = vld [vmem:[%s10987_s5 + $0x10] sm:$0xff]  ;;  %v7817_v0 = vpack.c.bf16 %v8182_v11, %v8181_v5 }
 0x624   : > { %7160 = vmatprep.mubr.msk.f32.mxu0 %vm1115_vm3, %v2276_v8  ;;  %7169 = vmatprep.subr.mxu0 %v943_v6  ;;  %v3530_v41 = vpop.permute.xlu0 %3529 }
 0x625   : > { %7170 = vmatpush3.msra.mxu0 %v943_v6 }
 0x627   : > { %8204 = vrot.lane.b32.xlu1 %v9070_v14, %s8718_s28  ;;  %7161 = vmatmul.mubr.msk.f32.gmra.mrb[26].mxu0 %vm1115_vm3, %v2277_v33 }
 0x628   : > { %7163 = vmatprep.mubr.msk.f32.mxu0 %vm1115_vm3, %v2278_v20  ;;  %v3534_v8 = vpop.permute.xlu0 %3533 }
 0x62b   : > { %7164 = vmatmul.mubr.msk.f32.gmra.mrb[28].mxu0 %vm1115_vm3, %v2279_v40 }
 0x62c   : > { %v3538_v33 = vpop.permute.xlu0 %3537 }
 0x62d   : > { %8189 = vrot.lane.b32.xlu0 %v9044_v42, %s8718_s28 }
 0x630   : > { %v3542_v20 = vpop.permute.xlu0 %3541 }
 0x631   : > { %8199 = vrot.lane.b32.xlu0 %v9062_v21, %s8718_s28 }
 0x640   : > { %v2265_v14 = vpop.xlane.xlu1 %2264 }
 0x641   : > { %8452 = vrcp.f32 %v2265_v14 }
 0x644   : > { %v2262_v10 = vpop.xlane.xlu1 %2261 }
 0x645   : > { %8454 = vrcp.f32 %v2262_v10 }
 0x648   : > { %v8155_v19 = vpop.permute.xlu1 %8154 }
 0x649   : > { %v8157_v31 = vunpack.i.h.bf16 %v8155_v19  ;;  %v8156_v9 = vunpack.i.l.bf16 %v8155_v19 }
 0x64b   : > { %v7771_v22 = vpack.c.bf16 %v8157_v31, %v8156_v9  ;;  %v8453_v13 = vpop.eup %8452 }
 0x64c   : > { %v8165_v42 = vpop.permute.xlu1 %8164  ;;  %v2281_v39 = vmul.f32 %v8453_v13, %v9670_v24 }
 0x64d   : > { %7773 = vmatprep.subr.msk.bf16.mxu1 %vm9140_vm2, %v7771_v22  ;;  %v8167_v55 = vunpack.i.h.bf16 %v8165_v42  ;;  %v8166_v44 = vunpack.i.l.bf16 %v8165_v42 }
 0x64e   : > { %7776 = vmatpush3.bf16.xpose.msk.msra.mxu1 %vm9140_vm2, %v7771_v22 }
 0x64f   : > { %v8455_v21 = vpop.eup %8454  ;;  %7779 = vmatprep.subr.msk.bf16.mxu1 %vm9140_vm2, %v7777_v7  ;;  %v7783_v52 = vpack.c.bf16 %v8167_v55, %v8166_v44 }
 0x650   : > { %v2280_v59 = vmul.f32 %v8455_v21, %v9678_v34  ;;  %v8175_v34 = vpop.permute.xlu1 %8174 }
 0x651   : > { %v8177_v24 = vunpack.i.h.bf16 %v8175_v34  ;;  %v8176_v60 = vunpack.i.l.bf16 %v8175_v34 }
 0x652   : > { %7166 = vmatprep.mubr.msk.f32.mxu0 %vm1115_vm3, %v2280_v59 }
 0x653   : > { %7167 = vmatmul.mubr.msk.f32.gmra.mrb[30].mxu0 %vm1115_vm3, %v2281_v39  ;;  %v7811_v12 = vpack.c.bf16 %v8177_v24, %v8176_v60 }
 0x654   : > { %v8185_v28 = vpop.permute.xlu1 %8184 }
 0x655   : > { %v8187_v32 = vunpack.i.h.bf16 %v8185_v28  ;;  %v8186_v1 = vunpack.i.l.bf16 %v8185_v28 }
 0x656   : > { %7782 = vmatpush3.bf16.xpose.msk.msra.mxu1 %vm9140_vm2, %v7777_v7 }
 0x657   : > { %7785 = vmatprep.subr.msk.bf16.mxu1 %vm9140_vm2, %v7783_v52  ;;  %v7823_v3 = vpack.c.bf16 %v8187_v32, %v8186_v1 }
 0x658   : > { %v3532_v48 = vpop.permute.xlu1 %3531 }
 0x65c   : > { %v3536_v56 = vpop.permute.xlu1 %3535 }
 0x65e   : > { %7788 = vmatpush3.bf16.xpose.msk.msra.mxu1 %vm9140_vm2, %v7783_v52 }
 0x65f   : > { %7807 = vmatprep.subr.msk.bf16.mxu1 %vm9140_vm2, %v7805_v43 }
 0x660   : > { %v3540_v15 = vpop.permute.xlu1 %3539 }
 0x664   : > { %v3544_v40 = vpop.permute.xlu1 %3543 }
 0x665   : > { %7270 = vmatmul.mubr.msk.f32.vlgmr.msra.gmra.mrb[48].mxu1 %vm969_vm1, %v9693_v49 }
 0x666   : > { %7272 = vmatprep.mubr.msk.f32.mxu1 %vm969_vm1, %v9639_v61  ;;  %7810 = vmatpush3.bf16.xpose.msk.msra.mxu1 %vm9140_vm2, %v7805_v43 }
 0x667   : > { %7813 = vmatprep.subr.msk.bf16.mxu1 %vm9140_vm2, %v7811_v12 }
 0x669   : > { %7273 = vmatmul.mubr.msk.f32.gmra.mrb[50].mxu1 %vm969_vm1, %v9698_v27 }
 0x66a   : > { %7275 = vmatprep.mubr.msk.f32.mxu1 %vm969_vm1, %v9647_v57 }
 0x66d   : > { %7276 = vmatmul.mubr.msk.f32.gmra.mrb[52].mxu1 %vm969_vm1, %v9705_v17 }
 0x66e   : > { %7278 = vmatprep.mubr.msk.f32.mxu1 %vm969_vm1, %v9652_v36  ;;  %7816 = vmatpush3.bf16.xpose.msk.msra.mxu1 %vm9140_vm2, %v7811_v12 }
 0x66f   : > { %7819 = vmatprep.subr.msk.bf16.mxu1 %vm9140_vm2, %v7817_v0 }
 0x671   : > { %7279 = vmatmul.mubr.msk.f32.gmra.mrb[54].mxu1 %vm969_vm1, %v9712_v58 }
 0x672   : > { %7325 = vmatprep.mubr.msk.f32.mxu1 %vm969_vm1, %v3530_v41 }
 0x676   : > { %7822 = vmatpush3.bf16.xpose.msk.msra.mxu1 %vm9140_vm2, %v7817_v0 }
 0x677   : > { %7825 = vmatprep.subr.msk.bf16.mxu1 %vm9140_vm2, %v7823_v3 }
 0x67e   : > { %7828 = vmatpush3.bf16.xpose.msk.msra.mxu1 %vm9140_vm2, %v7823_v3 }
 0x685   : > { %7326 = vmatmul.mubr.msk.f32.vlgmr.msra.gmra.mrb[56].mxu1 %vm969_vm1, %v3532_v48 }
 0x686   : > { %7328 = vmatprep.mubr.msk.f32.mxu1 %vm969_vm1, %v3534_v8 }
 0x689   : > { %7329 = vmatmul.mubr.msk.f32.gmra.mrb[58].mxu1 %vm969_vm1, %v3536_v56 }
 0x68a   : > { %7331 = vmatprep.mubr.msk.f32.mxu1 %vm969_vm1, %v3538_v33 }
 0x68d   : > { %7332 = vmatmul.mubr.msk.f32.gmra.mrb[60].mxu1 %vm969_vm1, %v3540_v15 }
 0x68e   : > { %7334 = vmatprep.mubr.msk.f32.mxu1 %vm969_vm1, %v3542_v20 }
 0x691   : > { %7335 = vmatmul.mubr.msk.f32.gmra.mrb[62].mxu1 %vm969_vm1, %v3544_v40 }
 0x694   : > { %v2743_v6 = vpop.xlane.xlu0 %2742 }
 0x695   : > { %v2765_v14 = vsub.f32 %v9726_v51, %v2743_v6  ;;  %v2746_v10 = vpop.xlane.xlu1 %2745 }
 0x696   : > { %v2766_v46 = vsub.f32 %v9724_v63, %v2746_v10 }
 0x697   : > { %v2773_v19 = vmul.f32 1.442695, %v2765_v14 }
 0x698   : > { %v2775_v18 = vmul.f32 1.442695, %v2766_v46  ;;  %v2749_v45 = vpop.xlane.xlu0 %2748 }
 0x699   : > { %8456 = vpow2.f32 %v2773_v19  ;;  %v2767_v31 = vsub.f32 %v9736_v37, %v2749_v45 }
 0x69a   : > { %8458 = vpow2.f32 %v2775_v18 }
 0x69b   : > { %v2777_v9 = vmul.f32 1.442695, %v2767_v31  ;;  %v2758_v22 = vpop.xlane.xlu1 %2757 }
 0x69c   : > { %v2770_v7 = vsub.f32 %v9742_v38, %v2758_v22  ;;  %v2752_v13 = vpop.xlane.xlu0 %2751 }
 0x69d   : > { %8460 = vpow2.f32 %v2777_v9  ;;  %v2768_v42 = vsub.f32 %v9734_v47, %v2752_v13 }
 0x69e   : > { %v2783_v21 = vmul.f32 1.442695, %v2770_v7 }
 0x69f   : > { %v2779_v51 = vmul.f32 1.442695, %v2768_v42  ;;  %v2764_v5 = vpop.xlane.xlu1 %2763 }
 0x6a0   : > { %v2755_v59 = vpop.xlane.xlu0 %2754  ;;  %v2772_v0 = vsub.f32 %v9754_v53, %v2764_v5 }
 0x6a1   : > { %8462 = vpow2.f32 %v2779_v51  ;;  %v2769_v63 = vsub.f32 %v9744_v4, %v2755_v59 }
 0x6a2   : > { %8464 = vpow2.f32 %v2783_v21  ;;  %v2787_v28 = vmul.f32 1.442695, %v2772_v0 }
 0x6a3   : > { %v9865_v55 = vpop.eup %8456  ;;  %v2781_v44 = vmul.f32 1.442695, %v2769_v63  ;;  %v8195_v8 = vpop.permute.xlu1 %8194 }
 0x6a4   : > { %v9867_v37 = vpop.eup %8458  ;;  %v2761_v39 = vpop.xlane.xlu0 %2760  ;;  %v2789_v38 = vsel %vm1115_vm3, %v9865_v55, 0.0  ;;  %v8197_v56 = vunpack.i.h.bf16 %v8195_v8  ;;  %v8196_v33 = vunpack.i.l.bf16 %v8195_v8 }
 0x6a5   : > { %8466 = vpow2.f32 %v2781_v44  ;;  %2790 = vadd.xlane.f32.xlu0 %v2789_v38  ;;  %v2792_v47 = vsel %vm1115_vm3, %v9867_v37, 0.0  ;;  %v2771_v41 = vsub.f32 %v9756_v23, %v2761_v39 }
 0x6a6   : > { %2793 = vadd.xlane.f32.xlu1 %v2792_v47  ;;  %8468 = vpow2.f32 %v2787_v28  ;;  %v7753_v14 = vpack.c.bf16 %v8197_v56, %v8196_v33 }
 0x6a7   : > { %v9873_v52 = vpop.eup %8460  ;;  %v2785_v32 = vmul.f32 1.442695, %v2771_v41  ;;  %v8205_v10 = vpop.permute.xlu1 %8204 }
 0x6a8   : > { %v8190_v29 = vpop.permute.xlu0 %8189  ;;  %v2795_v4 = vsel %vm1115_vm3, %v9873_v52, 0.0  ;;  %v8207_v18 = vunpack.i.h.bf16 %v8205_v10  ;;  %v8206_v45 = vunpack.i.l.bf16 %v8205_v10 }
 0x6a9   : > { %v8192_v54 = vunpack.i.h.bf16 %v8190_v29  ;;  %v8191_v26 = vunpack.i.l.bf16 %v8190_v29  ;;  %2796 = vadd.xlane.f32.xlu0 %v2795_v4  ;;  %8470 = vpow2.f32 %v2785_v32 }
 0x6aa   : > { %v7761_v7 = vpack.c.bf16 %v8207_v18, %v8206_v45 }
 0x6ab   : > { %v9877_v43 = vpop.eup %8462  ;;  %v7749_v34 = vpack.c.bf16 %v8192_v54, %v8191_v26 }
 0x6ac   : > { %v2798_v24 = vsel %vm1115_vm3, %v9877_v43, 0.0  ;;  %v9881_v60 = vpop.eup %8464  ;;  %v8200_v15 = vpop.permute.xlu0 %8199 }
 0x6ad   : > { %2799 = vadd.xlane.f32.xlu1 %v2798_v24  ;;  %7750 = vmatprep.subr.bf16.mxu0 %v7749_v34  ;;  %v2804_v62 = vsel %vm1115_vm3, %v9881_v60, 0.0  ;;  %v8202_v40 = vunpack.i.h.bf16 %v8200_v15  ;;  %v8201_v6 = vunpack.i.l.bf16 %v8200_v15 }
 0x6af   : > { %v9883_v12 = vpop.eup %8466  ;;  %v7757_v31 = vpack.c.bf16 %v8202_v40, %v8201_v6 }
 0x6b0   : > { %v2801_v11 = vsel %vm1115_vm3, %v9883_v12, 0.0  ;;  %v9909_v1 = vpop.eup %8468 }
 0x6b1   : > { %2805 = vadd.xlane.f32.xlu1 %v2804_v62  ;;  %2802 = vadd.xlane.f32.xlu0 %v2801_v11  ;;  %v2810_v3 = vsel %vm1115_vm3, %v9909_v1, 0.0 }
 0x6b3   : > { %v9913_v48 = vpop.eup %8470 }
 0x6b4   : > { %v2807_v53 = vsel %vm1115_vm3, %v9913_v48, 0.0 }
 0x6c2   : > { %8214 = vrot.lane.b32.xlu1 %v9237_v35, %s8711_s19 }
 0x6c6   : > { %8224 = vrot.lane.b32.xlu1 %v9263_v2, %s8711_s19 }
 0x6c7   : > { %8209 = vrot.lane.b32.xlu0 %v9223_v30, %s8711_s19 }
 0x6ca   : > { %4199 = vrot.lane.b32.xlu1 %v9693_v49, %s8712_s20 }
 0x6cb   : > { %8219 = vrot.lane.b32.xlu0 %v9251_v50, %s8711_s19 }
 0x6ce   : > { %4203 = vrot.lane.b32.xlu1 %v9698_v27, %s8712_s20 }
 0x6cf   : > { %4197 = vrot.lane.b32.xlu0 %v9589_v16, %s8712_s20 }
 0x6d3   : > { %4201 = vrot.lane.b32.xlu0 %v9639_v61, %s8712_s20 }
 0x6d7   : > { %4205 = vrot.lane.b32.xlu0 %v9647_v57, %s8712_s20 }
 0x6f2   : > { %2811 = vadd.xlane.f32.xlu1 %v2810_v3 }
 0x6f6   : > { %2808 = vadd.xlane.f32.xlu1 %v2807_v53  ;;  %v7159_v23 = vpop.f32.mrb[24].mxu0 }
 0x6f7   : > { %v2396_v20 = vpop.f32.mrb[25].mxu0 }
 0x6f8   : > { %7171 = vmatprep.mubr.msk.f32.mxu0 %vm969_vm1, %v2396_v20 }
 0x6f9   : > { %7172 = vmatmul.mubr.msk.f32.vlgmr.msra.gmra.mrb[16].mxu0 %vm969_vm1, %v7159_v23 }
 0x6fa   : > { %7752 = vmatpush3.bf16.msra.mxu0 %v7749_v34  ;;  %v7162_v46 = vpop.f32.mrb[26].mxu0 }
 0x6fb   : > { %7754 = vmatprep.subr.bf16.mxu0 %v7753_v14  ;;  %v2406_v19 = vpop.f32.mrb[27].mxu0 }
 0x6fc   : > { %7174 = vmatprep.mubr.msk.f32.mxu0 %vm969_vm1, %v2406_v19 }
 0x6fd   : > { %7175 = vmatmul.mubr.msk.f32.gmra.mrb[18].mxu0 %vm969_vm1, %v7162_v46 }
 0x6fe   : > { %7756 = vmatpush3.bf16.msra.mxu0 %v7753_v14  ;;  %v7165_v9 = vpop.f32.mrb[28].mxu0 }
 0x6ff   : > { %7758 = vmatprep.subr.bf16.mxu0 %v7757_v31  ;;  %v2416_v22 = vpop.f32.mrb[29].mxu0 }
 0x700   : > { %7177 = vmatprep.mubr.msk.f32.mxu0 %vm969_vm1, %v2416_v22 }
 0x701   : > { %7178 = vmatmul.mubr.msk.f32.gmra.mrb[20].mxu0 %vm969_vm1, %v7165_v9 }
 0x702   : > { %7760 = vmatpush3.bf16.msra.mxu0 %v7757_v31 }
 0x703   : > { %7762 = vmatprep.subr.bf16.mxu0 %v7761_v7 }
 0x706   : > { %7764 = vmatpush3.bf16.msra.mxu0 %v7761_v7 }
 0x707   : > { %4207 = vrot.lane.b32.xlu1 %v9705_v17, %s8712_s20 }
 0x726   : > { %v7168_v13 = vpop.f32.mrb[30].mxu0 }
 0x727   : > { %v2426_v42 = vpop.f32.mrb[31].mxu0 }
 0x728   : > { %7180 = vmatprep.mubr.msk.f32.mxu0 %vm969_vm1, %v2426_v42 }
 0x729   : > { %7181 = vmatmul.mubr.msk.f32.gmra.mrb[22].mxu0 %vm969_vm1, %v7168_v13 }
 0x732   : > { %v2791_v21 = vpop.xlane.xlu0 %2790 }
 0x733   : > { %8472 = vrcp.f32 %v2791_v21  ;;  %v2794_v51 = vpop.xlane.xlu1 %2793 }
 0x734   : > { %8474 = vrcp.f32 %v2794_v51 }
 0x736   : > { %v2797_v59 = vpop.xlane.xlu0 %2796 }
 0x737   : > { %8476 = vrcp.f32 %v2797_v59 }
 0x738   : > { %v9927_v63 = vpop.f32.mrb[48].mxu1 }
 0x739   : > { %v9929_v44 = vpop.f32.mrb[49].mxu1  ;;  %v3291_v39 = vsel %vm1115_vm3, %v9927_v63, -inf }
 0x73a   : > { %v2800_v38 = vpop.xlane.xlu1 %2799  ;;  %3292 = vmax.xlane.f32.xlu1 %v3291_v39  ;;  %v3288_v47 = vsel %vm1115_vm3, %v9929_v44, -inf }
 0x73b   : > { %8478 = vrcp.f32 %v2800_v38  ;;  %3289 = vmax.xlane.f32.xlu0 %v3288_v47 }
 0x73c   : > { %v9935_v29 = vpop.f32.mrb[50].mxu1 }
 0x73d   : > { %v8473_v4 = vpop.eup %8472  ;;  %v9937_v54 = vpop.f32.mrb[51].mxu1 }
 0x73e   : > { %v8475_v26 = vpop.eup %8474  ;;  %v2806_v34 = vpop.xlane.xlu1 %2805  ;;  %v2821_v62 = vmul.f32 %v8473_v4, %v9865_v55 }
 0x73f   : > { %v2803_v24 = vpop.xlane.xlu0 %2802  ;;  %v2822_v11 = vmul.f32 %v8475_v26, %v9867_v37  ;;  %8480 = vrcp.f32 %v2806_v34  ;;  %v3297_v34 = vsel %vm1115_vm3, %v9935_v29, -inf }
 0x740   : > { %8482 = vrcp.f32 %v2803_v24  ;;  %7227 = vmatprep.mubr.msk.f32.mxu0 %vm1115_vm3, %v2821_v62  ;;  %v9942_v5 = vpop.f32.mrb[52].mxu1  ;;  %v3294_v24 = vsel %vm1115_vm3, %v9937_v54, -inf }
 0x741   : > { %v8477_v0 = vpop.eup %8476  ;;  %7228 = vmatmul.mubr.msk.f32.vlgmr.msra.gmra.mrb[32].mxu0 %vm1115_vm3, %v2822_v11  ;;  %v9945_v28 = vpop.f32.mrb[53].mxu1 }
 0x742   : > { %v8215_v41 = vpop.permute.xlu1 %8214  ;;  %v2823_v3 = vmul.f32 %v8477_v0, %v9873_v52  ;;  %v3300_v11 = vsel %vm1115_vm3, %v9945_v28, -inf }
 0x743   : > { %v8210_v32 = vpop.permute.xlu0 %8209  ;;  %v8217_v8 = vunpack.i.h.bf16 %v8215_v41  ;;  %v8216_v56 = vunpack.i.l.bf16 %v8215_v41  ;;  %v3303_v41 = vsel %vm1115_vm3, %v9942_v5, -inf }
 0x744   : > { %v8212_v55 = vunpack.i.h.bf16 %v8210_v32  ;;  %v8211_v33 = vunpack.i.l.bf16 %v8210_v32  ;;  %7230 = vmatprep.mubr.msk.f32.mxu0 %vm1115_vm3, %v2823_v3  ;;  %v9949_v37 = vpop.f32.mrb[54].mxu1 }
 0x745   : > { %v8479_v53 = vpop.eup %8478  ;;  %v9951_v23 = vpop.f32.mrb[55].mxu1  ;;  %v7851_v6 = vpack.c.bf16 %v8217_v8, %v8216_v56  ;;  %v3309_v62 = vsel %vm1115_vm3, %v9949_v37, -inf }
 0x746   : > { %v7845_v15 = vpack.c.bf16 %v8212_v55, %v8211_v33  ;;  %v2824_v40 = vmul.f32 %v8479_v53, %v9877_v43  ;;  %v8225_v31 = vpop.permute.xlu1 %8224  ;;  %v3306_v3 = vsel %vm1115_vm3, %v9951_v23, -inf }
 0x747   : > { %v8220_v20 = vpop.permute.xlu0 %8219  ;;  %v8226_v9 = vunpack.i.l.bf16 %v8225_v31 }
 0x748   : > { %7847 = vmatprep.subr.msk.bf16.mxu1 %vm9140_vm2, %v7845_v15  ;;  %7231 = vmatmul.mubr.msk.f32.gmra.mrb[34].mxu0 %vm1115_vm3, %v2824_v40  ;;  %v8222_v19 = vunpack.i.h.bf16 %v8220_v20  ;;  %v8221_v18 = vunpack.i.l.bf16 %v8220_v20 }
 0x749   : > { %7850 = vmatpush3.bf16.xpose.msk.msra.mxu1 %vm9140_vm2, %v7845_v15  ;;  %v8481_v52 = vpop.eup %8480 }
 0x74a   : > { %7853 = vmatprep.subr.msk.bf16.mxu1 %vm9140_vm2, %v7851_v6  ;;  %v8483_v14 = vpop.eup %8482  ;;  %v2826_v46 = vmul.f32 %v8481_v52, %v9881_v60  ;;  %v7857_v45 = vpack.c.bf16 %v8222_v19, %v8221_v18  ;;  %v8227_v60 = vunpack.i.h.bf16 %v8225_v31  ;;  %v4200_v59 = vpop.permute.xlu1 %4199  ;;  %v944_v19 = vld [vmem:[%s10987_s5 + $0x18] sm:$0xff] }
 0x74b   : > { %v4198_v10 = vpop.permute.xlu0 %4197  ;;  %4211 = vrot.lane.b32.xlu1 %v9712_v58, %s8712_s20  ;;  %v2825_v43 = vmul.f32 %v8483_v14, %v9883_v12  ;;  %7239 = vmatprep.subr.mxu0 %v944_v19 }
 0x74c   : > { %7409 = vmatprep.mubr.msk.f32.mxu1 %vm969_vm1, %v4198_v10  ;;  %v7863_v22 = vpack.c.bf16 %v8227_v60, %v8226_v9  ;;  %7240 = vmatpush3.msra.mxu0 %v944_v19 }
 0x74d   : > { %7233 = vmatprep.mubr.msk.f32.mxu0 %vm1115_vm3, %v2825_v43 }
 0x74e   : > { %7234 = vmatmul.mubr.msk.f32.gmra.mrb[36].mxu0 %vm1115_vm3, %v2826_v46  ;;  %v4204_v4 = vpop.permute.xlu1 %4203 }
 0x74f   : > { %v4202_v38 = vpop.permute.xlu0 %4201 }
 0x751   : > { %7856 = vmatpush3.bf16.xpose.msk.msra.mxu1 %vm9140_vm2, %v7851_v6  ;;  %4209 = vrot.lane.b32.xlu0 %v9652_v36, %s8712_s20 }
 0x752   : > { %7859 = vmatprep.subr.msk.bf16.mxu1 %vm9140_vm2, %v7857_v45 }
 0x753   : > { %v4206_v26 = vpop.permute.xlu0 %4205 }
 0x758   : > { %v9974_v7 = vpop.f32.mrb[56].mxu1 }
 0x759   : > { %7862 = vmatpush3.bf16.xpose.msk.msra.mxu1 %vm9140_vm2, %v7857_v45  ;;  %v9978_v12 = vpop.f32.mrb[57].mxu1  ;;  %v3701_v0 = vsel %vm1115_vm3, %v9974_v7, -inf }
 0x75a   : > { %7865 = vmatprep.subr.msk.bf16.mxu1 %vm9140_vm2, %v7863_v22  ;;  %v3698_v55 = vsel %vm1115_vm3, %v9978_v12, -inf }
 0x75c   : > { %v9982_v13 = vpop.f32.mrb[58].mxu1 }
 0x75d   : > { %v9984_v42 = vpop.f32.mrb[59].mxu1  ;;  %v3707_v32 = vsel %vm1115_vm3, %v9982_v13, -inf }
 0x75e   : > { %v3704_v15 = vsel %vm1115_vm3, %v9984_v42, -inf }
 0x760   : > { %v9986_v21 = vpop.f32.mrb[60].mxu1 }
 0x761   : > { %7868 = vmatpush3.bf16.xpose.msk.msra.mxu1 %vm9140_vm2, %v7863_v22  ;;  %v9990_v51 = vpop.f32.mrb[61].mxu1  ;;  %v3713_v8 = vsel %vm1115_vm3, %v9986_v21, -inf }
 0x762   : > { %v3710_v40 = vsel %vm1115_vm3, %v9990_v51, -inf }
 0x764   : > { %v9992_v39 = vpop.f32.mrb[62].mxu1 }
 0x765   : > { %v9994_v47 = vpop.f32.mrb[63].mxu1  ;;  %v3719_v33 = vsel %vm1115_vm3, %v9992_v39, -inf }
 0x766   : > { %v3716_v6 = vsel %vm1115_vm3, %v9994_v47, -inf }
 0x768   : > { %7410 = vmatmul.mubr.msk.f32.vlgmr.msra.gmra.mrb[64].mxu1 %vm969_vm1, %v4200_v59 }
 0x769   : > { %7412 = vmatprep.mubr.msk.f32.mxu1 %vm969_vm1, %v4202_v38 }
 0x76c   : > { %7413 = vmatmul.mubr.msk.f32.gmra.mrb[66].mxu1 %vm969_vm1, %v4204_v4 }
 0x76d   : > { %7415 = vmatprep.mubr.msk.f32.mxu1 %vm969_vm1, %v4206_v26 }
 0x76f   : > { %3298 = vmax.xlane.f32.xlu1 %v3297_v34 }
 0x770   : > { %3295 = vmax.xlane.f32.xlu0 %v3294_v24 }
 0x773   : > { %3310 = vmax.xlane.f32.xlu1 %v3309_v62 }
 0x774   : > { %3301 = vmax.xlane.f32.xlu0 %v3300_v11 }
 0x777   : > { %3702 = vmax.xlane.f32.xlu1 %v3701_v0 }
 0x778   : > { %3304 = vmax.xlane.f32.xlu0 %v3303_v41 }
 0x77b   : > { %3708 = vmax.xlane.f32.xlu1 %v3707_v32 }
 0x77c   : > { %3307 = vmax.xlane.f32.xlu0 %v3306_v3 }
 0x77f   : > { %v2812_v56 = vpop.xlane.xlu1 %2811  ;;  %3714 = vmax.xlane.f32.xlu1 %v3713_v8 }
 0x780   : > { %3699 = vmax.xlane.f32.xlu0 %v3698_v55  ;;  %8484 = vrcp.f32 %v2812_v56 }
 0x783   : > { %3720 = vmax.xlane.f32.xlu1 %v3719_v33  ;;  %v2809_v53 = vpop.xlane.xlu1 %2808 }
 0x784   : > { %8486 = vrcp.f32 %v2809_v53  ;;  %3705 = vmax.xlane.f32.xlu0 %v3704_v15 }
 0x787   : > { %v4208_v20 = vpop.permute.xlu1 %4207 }
 0x788   : > { %3711 = vmax.xlane.f32.xlu0 %v3710_v40  ;;  %7416 = vmatmul.mubr.msk.f32.gmra.mrb[68].mxu1 %vm969_vm1, %v4208_v20 }
 0x78a   : > { %v8485_v52 = vpop.eup %8484 }
 0x78b   : > { %v2828_v46 = vmul.f32 %v8485_v52, %v9909_v1 }
 0x78c   : > { %3717 = vmax.xlane.f32.xlu0 %v3716_v6 }
 0x78e   : > { %v8487_v14 = vpop.eup %8486 }
 0x78f   : > { %v2827_v10 = vmul.f32 %v8487_v14, %v9913_v48 }
 0x791   : > { %7236 = vmatprep.mubr.msk.f32.mxu0 %vm1115_vm3, %v2827_v10 }
 0x792   : > { %7237 = vmatmul.mubr.msk.f32.gmra.mrb[38].mxu0 %vm1115_vm3, %v2828_v46 }
 0x794   : > { %8234 = vrot.lane.b32.xlu1 %v9237_v35, %s8713_s21 }
 0x798   : > { %8244 = vrot.lane.b32.xlu1 %v9263_v2, %s8713_s21 }
 0x7a2   : > { %8229 = vrot.lane.b32.xlu0 %v9223_v30, %s8713_s21 }
 0x7a6   : > { %8239 = vrot.lane.b32.xlu0 %v9251_v50, %s8713_s21 }
 0x7aa   : > { %8249 = vrot.lane.b32.xlu0 %v9223_v30, %s8714_s22 }
 0x7ae   : > { %8254 = vrot.lane.b32.xlu0 %v9237_v35, %s8714_s22 }
 0x7c7   : > { %v3293_v1 = vpop.xlane.xlu1 %3292 }
 0x7c8   : > { %v3313_v48 = vsub.f32 %v9927_v63, %v3293_v1  ;;  %v3290_v18 = vpop.xlane.xlu0 %3289 }
 0x7c9   : > { %v3312_v43 = vsub.f32 %v9929_v44, %v3290_v18 }
 0x7ca   : > { %v3322_v45 = vmul.f32 1.442695, %v3313_v48 }
 0x7cb   : > { %v3320_v31 = vmul.f32 1.442695, %v3312_v43  ;;  %v4212_v9 = vpop.permute.xlu1 %4211 }
 0x7cc   : > { %8488 = vpow2.f32 %v3322_v45  ;;  %v4210_v60 = vpop.permute.xlu0 %4209 }
 0x7cd   : > { %8490 = vpow2.f32 %v3320_v31  ;;  %7418 = vmatprep.mubr.msk.f32.mxu1 %vm969_vm1, %v4210_v60 }
 0x7ce   : > { %7419 = vmatmul.mubr.msk.f32.gmra.mrb[70].mxu1 %vm969_vm1, %v4212_v9 }
 0x7d6   : > { %v10052_v22 = vpop.eup %8488 }
 0x7d7   : > { %v10054_v59 = vpop.eup %8490  ;;  %v3339_v63 = vsel %vm1115_vm3, %v10052_v22, 0.0 }
 0x7d8   : > { %3340 = vadd.xlane.f32.xlu1 %v3339_v63  ;;  %v3336_v44 = vsel %vm1115_vm3, %v10054_v59, 0.0 }
 0x7d9   : > { %3337 = vadd.xlane.f32.xlu0 %v3336_v44 }
 0x7fc   : > { %v3299_v38 = vpop.xlane.xlu1 %3298 }
 0x7fd   : > { %v3315_v4 = vsub.f32 %v9935_v29, %v3299_v38  ;;  %v3296_v26 = vpop.xlane.xlu0 %3295 }
 0x7fe   : > { %v3314_v34 = vsub.f32 %v9937_v54, %v3296_v26 }
 0x7ff   : > { %v3326_v24 = vmul.f32 1.442695, %v3315_v4 }
 0x800   : > { %v3324_v62 = vmul.f32 1.442695, %v3314_v34  ;;  %v3311_v11 = vpop.xlane.xlu1 %3310 }
 0x801   : > { %8492 = vpow2.f32 %v3326_v24  ;;  %v3302_v0 = vpop.xlane.xlu0 %3301  ;;  %v3319_v32 = vsub.f32 %v9949_v37, %v3311_v11 }
 0x802   : > { %8494 = vpow2.f32 %v3324_v62  ;;  %v3316_v41 = vsub.f32 %v9945_v28, %v3302_v0 }
 0x803   : > { %v3334_v29 = vmul.f32 1.442695, %v3319_v32 }
 0x804   : > { %v3328_v3 = vmul.f32 1.442695, %v3316_v41  ;;  %v3703_v8 = vpop.xlane.xlu1 %3702 }
 0x805   : > { %v3305_v56 = vpop.xlane.xlu0 %3304  ;;  %v3723_v28 = vsub.f32 %v9974_v7, %v3703_v8 }
 0x806   : > { %8496 = vpow2.f32 %v3328_v3  ;;  %v3317_v55 = vsub.f32 %v9942_v5, %v3305_v56 }
 0x807   : > { %v3732_v46 = vmul.f32 1.442695, %v3723_v28 }
 0x808   : > { %v3330_v33 = vmul.f32 1.442695, %v3317_v55  ;;  %v3709_v53 = vpop.xlane.xlu1 %3708 }
 0x809   : > { %v3308_v54 = vpop.xlane.xlu0 %3307  ;;  %v3725_v19 = vsub.f32 %v9982_v13, %v3709_v53 }
 0x80a   : > { %8498 = vpow2.f32 %v3330_v33  ;;  %v3318_v15 = vsub.f32 %v9951_v23, %v3308_v54 }
 0x80b   : > { %v10066_v20 = vpop.eup %8492  ;;  %8500 = vpow2.f32 %v3334_v29  ;;  %v3736_v43 = vmul.f32 1.442695, %v3725_v19 }
 0x80c   : > { %v10068_v40 = vpop.eup %8494  ;;  %v3332_v37 = vmul.f32 1.442695, %v3318_v15  ;;  %v3345_v6 = vsel %vm1115_vm3, %v10066_v20, 0.0  ;;  %v3715_v14 = vpop.xlane.xlu1 %3714 }
 0x80d   : > { %3346 = vadd.xlane.f32.xlu1 %v3345_v6  ;;  %v3700_v5 = vpop.xlane.xlu0 %3699  ;;  %v3342_v52 = vsel %vm1115_vm3, %v10068_v40, 0.0  ;;  %v3727_v38 = vsub.f32 %v9986_v21, %v3715_v14 }
 0x80e   : > { %v3722_v10 = vsub.f32 %v9978_v12, %v3700_v5  ;;  %3343 = vadd.xlane.f32.xlu0 %v3342_v52  ;;  %8502 = vpow2.f32 %v3332_v37 }
 0x80f   : > { %v3740_v0 = vmul.f32 1.442695, %v3727_v38 }
 0x810   : > { %v10076_v23 = vpop.eup %8496  ;;  %v3730_v7 = vmul.f32 1.442695, %v3722_v10  ;;  %v3721_v45 = vpop.xlane.xlu1 %3720 }
 0x811   : > { %v3706_v1 = vpop.xlane.xlu0 %3705  ;;  %v3348_v48 = vsel %vm1115_vm3, %v10076_v23, 0.0  ;;  %v3729_v41 = vsub.f32 %v9992_v39, %v3721_v45 }
 0x812   : > { %8504 = vpow2.f32 %v3730_v7  ;;  %3349 = vadd.xlane.f32.xlu0 %v3348_v48  ;;  %v3724_v12 = vsub.f32 %v9984_v42, %v3706_v1 }
 0x813   : > { %8506 = vpow2.f32 %v3732_v46  ;;  %v3744_v39 = vmul.f32 1.442695, %v3729_v41 }
 0x814   : > { %v10081_v18 = vpop.eup %8498  ;;  %v7229_v31 = vpop.f32.mrb[32].mxu0  ;;  %8508 = vpow2.f32 %v3736_v43  ;;  %v3734_v4 = vmul.f32 1.442695, %v3724_v12 }
 0x815   : > { %v3712_v60 = vpop.xlane.xlu0 %3711  ;;  %v2943_v9 = vpop.f32.mrb[33].mxu0  ;;  %v3351_v13 = vsel %vm1115_vm3, %v10081_v18, 0.0 }
 0x816   : > { %v10086_v63 = vpop.eup %8500  ;;  %v3726_v44 = vsub.f32 %v9990_v51, %v3712_v60  ;;  %3352 = vadd.xlane.f32.xlu1 %v3351_v13  ;;  %7241 = vmatprep.mubr.msk.f32.mxu0 %vm969_vm1, %v2943_v9  ;;  %v8235_v62 = vpop.permute.xlu1 %8234 }
 0x817   : > { %7242 = vmatmul.mubr.msk.f32.vlgmr.msra.gmra.mrb[16].mxu0 %vm969_vm1, %v7229_v31  ;;  %v3357_v34 = vsel %vm1115_vm3, %v10086_v63, 0.0  ;;  %v8237_v55 = vunpack.i.h.bf16 %v8235_v62  ;;  %v8236_v29 = vunpack.i.l.bf16 %v8235_v62 }
 0x818   : > { %v3738_v42 = vmul.f32 1.442695, %v3726_v44  ;;  %v10094_v24 = vpop.eup %8502 }
 0x819   : > { %v3718_v26 = vpop.xlane.xlu0 %3717  ;;  %v3354_v3 = vsel %vm1115_vm3, %v10094_v24, 0.0  ;;  %v7793_v46 = vpack.c.bf16 %v8237_v55, %v8236_v29 }
 0x81a   : > { %8510 = vpow2.f32 %v3738_v42  ;;  %3358 = vadd.xlane.f32.xlu1 %v3357_v34  ;;  %v3728_v54 = vsub.f32 %v9994_v47, %v3718_v26  ;;  %v8245_v19 = vpop.permute.xlu1 %8244 }
 0x81b   : > { %v7232_v51 = vpop.f32.mrb[34].mxu0  ;;  %8512 = vpow2.f32 %v3734_v4  ;;  %v8247_v45 = vunpack.i.h.bf16 %v8245_v19  ;;  %v8246_v12 = vunpack.i.l.bf16 %v8245_v19 }
 0x81c   : > { %v10096_v11 = vpop.eup %8504  ;;  %v2953_v32 = vpop.f32.mrb[35].mxu0  ;;  %8514 = vpow2.f32 %v3740_v0  ;;  %v3742_v47 = vmul.f32 1.442695, %v3728_v54 }
 0x81d   : > { %v8230_v21 = vpop.permute.xlu0 %8229  ;;  %7244 = vmatprep.mubr.msk.f32.mxu0 %vm969_vm1, %v2953_v32  ;;  %v3746_v8 = vsel %vm1115_vm3, %v10096_v11, 0.0  ;;  %v10104_v56 = vpop.eup %8506  ;;  %8516 = vpow2.f32 %v3744_v39  ;;  %v7801_v4 = vpack.c.bf16 %v8247_v45, %v8246_v12 }
 0x81e   : > { %v8232_v33 = vunpack.i.h.bf16 %v8230_v21  ;;  %v8231_v53 = vunpack.i.l.bf16 %v8230_v21  ;;  %3355 = vadd.xlane.f32.xlu1 %v3354_v3  ;;  %3747 = vadd.xlane.f32.xlu0 %v3746_v8  ;;  %v3749_v6 = vsel %vm1115_vm3, %v10104_v56, 0.0  ;;  %v10110_v5 = vpop.eup %8508  ;;  %8518 = vpow2.f32 %v3742_v47 }
 0x81f   : > { %7245 = vmatmul.mubr.msk.f32.gmra.mrb[18].mxu0 %vm969_vm1, %v7232_v51  ;;  %v3755_v1 = vsel %vm1115_vm3, %v10110_v5, 0.0 }
 0x820   : > { %v7789_v15 = vpack.c.bf16 %v8232_v33, %v8231_v53 }
 0x821   : > { %v7235_v28 = vpop.f32.mrb[36].mxu0  ;;  %v8240_v37 = vpop.permute.xlu0 %8239 }
 0x822   : > { %v8242_v52 = vunpack.i.h.bf16 %v8240_v37  ;;  %v8241_v14 = vunpack.i.l.bf16 %v8240_v37  ;;  %v2963_v10 = vpop.f32.mrb[37].mxu0  ;;  %3750 = vadd.xlane.f32.xlu1 %v3749_v6  ;;  %7790 = vmatprep.subr.bf16.mxu0 %v7789_v15 }
 0x823   : > { %7247 = vmatprep.mubr.msk.f32.mxu0 %vm969_vm1, %v2963_v10  ;;  %7792 = vmatpush3.bf16.msra.mxu0 %v7789_v15 }
 0x824   : > { %v10113_v7 = vpop.eup %8510  ;;  %7248 = vmatmul.mubr.msk.f32.gmra.mrb[20].mxu0 %vm969_vm1, %v7235_v28  ;;  %7794 = vmatprep.subr.bf16.mxu0 %v7793_v46  ;;  %v7797_v31 = vpack.c.bf16 %v8242_v52, %v8241_v14 }
 0x825   : > { %v3758_v48 = vsel %vm1115_vm3, %v10113_v7, 0.0  ;;  %v10120_v43 = vpop.eup %8512  ;;  %v8250_v60 = vpop.permute.xlu0 %8249 }
 0x826   : > { %3756 = vadd.xlane.f32.xlu1 %v3755_v1  ;;  %3759 = vadd.xlane.f32.xlu0 %v3758_v48  ;;  %v3752_v9 = vsel %vm1115_vm3, %v10120_v43, 0.0  ;;  %v10124_v13 = vpop.eup %8514  ;;  %v8252_v44 = vunpack.i.h.bf16 %v8250_v60  ;;  %v8251_v38 = vunpack.i.l.bf16 %v8250_v60 }
 0x827   : > { %7796 = vmatpush3.bf16.msra.mxu0 %v7793_v46  ;;  %v3761_v42 = vsel %vm1115_vm3, %v10124_v13, 0.0  ;;  %v10128_v26 = vpop.eup %8516 }
 0x828   : > { %7798 = vmatprep.subr.bf16.mxu0 %v7797_v31  ;;  %v7829_v34 = vpack.c.bf16 %v8252_v44, %v8251_v38  ;;  %v3767_v62 = vsel %vm1115_vm3, %v10128_v26, 0.0  ;;  %v10132_v51 = vpop.eup %8518 }
 0x829   : > { %v3764_v0 = vsel %vm1115_vm3, %v10132_v51, 0.0 }
 0x82a   : > { %3753 = vadd.xlane.f32.xlu1 %v3752_v9 }
 0x82b   : > { %7800 = vmatpush3.bf16.msra.mxu0 %v7797_v31 }
 0x82c   : > { %7802 = vmatprep.subr.bf16.mxu0 %v7801_v4 }
 0x82e   : > { %3762 = vadd.xlane.f32.xlu1 %v3761_v42 }
 0x82f   : > { %7804 = vmatpush3.bf16.msra.mxu0 %v7801_v4 }
 0x830   : > { %7830 = vmatprep.subr.bf16.mxu0 %v7829_v34 }
 0x832   : > { %3768 = vadd.xlane.f32.xlu1 %v3767_v62 }
 0x836   : > { %3765 = vadd.xlane.f32.xlu1 %v3764_v0 }
 0x83b   : > { %v10136_v41 = vpop.f32.mrb[64].mxu1 }
 0x83c   : > { %v10138_v32 = vpop.f32.mrb[65].mxu1  ;;  %8264 = vrot.lane.b32.xlu0 %v9263_v2, %s8714_s22 }
 0x83d   : > { %v4366_v54 = vsel %vm1115_vm3, %v10138_v32, -inf }
 0x83f   : > { %v10142_v21 = vpop.f32.mrb[66].mxu1 }
 0x840   : > { %v10144_v3 = vpop.f32.mrb[67].mxu1  ;;  %8269 = vrot.lane.b32.xlu0 %v9223_v30, %s8715_s23 }
 0x841   : > { %v4372_v15 = vsel %vm1115_vm3, %v10144_v3, -inf }
 0x844   : > { %8274 = vrot.lane.b32.xlu0 %v9237_v35, %s8715_s23 }
 0x847   : > { %8259 = vrot.lane.b32.xlu1 %v9251_v50, %s8714_s22 }
 0x848   : > { %8279 = vrot.lane.b32.xlu0 %v9251_v50, %s8715_s23 }
 0x84b   : > { %8284 = vrot.lane.b32.xlu1 %v9263_v2, %s8715_s23 }
 0x84c   : > { %4744 = vrot.lane.b32.xlu0 %v9589_v16, %s8716_s24 }
 0x84f   : > { %4746 = vrot.lane.b32.xlu1 %v9693_v49, %s8716_s24 }
 0x850   : > { %4748 = vrot.lane.b32.xlu0 %v9639_v61, %s8716_s24  ;;  %v8255_v61 = vpop.permute.xlu0 %8254 }
 0x851   : > { %v8256_v33 = vunpack.i.l.bf16 %v8255_v61 }
 0x853   : > { %4750 = vrot.lane.b32.xlu1 %v9698_v27, %s8716_s24 }
 0x854   : > { %4752 = vrot.lane.b32.xlu0 %v9647_v57, %s8716_s24 }
 0x857   : > { %4754 = vrot.lane.b32.xlu1 %v9705_v17, %s8716_s24  ;;  %v8257_v17 = vunpack.i.h.bf16 %v8255_v61 }
 0x858   : > { %4756 = vrot.lane.b32.xlu0 %v9652_v36, %s8716_s24 }
 0x859   : > { %v7833_v39 = vpack.c.bf16 %v8257_v17, %v8256_v33 }
 0x85b   : > { %4758 = vrot.lane.b32.xlu1 %v9712_v58, %s8716_s24  ;;  %v10172_v16 = vpop.f32.mrb[68].mxu1  ;;  %s10999_s24 = sshll.u32 %s11001_s27, 6 }
 0x85c   : > { %v10174_v49 = vpop.f32.mrb[69].mxu1  ;;  %v4381_v28 = vsel %vm1115_vm3, %v10172_v16, -inf  ;;  %s10929_s30 = scalar_lea.vmem %s10995_s13, %s10999_s24 }
 0x85d   : > { %v4378_v37 = vsel %vm1115_vm3, %v10174_v49, -inf }
 0x865   : > { %v3341_v8 = vpop.xlane.xlu1 %3340  ;;  %v7238_v55 = vpop.f32.mrb[38].mxu0 }
 0x866   : > { %8520 = vrcp.f32 %v3341_v8  ;;  %v3338_v27 = vpop.xlane.xlu0 %3337  ;;  %v2973_v29 = vpop.f32.mrb[39].mxu0 }
 0x867   : > { %8522 = vrcp.f32 %v3338_v27  ;;  %7250 = vmatprep.mubr.msk.f32.mxu0 %vm969_vm1, %v2973_v29 }
 0x868   : > { %7251 = vmatmul.mubr.msk.f32.gmra.mrb[22].mxu0 %vm969_vm1, %v7238_v55 }
 0x870   : > { %v8521_v57 = vpop.eup %8520 }
 0x871   : > { %v8523_v36 = vpop.eup %8522  ;;  %v3369_v53 = vmul.f32 %v8521_v57, %v10052_v22  ;;  %v4375_v22 = vsel %vm1115_vm3, %v10142_v21, -inf }
 0x872   : > { %v3368_v58 = vmul.f32 %v8523_v36, %v10054_v59  ;;  %v4369_v59 = vsel %vm1115_vm3, %v10136_v41, -inf }
 0x874   : > { %7297 = vmatprep.mubr.msk.f32.mxu0 %vm1115_vm3, %v3368_v58 }
 0x875   : > { %7298 = vmatmul.mubr.msk.f32.vlgmr.msra.gmra.mrb[40].mxu0 %vm1115_vm3, %v3369_v53 }
 0x876   : > { %7832 = vmatpush3.bf16.msra.mxu0 %v7829_v34 }
 0x877   : > { %7834 = vmatprep.subr.bf16.mxu0 %v7833_v39  ;;  %4367 = vmax.xlane.f32.xlu0 %v4366_v54 }
 0x87a   : > { %7836 = vmatpush3.bf16.msra.mxu0 %v7833_v39 }
 0x87b   : > { %4373 = vmax.xlane.f32.xlu0 %v4372_v15 }
 0x87f   : > { %4370 = vmax.xlane.f32.xlu1 %v4369_v59  ;;  %4376 = vmax.xlane.f32.xlu0 %v4375_v22 }
 0x883   : > { %4382 = vmax.xlane.f32.xlu1 %v4381_v28  ;;  %4379 = vmax.xlane.f32.xlu0 %v4378_v37 }
 0x89a   : > { %v3347_v6 = vpop.xlane.xlu1 %3346 }
 0x89b   : > { %8524 = vrcp.f32 %v3347_v6  ;;  %v3344_v52 = vpop.xlane.xlu0 %3343 }
 0x89c   : > { %8526 = vrcp.f32 %v3344_v52 }
 0x89f   : > { %v3350_v14 = vpop.xlane.xlu0 %3349 }
 0x8a0   : > { %8528 = vrcp.f32 %v3350_v14 }
 0x8a1   : > { %v10194_v10 = vpop.f32.mrb[70].mxu1 }
 0x8a2   : > { %v10196_v46 = vpop.f32.mrb[71].mxu1  ;;  %v4387_v19 = vsel %vm1115_vm3, %v10194_v10, -inf }
 0x8a3   : > { %v3353_v47 = vpop.xlane.xlu1 %3352  ;;  %4388 = vmax.xlane.f32.xlu1 %v4387_v19  ;;  %v4384_v1 = vsel %vm1115_vm3, %v10196_v46, -inf }
 0x8a4   : > { %8530 = vrcp.f32 %v3353_v47  ;;  %4385 = vmax.xlane.f32.xlu0 %v4384_v1 }
 0x8a5   : > { %v8525_v48 = vpop.eup %8524 }
 0x8a6   : > { %v8527_v45 = vpop.eup %8526  ;;  %v3371_v60 = vmul.f32 %v8525_v48, %v10066_v20 }
 0x8a7   : > { %v3359_v12 = vpop.xlane.xlu1 %3358  ;;  %v3370_v31 = vmul.f32 %v8527_v45, %v10068_v40 }
 0x8a8   : > { %8532 = vrcp.f32 %v3359_v12 }
 0x8a9   : > { %7300 = vmatprep.mubr.msk.f32.mxu0 %vm1115_vm3, %v3370_v31 }
 0x8aa   : > { %v8529_v9 = vpop.eup %8528  ;;  %7301 = vmatmul.mubr.msk.f32.gmra.mrb[42].mxu0 %vm1115_vm3, %v3371_v60 }
 0x8ab   : > { %v3356_v44 = vpop.xlane.xlu1 %3355  ;;  %v3748_v38 = vpop.xlane.xlu0 %3747  ;;  %v3372_v4 = vmul.f32 %v8529_v9, %v10076_v23 }
 0x8ac   : > { %8534 = vrcp.f32 %v3356_v44 }
 0x8ad   : > { %8536 = vrcp.f32 %v3748_v38  ;;  %7303 = vmatprep.mubr.msk.f32.mxu0 %vm1115_vm3, %v3372_v4  ;;  %v8680_v4 = vld [vmem:[%s10987_s5 + $0x8] sm:$0xff] }
 0x8ae   : > { %v8531_v42 = vpop.eup %8530 }
 0x8af   : > { %v3751_v34 = vpop.xlane.xlu1 %3750  ;;  %v3373_v40 = vmul.f32 %v8531_v42, %v10081_v18 }
 0x8b0   : > { %8538 = vrcp.f32 %v3751_v34 }
 0x8b1   : > { %7304 = vmatmul.mubr.msk.f32.gmra.mrb[44].mxu0 %vm1115_vm3, %v3373_v40 }
 0x8b2   : > { %v8533_v0 = vpop.eup %8532 }
 0x8b3   : > { %v3757_v20 = vpop.xlane.xlu1 %3756  ;;  %v3760_v62 = vpop.xlane.xlu0 %3759  ;;  %v3375_v29 = vmul.f32 %v8533_v0, %v10086_v63 }
 0x8b4   : > { %8294 = vrot.lane.b32.xlu1 %v9237_v35, %s8717_s26 }
 0x8b6   : > { %v8535_v61 = vpop.eup %8534 }
 0x8b7   : > { %v8537_v8 = vpop.eup %8536  ;;  %v3754_v55 = vpop.xlane.xlu1 %3753  ;;  %v3374_v27 = vmul.f32 %v8535_v61, %v10094_v24 }
 0x8b8   : > { %v8265_v23 = vpop.permute.xlu0 %8264  ;;  %v3778_v18 = vmul.f32 %v8537_v8, %v10096_v11  ;;  %8540 = vrcp.f32 %v3754_v55 }
 0x8b9   : > { %7306 = vmatprep.mubr.msk.f32.mxu0 %vm1115_vm3, %v3374_v27  ;;  %v8267_v28 = vunpack.i.h.bf16 %v8265_v23  ;;  %v8266_v52 = vunpack.i.l.bf16 %v8265_v23  ;;  %8542 = vrcp.f32 %v3757_v20 }
 0x8ba   : > { %8289 = vrot.lane.b32.xlu0 %v9223_v30, %s8717_s26  ;;  %7307 = vmatmul.mubr.msk.f32.gmra.mrb[46].mxu0 %vm1115_vm3, %v3375_v29  ;;  %8544 = vrcp.f32 %v3760_v62  ;;  %v8539_v60 = vpop.eup %8538 }
 0x8bb   : > { %v3763_v57 = vpop.xlane.xlu1 %3762  ;;  %7353 = vmatprep.mubr.msk.f32.mxu0 %vm1115_vm3, %v3778_v18  ;;  %v7841_v45 = vpack.c.bf16 %v8267_v28, %v8266_v52  ;;  %v3779_v38 = vmul.f32 %v8539_v60, %v10104_v56  ;;  %v10246_v56 = vld [vmem:[%s10987_s5] sm:$0xff] }
 0x8bc   : > { %v8270_v36 = vpop.permute.xlu0 %8269  ;;  %8546 = vrcp.f32 %v3763_v57 }
 0x8bd   : > { %v8272_v17 = vunpack.i.h.bf16 %v8270_v36  ;;  %v8271_v33 = vunpack.i.l.bf16 %v8270_v36 }
 0x8bf   : > { %v7885_v58 = vpack.c.bf16 %v8272_v17, %v8271_v33  ;;  %v3769_v53 = vpop.xlane.xlu1 %3768 }
 0x8c0   : > { %v8275_v24 = vpop.permute.xlu0 %8274 }
 0x8c1   : > { %v8277_v39 = vunpack.i.h.bf16 %v8275_v24  ;;  %v8276_v63 = vunpack.i.l.bf16 %v8275_v24  ;;  %7887 = vmatprep.subr.msk.bf16.mxu1 %vm9140_vm2, %v7885_v58 }
 0x8c2   : > { %7890 = vmatpush3.bf16.xpose.msk.msra.mxu1 %vm9140_vm2, %v7885_v58  ;;  %v8541_v9 = vpop.eup %8540 }
 0x8c3   : > { %v7891_v11 = vpack.c.bf16 %v8277_v39, %v8276_v63  ;;  %v3766_v54 = vpop.xlane.xlu1 %3765  ;;  %v8543_v42 = vpop.eup %8542  ;;  %v3780_v34 = vmul.f32 %v8541_v9, %v10120_v43 }
 0x8c4   : > { %v8280_v15 = vpop.permute.xlu0 %8279  ;;  %8548 = vrcp.f32 %v3766_v54  ;;  %v8545_v40 = vpop.eup %8544  ;;  %v3781_v20 = vmul.f32 %v8543_v42, %v10110_v5 }
 0x8c5   : > { %v8282_v59 = vunpack.i.h.bf16 %v8280_v15  ;;  %v8281_v22 = vunpack.i.l.bf16 %v8280_v15  ;;  %7893 = vmatprep.subr.msk.bf16.mxu1 %vm9140_vm2, %v7891_v11  ;;  %8550 = vrcp.f32 %v3769_v53  ;;  %v3782_v0 = vmul.f32 %v8545_v40, %v10113_v7 }
 0x8c6   : > { %v8547_v62 = vpop.eup %8546 }
 0x8c7   : > { %v8260_v37 = vpop.permute.xlu1 %8259  ;;  %v7897_v14 = vpack.c.bf16 %v8282_v59, %v8281_v22  ;;  %v3783_v5 = vmul.f32 %v8547_v62, %v10124_v13 }
 0x8c8   : > { %v4745_v6 = vpop.permute.xlu0 %4744  ;;  %v8262_v19 = vunpack.i.h.bf16 %v8260_v37  ;;  %v8261_v47 = vunpack.i.l.bf16 %v8260_v37 }
 0x8c9   : > { %7479 = vmatprep.mubr.msk.f32.mxu1 %vm969_vm1, %v4745_v6 }
 0x8ca   : > { %7896 = vmatpush3.bf16.xpose.msk.msra.mxu1 %vm9140_vm2, %v7891_v11  ;;  %v7837_v1 = vpack.c.bf16 %v8262_v19, %v8261_v47 }
 0x8cb   : > { %7899 = vmatprep.subr.msk.bf16.mxu1 %vm9140_vm2, %v7897_v14  ;;  %v8285_v48 = vpop.permute.xlu1 %8284 }
 0x8cc   : > { %v8287_v12 = vunpack.i.h.bf16 %v8285_v48  ;;  %v8286_v31 = vunpack.i.l.bf16 %v8285_v48  ;;  %7838 = vmatprep.subr.bf16.mxu0 %v7837_v1  ;;  %v4749_v23 = vpop.permute.xlu0 %4748 }
 0x8cd   : > { %7840 = vmatpush3.bf16.msra.mxu0 %v7837_v1 }
 0x8ce   : > { %7842 = vmatprep.subr.bf16.mxu0 %v7841_v45  ;;  %v7903_v44 = vpack.c.bf16 %v8287_v12, %v8286_v31  ;;  %v8549_v61 = vpop.eup %8548 }
 0x8cf   : > { %v4747_v43 = vpop.permute.xlu1 %4746  ;;  %v8551_v8 = vpop.eup %8550  ;;  %v3784_v55 = vmul.f32 %v8549_v61, %v10132_v51 }
 0x8d0   : > { %v3785_v7 = vmul.f32 %v8551_v8, %v10128_v26  ;;  %v4753_v25 = vpop.permute.xlu0 %4752 }
 0x8d1   : > { %7844 = vmatpush3.bf16.msra.mxu0 %v7841_v45 }
 0x8d2   : > { %7902 = vmatpush3.bf16.xpose.msk.msra.mxu1 %vm9140_vm2, %v7897_v14  ;;  %7365 = vmatprep.subr.mxu0 %v8680_v4 }
 0x8d3   : > { %7905 = vmatprep.subr.msk.bf16.mxu1 %vm9140_vm2, %v7903_v44  ;;  %v4751_v27 = vpop.permute.xlu1 %4750 }
 0x8d4   : > { %7354 = vmatmul.mubr.msk.f32.vlgmr.msra.gmra.mrb[48].mxu0 %vm1115_vm3, %v3779_v38  ;;  %v4757_v51 = vpop.permute.xlu0 %4756 }
 0x8d5   : > { %7356 = vmatprep.mubr.msk.f32.mxu0 %vm1115_vm3, %v3780_v34  ;;  %7366 = vmatpush3.msra.mxu0 %v8680_v4 }
 0x8d6   : > { %7379 = vmatprep.subr.mxu0 %v10246_v56 }
 0x8d7   : > { %v4755_v13 = vpop.permute.xlu1 %4754 }
 0x8d8   : > { %7357 = vmatmul.mubr.msk.f32.gmra.mrb[50].mxu0 %vm1115_vm3, %v3781_v20 }
 0x8d9   : > { %7359 = vmatprep.mubr.msk.f32.mxu0 %vm1115_vm3, %v3782_v0 }
 0x8da   : > { %7908 = vmatpush3.bf16.xpose.msk.msra.mxu1 %vm9140_vm2, %v7903_v44 }
 0x8db   : > { %v4759_v26 = vpop.permute.xlu1 %4758 }
 0x8dc   : > { %7360 = vmatmul.mubr.msk.f32.gmra.mrb[52].mxu0 %vm1115_vm3, %v3783_v5 }
 0x8dd   : > { %7362 = vmatprep.mubr.msk.f32.mxu0 %vm1115_vm3, %v3784_v55 }
 0x8e0   : > { %7363 = vmatmul.mubr.msk.f32.gmra.mrb[54].mxu0 %vm1115_vm3, %v3785_v7 }
 0x8e1   : > { %7480 = vmatmul.mubr.msk.f32.vlgmr.msra.gmra.mrb[72].mxu1 %vm969_vm1, %v4747_v43 }
 0x8e2   : > { %7482 = vmatprep.mubr.msk.f32.mxu1 %vm969_vm1, %v4749_v23 }
 0x8e5   : > { %7483 = vmatmul.mubr.msk.f32.gmra.mrb[74].mxu1 %vm969_vm1, %v4751_v27 }
 0x8e6   : > { %7485 = vmatprep.mubr.msk.f32.mxu1 %vm969_vm1, %v4753_v25 }
 0x8e9   : > { %7486 = vmatmul.mubr.msk.f32.gmra.mrb[76].mxu1 %vm969_vm1, %v4755_v13 }
 0x8ea   : > { %7488 = vmatprep.mubr.msk.f32.mxu1 %vm969_vm1, %v4757_v51  ;;  %v10266_v29 = vpop.f32.mrb[16].mxu0 }
 0x8eb   : > { %v10268_v18 = vpop.f32.mrb[17].mxu0 }
 0x8ed   : > { %7489 = vmatmul.mubr.msk.f32.gmra.mrb[78].mxu1 %vm969_vm1, %v4759_v26 }
 0x8f2   : > { %v10271_v57 = vpop.f32.mrb[18].mxu0 }
 0x8f3   : > { %v10273_v36 = vpop.f32.mrb[19].mxu0 }
 0x8f7   : > { %v10275_v17 = vpop.f32.mrb[20].mxu0 }
 0x8f8   : > { %v10277_v33 = vpop.f32.mrb[21].mxu0 }
 0x904   : > { %v4368_v58 = vpop.xlane.xlu0 %4367 }
 0x905   : > { %v4390_v53 = vsub.f32 %v10138_v32, %v4368_v58 }
 0x907   : > { %v4398_v24 = vmul.f32 1.442695, %v4390_v53 }
 0x908   : > { %v4374_v39 = vpop.xlane.xlu0 %4373 }
 0x909   : > { %8552 = vpow2.f32 %v4398_v24  ;;  %v4392_v63 = vsub.f32 %v10144_v3, %v4374_v39 }
 0x90b   : > { %v4402_v11 = vmul.f32 1.442695, %v4392_v63 }
 0x90c   : > { %v4371_v54 = vpop.xlane.xlu1 %4370  ;;  %v4377_v15 = vpop.xlane.xlu0 %4376 }
 0x90d   : > { %8554 = vpow2.f32 %v4402_v11  ;;  %v4391_v59 = vsub.f32 %v10136_v41, %v4371_v54  ;;  %v4393_v22 = vsub.f32 %v10142_v21, %v4377_v15 }
 0x90f   : > { %v4400_v28 = vmul.f32 1.442695, %v4391_v59  ;;  %v4404_v37 = vmul.f32 1.442695, %v4393_v22 }
 0x910   : > { %v4383_v6 = vpop.xlane.xlu1 %4382  ;;  %v4380_v52 = vpop.xlane.xlu0 %4379 }
 0x911   : > { %8556 = vpow2.f32 %v4400_v28  ;;  %v4395_v32 = vsub.f32 %v10172_v16, %v4383_v6  ;;  %v4394_v14 = vsub.f32 %v10174_v49, %v4380_v52 }
 0x912   : > { %8558 = vpow2.f32 %v4404_v37 }
 0x913   : > { %v10285_v19 = vpop.eup %8552  ;;  %v4408_v3 = vmul.f32 1.442695, %v4395_v32  ;;  %v4406_v47 = vmul.f32 1.442695, %v4394_v14 }
 0x914   : > { %v4414_v1 = vsel %vm1115_vm3, %v10285_v19, 0.0 }
 0x915   : > { %4415 = vadd.xlane.f32.xlu0 %v4414_v1  ;;  %8560 = vpow2.f32 %v4406_v47 }
 0x916   : > { %8562 = vpow2.f32 %v4408_v3 }
 0x917   : > { %v10289_v41 = vpop.eup %8554 }
 0x918   : > { %v4420_v21 = vsel %vm1115_vm3, %v10289_v41, 0.0 }
 0x919   : > { %4421 = vadd.xlane.f32.xlu0 %v4420_v21 }
 0x91b   : > { %v10293_v16 = vpop.eup %8556 }
 0x91c   : > { %v4417_v49 = vsel %vm1115_vm3, %v10293_v16, 0.0  ;;  %v10297_v48 = vpop.eup %8558 }
 0x91d   : > { %4418 = vadd.xlane.f32.xlu1 %v4417_v49  ;;  %v4423_v12 = vsel %vm1115_vm3, %v10297_v48, 0.0 }
 0x91f   : > { %v10299_v45 = vpop.eup %8560 }
 0x920   : > { %v10303_v31 = vpop.eup %8562  ;;  %v4426_v60 = vsel %vm1115_vm3, %v10299_v45, 0.0 }
 0x921   : > { %4424 = vadd.xlane.f32.xlu1 %v4423_v12  ;;  %4427 = vadd.xlane.f32.xlu0 %v4426_v60  ;;  %v4429_v9 = vsel %vm1115_vm3, %v10303_v31, 0.0 }
 0x925   : > { %4430 = vadd.xlane.f32.xlu1 %v4429_v9 }
 0x930   : > { %v4389_v44 = vpop.xlane.xlu1 %4388 }
 0x931   : > { %v4397_v38 = vsub.f32 %v10194_v10, %v4389_v44  ;;  %v4386_v4 = vpop.xlane.xlu0 %4385 }
 0x932   : > { %v4396_v42 = vsub.f32 %v10196_v46, %v4386_v4 }
 0x933   : > { %v4412_v34 = vmul.f32 1.442695, %v4397_v38 }
 0x934   : > { %v4410_v40 = vmul.f32 1.442695, %v4396_v42  ;;  %v8295_v28 = vpop.permute.xlu1 %8294 }
 0x935   : > { %8564 = vpow2.f32 %v4412_v34  ;;  %v8290_v13 = vpop.permute.xlu0 %8289  ;;  %v8297_v14 = vunpack.i.h.bf16 %v8295_v28  ;;  %v8296_v3 = vunpack.i.l.bf16 %v8295_v28 }
 0x936   : > { %8566 = vpow2.f32 %v4410_v40  ;;  %v8292_v51 = vunpack.i.h.bf16 %v8290_v13  ;;  %v8291_v26 = vunpack.i.l.bf16 %v8290_v13 }
 0x937   : > { %8299 = vrot.lane.b32.xlu0 %v9251_v50, %s8717_s26  ;;  %v7873_v60 = vpack.c.bf16 %v8297_v14, %v8296_v3 }
 0x938   : > { %v7869_v39 = vpack.c.bf16 %v8292_v51, %v8291_v26 }
 0x93b   : > { %v10313_v20 = vpop.f32.mrb[22].mxu0 }
 0x93c   : > { %v10315_v62 = vpop.f32.mrb[23].mxu0 }
 0x93f   : > { %v10317_v0 = vpop.eup %8564 }
 0x940   : > { %v4435_v61 = vsel %vm1115_vm3, %v10317_v0, 0.0  ;;  %v10321_v10 = vpop.eup %8566 }
 0x941   : > { %4436 = vadd.xlane.f32.xlu1 %v4435_v61  ;;  %v4432_v46 = vsel %vm1115_vm3, %v10321_v10, 0.0 }
 0x945   : > { %4433 = vadd.xlane.f32.xlu1 %v4432_v46 }
 0x948   : > { %v7299_v43 = vpop.f32.mrb[40].mxu0 }
 0x949   : > { %v3490_v5 = vpop.f32.mrb[41].mxu0 }
 0x956   : > { %8304 = vrot.lane.b32.xlu1 %v9263_v2, %s8717_s26 }
 0x97d   : > { %v7302_v8 = vpop.f32.mrb[42].mxu0 }
 0x97e   : > { %v3500_v55 = vpop.f32.mrb[43].mxu0 }
 0x984   : > { %v10327_v23 = vpop.f32.mrb[44].mxu0 }
 0x985   : > { %v3510_v7 = vpop.f32.mrb[45].mxu0 }
 0x98d   : > { %v10329_v27 = vpop.f32.mrb[46].mxu0 }
 0x98e   : > { %v10331_v25 = vpop.f32.mrb[47].mxu0 }
 0x9a2   : > { %v4416_v58 = vpop.xlane.xlu0 %4415 }
 0x9a3   : > { %8568 = vrcp.f32 %v4416_v58 }
 0x9a6   : > { %v10336_v54 = vpop.xlane.xlu0 %4421 }
 0x9a7   : > { %v7355_v53 = vpop.f32.mrb[48].mxu0 }
 0x9a8   : > { %v3900_v24 = vpop.f32.mrb[49].mxu0 }
 0x9a9   : > { %7367 = vmatprep.mubr.msk.f32.mxu0 %vm969_vm1, %v3900_v24 }
 0x9aa   : > { %7368 = vmatmul.mubr.msk.f32.vlgmr.msra.gmra.mrb[56].mxu0 %vm969_vm1, %v7355_v53  ;;  %v4419_v34 = vpop.xlane.xlu1 %4418 }
 0x9ab   : > { %7380 = vmatpush3.msra.mxu0 %v10246_v56  ;;  %v7358_v63 = vpop.f32.mrb[50].mxu0  ;;  %8570 = vrcp.f32 %v4419_v34 }
 0x9ac   : > { %7870 = vmatprep.subr.bf16.mxu0 %v7869_v39  ;;  %v3910_v11 = vpop.f32.mrb[51].mxu0  ;;  %8572 = vrcp.f32 %v10336_v54 }
 0x9ad   : > { %7370 = vmatprep.mubr.msk.f32.mxu0 %vm969_vm1, %v3910_v11 }
 0x9ae   : > { %7371 = vmatmul.mubr.msk.f32.gmra.mrb[58].mxu0 %vm969_vm1, %v7358_v63  ;;  %v10340_v22 = vpop.xlane.xlu0 %4427 }
 0x9af   : > { %v7361_v15 = vpop.f32.mrb[52].mxu0 }
 0x9b0   : > { %v3920_v59 = vpop.f32.mrb[53].mxu0 }
 0x9b1   : > { %7373 = vmatprep.mubr.msk.f32.mxu0 %vm969_vm1, %v3920_v59 }
 0x9b2   : > { %7374 = vmatmul.mubr.msk.f32.gmra.mrb[60].mxu0 %vm969_vm1, %v7361_v15  ;;  %v8300_v1 = vpop.permute.xlu0 %8299 }
 0x9b3   : > { %v7364_v37 = vpop.f32.mrb[54].mxu0  ;;  %v8302_v9 = vunpack.i.h.bf16 %v8300_v1  ;;  %v8301_v44 = vunpack.i.l.bf16 %v8300_v1 }
 0x9b4   : > { %v10344_v56 = vpop.f32.mrb[72].mxu1  ;;  %v3930_v6 = vpop.f32.mrb[55].mxu0 }
 0x9b5   : > { %v10346_v52 = vpop.f32.mrb[73].mxu1  ;;  %v4916_v32 = vsel %vm1115_vm3, %v10344_v56, -inf  ;;  %7376 = vmatprep.mubr.msk.f32.mxu0 %vm969_vm1, %v3930_v6  ;;  %v7877_v40 = vpack.c.bf16 %v8302_v9, %v8301_v44 }
 0x9b6   : > { %4917 = vmax.xlane.f32.xlu1 %v4916_v32  ;;  %v4913_v47 = vsel %vm1115_vm3, %v10346_v52, -inf  ;;  %7377 = vmatmul.mubr.msk.f32.gmra.mrb[62].mxu0 %vm969_vm1, %v7364_v37 }
 0x9b7   : > { %4914 = vmax.xlane.f32.xlu0 %v4913_v47  ;;  %7381 = vmatprep.mubr.msk.f32.mxu0 %vm969_vm1, %v3490_v5 }
 0x9b8   : > { %v10355_v21 = vpop.f32.mrb[74].mxu1 }
 0x9b9   : > { %v10357_v49 = vpop.f32.mrb[75].mxu1  ;;  %v4922_v61 = vsel %vm1115_vm3, %v10355_v21, -inf }
 0x9ba   : > { %v4919_v12 = vsel %vm1115_vm3, %v10357_v49, -inf  ;;  %7382 = vmatmul.mubr.msk.f32.vlgmr.msra.gmra.mrb[56].mxu0 %vm969_vm1, %v7299_v43 }
 0x9bb   : > { %4920 = vmax.xlane.f32.xlu0 %v4919_v12  ;;  %7872 = vmatpush3.bf16.msra.mxu0 %v7869_v39 }
 0x9bc   : > { %v10362_v38 = vpop.f32.mrb[76].mxu1  ;;  %7384 = vmatprep.mubr.msk.f32.mxu0 %vm969_vm1, %v3500_v55  ;;  %7874 = vmatprep.subr.bf16.mxu0 %v7873_v60  ;;  %v8569_v55 = vpop.eup %8568 }
 0x9bd   : > { %v10365_v4 = vpop.f32.mrb[77].mxu1  ;;  %v4928_v42 = vsel %vm1115_vm3, %v10362_v38, -inf  ;;  %v8571_v24 = vpop.eup %8570 }
 0x9be   : > { %4929 = vmax.xlane.f32.xlu1 %v4928_v42  ;;  %7385 = vmatmul.mubr.msk.f32.gmra.mrb[58].mxu0 %vm969_vm1, %v7302_v8  ;;  %v4925_v13 = vsel %vm1115_vm3, %v10365_v4, -inf  ;;  %v4425_v8 = vpop.xlane.xlu1 %4424  ;;  %v8573_v39 = vpop.eup %8572  ;;  %v4447_v63 = vmul.f32 %v8571_v24, %v10293_v16 }
 0x9bf   : > { %4923 = vmax.xlane.f32.xlu0 %v4922_v61  ;;  %7876 = vmatpush3.bf16.msra.mxu0 %v7873_v60  ;;  %8574 = vrcp.f32 %v4425_v8  ;;  %v4448_v54 = vmul.f32 %v8573_v39, %v10289_v41 }
 0x9c0   : > { %v10372_v46 = vpop.f32.mrb[78].mxu1  ;;  %7387 = vmatprep.mubr.msk.f32.mxu0 %vm969_vm1, %v3510_v7  ;;  %7878 = vmatprep.subr.bf16.mxu0 %v7877_v40  ;;  %v4446_v7 = vmul.f32 %v8569_v55, %v10285_v19  ;;  %8576 = vrcp.f32 %v10340_v22 }
 0x9c1   : > { %v10375_v43 = vpop.f32.mrb[79].mxu1  ;;  %v4934_v5 = vsel %vm1115_vm3, %v10372_v46, -inf }
 0x9c2   : > { %4935 = vmax.xlane.f32.xlu1 %v4934_v5  ;;  %7388 = vmatmul.mubr.msk.f32.gmra.mrb[60].mxu0 %vm969_vm1, %v10327_v23  ;;  %v4931_v51 = vsel %vm1115_vm3, %v10375_v43, -inf  ;;  %v4431_v26 = vpop.xlane.xlu1 %4430 }
 0x9c3   : > { %4926 = vmax.xlane.f32.xlu0 %v4925_v13  ;;  %7880 = vmatpush3.bf16.msra.mxu0 %v7877_v40  ;;  %8578 = vrcp.f32 %v4431_v26 }
 0x9c4   : > { %7390 = vmatprep.mubr.msk.f32.mxu0 %vm969_vm1, %v10331_v25 }
 0x9c6   : > { %7391 = vmatmul.mubr.msk.f32.gmra.mrb[62].mxu0 %vm969_vm1, %v10329_v27 }
 0x9c7   : > { %4932 = vmax.xlane.f32.xlu0 %v4931_v51  ;;  %7437 = vmatprep.mubr.msk.f32.mxu0 %vm1115_vm3, %v4446_v7 }
 0x9c9   : > { %v8575_v11 = vpop.eup %8574 }
 0x9ca   : > { %v8577_v15 = vpop.eup %8576  ;;  %v4449_v59 = vmul.f32 %v8575_v11, %v10297_v48 }
 0x9cb   : > { %v4450_v22 = vmul.f32 %v8577_v15, %v10299_v45 }
 0x9cd   : > { %v8579_v16 = vpop.eup %8578 }
 0x9ce   : > { %v4437_v58 = vpop.xlane.xlu1 %4436  ;;  %v4451_v28 = vmul.f32 %v8579_v16, %v10303_v31 }
 0x9d2   : > { %v4434_v23 = vpop.xlane.xlu1 %4433 }
 0x9d3   : > { %8314 = vrot.lane.b32.xlu1 %v9237_v35, %s8718_s28  ;;  %8580 = vrcp.f32 %v4434_v23  ;;  %v8682_v35 = vld [vmem:[%s10987_s5 + $0x10] sm:$0xff] }
 0x9d4   : > { %8582 = vrcp.f32 %v4437_v58 }
 0x9d6   : > { %v8305_v19 = vpop.permute.xlu1 %8304 }
 0x9d7   : > { %v8307_v25 = vunpack.i.h.bf16 %v8305_v19  ;;  %v8306_v53 = vunpack.i.l.bf16 %v8305_v19 }
 0x9d9   : > { %v7881_v27 = vpack.c.bf16 %v8307_v25, %v8306_v53 }
 0x9db   : > { %7882 = vmatprep.subr.bf16.mxu0 %v7881_v27 }
 0x9dc   : > { %7884 = vmatpush3.bf16.msra.mxu0 %v7881_v27 }
 0x9dd   : > { %8309 = vrot.lane.b32.xlu0 %v9223_v30, %s8718_s28  ;;  %7449 = vmatprep.subr.mxu0 %v8682_v35  ;;  %v8581_v30 = vpop.eup %8580 }
 0x9de   : > { %v8583_v37 = vpop.eup %8582  ;;  %v4452_v41 = vmul.f32 %v8581_v30, %v10321_v10  ;;  %v8684_v30 = vld [vmem:[%s8805_s14 + $0x18] sm:$0xff] }
 0x9df   : > { %7438 = vmatmul.mubr.msk.f32.vlgmr.msra.gmra.mrb[64].mxu0 %vm1115_vm3, %v4447_v63  ;;  %v4453_v6 = vmul.f32 %v8583_v37, %v10317_v0  ;;  %v8685_v37 = vld [vmem:[%s8805_s14 + $0x8] sm:$0xff] }
 0x9e0   : > { %7440 = vmatprep.mubr.msk.f32.mxu0 %vm1115_vm3, %v4448_v54  ;;  %7450 = vmatpush3.msra.mxu0 %v8682_v35  ;;  %v10464_v54 = vld [vmem:[%s10988_s6] ss:$0 sm:$0xff] }
 0x9e1   : > { %v5298_v15 = vadd.f32 %v10464_v54, %v10268_v18 }
 0x9e3   : > { %7441 = vmatmul.mubr.msk.f32.gmra.mrb[66].mxu0 %vm1115_vm3, %v4449_v59  ;;  %v8683_v59 = vld [vmem:[%s8805_s14] sm:$0xff] }
 0x9e4   : > { %7443 = vmatprep.mubr.msk.f32.mxu0 %vm1115_vm3, %v4450_v22  ;;  %v10469_v16 = vadd.f32 %v8683_v59, %v5298_v15  ;;  %v5301_v22 = vadd.f32 %v10271_v57, %v10464_v54 }
 0x9e6   : > { %v5332_v18 = vsel %vm467_vm0, %v10469_v16, 0.0 }
 0x9e7   : > { %7444 = vmatmul.mubr.msk.f32.gmra.mrb[68].mxu0 %vm1115_vm3, %v4451_v28  ;;  %v10478_v28 = vadd.f32 %v8684_v30, %v5301_v22 }
 0x9e8   : > { %7446 = vmatprep.mubr.msk.f32.mxu0 %vm1115_vm3, %v4452_v41 }
 0x9eb   : > { %7447 = vmatmul.mubr.msk.f32.gmra.mrb[70].mxu0 %vm1115_vm3, %v4453_v6  ;;  %v8686_v6 = vld [vmem:[%s8805_s14 + $0x10] sm:$0xff] }
 0xa43   : > { %v4918_v48 = vpop.xlane.xlu1 %4917 }
 0xa44   : > { %v4938_v45 = vsub.f32 %v10344_v56, %v4918_v48  ;;  %v4915_v32 = vpop.xlane.xlu0 %4914  ;;  %v5341_v48 = vsel %vm467_vm0, %v10478_v28, 0.0 }
 0xa45   : > { %v4937_v14 = vsub.f32 %v10346_v52, %v4915_v32 }
 0xa46   : > { %v4947_v3 = vmul.f32 1.442695, %v4938_v45 }
 0xa47   : > { %v4945_v47 = vmul.f32 1.442695, %v4937_v14  ;;  %v8687_v14 = vld [vmem:[%s8805_s14 + $0x28] sm:$0xff] }
 0xa48   : > { %8584 = vpow2.f32 %v4947_v3  ;;  %v4921_v31 = vpop.xlane.xlu0 %4920 }
 0xa49   : > { %8586 = vpow2.f32 %v4945_v47  ;;  %v4939_v10 = vsub.f32 %v10357_v49, %v4921_v31  ;;  %v8688_v47 = vld [vmem:[%s8805_s14 + $0x20] sm:$0xff] }
 0xa4b   : > { %v4930_v1 = vpop.xlane.xlu1 %4929  ;;  %v4949_v12 = vmul.f32 1.442695, %v4939_v10  ;;  %v8689_v10 = vld [vmem:[%s8805_s14 + $0x38] sm:$0xff] }
 0xa4c   : > { %v4942_v60 = vsub.f32 %v10362_v38, %v4930_v1  ;;  %v4924_v0 = vpop.xlane.xlu0 %4923 }
 0xa4d   : > { %8588 = vpow2.f32 %v4949_v12  ;;  %v4940_v9 = vsub.f32 %v10355_v21, %v4924_v0  ;;  %v8690_v12 = vld [vmem:[%s8805_s14 + $0x30] sm:$0xff] }
 0xa4e   : > { %v4955_v56 = vmul.f32 1.442695, %v4942_v60 }
 0xa4f   : > { %v4936_v44 = vpop.xlane.xlu1 %4935  ;;  %v4951_v42 = vmul.f32 1.442695, %v4940_v9 }
 0xa50   : > { %v4944_v52 = vsub.f32 %v10372_v46, %v4936_v44  ;;  %v4927_v34 = vpop.xlane.xlu0 %4926 }
 0xa51   : > { %8590 = vpow2.f32 %v4951_v42  ;;  %v4941_v40 = vsub.f32 %v10365_v4, %v4927_v34 }
 0xa52   : > { %v10421_v61 = vpop.eup %8584  ;;  %8592 = vpow2.f32 %v4955_v56  ;;  %v4959_v5 = vmul.f32 1.442695, %v4944_v52 }
 0xa53   : > { %v10423_v49 = vpop.eup %8586  ;;  %v4953_v38 = vmul.f32 1.442695, %v4941_v40  ;;  %v4964_v55 = vsel %vm1115_vm3, %v10421_v61, 0.0  ;;  %v8315_v44 = vpop.permute.xlu1 %8314 }
 0xa54   : > { %v4933_v21 = vpop.xlane.xlu0 %4932  ;;  %v4961_v13 = vsel %vm1115_vm3, %v10423_v49, 0.0  ;;  %4965 = vadd.xlane.f32.xlu1 %v4964_v55  ;;  %v8317_v56 = vunpack.i.h.bf16 %v8315_v44  ;;  %v8316_v42 = vunpack.i.l.bf16 %v8315_v44 }
 0xa55   : > { %8594 = vpow2.f32 %v4953_v38  ;;  %v4943_v46 = vsub.f32 %v10375_v43, %v4933_v21  ;;  %4962 = vadd.xlane.f32.xlu0 %v4961_v13 }
 0xa56   : > { %8596 = vpow2.f32 %v4959_v5  ;;  %v7913_v40 = vpack.c.bf16 %v8317_v56, %v8316_v42 }
 0xa57   : > { %v10430_v4 = vpop.eup %8588  ;;  %v4957_v8 = vmul.f32 1.442695, %v4943_v46 }
 0xa58   : > { %v8310_v7 = vpop.permute.xlu0 %8309  ;;  %v4967_v51 = vsel %vm1115_vm3, %v10430_v4, 0.0 }
 0xa59   : > { %v8312_v26 = vunpack.i.h.bf16 %v8310_v7  ;;  %v8311_v58 = vunpack.i.l.bf16 %v8310_v7  ;;  %4968 = vadd.xlane.f32.xlu0 %v4967_v51  ;;  %8598 = vpow2.f32 %v4957_v8 }
 0xa5b   : > { %v10434_v23 = vpop.eup %8590  ;;  %v10436_v19 = vpack.c.bf16 %v8312_v26, %v8311_v58 }
 0xa5c   : > { %v4970_v43 = vsel %vm1115_vm3, %v10434_v23, 0.0  ;;  %v10440_v25 = vpop.eup %8592 }
 0xa5d   : > { %4971 = vadd.xlane.f32.xlu1 %v4970_v43  ;;  %7910 = vmatprep.subr.bf16.mxu0 %v10436_v19  ;;  %v4976_v27 = vsel %vm1115_vm3, %v10440_v25, 0.0 }
 0xa5f   : > { %v10443_v53 = vpop.eup %8594 }
 0xa60   : > { %v4973_v24 = vsel %vm1115_vm3, %v10443_v53, 0.0  ;;  %v10449_v39 = vpop.eup %8596 }
 0xa61   : > { %4977 = vadd.xlane.f32.xlu1 %v4976_v27  ;;  %4974 = vadd.xlane.f32.xlu0 %v4973_v24  ;;  %v4982_v63 = vsel %vm1115_vm3, %v10449_v39, 0.0 }
 0xa63   : > { %v10453_v35 = vpop.eup %8598 }
 0xa64   : > { %v4979_v11 = vsel %vm1115_vm3, %v10453_v35, 0.0 }
 0xa65   : > { %4983 = vadd.xlane.f32.xlu1 %v4982_v63 }
 0xa69   : > { %4980 = vadd.xlane.f32.xlu1 %v4979_v11 }
 0xa77   : > { %8319 = vrot.lane.b32.xlu0 %v9251_v50, %s8718_s28  ;;  %v5299_v50 = vadd.f32 %v10266_v29, %v10464_v54  ;;  %v5303_v29 = vadd.f32 %v10275_v17, %v10464_v54  ;;  %v5305_v17 = vadd.f32 %v10313_v20, %v10464_v54 }
 0xa79   : > { %v10483_v41 = vadd.f32 %v8685_v37, %v5299_v50  ;;  %v10499_v3 = vadd.f32 %v8687_v14, %v5303_v29  ;;  %v10509_v1 = vadd.f32 %v8689_v10, %v5305_v17  ;;  %v8691_v29 = vld [vmem:[%s10987_s5 + $0x18] sm:$0xff] }
 0xa7a   : > { %8324 = vrot.lane.b32.xlu1 %v9263_v2, %s8718_s28  ;;  %v5300_v2 = vadd.f32 %v10464_v54, %v10273_v36  ;;  %v5302_v36 = vadd.f32 %v10464_v54, %v10277_v33  ;;  %v5304_v33 = vadd.f32 %v10464_v54, %v10315_v62 }
 0xa7b   : > { %v5335_v45 = vsel %vm467_vm0, %v10483_v41, 0.0  ;;  %v5347_v0 = vsel %vm467_vm0, %v10499_v3, 0.0  ;;  %v5353_v20 = vsel %vm467_vm0, %v10509_v1, 0.0 }
 0xa7c   : > { %v10486_v57 = vadd.f32 %v8686_v6, %v5300_v2  ;;  %v10502_v31 = vadd.f32 %v8688_v47, %v5302_v36  ;;  %v10512_v60 = vadd.f32 %v8690_v12, %v5304_v33 }
 0xa7e   : > { %v5338_v32 = vsel %vm467_vm0, %v10486_v57, 0.0  ;;  %v5344_v9 = vsel %vm467_vm0, %v10502_v31, 0.0  ;;  %v5350_v62 = vsel %vm467_vm0, %v10512_v60, 0.0 }
 0xa96   : > { %5333 = vadd.xlane.f32.xlu0 %v5332_v18 }
 0xa9a   : > { %5342 = vadd.xlane.f32.xlu0 %v5341_v48 }
 0xa9e   : > { %5336 = vadd.xlane.f32.xlu1 %v5335_v45  ;;  %5339 = vadd.xlane.f32.xlu0 %v5338_v32 }
 0xaa2   : > { %5348 = vadd.xlane.f32.xlu1 %v5347_v0  ;;  %5345 = vadd.xlane.f32.xlu0 %v5344_v9 }
 0xaa6   : > { %5354 = vadd.xlane.f32.xlu1 %v5353_v20  ;;  %5351 = vadd.xlane.f32.xlu0 %v5350_v62 }
 0xab2   : > { %v7439_v52 = vpop.f32.mrb[64].mxu0 }
 0xab3   : > { %v4568_v34 = vpop.f32.mrb[65].mxu0 }
 0xab4   : > { %7451 = vmatprep.mubr.msk.f32.mxu0 %vm969_vm1, %v4568_v34  ;;  %v8692_v34 = vld [vmem:[%s8805_s14 + $0x48] sm:$0xff] }
 0xab5   : > { %7452 = vmatmul.mubr.msk.f32.vlgmr.msra.gmra.mrb[56].mxu0 %vm969_vm1, %v7439_v52 }
 0xab6   : > { %7912 = vmatpush3.bf16.msra.mxu0 %v10436_v19  ;;  %v7442_v5 = vpop.f32.mrb[66].mxu0 }
 0xab7   : > { %7914 = vmatprep.subr.bf16.mxu0 %v7913_v40  ;;  %v4578_v38 = vpop.f32.mrb[67].mxu0 }
 0xab8   : > { %7454 = vmatprep.mubr.msk.f32.mxu0 %vm969_vm1, %v4578_v38 }
 0xab9   : > { %7455 = vmatmul.mubr.msk.f32.gmra.mrb[58].mxu0 %vm969_vm1, %v7442_v5  ;;  %v8693_v5 = vld [vmem:[%s8805_s14 + $0x40] sm:$0xff] }
 0xaba   : > { %7916 = vmatpush3.bf16.msra.mxu0 %v7913_v40  ;;  %v7445_v55 = vpop.f32.mrb[68].mxu0 }
 0xabb   : > { %v4588_v21 = vpop.f32.mrb[69].mxu0 }
 0xabc   : > { %7457 = vmatprep.mubr.msk.f32.mxu0 %vm969_vm1, %v4588_v21 }
 0xabd   : > { %7458 = vmatmul.mubr.msk.f32.gmra.mrb[60].mxu0 %vm969_vm1, %v7445_v55 }
 0xabe   : > { %v7448_v13 = vpop.f32.mrb[70].mxu0 }
 0xabf   : > { %v4598_v46 = vpop.f32.mrb[71].mxu0 }
 0xac0   : > { %7460 = vmatprep.mubr.msk.f32.mxu0 %vm969_vm1, %v4598_v46 }
 0xac1   : > { %7461 = vmatmul.mubr.msk.f32.gmra.mrb[62].mxu0 %vm969_vm1, %v7448_v13 }
 0xae1   : > { %v4966_v7 = vpop.xlane.xlu1 %4965 }
 0xae2   : > { %v4963_v8 = vpop.xlane.xlu0 %4962 }
 0xae3   : > { %8600 = vrcp.f32 %v4963_v8 }
 0xae4   : > { %8602 = vrcp.f32 %v4966_v7 }
 0xae6   : > { %v4969_v51 = vpop.xlane.xlu0 %4968 }
 0xae7   : > { %8604 = vrcp.f32 %v4969_v51 }
 0xaea   : > { %v4972_v26 = vpop.xlane.xlu1 %4971 }
 0xaeb   : > { %8606 = vrcp.f32 %v4972_v26 }
 0xaed   : > { %v8601_v58 = vpop.eup %8600 }
 0xaee   : > { %v4978_v19 = vpop.xlane.xlu1 %4977  ;;  %v4975_v43 = vpop.xlane.xlu0 %4974  ;;  %v4993_v27 = vmul.f32 %v8601_v58, %v10423_v49  ;;  %v8694_v58 = vld [vmem:[%s8805_s14 + $0x58] sm:$0xff] }
 0xaef   : > { %8608 = vrcp.f32 %v4975_v43  ;;  %v8603_v18 = vpop.eup %8602  ;;  %v8695_v43 = vld [vmem:[%s8805_s14 + $0x50] sm:$0xff] }
 0xaf0   : > { %7507 = vmatprep.mubr.msk.f32.mxu0 %vm1115_vm3, %v4993_v27  ;;  %8610 = vrcp.f32 %v4978_v19  ;;  %v4994_v6 = vmul.f32 %v8603_v18, %v10421_v61 }
 0xaf1   : > { %v8605_v37 = vpop.eup %8604 }
 0xaf2   : > { %v4984_v24 = vpop.xlane.xlu1 %4983  ;;  %v8320_v63 = vpop.permute.xlu0 %8319  ;;  %v4995_v48 = vmul.f32 %v8605_v37, %v10430_v4  ;;  %v8697_v37 = vld [vmem:[%s8805_s14 + $0x60] sm:$0xff] }
 0xaf3   : > { %v8322_v11 = vunpack.i.h.bf16 %v8320_v63  ;;  %v8321_v15 = vunpack.i.l.bf16 %v8320_v63 }
 0xaf5   : > { %v7917_v59 = vpack.c.bf16 %v8322_v11, %v8321_v15  ;;  %v8607_v36 = vpop.eup %8606 }
 0xaf6   : > { %v4981_v22 = vpop.xlane.xlu1 %4980  ;;  %v4996_v32 = vmul.f32 %v8607_v36, %v10434_v23 }
 0xaf7   : > { %7918 = vmatprep.subr.bf16.mxu0 %v7917_v59  ;;  %8612 = vrcp.f32 %v4981_v22 }
 0xaf8   : > { %7920 = vmatpush3.bf16.msra.mxu0 %v7917_v59  ;;  %8614 = vrcp.f32 %v4984_v24 }
 0xaf9   : > { %v8609_v45 = vpop.eup %8608 }
 0xafa   : > { %v8325_v50 = vpop.permute.xlu1 %8324  ;;  %v8611_v14 = vpop.eup %8610  ;;  %v4997_v47 = vmul.f32 %v8609_v45, %v10443_v53 }
 0xafb   : > { %v8327_v2 = vunpack.i.h.bf16 %v8325_v50  ;;  %v8326_v30 = vunpack.i.l.bf16 %v8325_v50  ;;  %v4998_v17 = vmul.f32 %v8611_v14, %v10440_v25 }
 0xafd   : > { %v7921_v49 = vpack.c.bf16 %v8327_v2, %v8326_v30  ;;  %v8696_v30 = vld [vmem:[%s8805_s14 + $0x68] sm:$0xff] }
 0xaff   : > { %7922 = vmatprep.subr.bf16.mxu0 %v7921_v49 }
 0xb00   : > { %7924 = vmatpush3.bf16.msra.mxu0 %v7921_v49 }
 0xb01   : > { %7519 = vmatprep.subr.mxu0 %v8691_v29  ;;  %v8613_v61 = vpop.eup %8612 }
 0xb02   : > { %v8615_v33 = vpop.eup %8614  ;;  %v4999_v4 = vmul.f32 %v8613_v61, %v10453_v35 }
 0xb03   : > { %7508 = vmatmul.mubr.msk.f32.vlgmr.msra.gmra.mrb[72].mxu0 %vm1115_vm3, %v4994_v6  ;;  %v5000_v10 = vmul.f32 %v8615_v33, %v10449_v39 }
 0xb04   : > { %7510 = vmatprep.mubr.msk.f32.mxu0 %vm1115_vm3, %v4995_v48  ;;  %7520 = vmatpush3.msra.mxu0 %v8691_v29 }
 0xb07   : > { %7511 = vmatmul.mubr.msk.f32.gmra.mrb[74].mxu0 %vm1115_vm3, %v4996_v32 }
 0xb08   : > { %7513 = vmatprep.mubr.msk.f32.mxu0 %vm1115_vm3, %v4997_v47 }
 0xb0b   : > { %7514 = vmatmul.mubr.msk.f32.gmra.mrb[76].mxu0 %vm1115_vm3, %v4998_v17 }
 0xb0c   : > { %7516 = vmatprep.mubr.msk.f32.mxu0 %vm1115_vm3, %v4999_v4 }
 0xb0f   : > { %7517 = vmatmul.mubr.msk.f32.gmra.mrb[78].mxu0 %vm1115_vm3, %v5000_v10  ;;  %v8698_v10 = vld [vmem:[%s8805_s14 + $0x78] sm:$0xff] }
 0xb23   : > { %v5334_v20 = vpop.xlane.xlu0 %5333 }
 0xb24   : > { %v5380_v22 = vmul.f32 0.03125, %v5334_v20 }
 0xb26   : > { %v10597_v61 = vsub.f32 %v10469_v16, %v5380_v22 }
 0xb27   : > { %v5343_v44 = vpop.xlane.xlu0 %5342 }
 0xb28   : > { %v5383_v36 = vmul.f32 0.03125, %v5343_v44  ;;  %v5412_v44 = vmul.f32 %v10597_v61, %v10597_v61 }
 0xb2b   : > { %v5337_v8 = vpop.xlane.xlu1 %5336  ;;  %v5340_v26 = vpop.xlane.xlu0 %5339 }
 0xb2c   : > { %v5381_v63 = vmul.f32 0.03125, %v5337_v8  ;;  %v5382_v17 = vmul.f32 0.03125, %v5340_v26 }
 0xb2e   : > { %v10591_v48 = vsub.f32 %v10483_v41, %v5381_v63 }
 0xb2f   : > { %v5349_v18 = vpop.xlane.xlu1 %5348  ;;  %v5346_v45 = vpop.xlane.xlu0 %5345 }
 0xb33   : > { %v5355_v20 = vpop.xlane.xlu1 %5354 }
 0xbd6   : > { %v7509_v23 = vpop.f32.mrb[72].mxu0 }
 0xbd7   : > { %v5115_v53 = vpop.f32.mrb[73].mxu0 }
 0xbd8   : > { %7521 = vmatprep.mubr.msk.f32.mxu0 %vm969_vm1, %v5115_v53  ;;  %v8699_v53 = vld [vmem:[%s8805_s14 + $0x70] sm:$0xff] }
 0xbd9   : > { %7522 = vmatmul.mubr.msk.f32.vlgmr.msra.gmra.mrb[56].mxu0 %vm969_vm1, %v7509_v23 }
 0xbda   : > { %v7512_v12 = vpop.f32.mrb[74].mxu0 }
 0xbdb   : > { %v5125_v0 = vpop.f32.mrb[75].mxu0 }
 0xbdc   : > { %7524 = vmatprep.mubr.msk.f32.mxu0 %vm969_vm1, %v5125_v0  ;;  %v10609_v0 = vsub.f32 %v10478_v28, %v5383_v36 }
 0xbdd   : > { %7525 = vmatmul.mubr.msk.f32.gmra.mrb[58].mxu0 %vm969_vm1, %v7512_v12 }
 0xbde   : > { %v7515_v25 = vpop.f32.mrb[76].mxu0 }
 0xbdf   : > { %v5135_v35 = vpop.f32.mrb[77].mxu0 }
 0xbe0   : > { %7527 = vmatprep.mubr.msk.f32.mxu0 %vm969_vm1, %v5135_v35 }
 0xbe1   : > { %7528 = vmatmul.mubr.msk.f32.gmra.mrb[60].mxu0 %vm969_vm1, %v7515_v25  ;;  %v5385_v25 = vmul.f32 0.03125, %v5349_v18  ;;  %v5586_v18 = vld [vmem:[%s10991_s9 + $0x10] sm:$0xff] }
 0xbe2   : > { %v7518_v39 = vpop.f32.mrb[78].mxu0 }
 0xbe3   : > { %v5145_v9 = vpop.f32.mrb[79].mxu0 }
 0xbe4   : > { %7530 = vmatprep.mubr.msk.f32.mxu0 %vm969_vm1, %v5145_v9  ;;  %v5384_v9 = vmul.f32 0.03125, %v5346_v45 }
 0xbe5   : > { %7531 = vmatmul.mubr.msk.f32.gmra.mrb[62].mxu0 %vm969_vm1, %v7518_v39  ;;  %v10616_v39 = vsub.f32 %v10486_v57, %v5382_v17 }
 0xcac   : > { %v7523_v62 = vpop.f32.mrb[56].mxu0 }
 0xcad   : > { %v5307_v56 = vadd.f32 %v7523_v62, %v10464_v54  ;;  %v5244_v42 = vpop.f32.mrb[57].mxu0 }
 0xcae   : > { %v5306_v52 = vadd.f32 %v10464_v54, %v5244_v42  ;;  %v10623_v42 = vsub.f32 %v10499_v3, %v5385_v25 }
 0xcaf   : > { %v10561_v40 = vadd.f32 %v8692_v34, %v5307_v56  ;;  %v5352_v56 = vpop.xlane.xlu0 %5351 }
 0xcb0   : > { %v10564_v38 = vadd.f32 %v8693_v5, %v5306_v52  ;;  %v7526_v55 = vpop.f32.mrb[58].mxu0  ;;  %v5387_v52 = vmul.f32 0.03125, %v5355_v20  ;;  %v5415_v5 = vmul.f32 %v10609_v0, %v10609_v0 }
 0xcb1   : > { %v5309_v21 = vadd.f32 %v7526_v55, %v10464_v54  ;;  %v5254_v13 = vpop.f32.mrb[59].mxu0  ;;  %v5359_v46 = vsel %vm467_vm0, %v10561_v40, 0.0  ;;  %v10629_v55 = vsub.f32 %v10502_v31, %v5384_v9 }
 0xcb2   : > { %v5308_v7 = vadd.f32 %v10464_v54, %v5254_v13  ;;  %5360 = vadd.xlane.f32.xlu1 %v5359_v46  ;;  %v5356_v51 = vsel %vm467_vm0, %v10564_v38, 0.0  ;;  %v5428_v13 = vsel %vm467_vm0, %v5412_v44, 0.0  ;;  %v5414_v46 = vmul.f32 %v10616_v39, %v10616_v39 }
 0xcb3   : > { %v10573_v19 = vadd.f32 %v8694_v58, %v5309_v21  ;;  %5357 = vadd.xlane.f32.xlu0 %v5356_v51  ;;  %v5386_v21 = vmul.f32 0.03125, %v5352_v56  ;;  %v10635_v8 = vsub.f32 %v10509_v1, %v5387_v52  ;;  %v5417_v51 = vmul.f32 %v10623_v42, %v10623_v42 }
 0xcb4   : > { %v10576_v27 = vadd.f32 %v8695_v43, %v5308_v7  ;;  %v7529_v24 = vpop.f32.mrb[60].mxu0  ;;  %v5437_v7 = vsel %vm467_vm0, %v5415_v5, 0.0  ;;  %v5434_v58 = vsel %vm467_vm0, %v5414_v46, 0.0  ;;  %v5416_v43 = vmul.f32 %v10629_v55, %v10629_v55 }
 0xcb5   : > { %v5311_v11 = vadd.f32 %v7529_v24, %v10464_v54  ;;  %v5264_v15 = vpop.f32.mrb[61].mxu0  ;;  %v5365_v59 = vsel %vm467_vm0, %v10573_v19, 0.0  ;;  %v10641_v26 = vsub.f32 %v10512_v60, %v5386_v21  ;;  %v5443_v24 = vsel %vm467_vm0, %v5417_v51, 0.0 }
 0xcb6   : > { %v5310_v50 = vadd.f32 %v10464_v54, %v5264_v15  ;;  %5366 = vadd.xlane.f32.xlu1 %v5365_v59  ;;  %v5362_v2 = vsel %vm467_vm0, %v10576_v27, 0.0  ;;  %v5419_v63 = vmul.f32 %v10635_v8, %v10635_v8 }
 0xcb7   : > { %v10585_v49 = vadd.f32 %v8696_v30, %v5311_v11  ;;  %5363 = vadd.xlane.f32.xlu0 %v5362_v2  ;;  %v5440_v11 = vsel %vm467_vm0, %v5416_v43, 0.0  ;;  %v5418_v15 = vmul.f32 %v10641_v26, %v10641_v26  ;;  %v5585_v2 = vld [vmem:[%s10991_s9 + $0x8] sm:$0xff] }
 0xcb8   : > { %v10588_v6 = vadd.f32 %v8697_v37, %v5310_v50  ;;  %v7532_v29 = vpop.f32.mrb[62].mxu0  ;;  %v5449_v59 = vsel %vm467_vm0, %v5419_v63, 0.0  ;;  %v5584_v50 = vld [vmem:[%s10991_s9] sm:$0xff]  ;;  %v5587_v37 = vld [vmem:[%s10991_s9 + $0x18] sm:$0xff] }
 0xcb9   : > { %v5313_v32 = vadd.f32 %v7532_v29, %v10464_v54  ;;  %v5274_v14 = vpop.f32.mrb[63].mxu0  ;;  %v5371_v47 = vsel %vm467_vm0, %v10585_v49, 0.0  ;;  %v5446_v22 = vsel %vm467_vm0, %v5418_v15, 0.0  ;;  %v7925_v30 = vpack.c.bf16 %v5585_v2, %v5584_v50 }
 0xcba   : > { %v5312_v33 = vadd.f32 %v10464_v54, %v5274_v14  ;;  %5372 = vadd.xlane.f32.xlu1 %v5371_v47  ;;  %v5368_v4 = vsel %vm467_vm0, %v10588_v6, 0.0  ;;  %v5413_v54 = vmul.f32 %v10591_v48, %v10591_v48  ;;  %v7929_v29 = vpack.c.bf16 %v5587_v37, %v5586_v18 }
 0xcbb   : > { %v10603_v23 = vadd.f32 %v8698_v10, %v5313_v32  ;;  %5369 = vadd.xlane.f32.xlu0 %v5368_v4  ;;  %7926 = vmatprep.subr.bf16.mxu1 %v7925_v30 }
 0xcbc   : > { %v10606_v12 = vadd.f32 %v8699_v53, %v5312_v33  ;;  %v5431_v34 = vsel %vm467_vm0, %v5413_v54, 0.0  ;;  %7928 = vmatpush3.bf16.msra.mxu1 %v7925_v30 }
 0xcbd   : > { %v5377_v35 = vsel %vm467_vm0, %v10603_v23, 0.0  ;;  %7930 = vmatprep.subr.bf16.mxu1 %v7929_v29 }
 0xcbe   : > { %5378 = vadd.xlane.f32.xlu1 %v5377_v35  ;;  %v5374_v62 = vsel %vm467_vm0, %v10606_v12, 0.0 }
 0xcbf   : > { %5375 = vadd.xlane.f32.xlu0 %v5374_v62 }
 0xcc0   : > { %7932 = vmatpush3.bf16.msra.mxu1 %v7929_v29 }
 0xcc2   : > { %5432 = vadd.xlane.f32.xlu1 %v5431_v34 }
 0xcc3   : > { %5429 = vadd.xlane.f32.xlu0 %v5428_v13 }
 0xcc6   : > { %5438 = vadd.xlane.f32.xlu1 %v5437_v7 }
 0xcc7   : > { %5435 = vadd.xlane.f32.xlu0 %v5434_v58 }
 0xcca   : > { %5444 = vadd.xlane.f32.xlu1 %v5443_v24 }
 0xccb   : > { %5441 = vadd.xlane.f32.xlu0 %v5440_v11 }
 0xcce   : > { %5450 = vadd.xlane.f32.xlu1 %v5449_v59 }
 0xccf   : > { %5447 = vadd.xlane.f32.xlu0 %v5446_v22 }
 0xd3f   : > { %v5361_v36 = vpop.xlane.xlu1 %5360 }
 0xd40   : > { %v5389_v45 = vmul.f32 0.03125, %v5361_v36  ;;  %v5358_v32 = vpop.xlane.xlu0 %5357 }
 0xd41   : > { %v5388_v14 = vmul.f32 0.03125, %v5358_v32 }
 0xd42   : > { %v10667_v47 = vsub.f32 %v10561_v40, %v5389_v45 }
 0xd43   : > { %v10670_v17 = vsub.f32 %v10564_v38, %v5388_v14  ;;  %v5367_v33 = vpop.xlane.xlu1 %5366 }
 0xd44   : > { %v5391_v4 = vmul.f32 0.03125, %v5367_v33  ;;  %v5364_v10 = vpop.xlane.xlu0 %5363  ;;  %v5421_v53 = vmul.f32 %v10667_v47, %v10667_v47 }
 0xd45   : > { %v5390_v25 = vmul.f32 0.03125, %v5364_v10  ;;  %v5420_v35 = vmul.f32 %v10670_v17, %v10670_v17 }
 0xd46   : > { %v10677_v54 = vsub.f32 %v10573_v19, %v5391_v4  ;;  %v5455_v9 = vsel %vm467_vm0, %v5421_v53, 0.0 }
 0xd47   : > { %v10681_v20 = vsub.f32 %v10576_v27, %v5390_v25  ;;  %v5373_v62 = vpop.xlane.xlu1 %5372  ;;  %5456 = vadd.xlane.f32.xlu1 %v5455_v9  ;;  %v5452_v44 = vsel %vm467_vm0, %v5420_v35, 0.0 }
 0xd48   : > { %v5393_v56 = vmul.f32 0.03125, %v5373_v62  ;;  %v5370_v52 = vpop.xlane.xlu0 %5369  ;;  %5453 = vadd.xlane.f32.xlu0 %v5452_v44  ;;  %v5423_v34 = vmul.f32 %v10677_v54, %v10677_v54 }
 0xd49   : > { %v5392_v5 = vmul.f32 0.03125, %v5370_v52  ;;  %v5422_v21 = vmul.f32 %v10681_v20, %v10681_v20 }
 0xd4a   : > { %v10689_v13 = vsub.f32 %v10585_v49, %v5393_v56  ;;  %v5461_v46 = vsel %vm467_vm0, %v5423_v34, 0.0 }
 0xd4b   : > { %v10693_v7 = vsub.f32 %v10588_v6, %v5392_v5  ;;  %5462 = vadd.xlane.f32.xlu1 %v5461_v46  ;;  %v5379_v51 = vpop.xlane.xlu1 %5378  ;;  %v5458_v58 = vsel %vm467_vm0, %v5422_v21, 0.0 }
 0xd4c   : > { %v5395_v43 = vmul.f32 0.03125, %v5379_v51  ;;  %5459 = vadd.xlane.f32.xlu0 %v5458_v58  ;;  %v5376_v24 = vpop.xlane.xlu0 %5375  ;;  %v5425_v63 = vmul.f32 %v10689_v13, %v10689_v13 }
 0xd4d   : > { %v5394_v11 = vmul.f32 0.03125, %v5376_v24  ;;  %v5424_v15 = vmul.f32 %v10693_v7, %v10693_v7 }
 0xd4e   : > { %v10701_v59 = vsub.f32 %v10603_v23, %v5395_v43  ;;  %v5467_v22 = vsel %vm467_vm0, %v5425_v63, 0.0  ;;  %v10717_v63 = vld [vmem:[%s10989_s7] ss:$0 sm:$0xff] }
 0xd4f   : > { %v10705_v50 = vsub.f32 %v10606_v12, %v5394_v11  ;;  %5468 = vadd.xlane.f32.xlu1 %v5467_v22  ;;  %v5433_v2 = vpop.xlane.xlu1 %5432  ;;  %v5464_v30 = vsel %vm467_vm0, %v5424_v15, 0.0 }
 0xd50   : > { %v5477_v18 = vmul.f32 0.03125, %v5433_v2  ;;  %5465 = vadd.xlane.f32.xlu0 %v5464_v30  ;;  %v5430_v37 = vpop.xlane.xlu0 %5429  ;;  %v5427_v29 = vmul.f32 %v10701_v59, %v10701_v59 }
 0xd51   : > { %v5476_v36 = vmul.f32 0.03125, %v5430_v37  ;;  %v5426_v45 = vmul.f32 %v10705_v50, %v10705_v50 }
 0xd52   : > { %v5493_v32 = vadd.f32 1e-05, %v5477_v18  ;;  %v5473_v14 = vsel %vm467_vm0, %v5427_v29, 0.0  ;;  %v10724_v18 = vld [vmem:[%s10990_s8] ss:$0 sm:$0xff] }
 0xd53   : > { %v5492_v33 = vadd.f32 1e-05, %v5476_v36  ;;  %5474 = vadd.xlane.f32.xlu1 %v5473_v14  ;;  %v5439_v4 = vpop.xlane.xlu1 %5438  ;;  %v5470_v10 = vsel %vm467_vm0, %v5426_v45, 0.0 }
 0xd54   : > { %8616 = vrsqrt.f32 %v5493_v32  ;;  %v5479_v53 = vmul.f32 0.03125, %v5439_v4  ;;  %5471 = vadd.xlane.f32.xlu0 %v5470_v10  ;;  %v5436_v25 = vpop.xlane.xlu0 %5435 }
 0xd55   : > { %8618 = vrsqrt.f32 %v5492_v33  ;;  %v5478_v35 = vmul.f32 0.03125, %v5436_v25 }
 0xd56   : > { %v5495_v9 = vadd.f32 1e-05, %v5479_v53 }
 0xd57   : > { %v5494_v62 = vadd.f32 1e-05, %v5478_v35  ;;  %v5445_v44 = vpop.xlane.xlu1 %5444 }
 0xd58   : > { %8620 = vrsqrt.f32 %v5495_v9  ;;  %v5481_v56 = vmul.f32 0.03125, %v5445_v44  ;;  %v5442_v52 = vpop.xlane.xlu0 %5441 }
 0xd59   : > { %8622 = vrsqrt.f32 %v5494_v62  ;;  %v5480_v34 = vmul.f32 0.03125, %v5442_v52 }
 0xd5a   : > { %v5497_v5 = vadd.f32 1e-05, %v5481_v56 }
 0xd5b   : > { %v5496_v21 = vadd.f32 1e-05, %v5480_v34  ;;  %v5451_v46 = vpop.xlane.xlu1 %5450 }
 0xd5c   : > { %8624 = vrsqrt.f32 %v5497_v5  ;;  %v5483_v51 = vmul.f32 0.03125, %v5451_v46  ;;  %v5448_v58 = vpop.xlane.xlu0 %5447 }
 0xd5d   : > { %8626 = vrsqrt.f32 %v5496_v21  ;;  %v5482_v43 = vmul.f32 0.03125, %v5448_v58 }
 0xd5e   : > { %v8617_v24 = vpop.eup %8616  ;;  %v5499_v11 = vadd.f32 1e-05, %v5483_v51 }
 0xd5f   : > { %v8619_v15 = vpop.eup %8618  ;;  %v5525_v22 = vmul.f32 %v8617_v24, %v10591_v48  ;;  %v5498_v2 = vadd.f32 1e-05, %v5482_v43  ;;  %v5934_v43 = vld [vmem:[%s10993_s11 + $0x10] sm:$0xff]  ;;  %v5935_v24 = vld [vmem:[%s10993_s11 + $0x18] sm:$0xff] }
 0xd60   : > { %8628 = vrsqrt.f32 %v5499_v11  ;;  %v5524_v30 = vmul.f32 %v8619_v15, %v10597_v61  ;;  %v7937_v11 = vpack.c.bf16 %v5935_v24, %v5934_v43 }
 0xd61   : > { %v5547_v37 = vmul.f32 %v10717_v63, %v5525_v22  ;;  %8630 = vrsqrt.f32 %v5498_v2 }
 0xd62   : > { %v8621_v29 = vpop.eup %8620  ;;  %v5546_v36 = vmul.f32 %v10717_v63, %v5524_v30 }
 0xd63   : > { %v8623_v45 = vpop.eup %8622  ;;  %v5527_v32 = vmul.f32 %v8621_v29, %v10609_v0  ;;  %v5569_v61 = vadd.f32 %v10724_v18, %v5547_v37 }
 0xd64   : > { %v5568_v48 = vadd.f32 %v10724_v18, %v5546_v36  ;;  %v5526_v14 = vmul.f32 %v8623_v45, %v10616_v39 }
 0xd65   : > { %v5549_v33 = vmul.f32 %v10717_v63, %v5527_v32 }
 0xd66   : > { %v8625_v4 = vpop.eup %8624  ;;  %7541 = vmatprep.mubr.msk.f32.mxu1 %vm467_vm0, %v5568_v48  ;;  %v5548_v10 = vmul.f32 %v10717_v63, %v5526_v14 }
 0xd67   : > { %v8627_v53 = vpop.eup %8626  ;;  %7542 = vmatmul.mubr.msk.f32.vlgmr.msra.gmra.mrb[80].mxu1 %vm467_vm0, %v5569_v61  ;;  %v5529_v25 = vmul.f32 %v8625_v4, %v10623_v42  ;;  %v5571_v39 = vadd.f32 %v10724_v18, %v5549_v33 }
 0xd68   : > { %v5570_v0 = vadd.f32 %v10724_v18, %v5548_v10  ;;  %v5528_v35 = vmul.f32 %v8627_v53, %v10629_v55 }
 0xd69   : > { %v5551_v9 = vmul.f32 %v10717_v63, %v5529_v25 }
 0xd6a   : > { %v8629_v62 = vpop.eup %8628  ;;  %7544 = vmatprep.mubr.msk.f32.mxu1 %vm467_vm0, %v5570_v0  ;;  %v5550_v44 = vmul.f32 %v10717_v63, %v5528_v35 }
 0xd6b   : > { %v8631_v56 = vpop.eup %8630  ;;  %7545 = vmatmul.mubr.msk.f32.gmra.mrb[82].mxu1 %vm467_vm0, %v5571_v39  ;;  %v5531_v52 = vmul.f32 %v8629_v62, %v10635_v8  ;;  %v5573_v55 = vadd.f32 %v10724_v18, %v5551_v9  ;;  %v5932_v8 = vld [vmem:[%s10993_s11] sm:$0xff] }
 0xd6c   : > { %v5572_v42 = vadd.f32 %v10724_v18, %v5550_v44  ;;  %v5530_v34 = vmul.f32 %v8631_v56, %v10641_v26  ;;  %v5933_v26 = vld [vmem:[%s10993_s11 + $0x8] sm:$0xff] }
 0xd6d   : > { %v5553_v5 = vmul.f32 %v10717_v63, %v5531_v52  ;;  %v7933_v58 = vpack.c.bf16 %v5933_v26, %v5932_v8 }
 0xd6e   : > { %7547 = vmatprep.mubr.msk.f32.mxu1 %vm467_vm0, %v5572_v42  ;;  %v5552_v21 = vmul.f32 %v10717_v63, %v5530_v34 }
 0xd6f   : > { %7548 = vmatmul.mubr.msk.f32.gmra.mrb[84].mxu1 %vm467_vm0, %v5573_v55  ;;  %v5575_v51 = vadd.f32 %v10724_v18, %v5553_v5  ;;  %7934 = vmatprep.subr.bf16.mxu0 %v7933_v58 }
 0xd70   : > { %v5574_v46 = vadd.f32 %v10724_v18, %v5552_v21  ;;  %7936 = vmatpush3.bf16.msra.mxu0 %v7933_v58 }
 0xd71   : > { %7938 = vmatprep.subr.bf16.mxu0 %v7937_v11 }
 0xd72   : > { %7550 = vmatprep.mubr.msk.f32.mxu1 %vm467_vm0, %v5574_v46 }
 0xd73   : > { %7551 = vmatmul.mubr.msk.f32.gmra.mrb[86].mxu1 %vm467_vm0, %v5575_v51 }
 0xd74   : > { %7940 = vmatpush3.bf16.msra.mxu0 %v7937_v11 }
 0xdd4   : > { %v5457_v15 = vpop.xlane.xlu1 %5456 }
 0xdd5   : > { %v5485_v22 = vmul.f32 0.03125, %v5457_v15  ;;  %v5454_v2 = vpop.xlane.xlu0 %5453 }
 0xdd6   : > { %v5484_v30 = vmul.f32 0.03125, %v5454_v2 }
 0xdd7   : > { %v5501_v37 = vadd.f32 1e-05, %v5485_v22 }
 0xdd8   : > { %v5500_v29 = vadd.f32 1e-05, %v5484_v30  ;;  %v5463_v36 = vpop.xlane.xlu1 %5462 }
 0xdd9   : > { %8632 = vrsqrt.f32 %v5501_v37  ;;  %v5487_v45 = vmul.f32 0.03125, %v5463_v36  ;;  %v5460_v32 = vpop.xlane.xlu0 %5459 }
 0xdda   : > { %8634 = vrsqrt.f32 %v5500_v29  ;;  %v5486_v48 = vmul.f32 0.03125, %v5460_v32 }
 0xddb   : > { %v5503_v14 = vadd.f32 1e-05, %v5487_v45 }
 0xddc   : > { %v5502_v61 = vadd.f32 1e-05, %v5486_v48  ;;  %v5469_v33 = vpop.xlane.xlu1 %5468 }
 0xddd   : > { %8636 = vrsqrt.f32 %v5503_v14  ;;  %v5489_v4 = vmul.f32 0.03125, %v5469_v33  ;;  %v5466_v10 = vpop.xlane.xlu0 %5465 }
 0xdde   : > { %8638 = vrsqrt.f32 %v5502_v61  ;;  %v5488_v53 = vmul.f32 0.03125, %v5466_v10 }
 0xddf   : > { %v5505_v25 = vadd.f32 1e-05, %v5489_v4 }
 0xde0   : > { %v5504_v0 = vadd.f32 1e-05, %v5488_v53  ;;  %v5475_v35 = vpop.xlane.xlu1 %5474 }
 0xde1   : > { %8640 = vrsqrt.f32 %v5505_v25  ;;  %v5491_v39 = vmul.f32 0.03125, %v5475_v35  ;;  %v5472_v9 = vpop.xlane.xlu0 %5471 }
 0xde2   : > { %8642 = vrsqrt.f32 %v5504_v0  ;;  %v5490_v62 = vmul.f32 0.03125, %v5472_v9 }
 0xde3   : > { %v8633_v44 = vpop.eup %8632  ;;  %v5507_v56 = vadd.f32 1e-05, %v5491_v39 }
 0xde4   : > { %v8635_v52 = vpop.eup %8634  ;;  %v5506_v42 = vadd.f32 1e-05, %v5490_v62  ;;  %v5533_v34 = vmul.f32 %v8633_v44, %v10667_v47 }
 0xde5   : > { %8644 = vrsqrt.f32 %v5507_v56  ;;  %v5532_v55 = vmul.f32 %v8635_v52, %v10670_v17 }
 0xde6   : > { %8646 = vrsqrt.f32 %v5506_v42  ;;  %v5555_v5 = vmul.f32 %v10717_v63, %v5533_v34 }
 0xde7   : > { %v8637_v21 = vpop.eup %8636  ;;  %v5554_v46 = vmul.f32 %v10717_v63, %v5532_v55 }
 0xde8   : > { %v8639_v51 = vpop.eup %8638  ;;  %v5535_v8 = vmul.f32 %v8637_v21, %v10677_v54  ;;  %v5577_v43 = vadd.f32 %v10724_v18, %v5555_v5 }
 0xde9   : > { %v5576_v26 = vadd.f32 %v10724_v18, %v5554_v46  ;;  %v5534_v58 = vmul.f32 %v8639_v51, %v10681_v20 }
 0xdea   : > { %v5557_v47 = vmul.f32 %v10717_v63, %v5535_v8 }
 0xdeb   : > { %v8641_v24 = vpop.eup %8640  ;;  %7553 = vmatprep.mubr.msk.f32.mxu1 %vm467_vm0, %v5576_v26  ;;  %v5556_v17 = vmul.f32 %v10717_v63, %v5534_v58 }
 0xdec   : > { %v8643_v11 = vpop.eup %8642  ;;  %7554 = vmatmul.mubr.msk.f32.gmra.mrb[88].mxu1 %vm467_vm0, %v5577_v43  ;;  %v5537_v15 = vmul.f32 %v8641_v24, %v10689_v13  ;;  %v5579_v20 = vadd.f32 %v10724_v18, %v5557_v47 }
 0xded   : > { %v5578_v54 = vadd.f32 %v10724_v18, %v5556_v17  ;;  %v5536_v22 = vmul.f32 %v8643_v11, %v10693_v7 }
 0xdee   : > { %v5559_v2 = vmul.f32 %v10717_v63, %v5537_v15 }
 0xdef   : > { %v8645_v30 = vpop.eup %8644  ;;  %7556 = vmatprep.mubr.msk.f32.mxu1 %vm467_vm0, %v5578_v54  ;;  %v5558_v37 = vmul.f32 %v10717_v63, %v5536_v22 }
 0xdf0   : > { %v8647_v29 = vpop.eup %8646  ;;  %7557 = vmatmul.mubr.msk.f32.gmra.mrb[90].mxu1 %vm467_vm0, %v5579_v20  ;;  %v5539_v36 = vmul.f32 %v8645_v30, %v10701_v59  ;;  %v5581_v7 = vadd.f32 %v10724_v18, %v5559_v2  ;;  %v10803_v59 = vld [vmem:[%s10992_s10] ss:$0 sm:$0xff] }
 0xdf1   : > { %v5580_v13 = vadd.f32 %v10724_v18, %v5558_v37  ;;  %v5538_v45 = vmul.f32 %v8647_v29, %v10705_v50 }
 0xdf2   : > { %v5561_v32 = vmul.f32 %v10717_v63, %v5539_v36 }
 0xdf3   : > { %7559 = vmatprep.mubr.msk.f32.mxu1 %vm467_vm0, %v5580_v13  ;;  %v5560_v48 = vmul.f32 %v10717_v63, %v5538_v45 }
 0xdf4   : > { %7560 = vmatmul.mubr.msk.f32.gmra.mrb[92].mxu1 %vm467_vm0, %v5581_v7  ;;  %v5583_v61 = vadd.f32 %v10724_v18, %v5561_v32 }
 0xdf5   : > { %v5582_v14 = vadd.f32 %v10724_v18, %v5560_v48 }
 0xdf7   : > { %7562 = vmatprep.mubr.msk.f32.mxu1 %vm467_vm0, %v5582_v14 }
 0xdf8   : > { %7563 = vmatmul.mubr.msk.f32.gmra.mrb[94].mxu1 %vm467_vm0, %v5583_v61 }
 0xe3a   : > { %v7543_v50 = vpop.f32.mrb[80].mxu1 }
 0xe3b   : > { %v10806_v33 = vadd.f32 %v7543_v50, %v10803_v59  ;;  %v5709_v63 = vpop.f32.mrb[81].mxu1 }
 0xe3c   : > { %v5710_v4 = vadd.f32 %v10803_v59, %v5709_v63 }
 0xe3d   : > { %v5805_v10 = vmul.f32 0.044715, %v10806_v33 }
 0xe3e   : > { %v5804_v53 = vmul.f32 0.044715, %v5710_v4  ;;  %v7546_v18 = vpop.f32.mrb[82].mxu1 }
 0xe3f   : > { %v5821_v25 = vmul.f32 %v5805_v10, %v10806_v33  ;;  %v10812_v0 = vadd.f32 %v7546_v18, %v10803_v59  ;;  %v5719_v35 = vpop.f32.mrb[83].mxu1 }
 0xe40   : > { %v5820_v39 = vmul.f32 %v5804_v53, %v5710_v4  ;;  %v10815_v9 = vadd.f32 %v10803_v59, %v5719_v35 }
 0xe41   : > { %v5837_v62 = vmul.f32 %v5821_v25, %v10806_v33  ;;  %v5807_v44 = vmul.f32 0.044715, %v10812_v0 }
 0xe42   : > { %v5836_v56 = vmul.f32 %v5820_v39, %v5710_v4  ;;  %v5806_v52 = vmul.f32 0.044715, %v10815_v9  ;;  %v7549_v42 = vpop.f32.mrb[84].mxu1 }
 0xe43   : > { %v5853_v34 = vadd.f32 %v5837_v62, %v10806_v33  ;;  %v5823_v55 = vmul.f32 %v5807_v44, %v10812_v0  ;;  %v10823_v5 = vadd.f32 %v7549_v42, %v10803_v59  ;;  %v5729_v21 = vpop.f32.mrb[85].mxu1  ;;  %v5788_v42 = vmul.f32 0.5, %v5710_v4 }
 0xe44   : > { %v5852_v46 = vadd.f32 %v5836_v56, %v5710_v4  ;;  %v5822_v51 = vmul.f32 %v5806_v52, %v10815_v9  ;;  %v10827_v8 = vadd.f32 %v10803_v59, %v5729_v21 }
 0xe45   : > { %v5869_v26 = vmul.f32 0.7978846, %v5853_v34  ;;  %v5839_v58 = vmul.f32 %v5823_v55, %v10812_v0  ;;  %v5809_v43 = vmul.f32 0.044715, %v10823_v5  ;;  %v5789_v55 = vmul.f32 0.5, %v10806_v33 }
 0xe46   : > { %v5838_v47 = vmul.f32 %v5822_v51, %v10815_v9  ;;  %v5808_v24 = vmul.f32 0.044715, %v10827_v8  ;;  %v7552_v17 = vpop.f32.mrb[86].mxu1  ;;  %v5868_v11 = vmul.f32 0.7978846, %v5852_v46 }
 0xe47   : > { %8648 = vtanh.f32 %v5869_v26  ;;  %v5855_v15 = vadd.f32 %v5839_v58, %v10812_v0  ;;  %v5825_v54 = vmul.f32 %v5809_v43, %v10823_v5  ;;  %v10836_v22 = vadd.f32 %v7552_v17, %v10803_v59  ;;  %v5739_v20 = vpop.f32.mrb[87].mxu1 }
 0xe48   : > { %v5854_v2 = vadd.f32 %v5838_v47, %v10815_v9  ;;  %v5824_v30 = vmul.f32 %v5808_v24, %v10827_v8  ;;  %v5740_v37 = vadd.f32 %v10803_v59, %v5739_v20  ;;  %8650 = vtanh.f32 %v5868_v11 }
 0xe49   : > { %v5841_v29 = vmul.f32 %v5825_v54, %v10823_v5  ;;  %v5811_v36 = vmul.f32 0.044715, %v10836_v22  ;;  %v5871_v13 = vmul.f32 0.7978846, %v5855_v15  ;;  %v5790_v43 = vmul.f32 0.5, %v10815_v9 }
 0xe4a   : > { %v5840_v45 = vmul.f32 %v5824_v30, %v10827_v8  ;;  %v5810_v7 = vmul.f32 0.044715, %v5740_v37  ;;  %v5870_v32 = vmul.f32 0.7978846, %v5854_v2  ;;  %v5791_v24 = vmul.f32 0.5, %v10812_v0 }
 0xe4b   : > { %v5857_v48 = vadd.f32 %v5841_v29, %v10823_v5  ;;  %v5827_v14 = vmul.f32 %v5811_v36, %v10836_v22  ;;  %8652 = vtanh.f32 %v5871_v13  ;;  %v5792_v54 = vmul.f32 0.5, %v10827_v8 }
 0xe4c   : > { %v5856_v61 = vadd.f32 %v5840_v45, %v10827_v8  ;;  %v5826_v50 = vmul.f32 %v5810_v7, %v5740_v37  ;;  %8654 = vtanh.f32 %v5870_v32  ;;  %v5793_v2 = vmul.f32 0.5, %v10823_v5 }
 0xe4d   : > { %v5843_v63 = vmul.f32 %v5827_v14, %v10836_v22  ;;  %v5873_v10 = vmul.f32 0.7978846, %v5857_v48  ;;  %v5794_v0 = vmul.f32 0.5, %v5740_v37  ;;  %v5795_v7 = vmul.f32 0.5, %v10836_v22 }
 0xe4e   : > { %v5842_v53 = vmul.f32 %v5826_v50, %v5740_v37  ;;  %v5872_v18 = vmul.f32 0.7978846, %v5856_v61 }
 0xe4f   : > { %v5859_v25 = vadd.f32 %v5843_v63, %v10836_v22  ;;  %8656 = vtanh.f32 %v5873_v10 }
 0xe50   : > { %v5858_v35 = vadd.f32 %v5842_v53, %v5740_v37  ;;  %8658 = vtanh.f32 %v5872_v18 }
 0xe51   : > { %v8649_v39 = vpop.eup %8648  ;;  %v5875_v62 = vmul.f32 0.7978846, %v5859_v25 }
 0xe52   : > { %v8651_v44 = vpop.eup %8650  ;;  %v5901_v56 = vadd.f32 1.0, %v8649_v39  ;;  %v5874_v52 = vmul.f32 0.7978846, %v5858_v35 }
 0xe53   : > { %v5900_v34 = vadd.f32 1.0, %v8651_v44  ;;  %8660 = vtanh.f32 %v5875_v62 }
 0xe54   : > { %8662 = vtanh.f32 %v5874_v52  ;;  %v5917_v26 = vmul.f32 %v5901_v56, %v5789_v55 }
 0xe55   : > { %v8653_v21 = vpop.eup %8652  ;;  %v5916_v46 = vmul.f32 %v5900_v34, %v5788_v42 }
 0xe56   : > { %v8655_v51 = vpop.eup %8654  ;;  %v5903_v58 = vadd.f32 1.0, %v8653_v21 }
 0xe57   : > { %7573 = vmatprep.mubr.msk.f32.mxu0 %vm467_vm0, %v5916_v46  ;;  %v5902_v47 = vadd.f32 1.0, %v8655_v51 }
 0xe58   : > { %7574 = vmatmul.mubr.msk.f32.vlgmr.msra.gmra.mrb[80].mxu0 %vm467_vm0, %v5917_v26  ;;  %v5919_v15 = vmul.f32 %v5903_v58, %v5791_v24 }
 0xe59   : > { %v8657_v4 = vpop.eup %8656  ;;  %v5918_v17 = vmul.f32 %v5902_v47, %v5790_v43 }
 0xe5a   : > { %v8659_v11 = vpop.eup %8658  ;;  %v5905_v33 = vadd.f32 1.0, %v8657_v4 }
 0xe5b   : > { %7576 = vmatprep.mubr.msk.f32.mxu0 %vm467_vm0, %v5918_v17  ;;  %v5904_v20 = vadd.f32 1.0, %v8659_v11 }
 0xe5c   : > { %7577 = vmatmul.mubr.msk.f32.gmra.mrb[82].mxu0 %vm467_vm0, %v5919_v15  ;;  %v5921_v36 = vmul.f32 %v5905_v33, %v5793_v2 }
 0xe5d   : > { %v8661_v9 = vpop.eup %8660  ;;  %v5920_v30 = vmul.f32 %v5904_v20, %v5792_v54 }
 0xe5e   : > { %v8663_v29 = vpop.eup %8662  ;;  %v5907_v13 = vadd.f32 1.0, %v8661_v9 }
 0xe5f   : > { %7579 = vmatprep.mubr.msk.f32.mxu0 %vm467_vm0, %v5920_v30  ;;  %v5906_v45 = vadd.f32 1.0, %v8663_v29 }
 0xe60   : > { %7580 = vmatmul.mubr.msk.f32.gmra.mrb[84].mxu0 %vm467_vm0, %v5921_v36  ;;  %v5923_v8 = vmul.f32 %v5907_v13, %v5795_v7 }
 0xe61   : > { %v5922_v32 = vmul.f32 %v5906_v45, %v5794_v0 }
 0xe63   : > { %7582 = vmatprep.mubr.msk.f32.mxu0 %vm467_vm0, %v5922_v32 }
 0xe64   : > { %7583 = vmatmul.mubr.msk.f32.gmra.mrb[86].mxu0 %vm467_vm0, %v5923_v8 }
 0xebf   : > { %v7555_v5 = vpop.f32.mrb[88].mxu1 }
 0xec0   : > { %v10864_v48 = vadd.f32 %v7555_v5, %v10803_v59  ;;  %v5749_v14 = vpop.f32.mrb[89].mxu1 }
 0xec1   : > { %v5750_v61 = vadd.f32 %v10803_v59, %v5749_v14 }
 0xec2   : > { %v5813_v37 = vmul.f32 0.044715, %v10864_v48 }
 0xec3   : > { %v5812_v50 = vmul.f32 0.044715, %v5750_v61  ;;  %v7558_v63 = vpop.f32.mrb[90].mxu1 }
 0xec4   : > { %v5829_v10 = vmul.f32 %v5813_v37, %v10864_v48  ;;  %v10870_v22 = vadd.f32 %v7558_v63, %v10803_v59  ;;  %v5759_v53 = vpop.f32.mrb[91].mxu1 }
 0xec5   : > { %v5828_v18 = vmul.f32 %v5812_v50, %v5750_v61  ;;  %v10873_v25 = vadd.f32 %v10803_v59, %v5759_v53 }
 0xec6   : > { %v5845_v35 = vmul.f32 %v5829_v10, %v10864_v48  ;;  %v5815_v39 = vmul.f32 0.044715, %v10870_v22 }
 0xec7   : > { %v5844_v62 = vmul.f32 %v5828_v18, %v5750_v61  ;;  %v5814_v44 = vmul.f32 0.044715, %v10873_v25  ;;  %v7561_v56 = vpop.f32.mrb[92].mxu1 }
 0xec8   : > { %v5861_v52 = vadd.f32 %v5845_v35, %v10864_v48  ;;  %v5831_v42 = vmul.f32 %v5815_v39, %v10870_v22  ;;  %v10881_v34 = vadd.f32 %v7561_v56, %v10803_v59  ;;  %v5769_v55 = vpop.f32.mrb[93].mxu1 }
 0xec9   : > { %v5860_v21 = vadd.f32 %v5844_v62, %v5750_v61  ;;  %v5830_v46 = vmul.f32 %v5814_v44, %v10873_v25  ;;  %v10885_v51 = vadd.f32 %v10803_v59, %v5769_v55  ;;  %v5796_v44 = vmul.f32 0.5, %v5750_v61 }
 0xeca   : > { %v5847_v26 = vmul.f32 %v5831_v42, %v10870_v22  ;;  %v5817_v58 = vmul.f32 0.044715, %v10881_v34  ;;  %v5877_v43 = vmul.f32 0.7978846, %v5861_v52  ;;  %v5797_v52 = vmul.f32 0.5, %v10864_v48 }
 0xecb   : > { %v5846_v47 = vmul.f32 %v5830_v46, %v10873_v25  ;;  %v5816_v24 = vmul.f32 0.044715, %v10885_v51  ;;  %v7564_v4 = vpop.f32.mrb[94].mxu1  ;;  %v5876_v17 = vmul.f32 0.7978846, %v5860_v21 }
 0xecc   : > { %v5863_v11 = vadd.f32 %v5847_v26, %v10870_v22  ;;  %v5833_v15 = vmul.f32 %v5817_v58, %v10881_v34  ;;  %v10894_v33 = vadd.f32 %v7564_v4, %v10803_v59  ;;  %v5779_v54 = vpop.f32.mrb[95].mxu1  ;;  %8664 = vtanh.f32 %v5877_v43 }
 0xecd   : > { %v5862_v20 = vadd.f32 %v5846_v47, %v10873_v25  ;;  %v5832_v2 = vmul.f32 %v5816_v24, %v10885_v51  ;;  %v5780_v9 = vadd.f32 %v10803_v59, %v5779_v54  ;;  %8666 = vtanh.f32 %v5876_v17 }
 0xece   : > { %v5849_v30 = vmul.f32 %v5833_v15, %v10881_v34  ;;  %v5819_v29 = vmul.f32 0.044715, %v10894_v33  ;;  %v5879_v36 = vmul.f32 0.7978846, %v5863_v11  ;;  %v5798_v58 = vmul.f32 0.5, %v10873_v25 }
 0xecf   : > { %v5848_v13 = vmul.f32 %v5832_v2, %v10885_v51  ;;  %v5818_v0 = vmul.f32 0.044715, %v5780_v9  ;;  %v5878_v45 = vmul.f32 0.7978846, %v5862_v20  ;;  %v5799_v47 = vmul.f32 0.5, %v10870_v22 }
 0xed0   : > { %v5865_v7 = vadd.f32 %v5849_v30, %v10881_v34  ;;  %v5835_v32 = vmul.f32 %v5819_v29, %v10894_v33  ;;  %8668 = vtanh.f32 %v5879_v36  ;;  %v5800_v11 = vmul.f32 0.5, %v10885_v51 }
 0xed1   : > { %v5864_v8 = vadd.f32 %v5848_v13, %v10885_v51  ;;  %v5834_v5 = vmul.f32 %v5818_v0, %v5780_v9  ;;  %8670 = vtanh.f32 %v5878_v45  ;;  %v5801_v54 = vmul.f32 0.5, %v10881_v34  ;;  %v6532_v34 = vld [vmem:[%s10994_s12] ss:$0 sm:$0xff] }
 0xed2   : > { %v5851_v59 = vmul.f32 %v5835_v32, %v10894_v33  ;;  %v5881_v14 = vmul.f32 0.7978846, %v5865_v7  ;;  %v5802_v29 = vmul.f32 0.5, %v5780_v9  ;;  %v5803_v13 = vmul.f32 0.5, %v10894_v33 }
 0xed3   : > { %v5850_v37 = vmul.f32 %v5834_v5, %v5780_v9  ;;  %v5880_v50 = vmul.f32 0.7978846, %v5864_v8 }
 0xed4   : > { %v5867_v63 = vadd.f32 %v5851_v59, %v10894_v33  ;;  %8672 = vtanh.f32 %v5881_v14 }
 0xed5   : > { %v5866_v10 = vadd.f32 %v5850_v37, %v5780_v9  ;;  %8674 = vtanh.f32 %v5880_v50 }
 0xed6   : > { %v8665_v53 = vpop.eup %8664  ;;  %v5883_v18 = vmul.f32 0.7978846, %v5867_v63 }
 0xed7   : > { %v8667_v35 = vpop.eup %8666  ;;  %v5909_v39 = vadd.f32 1.0, %v8665_v53  ;;  %v5882_v62 = vmul.f32 0.7978846, %v5866_v10 }
 0xed8   : > { %v5908_v56 = vadd.f32 1.0, %v8667_v35  ;;  %8676 = vtanh.f32 %v5883_v18 }
 0xed9   : > { %8678 = vtanh.f32 %v5882_v62  ;;  %v5925_v46 = vmul.f32 %v5909_v39, %v5797_v52 }
 0xeda   : > { %v8669_v42 = vpop.eup %8668  ;;  %v5924_v55 = vmul.f32 %v5908_v56, %v5796_v44 }
 0xedb   : > { %v8671_v21 = vpop.eup %8670  ;;  %v5911_v26 = vadd.f32 1.0, %v8669_v42 }
 0xedc   : > { %7585 = vmatprep.mubr.msk.f32.mxu0 %vm467_vm0, %v5924_v55  ;;  %v5910_v43 = vadd.f32 1.0, %v8671_v21 }
 0xedd   : > { %7586 = vmatmul.mubr.msk.f32.gmra.mrb[88].mxu0 %vm467_vm0, %v5925_v46  ;;  %v5927_v17 = vmul.f32 %v5911_v26, %v5799_v47 }
 0xede   : > { %v8673_v61 = vpop.eup %8672  ;;  %v5926_v24 = vmul.f32 %v5910_v43, %v5798_v58 }
 0xedf   : > { %v8675_v4 = vpop.eup %8674  ;;  %v5913_v48 = vadd.f32 1.0, %v8673_v61 }
 0xee0   : > { %7588 = vmatprep.mubr.msk.f32.mxu0 %vm467_vm0, %v5926_v24  ;;  %v5912_v15 = vadd.f32 1.0, %v8675_v4 }
 0xee1   : > { %7589 = vmatmul.mubr.msk.f32.gmra.mrb[90].mxu0 %vm467_vm0, %v5927_v17  ;;  %v5929_v30 = vmul.f32 %v5913_v48, %v5801_v54 }
 0xee2   : > { %v8677_v25 = vpop.eup %8676  ;;  %v5928_v20 = vmul.f32 %v5912_v15, %v5800_v11 }
 0xee3   : > { %v8679_v2 = vpop.eup %8678  ;;  %v5915_v22 = vadd.f32 1.0, %v8677_v25 }
 0xee4   : > { %7591 = vmatprep.mubr.msk.f32.mxu0 %vm467_vm0, %v5928_v20  ;;  %v5914_v36 = vadd.f32 1.0, %v8679_v2 }
 0xee5   : > { %7592 = vmatmul.mubr.msk.f32.gmra.mrb[92].mxu0 %vm467_vm0, %v5929_v30  ;;  %v5931_v0 = vmul.f32 %v5915_v22, %v5803_v13 }
 0xee6   : > { %v5930_v51 = vmul.f32 %v5914_v36, %v5802_v29 }
 0xee8   : > { %7594 = vmatprep.mubr.msk.f32.mxu0 %vm467_vm0, %v5930_v51 }
 0xee9   : > { %7595 = vmatmul.mubr.msk.f32.gmra.mrb[94].mxu0 %vm467_vm0, %v5931_v0 }
 0xf2b   : > { %v7575_v45 = vpop.f32.mrb[80].mxu0 }
 0xf2c   : > { %v6063_v7 = vadd.f32 %v7575_v45, %v6532_v34  ;;  %v6057_v32 = vpop.f32.mrb[81].mxu0 }
 0xf2d   : > { %v6058_v33 = vadd.f32 %v6532_v34, %v6057_v32 }
 0xf2e   : > { %v6137_v9 = vadd.f32 %v6063_v7, %v10483_v41 }
 0xf2f   : > { %v6136_v8 = vadd.f32 %v6058_v33, %v10469_v16  ;;  %v7578_v5 = vpop.f32.mrb[82].mxu0 }
 0xf30   : > { %6153 = vst.msk [vmem:[%s10929_s30 + $0x8] sm:$0xff] %vm467_vm0, %v6137_v9  ;;  %v6073_v59 = vadd.f32 %v7578_v5, %v6532_v34  ;;  %v6067_v14 = vpop.f32.mrb[83].mxu0 }
 0xf31   : > { %6152 = vst.msk [vmem:[%s10929_s30] sm:$0xff] %vm467_vm0, %v6136_v8  ;;  %v6068_v37 = vadd.f32 %v6532_v34, %v6067_v14 }
 0xf32   : > { %v6139_v50 = vadd.f32 %v6073_v59, %v10478_v28 }
 0xf33   : > { %v6138_v63 = vadd.f32 %v6068_v37, %v10486_v57  ;;  %v7581_v10 = vpop.f32.mrb[84].mxu0 }
 0xf34   : > { %6155 = vst.msk [vmem:[%s10929_s30 + $0x18] sm:$0xff] %vm467_vm0, %v6139_v50  ;;  %v6083_v16 = vadd.f32 %v7581_v10, %v6532_v34  ;;  %v6077_v41 = vpop.f32.mrb[85].mxu0 }
 0xf35   : > { %6154 = vst.msk [vmem:[%s10929_s30 + $0x10] sm:$0xff] %vm467_vm0, %v6138_v63  ;;  %v6078_v53 = vadd.f32 %v6532_v34, %v6077_v41 }
 0xf36   : > { %v6141_v18 = vadd.f32 %v6083_v16, %v10499_v3 }
 0xf37   : > { %v6140_v35 = vadd.f32 %v6078_v53, %v10502_v31  ;;  %v7584_v39 = vpop.f32.mrb[86].mxu0 }
 0xf38   : > { %6157 = vst.msk [vmem:[%s10929_s30 + $0x28] sm:$0xff] %vm467_vm0, %v6141_v18  ;;  %v6093_v28 = vadd.f32 %v7584_v39, %v6532_v34  ;;  %v6087_v57 = vpop.f32.mrb[87].mxu0 }
 0xf39   : > { %6156 = vst.msk [vmem:[%s10929_s30 + $0x20] sm:$0xff] %vm467_vm0, %v6140_v35  ;;  %v6088_v62 = vadd.f32 %v6532_v34, %v6087_v57 }
 0xf3a   : > { %v6143_v44 = vadd.f32 %v6093_v28, %v10509_v1 }
 0xf3b   : > { %v6142_v56 = vadd.f32 %v6088_v62, %v10512_v60 }
 0xf3c   : > { %6159 = vst.msk [vmem:[%s10929_s30 + $0x38] sm:$0xff] %vm467_vm0, %v6143_v44 }
 0xf3d   : > { %6158 = vst.msk [vmem:[%s10929_s30 + $0x30] sm:$0xff] %vm467_vm0, %v6142_v56 }
 0xfb0   : > { %v7587_v3 = vpop.f32.mrb[88].mxu0 }
 0xfb1   : > { %v6103_v31 = vadd.f32 %v7587_v3, %v6532_v34  ;;  %v6097_v52 = vpop.f32.mrb[89].mxu0 }
 0xfb2   : > { %v6098_v42 = vadd.f32 %v6532_v34, %v6097_v52 }
 0xfb3   : > { %v6145_v55 = vadd.f32 %v6103_v31, %v10561_v40 }
 0xfb4   : > { %v6144_v21 = vadd.f32 %v6098_v42, %v10564_v38  ;;  %v7590_v46 = vpop.f32.mrb[90].mxu0 }
 0xfb5   : > { %6161 = vst.msk [vmem:[%s10929_s30 + $0x48] sm:$0xff] %vm467_vm0, %v6145_v55  ;;  %v6113_v1 = vadd.f32 %v7590_v46, %v6532_v34  ;;  %v6107_v60 = vpop.f32.mrb[91].mxu0 }
 0xfb6   : > { %6160 = vst.msk [vmem:[%s10929_s30 + $0x40] sm:$0xff] %vm467_vm0, %v6144_v21  ;;  %v6108_v26 = vadd.f32 %v6532_v34, %v6107_v60 }
 0xfb7   : > { %v6147_v58 = vadd.f32 %v6113_v1, %v10573_v19 }
 0xfb8   : > { %v6146_v43 = vadd.f32 %v6108_v26, %v10576_v27  ;;  %v7593_v47 = vpop.f32.mrb[92].mxu0 }
 0xfb9   : > { %6163 = vst.msk [vmem:[%s10929_s30 + $0x58] sm:$0xff] %vm467_vm0, %v6147_v58  ;;  %v6123_v40 = vadd.f32 %v7593_v47, %v6532_v34  ;;  %v6117_v38 = vpop.f32.mrb[93].mxu0 }
 0xfba   : > { %6162 = vst.msk [vmem:[%s10929_s30 + $0x50] sm:$0xff] %vm467_vm0, %v6146_v43  ;;  %v6118_v61 = vadd.f32 %v6532_v34, %v6117_v38 }
 0xfbb   : > { %v6149_v24 = vadd.f32 %v6123_v40, %v10585_v49 }
 0xfbc   : > { %v6148_v4 = vadd.f32 %v6118_v61, %v10588_v6  ;;  %v7596_v17 = vpop.f32.mrb[94].mxu0 }
 0xfbd   : > { %6165 = vst.msk [vmem:[%s10929_s30 + $0x68] sm:$0xff] %vm467_vm0, %v6149_v24  ;;  %v6133_v19 = vadd.f32 %v7596_v17, %v6532_v34  ;;  %v6127_v48 = vpop.f32.mrb[95].mxu0 }
 0xfbe   : > { %6164 = vst.msk [vmem:[%s10929_s30 + $0x60] sm:$0xff] %vm467_vm0, %v6148_v4  ;;  %v6128_v27 = vadd.f32 %v6532_v34, %v6127_v48 }
 0xfbf   : > { %v6151_v11 = vadd.f32 %v6133_v19, %v10603_v23 }
 0xfc0   : > { %v6150_v15 = vadd.f32 %v6128_v27, %v10606_v12 }
 0xfc1   : > { %6167 = vst.msk [vmem:[%s10929_s30 + $0x78] sm:$0xff] %vm467_vm0, %v6151_v11 }
 0xfc2   : > { %6166 = vst.msk [vmem:[%s10929_s30 + $0x70] sm:$0xff] %vm467_vm0, %v6150_v15 }
 0xfc3 PF: > { %s23_s25 = sadd.s32 1, %s8706_s25  }
 0xfc4   : > { %p20_p4 = scmp.ge.s32.totalorder %s23_s25, 4  }
 0xfc6   :  { %22 = sbr.rel (!%p20_p4) target bundleno = 1 (0x1), region = 102 }

// kernel: tpu_custom_call.1
= control target key start
LH: loop header
LB: loop body
LE: loop exit
PB: predicated region body
PF: predicated region fallthrough
CT: control target
= control target key end

     0   :  { %s8789_s25 = smov 0   ;;  %s10982_s0 = inlined_call_operand.vmem [shape: f32[4,64,32], index: 0, kind: input, shape index: {}]   ;;  %s10983_s1 = inlined_call_operand.vmem [shape: f32[1,32], index: 1, kind: input, shape index: {}]   ;;  %s10984_s2 = inlined_call_operand.vmem [shape: f32[1,32], index: 2, kind: input, shape index: {}]   ;;  %s10985_s3 = inlined_call_operand.vmem [shape: f32[32,96], index: 3, kind: input, shape index: {}]   ;;  %s10986_s4 = inlined_call_operand.vmem [shape: f32[1,96], index: 4, kind: input, shape index: {}]   ;;  %s10987_s5 = inlined_call_operand.vmem [shape: f32[32,32], index: 5, kind: input, shape index: {}]   ;;  %s10988_s6 = inlined_call_operand.vmem [shape: f32[1,32], index: 6, kind: input, shape index: {}]   ;;  %s10989_s7 = inlined_call_operand.vmem [shape: f32[1,32], index: 7, kind: input, shape index: {}]   ;;  %s10990_s8 = inlined_call_operand.vmem [shape: f32[1,32], index: 8, kind: input, shape index: {}]   ;;  %s10991_s9 = inlined_call_operand.vmem [shape: f32[32,32], index: 9, kind: input, shape index: {}]   ;;  %s10992_s10 = inlined_call_operand.vmem [shape: f32[1,32], index: 10, kind: input, shape index: {}]   ;;  %s10993_s11 = inlined_call_operand.vmem [shape: f32[32,32], index: 11, kind: input, shape index: {}]   ;;  %s10994_s12 = inlined_call_operand.vmem [shape: f32[1,32], index: 12, kind: input, shape index: {}]   ;;  %s10995_s13 = inlined_call_operand.vmem [shape: f32[4,64,32], index: 13, kind: output, shape index: {}]  }
   0x1 LB: > { %s6226_s26 = sadd.s32 4294967295, %s8706_s25   ;;  %p6230_p0 = scmp.ge.s32.totalorder %s8706_s25, 1  ;;  %s8706_s25 = sphi %s8789_s25, %s23_s25  }
   0x2   : > { %p389_p1 = scmp.lt.s32.totalorder %s8706_s25, 3 }
   0x4   : > { %p390_p2 = pnand %p6230_p0, %p389_p1 }
   0x5   : > { %s6231_s27 = sshll.u32 (!%p390_p2), %s6226_s26, 1  ;;  %vm467_vm0 = vcmask (!%p390_p2), 261120   ;;  %vm969_vm1 = vcmask (!%p390_p2), 64512   ;;  %s8708_s16 = smov (!%p390_p2), 96   ;;  %vm1115_vm3 = vcmask (!%p390_p2), 523264  }
   0x6   : > { %393 = sbr.rel (%p390_p2) target bundleno = 4035 (0xfc3), region = 72  ;;  %p436_p3 = scmp.lt.s32.totalorder (!%p390_p2), %s6231_s27, 3  ;;  %vm9140_vm2 = vmpackc.low (!%p390_p2), %vm969_vm1, %vm969_vm1 }
   0x7   : > { %s8709_s17 = smov (!%p390_p2), 88   ;;  %s8710_s18 = smov (!%p390_p2), 120  }
   0x8   : > { %s8711_s19 = smov (!%p390_p2), 80   ;;  %s8712_s20 = smov (!%p390_p2), 112  }
   0x9   : > { %s8713_s21 = smov (!%p390_p2), 64   ;;  %s8714_s22 = smov (!%p390_p2), 56  }
   0xa   : > { %s8715_s23 = smov (!%p390_p2), 72   ;;  %s8716_s24 = smov (!%p390_p2), 104  }
   0xb   : > { %s8717_s26 = smov (!%p390_p2), 48  }
   0xd   : > { %s11001_s27 = smov (!%p436_p3, %s6231_s27), 3 }
   0xe   : > { %s10996_s28 = sshll.u32 %s11001_s27, 6 }
   0xf   : > { %s8805_s14 = scalar_lea.vmem %s10982_s0, %s10996_s28  ;;  %s8718_s28 = smov 40  }
  0x10   : > { %v449_v0 = vld [vmem:[%s8805_s14] sm:$0xff]  ;;  %v451_v1 = vld [vmem:[%s8805_s14 + $0x10] sm:$0xff]  ;;  %v450_v2 = vld [vmem:[%s8805_s14 + $0x8] sm:$0xff] }
  0x11   : > { %v468_v3 = vsel %vm467_vm0, %v449_v0, 0.0  ;;  %v474_v4 = vsel %vm467_vm0, %v451_v1, 0.0  ;;  %v452_v5 = vld [vmem:[%s8805_s14 + $0x18] sm:$0xff]  ;;  %v471_v6 = vsel %vm467_vm0, %v450_v2, 0.0  ;;  %v453_v8 = vld [vmem:[%s8805_s14 + $0x20] sm:$0xff]  ;;  %v454_v9 = vld [vmem:[%s8805_s14 + $0x28] sm:$0xff] }
  0x12   : > { %469 = vadd.xlane.f32.xlu0 %v468_v3  ;;  %475 = vadd.xlane.f32.xlu1 %v474_v4  ;;  %v477_v7 = vsel %vm467_vm0, %v452_v5, 0.0  ;;  %v480_v10 = vsel %vm467_vm0, %v453_v8, 0.0  ;;  %v483_v11 = vsel %vm467_vm0, %v454_v9, 0.0  ;;  %v455_v12 = vld [vmem:[%s8805_s14 + $0x30] sm:$0xff]  ;;  %v456_v13 = vld [vmem:[%s8805_s14 + $0x38] sm:$0xff]  ;;  %v8862_v54 = vld [vmem:[%s8805_s14 + $0x40] sm:$0xff] }
  0x13   : > { %v486_v14 = vsel %vm467_vm0, %v455_v12, 0.0  ;;  %v489_v15 = vsel %vm467_vm0, %v456_v13, 0.0  ;;  %v492_v57 = vsel %vm467_vm0, %v8862_v54, 0.0  ;;  %v8869_v58 = vld [vmem:[%s8805_s14 + $0x48] sm:$0xff]  ;;  %v8872_v59 = vld [vmem:[%s8805_s14 + $0x50] sm:$0xff]  ;;  %v8879_v62 = vld [vmem:[%s8805_s14 + $0x58] sm:$0xff] }
  0x14   : > { %v495_v60 = vsel %vm467_vm0, %v8869_v58, 0.0  ;;  %v498_v61 = vsel %vm467_vm0, %v8872_v59, 0.0  ;;  %v8882_v63 = vld [vmem:[%s8805_s14 + $0x60] sm:$0xff]  ;;  %v8892_v3 = vld [vmem:[%s8805_s14 + $0x70] sm:$0xff] }
  0x16   : > { %472 = vadd.xlane.f32.xlu0 %v471_v6  ;;  %478 = vadd.xlane.f32.xlu1 %v477_v7  ;;  %v8899_v6 = vld [vmem:[%s8805_s14 + $0x78] sm:$0xff] }
  0x17   : > { %v513_v7 = vsel %vm467_vm0, %v8899_v6, 0.0 }
  0x1a   : > { %481 = vadd.xlane.f32.xlu0 %v480_v10  ;;  %484 = vadd.xlane.f32.xlu1 %v483_v11  ;;  %v723_v11 = vld [vmem:[%s10985_s3 + $0x10] sm:$0xff] }
  0x1e   : > { %487 = vadd.xlane.f32.xlu0 %v486_v14  ;;  %490 = vadd.xlane.f32.xlu1 %v489_v15 }
  0x9f   : > { %v470_v16 = vpop.xlane.xlu0 %469  ;;  %v476_v17 = vpop.xlane.xlu1 %475 }
  0xa0   : > { %v517_v18 = vmul.f32 0.03125, %v470_v16  ;;  %v519_v19 = vmul.f32 0.03125, %v476_v17 }
  0xa2   : > { %v8823_v20 = vsub.f32 %v449_v0, %v517_v18  ;;  %v8825_v21 = vsub.f32 %v451_v1, %v519_v19  ;;  %v501_v0 = vsel %vm467_vm0, %v8879_v62, 0.0  ;;  %v504_v1 = vsel %vm467_vm0, %v8882_v63, 0.0 }
  0xa3   : > { %v473_v22 = vpop.xlane.xlu0 %472  ;;  %v479_v23 = vpop.xlane.xlu1 %478 }
  0xa4   : > { %v518_v24 = vmul.f32 0.03125, %v473_v22  ;;  %v520_v25 = vmul.f32 0.03125, %v479_v23  ;;  %v549_v26 = vmul.f32 %v8823_v20, %v8823_v20  ;;  %v551_v27 = vmul.f32 %v8825_v21, %v8825_v21 }
  0xa6   : > { %v8831_v28 = vsub.f32 %v450_v2, %v518_v24  ;;  %v8833_v29 = vsub.f32 %v452_v5, %v520_v25  ;;  %v565_v30 = vsel %vm467_vm0, %v549_v26, 0.0  ;;  %v571_v33 = vsel %vm467_vm0, %v551_v27, 0.0  ;;  %v8889_v2 = vld [vmem:[%s8805_s14 + $0x68] sm:$0xff] }
  0xa7   : > { %566 = vadd.xlane.f32.xlu0 %v565_v30  ;;  %v482_v31 = vpop.xlane.xlu0 %481  ;;  %v485_v32 = vpop.xlane.xlu1 %484  ;;  %v507_v4 = vsel %vm467_vm0, %v8889_v2, 0.0  ;;  %v510_v5 = vsel %vm467_vm0, %v8892_v3, 0.0 }
  0xa8   : > { %v521_v34 = vmul.f32 0.03125, %v482_v31  ;;  %v522_v35 = vmul.f32 0.03125, %v485_v32  ;;  %v550_v36 = vmul.f32 %v8831_v28, %v8831_v28  ;;  %v552_v37 = vmul.f32 %v8833_v29, %v8833_v29 }
  0xaa   : > { %v8841_v38 = vsub.f32 %v453_v8, %v521_v34  ;;  %v8843_v39 = vsub.f32 %v454_v9, %v522_v35  ;;  %v568_v40 = vsel %vm467_vm0, %v550_v36, 0.0  ;;  %v574_v43 = vsel %vm467_vm0, %v552_v37, 0.0  ;;  %v721_v8 = vld [vmem:[%s10985_s3] sm:$0xff]  ;;  %v722_v9 = vld [vmem:[%s10985_s3 + $0x8] sm:$0xff] }
  0xab   : > { %572 = vadd.xlane.f32.xlu0 %v571_v33  ;;  %569 = vadd.xlane.f32.xlu1 %v568_v40  ;;  %v488_v41 = vpop.xlane.xlu0 %487  ;;  %v491_v42 = vpop.xlane.xlu1 %490  ;;  %v7597_v10 = vpack.c.bf16 %v722_v9, %v721_v8 }
  0xac   : > { %v523_v44 = vmul.f32 0.03125, %v488_v41  ;;  %v524_v45 = vmul.f32 0.03125, %v491_v42  ;;  %v553_v46 = vmul.f32 %v8841_v38, %v8841_v38  ;;  %v554_v47 = vmul.f32 %v8843_v39, %v8843_v39  ;;  %v8918_v42 = vld [vmem:[%s10983_s1] ss:$0 sm:$0xff] }
  0xad   : > { %7598 = vmatprep.subr.bf16.mxu1 %v7597_v10 }
  0xae   : > { %v8851_v48 = vsub.f32 %v455_v12, %v523_v44  ;;  %v8853_v49 = vsub.f32 %v456_v13, %v524_v45  ;;  %v577_v50 = vsel %vm467_vm0, %v553_v46, 0.0  ;;  %v580_v51 = vsel %vm467_vm0, %v554_v47, 0.0  ;;  %7600 = vmatpush3.bf16.msra.mxu1 %v7597_v10  ;;  %v724_v12 = vld [vmem:[%s10985_s3 + $0x18] sm:$0xff]  ;;  %v8924_v47 = vld [vmem:[%s10984_s2] ss:$0 sm:$0xff] }
  0xaf   : > { %575 = vadd.xlane.f32.xlu1 %v574_v43  ;;  %578 = vadd.xlane.f32.xlu0 %v577_v50  ;;  %v7601_v13 = vpack.c.bf16 %v724_v12, %v723_v11 }
  0xb0   : > { %v555_v52 = vmul.f32 %v8851_v48, %v8851_v48  ;;  %v556_v53 = vmul.f32 %v8853_v49, %v8853_v49 }
  0xb1   : > { %7602 = vmatprep.subr.bf16.mxu1 %v7601_v13 }
  0xb2   : > { %v583_v55 = vsel %vm467_vm0, %v555_v52, 0.0  ;;  %v586_v56 = vsel %vm467_vm0, %v556_v53, 0.0  ;;  %7604 = vmatpush3.bf16.msra.mxu1 %v7601_v13 }
  0xb3   : > { %581 = vadd.xlane.f32.xlu1 %v580_v51  ;;  %584 = vadd.xlane.f32.xlu0 %v583_v55 }
  0xb7   : > { %587 = vadd.xlane.f32.xlu1 %v586_v56  ;;  %493 = vadd.xlane.f32.xlu0 %v492_v57 }
  0xbb   : > { %496 = vadd.xlane.f32.xlu1 %v495_v60  ;;  %499 = vadd.xlane.f32.xlu0 %v498_v61 }
  0xbf   : > { %502 = vadd.xlane.f32.xlu1 %v501_v0  ;;  %505 = vadd.xlane.f32.xlu0 %v504_v1 }
  0xc3   : > { %508 = vadd.xlane.f32.xlu1 %v507_v4  ;;  %511 = vadd.xlane.f32.xlu0 %v510_v5 }
  0xc7   : > { %514 = vadd.xlane.f32.xlu1 %v513_v7 }
 0x134   : > { %v567_v14 = vpop.xlane.xlu0 %566 }
 0x135   : > { %v613_v15 = vmul.f32 0.03125, %v567_v14 }
 0x137   : > { %v629_v16 = vadd.f32 1e-05, %v613_v15 }
 0x138   : > { %v570_v17 = vpop.xlane.xlu1 %569  ;;  %v573_v18 = vpop.xlane.xlu0 %572 }
 0x139   : > { %8328 = vrsqrt.f32 %v629_v16  ;;  %v614_v19 = vmul.f32 0.03125, %v570_v17  ;;  %v615_v22 = vmul.f32 0.03125, %v573_v18 }
 0x13b   : > { %v630_v23 = vadd.f32 1e-05, %v614_v19  ;;  %v631_v24 = vadd.f32 1e-05, %v615_v22 }
 0x13c   : > { %v576_v25 = vpop.xlane.xlu1 %575  ;;  %v579_v26 = vpop.xlane.xlu0 %578 }
 0x13d   : > { %8330 = vrsqrt.f32 %v630_v23  ;;  %v616_v27 = vmul.f32 0.03125, %v576_v25  ;;  %v617_v30 = vmul.f32 0.03125, %v579_v26 }
 0x13e   : > { %8332 = vrsqrt.f32 %v631_v24 }
 0x13f   : > { %v632_v31 = vadd.f32 1e-05, %v616_v27  ;;  %v633_v32 = vadd.f32 1e-05, %v617_v30 }
 0x140   : > { %v582_v33 = vpop.xlane.xlu1 %581  ;;  %v585_v34 = vpop.xlane.xlu0 %584 }
 0x141   : > { %8334 = vrsqrt.f32 %v632_v31  ;;  %v618_v35 = vmul.f32 0.03125, %v582_v33  ;;  %v619_v36 = vmul.f32 0.03125, %v585_v34 }
 0x142   : > { %8336 = vrsqrt.f32 %v633_v32 }
 0x143   : > { %v8329_v37 = vpop.eup %8328  ;;  %v634_v40 = vadd.f32 1e-05, %v618_v35  ;;  %v635_v41 = vadd.f32 1e-05, %v619_v36 }
 0x144   : > { %v588_v43 = vpop.xlane.xlu1 %587  ;;  %v661_v44 = vmul.f32 %v8329_v37, %v8823_v20  ;;  %v494_v45 = vpop.xlane.xlu0 %493 }
 0x145   : > { %8338 = vrsqrt.f32 %v634_v40  ;;  %v620_v46 = vmul.f32 0.03125, %v588_v43  ;;  %v525_v50 = vmul.f32 0.03125, %v494_v45 }
 0x146   : > { %8340 = vrsqrt.f32 %v635_v41  ;;  %v683_v51 = vmul.f32 %v8918_v42, %v661_v44 }
 0x147   : > { %v8331_v52 = vpop.eup %8330  ;;  %v636_v53 = vadd.f32 1e-05, %v620_v46  ;;  %v8928_v55 = vsub.f32 %v8862_v54, %v525_v50 }
 0x148   : > { %v8333_v56 = vpop.eup %8332  ;;  %v705_v20 = vadd.f32 %v8924_v47, %v683_v51  ;;  %v662_v57 = vmul.f32 %v8331_v52, %v8831_v28  ;;  %v497_v60 = vpop.xlane.xlu1 %496 }
 0x149   : > { %v500_v61 = vpop.xlane.xlu0 %499  ;;  %8342 = vrsqrt.f32 %v636_v53  ;;  %v663_v0 = vmul.f32 %v8333_v56, %v8825_v21  ;;  %v526_v1 = vmul.f32 0.03125, %v497_v60  ;;  %v557_v54 = vmul.f32 %v8928_v55, %v8928_v55 }
 0x14a   : > { %v527_v4 = vmul.f32 0.03125, %v500_v61  ;;  %6949 = vmatprep.mubr.msk.f32.mxu1 %vm467_vm0, %v705_v20  ;;  %v684_v5 = vmul.f32 %v8918_v42, %v662_v57 }
 0x14b   : > { %v8335_v7 = vpop.eup %8334  ;;  %v685_v8 = vmul.f32 %v8918_v42, %v663_v0  ;;  %v8939_v9 = vsub.f32 %v8869_v58, %v526_v1  ;;  %v589_v13 = vsel %vm467_vm0, %v557_v54, 0.0 }
 0x14c   : > { %v8942_v28 = vsub.f32 %v8872_v59, %v527_v4  ;;  %v8337_v10 = vpop.eup %8336  ;;  %v706_v21 = vadd.f32 %v8924_v47, %v684_v5  ;;  %v664_v11 = vmul.f32 %v8335_v7, %v8833_v29  ;;  %v503_v12 = vpop.xlane.xlu1 %502  ;;  %590 = vadd.xlane.f32.xlu0 %v589_v13 }
 0x14d   : > { %v506_v14 = vpop.xlane.xlu0 %505  ;;  %v707_v15 = vadd.f32 %v8924_v47, %v685_v8  ;;  %v665_v16 = vmul.f32 %v8337_v10, %v8841_v38  ;;  %v528_v17 = vmul.f32 0.03125, %v503_v12  ;;  %v558_v18 = vmul.f32 %v8939_v9, %v8939_v9 }
 0x14e   : > { %v529_v58 = vmul.f32 0.03125, %v506_v14  ;;  %6950 = vmatmul.mubr.msk.f32.vlgmr.msra.gmra.mrb[0].mxu1 %vm467_vm0, %v706_v21  ;;  %v686_v59 = vmul.f32 %v8918_v42, %v664_v11  ;;  %v559_v29 = vmul.f32 %v8942_v28, %v8942_v28 }
 0x14f   : > { %v8339_v19 = vpop.eup %8338  ;;  %6952 = vmatprep.mubr.msk.f32.mxu1 %vm467_vm0, %v707_v15  ;;  %v687_v22 = vmul.f32 %v8918_v42, %v665_v16  ;;  %v8958_v38 = vsub.f32 %v8879_v62, %v528_v17  ;;  %v592_v27 = vsel %vm467_vm0, %v558_v18, 0.0 }
 0x150   : > { %v8961_v23 = vsub.f32 %v8882_v63, %v529_v58  ;;  %v8341_v24 = vpop.eup %8340  ;;  %v708_v25 = vadd.f32 %v8924_v47, %v686_v59  ;;  %v666_v26 = vmul.f32 %v8339_v19, %v8843_v39  ;;  %v509_v30 = vpop.xlane.xlu1 %508  ;;  %v595_v31 = vsel %vm467_vm0, %v559_v29, 0.0  ;;  %593 = vadd.xlane.f32.xlu1 %v592_v27 }
 0x151   : > { %v512_v32 = vpop.xlane.xlu0 %511  ;;  %v709_v33 = vadd.f32 %v8924_v47, %v687_v22  ;;  %v667_v34 = vmul.f32 %v8341_v24, %v8851_v48  ;;  %v530_v62 = vmul.f32 0.03125, %v509_v30  ;;  %596 = vadd.xlane.f32.xlu0 %v595_v31  ;;  %v560_v39 = vmul.f32 %v8958_v38, %v8958_v38 }
 0x152   : > { %v531_v63 = vmul.f32 0.03125, %v512_v32  ;;  %6953 = vmatmul.mubr.msk.f32.gmra.mrb[2].mxu1 %vm467_vm0, %v708_v25  ;;  %v688_v35 = vmul.f32 %v8918_v42, %v666_v26  ;;  %v561_v36 = vmul.f32 %v8961_v23, %v8961_v23 }
 0x153   : > { %v8343_v37 = vpop.eup %8342  ;;  %6955 = vmatprep.mubr.msk.f32.mxu1 %vm467_vm0, %v709_v33  ;;  %v689_v40 = vmul.f32 %v8918_v42, %v667_v34  ;;  %v8978_v48 = vsub.f32 %v8889_v2, %v530_v62  ;;  %v598_v45 = vsel %vm467_vm0, %v560_v39, 0.0 }
 0x154   : > { %v8981_v41 = vsub.f32 %v8892_v3, %v531_v63  ;;  %v710_v43 = vadd.f32 %v8924_v47, %v688_v35  ;;  %v668_v44 = vmul.f32 %v8343_v37, %v8853_v49  ;;  %v601_v46 = vsel %vm467_vm0, %v561_v36, 0.0  ;;  %v515_v50 = vpop.xlane.xlu1 %514  ;;  %599 = vadd.xlane.f32.xlu1 %v598_v45 }
 0x155   : > { %v711_v51 = vadd.f32 %v8924_v47, %v689_v40  ;;  %602 = vadd.xlane.f32.xlu0 %v601_v46  ;;  %v562_v2 = vmul.f32 %v8978_v48, %v8978_v48  ;;  %v532_v52 = vmul.f32 0.03125, %v515_v50 }
 0x156   : > { %v563_v3 = vmul.f32 %v8981_v41, %v8981_v41  ;;  %6956 = vmatmul.mubr.msk.f32.gmra.mrb[4].mxu1 %vm467_vm0, %v710_v43  ;;  %v690_v49 = vmul.f32 %v8918_v42, %v668_v44 }
 0x157   : > { %6958 = vmatprep.mubr.msk.f32.mxu1 %vm467_vm0, %v711_v51  ;;  %v604_v53 = vsel %vm467_vm0, %v562_v2, 0.0  ;;  %v8997_v56 = vsub.f32 %v8899_v6, %v532_v52 }
 0x158   : > { %v607_v20 = vsel %vm467_vm0, %v563_v3, 0.0  ;;  %v712_v57 = vadd.f32 %v8924_v47, %v690_v49  ;;  %605 = vadd.xlane.f32.xlu1 %v604_v53  ;;  %v9040_v53 = vld [vmem:[%s10986_s4] ss:$0 sm:$0xff] }
 0x159   : > { %608 = vadd.xlane.f32.xlu0 %v607_v20  ;;  %v564_v60 = vmul.f32 %v8997_v56, %v8997_v56 }
 0x15a   : > { %6959 = vmatmul.mubr.msk.f32.gmra.mrb[6].mxu1 %vm467_vm0, %v712_v57 }
 0x15b   : > { %v610_v61 = vsel %vm467_vm0, %v564_v60, 0.0 }
 0x15c   : > { %611 = vadd.xlane.f32.xlu1 %v610_v61 }
 0x1d9   : > { %v591_v0 = vpop.xlane.xlu0 %590 }
 0x1da   : > { %v621_v1 = vmul.f32 0.03125, %v591_v0 }
 0x1dc   : > { %v637_v4 = vadd.f32 1e-05, %v621_v1 }
 0x1dd   : > { %v594_v5 = vpop.xlane.xlu1 %593 }
 0x1de   : > { %v597_v6 = vpop.xlane.xlu0 %596  ;;  %8344 = vrsqrt.f32 %v637_v4  ;;  %v622_v54 = vmul.f32 0.03125, %v594_v5 }
 0x1df   : > { %v623_v7 = vmul.f32 0.03125, %v597_v6 }
 0x1e0   : > { %v638_v8 = vadd.f32 1e-05, %v622_v54 }
 0x1e1   : > { %v639_v10 = vadd.f32 1e-05, %v623_v7  ;;  %v600_v21 = vpop.xlane.xlu1 %599 }
 0x1e2   : > { %v603_v11 = vpop.xlane.xlu0 %602  ;;  %8346 = vrsqrt.f32 %v638_v8  ;;  %v624_v12 = vmul.f32 0.03125, %v600_v21 }
 0x1e3   : > { %v625_v13 = vmul.f32 0.03125, %v603_v11  ;;  %8348 = vrsqrt.f32 %v639_v10 }
 0x1e4   : > { %v640_v14 = vadd.f32 1e-05, %v624_v12 }
 0x1e5   : > { %v641_v15 = vadd.f32 1e-05, %v625_v13  ;;  %v606_v16 = vpop.xlane.xlu1 %605 }
 0x1e6   : > { %v609_v17 = vpop.xlane.xlu0 %608  ;;  %8350 = vrsqrt.f32 %v640_v14  ;;  %v626_v58 = vmul.f32 0.03125, %v606_v16 }
 0x1e7   : > { %v627_v59 = vmul.f32 0.03125, %v609_v17  ;;  %8352 = vrsqrt.f32 %v641_v15 }
 0x1e8   : > { %v8345_v18 = vpop.eup %8344  ;;  %v642_v29 = vadd.f32 1e-05, %v626_v58 }
 0x1e9   : > { %v643_v19 = vadd.f32 1e-05, %v627_v59  ;;  %v612_v22 = vpop.xlane.xlu1 %611  ;;  %v669_v24 = vmul.f32 %v8345_v18, %v8928_v55 }
 0x1ea   : > { %8354 = vrsqrt.f32 %v642_v29  ;;  %v628_v25 = vmul.f32 0.03125, %v612_v22 }
 0x1eb   : > { %8356 = vrsqrt.f32 %v643_v19  ;;  %v691_v26 = vmul.f32 %v8918_v42, %v669_v24 }
 0x1ec   : > { %v8347_v27 = vpop.eup %8346  ;;  %v644_v30 = vadd.f32 1e-05, %v628_v25 }
 0x1ed   : > { %v8349_v31 = vpop.eup %8348  ;;  %v713_v32 = vadd.f32 %v8924_v47, %v691_v26  ;;  %v670_v33 = vmul.f32 %v8347_v27, %v8939_v9 }
 0x1ee   : > { %8358 = vrsqrt.f32 %v644_v30  ;;  %v671_v34 = vmul.f32 %v8349_v31, %v8942_v28 }
 0x1ef   : > { %6961 = vmatprep.mubr.msk.f32.mxu1 %vm467_vm0, %v713_v32  ;;  %v692_v62 = vmul.f32 %v8918_v42, %v670_v33 }
 0x1f0   : > { %v8351_v55 = vpop.eup %8350  ;;  %v693_v63 = vmul.f32 %v8918_v42, %v671_v34 }
 0x1f1   : > { %v8353_v35 = vpop.eup %8352  ;;  %v714_v39 = vadd.f32 %v8924_v47, %v692_v62  ;;  %v672_v36 = vmul.f32 %v8351_v55, %v8958_v38 }
 0x1f2   : > { %v715_v37 = vadd.f32 %v8924_v47, %v693_v63  ;;  %v673_v40 = vmul.f32 %v8353_v35, %v8961_v23 }
 0x1f3   : > { %6962 = vmatmul.mubr.msk.f32.gmra.mrb[8].mxu1 %vm467_vm0, %v714_v39  ;;  %v694_v9 = vmul.f32 %v8918_v42, %v672_v36 }
 0x1f4   : > { %v8355_v28 = vpop.eup %8354  ;;  %6964 = vmatprep.mubr.msk.f32.mxu1 %vm467_vm0, %v715_v37  ;;  %v695_v43 = vmul.f32 %v8918_v42, %v673_v40 }
 0x1f5   : > { %v8357_v44 = vpop.eup %8356  ;;  %v716_v45 = vadd.f32 %v8924_v47, %v694_v9  ;;  %v674_v46 = vmul.f32 %v8355_v28, %v8978_v48 }
 0x1f6   : > { %v717_v38 = vadd.f32 %v8924_v47, %v695_v43  ;;  %v675_v50 = vmul.f32 %v8357_v44, %v8981_v41 }
 0x1f7   : > { %6965 = vmatmul.mubr.msk.f32.gmra.mrb[10].mxu1 %vm467_vm0, %v716_v45  ;;  %v696_v23 = vmul.f32 %v8918_v42, %v674_v46 }
 0x1f8   : > { %v8359_v51 = vpop.eup %8358  ;;  %6967 = vmatprep.mubr.msk.f32.mxu1 %vm467_vm0, %v717_v38  ;;  %v697_v2 = vmul.f32 %v8918_v42, %v675_v50 }
 0x1f9   : > { %v718_v52 = vadd.f32 %v8924_v47, %v696_v23  ;;  %v676_v3 = vmul.f32 %v8359_v51, %v8997_v56 }
 0x1fa   : > { %v719_v49 = vadd.f32 %v8924_v47, %v697_v2 }
 0x1fb   : > { %6968 = vmatmul.mubr.msk.f32.gmra.mrb[12].mxu1 %vm467_vm0, %v718_v52  ;;  %v698_v48 = vmul.f32 %v8918_v42, %v676_v3 }
 0x1fc   : > { %6970 = vmatprep.mubr.msk.f32.mxu1 %vm467_vm0, %v719_v49 }
 0x1fd   : > { %v720_v41 = vadd.f32 %v8924_v47, %v698_v48 }
 0x1ff   : > { %6971 = vmatmul.mubr.msk.f32.gmra.mrb[14].mxu1 %vm467_vm0, %v720_v41 }
 0x221   : > { %v6951_v20 = vpop.f32.mrb[0].mxu1 }
 0x222   : > { %v852_v56 = vadd.f32 %v6951_v20, %v9040_v53  ;;  %v846_v57 = vpop.f32.mrb[1].mxu1 }
 0x223   : > { %v847_v60 = vadd.f32 %v9040_v53, %v846_v57 }
 0x224   : > { %v9088_v17 = vmul.f32 0.35355338, %v852_v56 }
 0x225   : > { %v6954_v61 = vpop.f32.mrb[2].mxu1  ;;  %v9044_v42 = vpack.i.bf16 %v852_v56, %v847_v60  ;;  %v9046_v0 = vmul.f32 0.35355338, %v847_v60 }
 0x226   : > { %v862_v47 = vadd.f32 %v6954_v61, %v9040_v53  ;;  %v856_v1 = vpop.f32.mrb[3].mxu1 }
 0x227   : > { %v857_v4 = vadd.f32 %v9040_v53, %v856_v1  ;;  %8009 = vrot.lane.b32.xlu0 %v9044_v42, %s8708_s16  ;;  %6989 = vmatprep.mubr.msk.f32.mxu1 %vm969_vm1, %v9046_v0 }
 0x228   : > { %v9096_v59 = vmul.f32 0.35355338, %v862_v47 }
 0x229   : > { %v6957_v5 = vpop.f32.mrb[4].mxu1  ;;  %v9054_v6 = vpack.i.bf16 %v862_v47, %v857_v4  ;;  %v9076_v15 = vmul.f32 0.35355338, %v857_v4 }
 0x22a   : > { %v872_v54 = vadd.f32 %v6957_v5, %v9040_v53  ;;  %v866_v7 = vpop.f32.mrb[5].mxu1 }
 0x22b   : > { %v867_v8 = vadd.f32 %v9040_v53, %v866_v7  ;;  %8014 = vrot.lane.b32.xlu1 %v9054_v6, %s8708_s16  ;;  %8029 = vrot.lane.b32.xlu0 %v9044_v42, %s8709_s17 }
 0x22c   : > { %v9102_v18 = vmul.f32 0.35355338, %v872_v54 }
 0x22d   : > { %v6960_v10 = vpop.f32.mrb[6].mxu1  ;;  %v9062_v21 = vpack.i.bf16 %v872_v54, %v867_v8  ;;  %v9082_v16 = vmul.f32 0.35355338, %v867_v8 }
 0x22e   : > { %v882_v11 = vadd.f32 %v6960_v10, %v9040_v53  ;;  %v876_v12 = vpop.f32.mrb[7].mxu1 }
 0x22f   : > { %v877_v13 = vadd.f32 %v9040_v53, %v876_v12  ;;  %8019 = vrot.lane.b32.xlu1 %v9062_v21, %s8708_s16  ;;  %8039 = vrot.lane.b32.xlu0 %v9062_v21, %s8709_s17 }
 0x230   : > { %v9108_v29 = vmul.f32 0.35355338, %v882_v11 }
 0x231   : > { %v9070_v14 = vpack.i.bf16 %v882_v11, %v877_v13  ;;  %v9090_v58 = vmul.f32 0.35355338, %v877_v13 }
 0x233   : > { %8024 = vrot.lane.b32.xlu1 %v9070_v14, %s8708_s16  ;;  %1357 = vrot.lane.b32.xlu0 %v9046_v0, %s8710_s18 }
 0x237   : > { %8034 = vrot.lane.b32.xlu1 %v9054_v6, %s8709_s17  ;;  %1361 = vrot.lane.b32.xlu0 %v9076_v15, %s8710_s18 }
 0x23b   : > { %8044 = vrot.lane.b32.xlu1 %v9070_v14, %s8709_s17  ;;  %1365 = vrot.lane.b32.xlu0 %v9082_v16, %s8710_s18 }
 0x23f   : > { %1359 = vrot.lane.b32.xlu1 %v9088_v17, %s8710_s18  ;;  %1369 = vrot.lane.b32.xlu0 %v9090_v58, %s8710_s18 }
 0x243   : > { %1363 = vrot.lane.b32.xlu1 %v9096_v59, %s8710_s18  ;;  %8049 = vrot.lane.b32.xlu0 %v9044_v42, %s8711_s19 }
 0x247   : > { %1367 = vrot.lane.b32.xlu1 %v9102_v18, %s8710_s18  ;;  %8059 = vrot.lane.b32.xlu0 %v9062_v21, %s8711_s19 }
 0x24b   : > { %1371 = vrot.lane.b32.xlu1 %v9108_v29, %s8710_s18  ;;  %2025 = vrot.lane.b32.xlu0 %v9046_v0, %s8712_s20 }
 0x24f   : > { %8054 = vrot.lane.b32.xlu1 %v9054_v6, %s8711_s19  ;;  %2029 = vrot.lane.b32.xlu0 %v9076_v15, %s8712_s20 }
 0x253   : > { %8064 = vrot.lane.b32.xlu1 %v9070_v14, %s8711_s19  ;;  %2033 = vrot.lane.b32.xlu0 %v9082_v16, %s8712_s20 }
 0x257   : > { %2027 = vrot.lane.b32.xlu1 %v9088_v17, %s8712_s20  ;;  %8069 = vrot.lane.b32.xlu0 %v9044_v42, %s8713_s21 }
 0x25b   : > { %2031 = vrot.lane.b32.xlu1 %v9096_v59, %s8712_s20  ;;  %8079 = vrot.lane.b32.xlu0 %v9062_v21, %s8713_s21 }
 0x25f   : > { %2035 = vrot.lane.b32.xlu1 %v9102_v18, %s8712_s20  ;;  %2037 = vrot.lane.b32.xlu0 %v9090_v58, %s8712_s20 }
 0x263   : > { %2039 = vrot.lane.b32.xlu1 %v9108_v29, %s8712_s20 }
 0x267   : > { %8074 = vrot.lane.b32.xlu1 %v9054_v6, %s8713_s21 }
 0x299   : > { %v8010_v19 = vpop.permute.xlu0 %8009 }
 0x29a   : > { %v8012_v22 = vunpack.i.h.bf16 %v8010_v19  ;;  %v8011_v24 = vunpack.i.l.bf16 %v8010_v19 }
 0x29c   : > { %v7605_v26 = vpack.c.bf16 %v8012_v22, %v8011_v24 }
 0x29d   : > { %v8015_v27 = vpop.permute.xlu1 %8014  ;;  %v8030_v30 = vpop.permute.xlu0 %8029 }
 0x29e   : > { %v8017_v31 = vunpack.i.h.bf16 %v8015_v27  ;;  %v8016_v32 = vunpack.i.l.bf16 %v8015_v27  ;;  %7607 = vmatprep.subr.msk.bf16.mxu1 %vm9140_vm2, %v7605_v26  ;;  %v8032_v50 = vunpack.i.h.bf16 %v8030_v30  ;;  %v8031_v23 = vunpack.i.l.bf16 %v8030_v30 }
 0x29f   : > { %7610 = vmatpush3.bf16.xpose.msk.msra.mxu1 %vm9140_vm2, %v7605_v26 }
 0x2a0   : > { %v7611_v33 = vpack.c.bf16 %v8017_v31, %v8016_v32  ;;  %v7645_v52 = vpack.c.bf16 %v8032_v50, %v8031_v23 }
 0x2a1   : > { %v8020_v34 = vpop.permute.xlu1 %8019  ;;  %v8040_v62 = vpop.permute.xlu0 %8039 }
 0x2a2   : > { %v8022_v55 = vunpack.i.h.bf16 %v8020_v34  ;;  %v8021_v63 = vunpack.i.l.bf16 %v8020_v34  ;;  %7613 = vmatprep.subr.msk.bf16.mxu1 %vm9140_vm2, %v7611_v33  ;;  %v8042_v47 = vunpack.i.h.bf16 %v8040_v62  ;;  %v8041_v1 = vunpack.i.l.bf16 %v8040_v62 }
 0x2a4   : > { %v7617_v36 = vpack.c.bf16 %v8022_v55, %v8021_v63  ;;  %v7657_v54 = vpack.c.bf16 %v8042_v47, %v8041_v1 }
 0x2a5   : > { %v8025_v35 = vpop.permute.xlu1 %8024  ;;  %v1358_v39 = vpop.permute.xlu0 %1357 }
 0x2a6   : > { %v8027_v9 = vunpack.i.h.bf16 %v8025_v35  ;;  %v8026_v28 = vunpack.i.l.bf16 %v8025_v35 }
 0x2a7   : > { %7616 = vmatpush3.bf16.xpose.msk.msra.mxu1 %vm9140_vm2, %v7611_v33 }
 0x2a8   : > { %7619 = vmatprep.subr.msk.bf16.mxu1 %vm9140_vm2, %v7617_v36  ;;  %v7623_v45 = vpack.c.bf16 %v8027_v9, %v8026_v28 }
 0x2a9   : > { %v8035_v37 = vpop.permute.xlu1 %8034  ;;  %v9154_v40 = vpop.permute.xlu0 %1361 }
 0x2aa   : > { %v8037_v48 = vunpack.i.h.bf16 %v8035_v37  ;;  %v8036_v41 = vunpack.i.l.bf16 %v8035_v37 }
 0x2ac   : > { %v7651_v57 = vpack.c.bf16 %v8037_v48, %v8036_v41 }
 0x2ad   : > { %v8045_v43 = vpop.permute.xlu1 %8044  ;;  %v9156_v44 = vpop.permute.xlu0 %1365 }
 0x2ae   : > { %v8047_v19 = vunpack.i.h.bf16 %v8045_v43  ;;  %v8046_v22 = vunpack.i.l.bf16 %v8045_v43 }
 0x2af   : > { %7622 = vmatpush3.bf16.xpose.msk.msra.mxu1 %vm9140_vm2, %v7617_v36 }
 0x2b0   : > { %7625 = vmatprep.subr.msk.bf16.mxu1 %vm9140_vm2, %v7623_v45  ;;  %v7663_v55 = vpack.c.bf16 %v8047_v19, %v8046_v22 }
 0x2b1   : > { %v9162_v46 = vpop.permute.xlu1 %1359  ;;  %v9164_v38 = vpop.permute.xlu0 %1369 }
 0x2b5   : > { %v9166_v51 = vpop.permute.xlu1 %1363  ;;  %v9168_v2 = vpop.permute.xlu0 %8049 }
 0x2b6   : > { %v8052_v28 = vunpack.i.h.bf16 %v9168_v2  ;;  %v8051_v43 = vunpack.i.l.bf16 %v9168_v2 }
 0x2b7   : > { %7628 = vmatpush3.bf16.xpose.msk.msra.mxu1 %vm9140_vm2, %v7623_v45 }
 0x2b8   : > { %7647 = vmatprep.subr.msk.bf16.mxu1 %vm9140_vm2, %v7645_v52 }
 0x2b9   : > { %v9174_v3 = vpop.permute.xlu1 %1367  ;;  %v9176_v49 = vpop.permute.xlu0 %8059 }
 0x2bd   : > { %v9178_v20 = vpop.permute.xlu1 %1371  ;;  %v9180_v56 = vpop.permute.xlu0 %2025 }
 0x2be   : > { %6990 = vmatmul.mubr.msk.f32.vlgmr.msra.gmra.mrb[16].mxu1 %vm969_vm1, %v9088_v17 }
 0x2bf   : > { %6992 = vmatprep.mubr.msk.f32.mxu1 %vm969_vm1, %v9076_v15  ;;  %7650 = vmatpush3.bf16.xpose.msk.msra.mxu1 %vm9140_vm2, %v7645_v52 }
 0x2c0   : > { %7653 = vmatprep.subr.msk.bf16.mxu1 %vm9140_vm2, %v7651_v57 }
 0x2c1   : > { %v9190_v60 = vpop.permute.xlu1 %8054  ;;  %v9192_v61 = vpop.permute.xlu0 %2029 }
 0x2c2   : > { %6993 = vmatmul.mubr.msk.f32.gmra.mrb[18].mxu1 %vm969_vm1, %v9096_v59  ;;  %v8056_v19 = vunpack.i.l.bf16 %v9190_v60 }
 0x2c3   : > { %6995 = vmatprep.mubr.msk.f32.mxu1 %vm969_vm1, %v9082_v16 }
 0x2c5   : > { %v9198_v4 = vpop.permute.xlu1 %8064  ;;  %v9200_v5 = vpop.permute.xlu0 %2033 }
 0x2c6   : > { %6996 = vmatmul.mubr.msk.f32.gmra.mrb[20].mxu1 %vm969_vm1, %v9102_v18  ;;  %v6963_v7 = vpop.f32.mrb[8].mxu1 }
 0x2c7   : > { %6998 = vmatprep.mubr.msk.f32.mxu1 %vm969_vm1, %v9090_v58  ;;  %7656 = vmatpush3.bf16.xpose.msk.msra.mxu1 %vm9140_vm2, %v7651_v57  ;;  %v9211_v8 = vadd.f32 %v6963_v7, %v9040_v53  ;;  %v886_v10 = vpop.f32.mrb[9].mxu1  ;;  %v7685_v57 = vpack.c.bf16 %v8052_v28, %v8051_v43 }
 0x2c8   : > { %7659 = vmatprep.subr.msk.bf16.mxu1 %vm9140_vm2, %v7657_v54  ;;  %v9216_v13 = vadd.f32 %v9040_v53, %v886_v10 }
 0x2c9   : > { %v9213_v11 = vpop.permute.xlu1 %2027  ;;  %v8070_v12 = vpop.permute.xlu0 %8069 }
 0x2ca   : > { %6999 = vmatmul.mubr.msk.f32.gmra.mrb[22].mxu1 %vm969_vm1, %v9108_v29  ;;  %v8072_v24 = vunpack.i.h.bf16 %v8070_v12  ;;  %v8071_v26 = vunpack.i.l.bf16 %v8070_v12  ;;  %v6966_v27 = vpop.f32.mrb[10].mxu1  ;;  %v9223_v30 = vpack.i.bf16 %v9211_v8, %v9216_v13 }
 0x2cb   : > { %7045 = vmatprep.mubr.msk.f32.mxu1 %vm969_vm1, %v1358_v39  ;;  %v9226_v32 = vadd.f32 %v6966_v27, %v9040_v53  ;;  %v896_v33 = vpop.f32.mrb[11].mxu1 }
 0x2cc   : > { %v7629_v31 = vpack.c.bf16 %v8072_v24, %v8071_v26  ;;  %v9231_v62 = vadd.f32 %v9040_v53, %v896_v33 }
 0x2cd   : > { %v9228_v34 = vpop.permute.xlu1 %2031  ;;  %v8080_v47 = vpop.permute.xlu0 %8079 }
 0x2ce   : > { %7630 = vmatprep.subr.bf16.mxu0 %v7629_v31  ;;  %v6969_v63 = vpop.f32.mrb[12].mxu1  ;;  %v9237_v35 = vpack.i.bf16 %v9226_v32, %v9231_v62  ;;  %v8081_v7 = vunpack.i.l.bf16 %v8080_v47 }
 0x2cf   : > { %7632 = vmatpush3.bf16.msra.mxu0 %v7629_v31  ;;  %7662 = vmatpush3.bf16.xpose.msk.msra.mxu1 %vm9140_vm2, %v7657_v54  ;;  %v9242_v39 = vadd.f32 %v6969_v63, %v9040_v53  ;;  %v906_v36 = vpop.f32.mrb[13].mxu1  ;;  %v8082_v54 = vunpack.i.h.bf16 %v8080_v47 }
 0x2d0   : > { %7665 = vmatprep.subr.msk.bf16.mxu1 %vm9140_vm2, %v7663_v55  ;;  %v9245_v9 = vadd.f32 %v9040_v53, %v906_v36 }
 0x2d1   : > { %v2036_v37 = vpop.permute.xlu1 %2035  ;;  %v7637_v24 = vpack.c.bf16 %v8082_v54, %v8081_v7 }
 0x2d2   : > { %v6972_v45 = vpop.f32.mrb[14].mxu1  ;;  %v9251_v50 = vpack.i.bf16 %v9242_v39, %v9245_v9 }
 0x2d3   : > { %v9254_v23 = vadd.f32 %v6972_v45, %v9040_v53  ;;  %v916_v52 = vpop.f32.mrb[15].mxu1 }
 0x2d4   : > { %v9257_v41 = vadd.f32 %v9040_v53, %v916_v52  ;;  %v8057_v53 = vunpack.i.h.bf16 %v9190_v60  ;;  %v8062_v60 = vunpack.i.h.bf16 %v9176_v49 }
 0x2d5   : > { %v2040_v48 = vpop.permute.xlu1 %2039 }
 0x2d6   : > { %v9263_v2 = vpack.i.bf16 %v9254_v23, %v9257_v41  ;;  %v7691_v26 = vpack.c.bf16 %v8057_v53, %v8056_v19 }
 0x2d7   : > { %7668 = vmatpush3.bf16.xpose.msk.msra.mxu1 %vm9140_vm2, %v7663_v55 }
 0x2d8   : > { %7687 = vmatprep.subr.msk.bf16.mxu1 %vm9140_vm2, %v7685_v57 }
 0x2d9   : > { %v8075_v1 = vpop.permute.xlu1 %8074 }
 0x2da   : > { %v8077_v10 = vunpack.i.h.bf16 %v8075_v1  ;;  %v8076_v12 = vunpack.i.l.bf16 %v8075_v1 }
 0x2dc   : > { %v7633_v22 = vpack.c.bf16 %v8077_v10, %v8076_v12 }
 0x2de   : > { %7634 = vmatprep.subr.bf16.mxu0 %v7633_v22  ;;  %7046 = vmatmul.mubr.msk.f32.vlgmr.msra.gmra.mrb[24].mxu1 %vm969_vm1, %v9162_v46  ;;  %v8061_v46 = vunpack.i.l.bf16 %v9176_v49 }
 0x2df   : > { %7636 = vmatpush3.bf16.msra.mxu0 %v7633_v22  ;;  %7048 = vmatprep.mubr.msk.f32.mxu1 %vm969_vm1, %v9154_v40 }
 0x2e0   : > { %7690 = vmatpush3.bf16.xpose.msk.msra.mxu1 %vm9140_vm2, %v7685_v57  ;;  %7638 = vmatprep.subr.bf16.mxu0 %v7637_v24  ;;  %v7697_v40 = vpack.c.bf16 %v8062_v60, %v8061_v46 }
 0x2e1   : > { %7693 = vmatprep.subr.msk.bf16.mxu1 %vm9140_vm2, %v7691_v26 }
 0x2e2   : > { %7049 = vmatmul.mubr.msk.f32.gmra.mrb[26].mxu1 %vm969_vm1, %v9166_v51  ;;  %v8067_v51 = vunpack.i.h.bf16 %v9198_v4 }
 0x2e3   : > { %7640 = vmatpush3.bf16.msra.mxu0 %v7637_v24  ;;  %7051 = vmatprep.mubr.msk.f32.mxu1 %vm969_vm1, %v9156_v44  ;;  %v8066_v44 = vunpack.i.l.bf16 %v9198_v4 }
 0x2e6   : > { %7052 = vmatmul.mubr.msk.f32.gmra.mrb[28].mxu1 %vm969_vm1, %v9174_v3  ;;  %v7703_v3 = vpack.c.bf16 %v8067_v51, %v8066_v44 }
 0x2e7   : > { %7054 = vmatprep.mubr.msk.f32.mxu1 %vm969_vm1, %v9164_v38  ;;  %v2038_v38 = vpop.permute.xlu0 %2037 }
 0x2e8   : > { %7696 = vmatpush3.bf16.xpose.msk.msra.mxu1 %vm9140_vm2, %v7691_v26 }
 0x2e9   : > { %7699 = vmatprep.subr.msk.bf16.mxu1 %vm9140_vm2, %v7697_v40 }
 0x2ea   : > { %7055 = vmatmul.mubr.msk.f32.gmra.mrb[30].mxu1 %vm969_vm1, %v9178_v20 }
 0x2eb   : > { %7129 = vmatprep.mubr.msk.f32.mxu1 %vm969_vm1, %v9180_v56 }
 0x2f0   : > { %7702 = vmatpush3.bf16.xpose.msk.msra.mxu1 %vm9140_vm2, %v7697_v40 }
 0x2f1   : > { %7705 = vmatprep.subr.msk.bf16.mxu1 %vm9140_vm2, %v7703_v3 }
 0x2f8   : > { %7708 = vmatpush3.bf16.xpose.msk.msra.mxu1 %vm9140_vm2, %v7703_v3 }
 0x2ff   : > { %7130 = vmatmul.mubr.msk.f32.vlgmr.msra.gmra.mrb[32].mxu1 %vm969_vm1, %v9213_v11 }
 0x300   : > { %7132 = vmatprep.mubr.msk.f32.mxu1 %vm969_vm1, %v9192_v61 }
 0x303   : > { %7133 = vmatmul.mubr.msk.f32.gmra.mrb[34].mxu1 %vm969_vm1, %v9228_v34 }
 0x304   : > { %7135 = vmatprep.mubr.msk.f32.mxu1 %vm969_vm1, %v9200_v5 }
 0x307   : > { %7136 = vmatmul.mubr.msk.f32.gmra.mrb[36].mxu1 %vm969_vm1, %v2036_v37 }
 0x308   : > { %7138 = vmatprep.mubr.msk.f32.mxu1 %vm969_vm1, %v2038_v38 }
 0x30b   : > { %7139 = vmatmul.mubr.msk.f32.gmra.mrb[38].mxu1 %vm969_vm1, %v2040_v48 }
 0x391   : > { %v9314_v49 = vpop.f32.mrb[16].mxu1 }
 0x392   : > { %v9316_v20 = vpop.f32.mrb[17].mxu1  ;;  %v1119_v56 = vsel %vm1115_vm3, %v9314_v49, -inf }
 0x393   : > { %1120 = vmax.xlane.f32.xlu1 %v1119_v56  ;;  %v1116_v61 = vsel %vm1115_vm3, %v9316_v20, -inf }
 0x394   : > { %1117 = vmax.xlane.f32.xlu0 %v1116_v61 }
 0x395   : > { %v9322_v4 = vpop.f32.mrb[18].mxu1 }
 0x396   : > { %v9324_v5 = vpop.f32.mrb[19].mxu1  ;;  %v1125_v11 = vsel %vm1115_vm3, %v9322_v4, -inf }
 0x397   : > { %1126 = vmax.xlane.f32.xlu1 %v1125_v11  ;;  %v1122_v27 = vsel %vm1115_vm3, %v9324_v5, -inf }
 0x398   : > { %1123 = vmax.xlane.f32.xlu0 %v1122_v27 }
 0x399   : > { %v9330_v31 = vpop.f32.mrb[20].mxu1 }
 0x39a   : > { %v9332_v33 = vpop.f32.mrb[21].mxu1  ;;  %v1131_v34 = vsel %vm1115_vm3, %v9330_v31, -inf }
 0x39b   : > { %v1128_v37 = vsel %vm1115_vm3, %v9332_v33, -inf }
 0x39c   : > { %1132 = vmax.xlane.f32.xlu0 %v1131_v34 }
 0x39d   : > { %v9336_v55 = vpop.f32.mrb[22].mxu1 }
 0x39e   : > { %v9338_v63 = vpop.f32.mrb[23].mxu1  ;;  %v1137_v36 = vsel %vm1115_vm3, %v9336_v55, -inf }
 0x39f   : > { %1138 = vmax.xlane.f32.xlu1 %v1137_v36  ;;  %v1134_v28 = vsel %vm1115_vm3, %v9338_v63, -inf }
 0x3a0   : > { %1129 = vmax.xlane.f32.xlu0 %v1128_v37 }
 0x3a4   : > { %1135 = vmax.xlane.f32.xlu0 %v1134_v28 }
 0x3b1   : > { %v9346_v43 = vpop.f32.mrb[24].mxu1 }
 0x3b2   : > { %v9348_v45 = vpop.f32.mrb[25].mxu1  ;;  %v1529_v52 = vsel %vm1115_vm3, %v9346_v43, -inf }
 0x3b3   : > { %1530 = vmax.xlane.f32.xlu1 %v1529_v52  ;;  %v1526_v48 = vsel %vm1115_vm3, %v9348_v45, -inf }
 0x3b4   : > { %1527 = vmax.xlane.f32.xlu0 %v1526_v48 }
 0x3b5   : > { %v9354_v57 = vpop.f32.mrb[26].mxu1 }
 0x3b6   : > { %v9356_v47 = vpop.f32.mrb[27].mxu1  ;;  %v1535_v1 = vsel %vm1115_vm3, %v9354_v57, -inf }
 0x3b7   : > { %1536 = vmax.xlane.f32.xlu1 %v1535_v1  ;;  %v1532_v54 = vsel %vm1115_vm3, %v9356_v47, -inf }
 0x3b8   : > { %1533 = vmax.xlane.f32.xlu0 %v1532_v54 }
 0x3b9   : > { %v9362_v7 = vpop.f32.mrb[28].mxu1 }
 0x3ba   : > { %v9364_v10 = vpop.f32.mrb[29].mxu1  ;;  %v1541_v12 = vsel %vm1115_vm3, %v9362_v7, -inf }
 0x3bb   : > { %1542 = vmax.xlane.f32.xlu1 %v1541_v12  ;;  %v1538_v53 = vsel %vm1115_vm3, %v9364_v10, -inf }
 0x3bc   : > { %1539 = vmax.xlane.f32.xlu0 %v1538_v53 }
 0x3bd   : > { %v9370_v19 = vpop.f32.mrb[30].mxu1 }
 0x3be   : > { %v9372_v22 = vpop.f32.mrb[31].mxu1  ;;  %v1547_v24 = vsel %vm1115_vm3, %v9370_v19, -inf }
 0x3bf   : > { %1548 = vmax.xlane.f32.xlu1 %v1547_v24  ;;  %v1544_v56 = vsel %vm1115_vm3, %v9372_v22, -inf }
 0x3d0   : > { %8084 = vrot.lane.b32.xlu1 %v9070_v14, %s8713_s21 }
 0x3d2   : > { %v9378_v26 = vpop.f32.mrb[32].mxu1  ;;  %8089 = vrot.lane.b32.xlu0 %v9044_v42, %s8714_s22 }
 0x3d3   : > { %v9382_v60 = vpop.f32.mrb[33].mxu1 }
 0x3d6   : > { %v9384_v46 = vpop.f32.mrb[34].mxu1 }
 0x3d7   : > { %v9386_v40 = vpop.f32.mrb[35].mxu1 }
 0x3da   : > { %v9388_v51 = vpop.f32.mrb[36].mxu1 }
 0x3db   : > { %v9390_v44 = vpop.f32.mrb[37].mxu1 }
 0x3de   : > { %v9392_v3 = vpop.f32.mrb[38].mxu1 }
 0x3df   : > { %v9394_v38 = vpop.f32.mrb[39].mxu1 }
 0x3f1   : > { %1545 = vmax.xlane.f32.xlu0 %v1544_v56 }
 0x407   : > { %8094 = vrot.lane.b32.xlu0 %v9054_v6, %s8714_s22 }
 0x420   : > { %v1121_v61 = vpop.xlane.xlu1 %1120 }
 0x421   : > { %v1141_v11 = vsub.f32 %v9314_v49, %v1121_v61  ;;  %v1118_v27 = vpop.xlane.xlu0 %1117 }
 0x422   : > { %v1140_v34 = vsub.f32 %v9316_v20, %v1118_v27 }
 0x423   : > { %v1150_v36 = vmul.f32 1.442695, %v1141_v11 }
 0x424   : > { %v1148_v37 = vmul.f32 1.442695, %v1140_v34  ;;  %v1127_v28 = vpop.xlane.xlu1 %1126 }
 0x425   : > { %8360 = vpow2.f32 %v1150_v36  ;;  %v1143_v52 = vsub.f32 %v9322_v4, %v1127_v28  ;;  %v1124_v48 = vpop.xlane.xlu0 %1123 }
 0x426   : > { %8362 = vpow2.f32 %v1148_v37  ;;  %v1142_v1 = vsub.f32 %v9324_v5, %v1124_v48 }
 0x427   : > { %v1154_v54 = vmul.f32 1.442695, %v1143_v52 }
 0x428   : > { %v1152_v12 = vmul.f32 1.442695, %v1142_v1 }
 0x429   : > { %8364 = vpow2.f32 %v1154_v54  ;;  %v1133_v53 = vpop.xlane.xlu0 %1132 }
 0x42a   : > { %8366 = vpow2.f32 %v1152_v12  ;;  %v1145_v49 = vsub.f32 %v9330_v31, %v1133_v53 }
 0x42c   : > { %v1158_v24 = vmul.f32 1.442695, %v1145_v49  ;;  %v1139_v56 = vpop.xlane.xlu1 %1138 }
 0x42d   : > { %v1147_v20 = vsub.f32 %v9336_v55, %v1139_v56  ;;  %v1130_v61 = vpop.xlane.xlu0 %1129 }
 0x42e   : > { %8368 = vpow2.f32 %v1158_v24  ;;  %v1144_v11 = vsub.f32 %v9332_v33, %v1130_v61 }
 0x42f   : > { %v9407_v4 = vpop.eup %8360  ;;  %v1162_v27 = vmul.f32 1.442695, %v1147_v20 }
 0x430   : > { %v9409_v34 = vpop.eup %8362  ;;  %v1156_v5 = vmul.f32 1.442695, %v1144_v11  ;;  %v1167_v36 = vsel %vm1115_vm3, %v9407_v4, 0.0 }
 0x431   : > { %8370 = vpow2.f32 %v1162_v27  ;;  %1168 = vadd.xlane.f32.xlu1 %v1167_v36  ;;  %v1136_v31 = vpop.xlane.xlu0 %1135  ;;  %v1164_v37 = vsel %vm1115_vm3, %v9409_v34, 0.0 }
 0x432   : > { %8372 = vpow2.f32 %v1156_v5  ;;  %v1146_v55 = vsub.f32 %v9338_v63, %v1136_v31  ;;  %1165 = vadd.xlane.f32.xlu0 %v1164_v37 }
 0x433   : > { %v9416_v33 = vpop.eup %8364 }
 0x434   : > { %v9418_v28 = vpop.eup %8366  ;;  %v1160_v52 = vmul.f32 1.442695, %v1146_v55  ;;  %v1173_v48 = vsel %vm1115_vm3, %v9416_v33, 0.0 }
 0x435   : > { %1174 = vadd.xlane.f32.xlu1 %v1173_v48  ;;  %v1170_v1 = vsel %vm1115_vm3, %v9418_v28, 0.0 }
 0x436   : > { %8374 = vpow2.f32 %v1160_v52  ;;  %1171 = vadd.xlane.f32.xlu0 %v1170_v1 }
 0x438   : > { %v9424_v54 = vpop.eup %8368 }
 0x439   : > { %v1179_v63 = vsel %vm1115_vm3, %v9424_v54, 0.0 }
 0x43a   : > { %1180 = vadd.xlane.f32.xlu1 %v1179_v63 }
 0x43b   : > { %v9428_v12 = vpop.eup %8370 }
 0x43c   : > { %v9430_v53 = vpop.eup %8372  ;;  %v1185_v49 = vsel %vm1115_vm3, %v9428_v12, 0.0 }
 0x43d   : > { %v1176_v24 = vsel %vm1115_vm3, %v9430_v53, 0.0 }
 0x43e   : > { %1186 = vadd.xlane.f32.xlu1 %v1185_v49  ;;  %1177 = vadd.xlane.f32.xlu0 %v1176_v24 }
 0x440   : > { %v9436_v56 = vpop.eup %8374  ;;  %v1531_v20 = vpop.xlane.xlu1 %1530 }
 0x441   : > { %v1551_v61 = vsub.f32 %v9346_v43, %v1531_v20  ;;  %v1528_v11 = vpop.xlane.xlu0 %1527  ;;  %v1182_v27 = vsel %vm1115_vm3, %v9436_v56, 0.0 }
 0x442   : > { %v1550_v5 = vsub.f32 %v9348_v45, %v1528_v11  ;;  %1183 = vadd.xlane.f32.xlu1 %v1182_v27 }
 0x443   : > { %v1560_v36 = vmul.f32 1.442695, %v1551_v61 }
 0x444   : > { %v1558_v31 = vmul.f32 1.442695, %v1550_v5  ;;  %v1537_v37 = vpop.xlane.xlu1 %1536 }
 0x445   : > { %8376 = vpow2.f32 %v1560_v36  ;;  %v1553_v55 = vsub.f32 %v9354_v57, %v1537_v37  ;;  %v1534_v52 = vpop.xlane.xlu0 %1533 }
 0x446   : > { %8378 = vpow2.f32 %v1558_v31  ;;  %v1552_v48 = vsub.f32 %v9356_v47, %v1534_v52 }
 0x447   : > { %v1564_v1 = vmul.f32 1.442695, %v1553_v55 }
 0x448   : > { %v1562_v63 = vmul.f32 1.442695, %v1552_v48  ;;  %v1543_v43 = vpop.xlane.xlu1 %1542 }
 0x449   : > { %8380 = vpow2.f32 %v1564_v1  ;;  %v1555_v49 = vsub.f32 %v9362_v7, %v1543_v43  ;;  %v1540_v24 = vpop.xlane.xlu0 %1539 }
 0x44a   : > { %v1554_v45 = vsub.f32 %v9364_v10, %v1540_v24  ;;  %8382 = vpow2.f32 %v1562_v63 }
 0x44b   : > { %v1568_v20 = vmul.f32 1.442695, %v1555_v49 }
 0x44c   : > { %v1566_v61 = vmul.f32 1.442695, %v1554_v45  ;;  %v1549_v11 = vpop.xlane.xlu1 %1548 }
 0x44d   : > { %v1557_v27 = vsub.f32 %v9370_v19, %v1549_v11  ;;  %v8090_v57 = vpop.permute.xlu0 %8089 }
 0x44e   : > { %8384 = vpow2.f32 %v1566_v61  ;;  %v8092_v31 = vunpack.i.h.bf16 %v8090_v57  ;;  %v8091_v10 = vunpack.i.l.bf16 %v8090_v57 }
 0x44f   : > { %v9447_v5 = vpop.eup %8376  ;;  %8386 = vpow2.f32 %v1568_v20  ;;  %v1572_v47 = vmul.f32 1.442695, %v1557_v27 }
 0x450   : > { %v9449_v36 = vpop.eup %8378  ;;  %v8085_v37 = vpop.permute.xlu1 %8084  ;;  %v1577_v7 = vsel %vm1115_vm3, %v9447_v5, 0.0  ;;  %v9461_v49 = vpack.c.bf16 %v8092_v31, %v8091_v10 }
 0x451   : > { %v8087_v55 = vunpack.i.h.bf16 %v8085_v37  ;;  %v8086_v52 = vunpack.i.l.bf16 %v8085_v37  ;;  %1578 = vadd.xlane.f32.xlu1 %v1577_v7  ;;  %v1574_v19 = vsel %vm1115_vm3, %v9449_v36, 0.0  ;;  %8388 = vpow2.f32 %v1572_v47 }
 0x452   : > { %1575 = vadd.xlane.f32.xlu0 %v1574_v19 }
 0x453   : > { %v9455_v48 = vpop.eup %8380  ;;  %v7641_v1 = vpack.c.bf16 %v8087_v55, %v8086_v52 }
 0x454   : > { %v1583_v63 = vsel %vm1115_vm3, %v9455_v48, 0.0  ;;  %v9459_v43 = vpop.eup %8382 }
 0x455   : > { %7642 = vmatprep.subr.bf16.mxu0 %v7641_v1  ;;  %1584 = vadd.xlane.f32.xlu1 %v1583_v63  ;;  %v1580_v45 = vsel %vm1115_vm3, %v9459_v43, 0.0 }
 0x456   : > { %7644 = vmatpush3.bf16.msra.mxu0 %v7641_v1 }
 0x457   : > { %7670 = vmatprep.subr.bf16.mxu0 %v9461_v49 }
 0x458   : > { %v9464_v24 = vpop.eup %8384 }
 0x459   : > { %v9468_v20 = vpop.eup %8386  ;;  %1581 = vadd.xlane.f32.xlu1 %v1580_v45  ;;  %v1586_v61 = vsel %vm1115_vm3, %v9464_v24, 0.0 }
 0x45a   : > { %1587 = vadd.xlane.f32.xlu0 %v1586_v61  ;;  %v1589_v11 = vsel %vm1115_vm3, %v9468_v20, 0.0 }
 0x45b   : > { %v9474_v27 = vpop.eup %8388 }
 0x45c   : > { %v1595_v57 = vsel %vm1115_vm3, %v9474_v27, 0.0 }
 0x45d   : > { %1590 = vadd.xlane.f32.xlu1 %v1589_v11 }
 0x461   : > { %1596 = vadd.xlane.f32.xlu1 %v1595_v57 }
 0x470   : > { %8104 = vrot.lane.b32.xlu0 %v9070_v14, %s8714_s22 }
 0x474   : > { %8109 = vrot.lane.b32.xlu0 %v9044_v42, %s8715_s23 }
 0x478   : > { %8114 = vrot.lane.b32.xlu0 %v9054_v6, %s8715_s23 }
 0x47c   : > { %8119 = vrot.lane.b32.xlu0 %v9062_v21, %s8715_s23 }
 0x47e   : > { %v1546_v47 = vpop.xlane.xlu0 %1545 }
 0x47f   : > { %v1556_v31 = vsub.f32 %v9372_v22, %v1546_v47 }
 0x480   : > { %2572 = vrot.lane.b32.xlu0 %v9046_v0, %s8716_s24  ;;  %v2194_v0 = vsel %vm1115_vm3, %v9382_v60, -inf }
 0x481   : > { %v1570_v37 = vmul.f32 1.442695, %v1556_v31 }
 0x483   : > { %8390 = vpow2.f32 %v1570_v37 }
 0x484   : > { %2576 = vrot.lane.b32.xlu0 %v9076_v15, %s8716_s24  ;;  %v2200_v15 = vsel %vm1115_vm3, %v9386_v40, -inf }
 0x488   : > { %2580 = vrot.lane.b32.xlu0 %v9082_v16, %s8716_s24  ;;  %v2203_v16 = vsel %vm1115_vm3, %v9384_v46, -inf }
 0x48c   : > { %2584 = vrot.lane.b32.xlu0 %v9090_v58, %s8716_s24  ;;  %v2212_v58 = vsel %vm1115_vm3, %v9394_v38, -inf }
 0x48d   : > { %v9495_v7 = vpop.eup %8390 }
 0x48e   : > { %v1592_v22 = vsel %vm1115_vm3, %v9495_v7, 0.0 }
 0x48f   : > { %1593 = vadd.xlane.f32.xlu1 %v1592_v22 }
 0x4a0   : > { %8099 = vrot.lane.b32.xlu1 %v9062_v21, %s8714_s22 }
 0x4a4   : > { %8124 = vrot.lane.b32.xlu1 %v9070_v14, %s8715_s23 }
 0x4a8   : > { %2574 = vrot.lane.b32.xlu1 %v9088_v17, %s8716_s24  ;;  %v2206_v17 = vsel %vm1115_vm3, %v9390_v44, -inf }
 0x4ab   : > { %2195 = vmax.xlane.f32.xlu0 %v2194_v0 }
 0x4ac   : > { %2578 = vrot.lane.b32.xlu1 %v9096_v59, %s8716_s24  ;;  %v8095_v59 = vpop.permute.xlu0 %8094 }
 0x4ad   : > { %v8097_v63 = vunpack.i.h.bf16 %v8095_v59  ;;  %v8096_v45 = vunpack.i.l.bf16 %v8095_v59  ;;  %v2209_v59 = vsel %vm1115_vm3, %v9388_v51, -inf }
 0x4af   : > { %2201 = vmax.xlane.f32.xlu0 %v2200_v15  ;;  %v7673_v22 = vpack.c.bf16 %v8097_v63, %v8096_v45 }
 0x4b0   : > { %2582 = vrot.lane.b32.xlu1 %v9102_v18, %s8716_s24 }
 0x4b3   : > { %2204 = vmax.xlane.f32.xlu0 %v2203_v16 }
 0x4b4   : > { %2586 = vrot.lane.b32.xlu1 %v9108_v29, %s8716_s24 }
 0x4b7   : > { %2207 = vmax.xlane.f32.xlu0 %v2206_v17 }
 0x4bb   : > { %2213 = vmax.xlane.f32.xlu0 %v2212_v58 }
 0x4be   : > { %v1169_v10 = vpop.xlane.xlu1 %1168 }
 0x4bf   : > { %8392 = vrcp.f32 %v1169_v10  ;;  %v1166_v55 = vpop.xlane.xlu0 %1165 }
 0x4c0   : > { %8394 = vrcp.f32 %v1166_v55 }
 0x4c2   : > { %v1175_v18 = vpop.xlane.xlu1 %1174 }
 0x4c3   : > { %8396 = vrcp.f32 %v1175_v18  ;;  %v1172_v52 = vpop.xlane.xlu0 %1171 }
 0x4c4   : > { %8398 = vrcp.f32 %v1172_v52 }
 0x4c7   : > { %v1181_v19 = vpop.xlane.xlu1 %1180 }
 0x4c8   : > { %8400 = vrcp.f32 %v1181_v19 }
 0x4c9   : > { %v8393_v1 = vpop.eup %8392 }
 0x4ca   : > { %v8395_v29 = vpop.eup %8394  ;;  %v1197_v47 = vmul.f32 %v8393_v1, %v9407_v4 }
 0x4cb   : > { %v1187_v61 = vpop.xlane.xlu1 %1186  ;;  %v1178_v11 = vpop.xlane.xlu0 %1177  ;;  %v1196_v57 = vmul.f32 %v8395_v29, %v9409_v34 }
 0x4cc   : > { %8402 = vrcp.f32 %v1178_v11 }
 0x4cd   : > { %v8397_v31 = vpop.eup %8396  ;;  %7017 = vmatprep.mubr.msk.f32.mxu0 %vm1115_vm3, %v1196_v57  ;;  %8404 = vrcp.f32 %v1187_v61 }
 0x4ce   : > { %v8399_v37 = vpop.eup %8398  ;;  %7018 = vmatmul.mubr.msk.f32.vlgmr.msra.gmra.mrb[0].mxu0 %vm1115_vm3, %v1197_v47  ;;  %v1199_v34 = vmul.f32 %v8397_v31, %v9416_v33 }
 0x4cf   : > { %7672 = vmatpush3.bf16.msra.mxu0 %v9461_v49  ;;  %v1184_v0 = vpop.xlane.xlu1 %1183  ;;  %v1198_v15 = vmul.f32 %v8399_v37, %v9418_v28  ;;  %v2197_v49 = vsel %vm1115_vm3, %v9378_v26, -inf }
 0x4d0   : > { %8406 = vrcp.f32 %v1184_v0  ;;  %7674 = vmatprep.subr.bf16.mxu0 %v7673_v22 }
 0x4d1   : > { %8129 = vrot.lane.b32.xlu0 %v9044_v42, %s8717_s26  ;;  %7020 = vmatprep.mubr.msk.f32.mxu0 %vm1115_vm3, %v1198_v15 }
 0x4d2   : > { %7021 = vmatmul.mubr.msk.f32.gmra.mrb[2].mxu0 %vm1115_vm3, %v1199_v34  ;;  %v8401_v4 = vpop.eup %8400 }
 0x4d3   : > { %7676 = vmatpush3.bf16.msra.mxu0 %v7673_v22  ;;  %v1201_v33 = vmul.f32 %v8401_v4, %v9424_v54  ;;  %v2215_v54 = vsel %vm1115_vm3, %v9392_v3, -inf }
 0x4d6   : > { %v8403_v16 = vpop.eup %8402 }
 0x4d7   : > { %v1200_v28 = vmul.f32 %v8403_v16, %v9430_v53  ;;  %v8405_v17 = vpop.eup %8404 }
 0x4d8   : > { %2198 = vmax.xlane.f32.xlu1 %v2197_v49  ;;  %v1203_v55 = vmul.f32 %v8405_v17, %v9428_v12 }
 0x4d9   : > { %7023 = vmatprep.mubr.msk.f32.mxu0 %vm1115_vm3, %v1200_v28 }
 0x4da   : > { %v8407_v58 = vpop.eup %8406  ;;  %7024 = vmatmul.mubr.msk.f32.gmra.mrb[4].mxu0 %vm1115_vm3, %v1201_v33 }
 0x4db   : > { %v1202_v10 = vmul.f32 %v8407_v58, %v9436_v56 }
 0x4dc   : > { %2210 = vmax.xlane.f32.xlu1 %v2209_v59 }
 0x4dd   : > { %7026 = vmatprep.mubr.msk.f32.mxu0 %vm1115_vm3, %v1202_v10 }
 0x4de   : > { %7027 = vmatmul.mubr.msk.f32.gmra.mrb[6].mxu0 %vm1115_vm3, %v1203_v55  ;;  %v1579_v0 = vpop.xlane.xlu1 %1578 }
 0x4df   : > { %v1576_v53 = vpop.xlane.xlu0 %1575 }
 0x4e0   : > { %8408 = vrcp.f32 %v1576_v53  ;;  %2216 = vmax.xlane.f32.xlu1 %v2215_v54 }
 0x4e1   : > { %8410 = vrcp.f32 %v1579_v0 }
 0x4e2   : > { %v1585_v15 = vpop.xlane.xlu1 %1584 }
 0x4e6   : > { %v1582_v34 = vpop.xlane.xlu1 %1581 }
 0x4e7   : > { %v1588_v18 = vpop.xlane.xlu0 %1587  ;;  %8412 = vrcp.f32 %v1582_v34 }
 0x4e8   : > { %8414 = vrcp.f32 %v1585_v15 }
 0x4e9   : > { %8416 = vrcp.f32 %v1588_v18 }
 0x4ea   : > { %v8409_v52 = vpop.eup %8408  ;;  %v1591_v4 = vpop.xlane.xlu1 %1590 }
 0x4eb   : > { %v8105_v19 = vpop.permute.xlu0 %8104  ;;  %v1606_v1 = vmul.f32 %v8409_v52, %v9449_v36  ;;  %8418 = vrcp.f32 %v1591_v4 }
 0x4ec   : > { %v8107_v17 = vunpack.i.h.bf16 %v8105_v19  ;;  %v8106_v33 = vunpack.i.l.bf16 %v8105_v19 }
 0x4ed   : > { %7073 = vmatprep.mubr.msk.f32.mxu0 %vm1115_vm3, %v1606_v1 }
 0x4ee   : > { %v1597_v16 = vpop.xlane.xlu1 %1596  ;;  %v7681_v52 = vpack.c.bf16 %v8107_v17, %v8106_v33 }
 0x4ef   : > { %v8110_v56 = vpop.permute.xlu0 %8109 }
 0x4f0   : > { %v8112_v29 = vunpack.i.h.bf16 %v8110_v56  ;;  %v8111_v63 = vunpack.i.l.bf16 %v8110_v56  ;;  %v8411_v56 = vpop.eup %8410 }
 0x4f1   : > { %8134 = vrot.lane.b32.xlu1 %v9054_v6, %s8717_s26  ;;  %v1607_v18 = vmul.f32 %v8411_v56, %v9447_v5 }
 0x4f2   : > { %v7725_v12 = vpack.c.bf16 %v8112_v29, %v8111_v63  ;;  %v8413_v63 = vpop.eup %8412 }
 0x4f3   : > { %v8115_v45 = vpop.permute.xlu0 %8114 }
 0x4f4   : > { %v8117_v61 = vunpack.i.h.bf16 %v8115_v45  ;;  %v8116_v11 = vunpack.i.l.bf16 %v8115_v45  ;;  %7727 = vmatprep.subr.msk.bf16.mxu1 %vm9140_vm2, %v7725_v12  ;;  %v1608_v45 = vmul.f32 %v8413_v63, %v9459_v43 }
 0x4f5   : > { %7730 = vmatpush3.bf16.xpose.msk.msra.mxu1 %vm9140_vm2, %v7725_v12  ;;  %v8415_v12 = vpop.eup %8414 }
 0x4f6   : > { %v7731_v57 = vpack.c.bf16 %v8117_v61, %v8116_v11  ;;  %v8417_v61 = vpop.eup %8416 }
 0x4f7   : > { %v8120_v36 = vpop.permute.xlu0 %8119 }
 0x4f8   : > { %v8122_v47 = vunpack.i.h.bf16 %v8120_v36  ;;  %v8121_v31 = vunpack.i.l.bf16 %v8120_v36  ;;  %7733 = vmatprep.subr.msk.bf16.mxu1 %vm9140_vm2, %v7731_v57  ;;  %v8419_v36 = vpop.eup %8418 }
 0x4f9   : > { %v1611_v5 = vmul.f32 %v8419_v36, %v9468_v20  ;;  %v9652_v36 = vmul.f32 0.35355338, %v9257_v41 }
 0x4fa   : > { %v7737_v22 = vpack.c.bf16 %v8122_v47, %v8121_v31  ;;  %v1610_v31 = vmul.f32 %v8417_v61, %v9464_v24  ;;  %v9639_v61 = vmul.f32 0.35355338, %v9231_v62 }
 0x4fb   : > { %v2573_v37 = vpop.permute.xlu0 %2572 }
 0x4fc   : > { %7199 = vmatprep.mubr.msk.f32.mxu1 %vm969_vm1, %v2573_v37 }
 0x4fd   : > { %7736 = vmatpush3.bf16.xpose.msk.msra.mxu1 %vm9140_vm2, %v7731_v57  ;;  %v1609_v57 = vmul.f32 %v8415_v12, %v9455_v48 }
 0x4fe   : > { %7739 = vmatprep.subr.msk.bf16.mxu1 %vm9140_vm2, %v7737_v22 }
 0x4ff   : > { %v2577_v29 = vpop.permute.xlu0 %2576 }
 0x503   : > { %v2581_v11 = vpop.permute.xlu0 %2580 }
 0x505   : > { %7742 = vmatpush3.bf16.xpose.msk.msra.mxu1 %vm9140_vm2, %v7737_v22 }
 0x507   : > { %v2585_v22 = vpop.permute.xlu0 %2584 }
 0x51c   : > { %v1594_v49 = vpop.xlane.xlu1 %1593 }
 0x51d   : > { %8420 = vrcp.f32 %v1594_v49 }
 0x51e   : > { %8422 = vrcp.f32 %v1597_v16  ;;  %v9589_v16 = vmul.f32 0.35355338, %v9216_v13 }
 0x520   : > { %v8100_v28 = vpop.permute.xlu1 %8099 }
 0x521   : > { %v8102_v58 = vunpack.i.h.bf16 %v8100_v28  ;;  %v8101_v59 = vunpack.i.l.bf16 %v8100_v28 }
 0x523   : > { %v7677_v10 = vpack.c.bf16 %v8102_v58, %v8101_v59 }
 0x524   : > { %v8125_v55 = vpop.permute.xlu1 %8124 }
 0x525   : > { %v8127_v53 = vunpack.i.h.bf16 %v8125_v55  ;;  %v8126_v54 = vunpack.i.l.bf16 %v8125_v55  ;;  %7678 = vmatprep.subr.bf16.mxu0 %v7677_v10 }
 0x526   : > { %7680 = vmatpush3.bf16.msra.mxu0 %v7677_v10 }
 0x527   : > { %v7743_v1 = vpack.c.bf16 %v8127_v53, %v8126_v54  ;;  %7682 = vmatprep.subr.bf16.mxu0 %v7681_v52  ;;  %v8421_v37 = vpop.eup %8420 }
 0x528   : > { %v2575_v19 = vpop.permute.xlu1 %2574  ;;  %v8423_v43 = vpop.eup %8422  ;;  %v1612_v0 = vmul.f32 %v8421_v37, %v9495_v7 }
 0x529   : > { %7745 = vmatprep.subr.msk.bf16.mxu1 %vm9140_vm2, %v7743_v1  ;;  %v1613_v24 = vmul.f32 %v8423_v43, %v9474_v27 }
 0x52a   : > { %7684 = vmatpush3.bf16.msra.mxu0 %v7681_v52  ;;  %7748 = vmatpush3.bf16.xpose.msk.msra.mxu1 %vm9140_vm2, %v7743_v1 }
 0x52c   : > { %v2579_v47 = vpop.permute.xlu1 %2578 }
 0x52d   : > { %7074 = vmatmul.mubr.msk.f32.vlgmr.msra.gmra.mrb[8].mxu0 %vm1115_vm3, %v1607_v18 }
 0x52e   : > { %7076 = vmatprep.mubr.msk.f32.mxu0 %vm1115_vm3, %v1608_v45  ;;  %v942_v45 = vld [vmem:[%s10987_s5 + $0x8] sm:$0xff] }
 0x52f   : > { %7085 = vmatprep.subr.mxu0 %v942_v45 }
 0x530   : > { %v2583_v48 = vpop.permute.xlu1 %2582  ;;  %7086 = vmatpush3.msra.mxu0 %v942_v45 }
 0x531   : > { %7077 = vmatmul.mubr.msk.f32.gmra.mrb[10].mxu0 %vm1115_vm3, %v1609_v57  ;;  %7200 = vmatmul.mubr.msk.f32.vlgmr.msra.gmra.mrb[40].mxu1 %vm969_vm1, %v2575_v19  ;;  %v9647_v57 = vmul.f32 0.35355338, %v9245_v9 }
 0x532   : > { %7079 = vmatprep.mubr.msk.f32.mxu0 %vm1115_vm3, %v1610_v31  ;;  %7202 = vmatprep.mubr.msk.f32.mxu1 %vm969_vm1, %v2577_v29 }
 0x534   : > { %v2587_v7 = vpop.permute.xlu1 %2586 }
 0x535   : > { %7080 = vmatmul.mubr.msk.f32.gmra.mrb[12].mxu0 %vm1115_vm3, %v1611_v5  ;;  %7203 = vmatmul.mubr.msk.f32.gmra.mrb[42].mxu1 %vm969_vm1, %v2579_v47 }
 0x536   : > { %7082 = vmatprep.mubr.msk.f32.mxu0 %vm1115_vm3, %v1612_v0  ;;  %7205 = vmatprep.mubr.msk.f32.mxu1 %vm969_vm1, %v2581_v11  ;;  %v941_v11 = vld [vmem:[%s10987_s5] sm:$0xff] }
 0x537   : > { %7099 = vmatprep.subr.mxu0 %v941_v11 }
 0x538   : > { %v2196_v15 = vpop.xlane.xlu0 %2195 }
 0x539   : > { %v2218_v34 = vsub.f32 %v9382_v60, %v2196_v15  ;;  %7083 = vmatmul.mubr.msk.f32.gmra.mrb[14].mxu0 %vm1115_vm3, %v1613_v24  ;;  %7206 = vmatmul.mubr.msk.f32.gmra.mrb[44].mxu1 %vm969_vm1, %v2583_v48 }
 0x53a   : > { %7208 = vmatprep.mubr.msk.f32.mxu1 %vm969_vm1, %v2585_v22 }
 0x53b   : > { %v2226_v20 = vmul.f32 1.442695, %v2218_v34 }
 0x53c   : > { %v2202_v4 = vpop.xlane.xlu0 %2201 }
 0x53d   : > { %8424 = vpow2.f32 %v2226_v20  ;;  %v2220_v49 = vsub.f32 %v9386_v40, %v2202_v4  ;;  %7209 = vmatmul.mubr.msk.f32.gmra.mrb[46].mxu1 %vm969_vm1, %v2587_v7 }
 0x53e   : > { %7269 = vmatprep.mubr.msk.f32.mxu1 %vm969_vm1, %v9589_v16 }
 0x53f   : > { %v2230_v60 = vmul.f32 1.442695, %v2220_v49  ;;  %v9693_v49 = vmul.f32 0.35355338, %v9211_v8 }
 0x540   : > { %v2205_v27 = vpop.xlane.xlu0 %2204 }
 0x541   : > { %8426 = vpow2.f32 %v2230_v60 }
 0x544   : > { %v2208_v28 = vpop.xlane.xlu0 %2207 }
 0x545   : > { %v2222_v17 = vsub.f32 %v9390_v44, %v2208_v28  ;;  %v2221_v44 = vsub.f32 %v9384_v46, %v2205_v27  ;;  %v9698_v27 = vmul.f32 0.35355338, %v9226_v32 }
 0x547   : > { %v9596_v33 = vpop.eup %8424  ;;  %v2234_v58 = vmul.f32 1.442695, %v2222_v17  ;;  %v2232_v52 = vmul.f32 1.442695, %v2221_v44  ;;  %v9705_v17 = vmul.f32 0.35355338, %v9242_v39 }
 0x548   : > { %v2242_v13 = vsel %vm1115_vm3, %v9596_v33, 0.0  ;;  %v2214_v31 = vpop.xlane.xlu0 %2213 }
 0x549   : > { %8428 = vpow2.f32 %v2234_v58  ;;  %2243 = vadd.xlane.f32.xlu0 %v2242_v13  ;;  %v2224_v37 = vsub.f32 %v9394_v38, %v2214_v31  ;;  %v9712_v58 = vmul.f32 0.35355338, %v9254_v23 }
 0x54b   : > { %v9600_v40 = vpop.eup %8426  ;;  %v2238_v22 = vmul.f32 1.442695, %v2224_v37 }
 0x54c   : > { %v2248_v59 = vsel %vm1115_vm3, %v9600_v40, 0.0  ;;  %v8130_v4 = vpop.permute.xlu0 %8129 }
 0x54d   : > { %2249 = vadd.xlane.f32.xlu0 %v2248_v59  ;;  %v8132_v39 = vunpack.i.h.bf16 %v8130_v4 }
 0x553   : > { %v9604_v10 = vpop.eup %8428 }
 0x554   : > { %v2254_v55 = vsel %vm1115_vm3, %v9604_v10, 0.0 }
 0x555   : > { %2255 = vadd.xlane.f32.xlu0 %v2254_v55 }
 0x565   : > { %v2199_v53 = vpop.xlane.xlu1 %2198 }
 0x566   : > { %v2219_v54 = vsub.f32 %v9378_v26, %v2199_v53  ;;  %v8131_v53 = vunpack.i.l.bf16 %v8130_v4 }
 0x568   : > { %v2228_v1 = vmul.f32 1.442695, %v2219_v54 }
 0x569   : > { %v2211_v56 = vpop.xlane.xlu1 %2210 }
 0x56a   : > { %8430 = vpow2.f32 %v2228_v1  ;;  %v2223_v29 = vsub.f32 %v9388_v51, %v2211_v56  ;;  %v7709_v56 = vpack.c.bf16 %v8132_v39, %v8131_v53 }
 0x56b   : > { %8139 = vrot.lane.b32.xlu0 %v9062_v21, %s8717_s26  ;;  %8432 = vpow2.f32 %v2232_v52 }
 0x56c   : > { %v2236_v63 = vmul.f32 1.442695, %v2223_v29 }
 0x56d   : > { %v2217_v62 = vpop.xlane.xlu1 %2216 }
 0x56e   : > { %8434 = vpow2.f32 %v2236_v63  ;;  %v2225_v47 = vsub.f32 %v9392_v3, %v2217_v62 }
 0x56f   : > { %8149 = vrot.lane.b32.xlu0 %v9223_v30, %s8708_s16 }
 0x570   : > { %v2240_v9 = vmul.f32 1.442695, %v2225_v47 }
 0x571   : > { %v8135_v54 = vpop.permute.xlu1 %8134 }
 0x572   : > { %8436 = vpow2.f32 %v2240_v9  ;;  %v8136_v39 = vunpack.i.l.bf16 %v8135_v54 }
 0x573   : > { %8159 = vrot.lane.b32.xlu0 %v9251_v50, %s8708_s16  ;;  %8438 = vpow2.f32 %v2238_v22 }
 0x574   : > { %v9617_v46 = vpop.eup %8430 }
 0x575   : > { %v2245_v26 = vsel %vm1115_vm3, %v9617_v46, 0.0  ;;  %v9621_v19 = vpop.eup %8432 }
 0x576   : > { %2246 = vadd.xlane.f32.xlu1 %v2245_v26  ;;  %v2251_v51 = vsel %vm1115_vm3, %v9621_v19, 0.0 }
 0x577   : > { %8169 = vrot.lane.b32.xlu0 %v9223_v30, %s8709_s17 }
 0x578   : > { %v9627_v18 = vpop.eup %8434 }
 0x579   : > { %v2257_v12 = vsel %vm1115_vm3, %v9627_v18, 0.0 }
 0x57a   : > { %2252 = vadd.xlane.f32.xlu1 %v2251_v51 }
 0x57b   : > { %8179 = vrot.lane.b32.xlu0 %v9251_v50, %s8709_s17 }
 0x57c   : > { %v9670_v24 = vpop.eup %8436 }
 0x57d   : > { %v2263_v38 = vsel %vm1115_vm3, %v9670_v24, 0.0  ;;  %v9678_v34 = vpop.eup %8438 }
 0x57e   : > { %2258 = vadd.xlane.f32.xlu1 %v2257_v12  ;;  %v2260_v7 = vsel %vm1115_vm3, %v9678_v34, 0.0 }
 0x57f   : > { %3529 = vrot.lane.b32.xlu0 %v9589_v16, %s8710_s18 }
 0x583   : > { %3533 = vrot.lane.b32.xlu0 %v9639_v61, %s8710_s18 }
 0x587   : > { %3537 = vrot.lane.b32.xlu0 %v9647_v57, %s8710_s18 }
 0x58b   : > { %3541 = vrot.lane.b32.xlu0 %v9652_v36, %s8710_s18 }
 0x58f   : > { %8144 = vrot.lane.b32.xlu1 %v9070_v14, %s8717_s26 }
 0x5a1   : > { %v9660_v5 = vpop.f32.mrb[0].mxu0 }
 0x5a2   : > { %v9662_v43 = vpop.f32.mrb[1].mxu0 }
 0x5a5   : > { %v9664_v41 = vpop.f32.mrb[2].mxu0 }
 0x5a6   : > { %v9666_v0 = vpop.f32.mrb[3].mxu0 }
 0x5ad   : > { %v9668_v48 = vpop.f32.mrb[4].mxu0 }
 0x5ae   : > { %v9672_v3 = vpop.f32.mrb[5].mxu0 }
 0x5b1   : > { %v9674_v15 = vpop.f32.mrb[6].mxu0 }
 0x5b2   : > { %v9680_v20 = vpop.f32.mrb[7].mxu0 }
 0x5b3   : > { %2264 = vadd.xlane.f32.xlu1 %v2263_v38 }
 0x5b7   : > { %2261 = vadd.xlane.f32.xlu1 %v2260_v7 }
 0x5c8   : > { %8154 = vrot.lane.b32.xlu1 %v9237_v35, %s8708_s16 }
 0x5cc   : > { %8164 = vrot.lane.b32.xlu1 %v9263_v2, %s8708_s16 }
 0x5d0   : > { %8174 = vrot.lane.b32.xlu1 %v9237_v35, %s8709_s17 }
 0x5d4   : > { %8184 = vrot.lane.b32.xlu1 %v9263_v2, %s8709_s17 }
 0x5d6   : > { %v2244_v60 = vpop.xlane.xlu0 %2243 }
 0x5d7   : > { %8440 = vrcp.f32 %v2244_v60 }
 0x5d8   : > { %3531 = vrot.lane.b32.xlu1 %v9693_v49, %s8710_s18 }
 0x5da   : > { %v9702_v28 = vpop.xlane.xlu0 %2249 }
 0x5dc   : > { %3535 = vrot.lane.b32.xlu1 %v9698_v27, %s8710_s18 }
 0x5e0   : > { %3539 = vrot.lane.b32.xlu1 %v9705_v17, %s8710_s18 }
 0x5e2   : > { %v9709_v8 = vpop.xlane.xlu0 %2255 }
 0x5e4   : > { %3543 = vrot.lane.b32.xlu1 %v9712_v58, %s8710_s18 }
 0x5e6   : > { %v9716_v32 = vpop.permute.xlu0 %8139 }
 0x5ea   : > { %v8150_v13 = vpop.permute.xlu0 %8149 }
 0x5eb   : > { %v8152_v59 = vunpack.i.h.bf16 %v8150_v13  ;;  %v8151_v55 = vunpack.i.l.bf16 %v8150_v13 }
 0x5ed   : > { %v7765_v44 = vpack.c.bf16 %v8152_v59, %v8151_v55 }
 0x5ef   : > { %7767 = vmatprep.subr.msk.bf16.mxu1 %vm9140_vm2, %v7765_v44 }
 0x5f0   : > { %7770 = vmatpush3.bf16.xpose.msk.msra.mxu1 %vm9140_vm2, %v7765_v44  ;;  %v8137_v44 = vunpack.i.h.bf16 %v8135_v54  ;;  %v8142_v54 = vunpack.i.h.bf16 %v9716_v32 }
 0x600   : > { %v7075_v23 = vpop.f32.mrb[8].mxu0 }
 0x601   : > { %v1728_v52 = vpop.f32.mrb[9].mxu0 }
 0x602   : > { %7087 = vmatprep.mubr.msk.f32.mxu0 %vm969_vm1, %v1728_v52 }
 0x603   : > { %v2247_v1 = vpop.xlane.xlu1 %2246  ;;  %7088 = vmatmul.mubr.msk.f32.vlgmr.msra.gmra.mrb[16].mxu0 %vm969_vm1, %v7075_v23 }
 0x604   : > { %7100 = vmatpush3.msra.mxu0 %v941_v11  ;;  %v7078_v29 = vpop.f32.mrb[10].mxu0  ;;  %v9724_v63 = vpop.f32.mrb[40].mxu1  ;;  %8442 = vrcp.f32 %v2247_v1 }
 0x605   : > { %7710 = vmatprep.subr.bf16.mxu0 %v7709_v56  ;;  %v1738_v26 = vpop.f32.mrb[11].mxu0  ;;  %v9726_v51 = vpop.f32.mrb[41].mxu1  ;;  %v2744_v62 = vsel %vm1115_vm3, %v9724_v63, -inf  ;;  %8444 = vrcp.f32 %v9702_v28 }
 0x606   : > { %7090 = vmatprep.mubr.msk.f32.mxu0 %vm969_vm1, %v1738_v26  ;;  %v2741_v12 = vsel %vm1115_vm3, %v9726_v51, -inf  ;;  %v8141_v26 = vunpack.i.l.bf16 %v9716_v32 }
 0x607   : > { %v2253_v45 = vpop.xlane.xlu1 %2252  ;;  %2742 = vmax.xlane.f32.xlu0 %v2741_v12  ;;  %7091 = vmatmul.mubr.msk.f32.gmra.mrb[18].mxu0 %vm969_vm1, %v7078_v29 }
 0x608   : > { %2745 = vmax.xlane.f32.xlu1 %v2744_v62  ;;  %v7081_v11 = vpop.f32.mrb[12].mxu0  ;;  %v9734_v47 = vpop.f32.mrb[42].mxu1  ;;  %8446 = vrcp.f32 %v2253_v45 }
 0x609   : > { %v1748_v31 = vpop.f32.mrb[13].mxu0  ;;  %v9736_v37 = vpop.f32.mrb[43].mxu1  ;;  %v2750_v55 = vsel %vm1115_vm3, %v9734_v47, -inf  ;;  %8448 = vrcp.f32 %v9709_v8 }
 0x60a   : > { %7093 = vmatprep.mubr.msk.f32.mxu0 %vm969_vm1, %v1748_v31  ;;  %v2747_v9 = vsel %vm1115_vm3, %v9736_v37, -inf }
 0x60b   : > { %2748 = vmax.xlane.f32.xlu0 %v2747_v9  ;;  %7094 = vmatmul.mubr.msk.f32.gmra.mrb[20].mxu0 %vm969_vm1, %v7081_v11  ;;  %v2259_v59 = vpop.xlane.xlu1 %2258 }
 0x60c   : > { %v7084_v22 = vpop.f32.mrb[14].mxu0  ;;  %v9742_v38 = vpop.f32.mrb[44].mxu1  ;;  %8450 = vrcp.f32 %v2259_v59 }
 0x60d   : > { %v1758_v7 = vpop.f32.mrb[15].mxu0  ;;  %v9744_v4 = vpop.f32.mrb[45].mxu1  ;;  %v2756_v13 = vsel %vm1115_vm3, %v9742_v38, -inf }
 0x60e   : > { %2757 = vmax.xlane.f32.xlu1 %v2756_v13  ;;  %7096 = vmatprep.mubr.msk.f32.mxu0 %vm969_vm1, %v1758_v7  ;;  %v2753_v29 = vsel %vm1115_vm3, %v9744_v4, -inf }
 0x60f   : > { %2751 = vmax.xlane.f32.xlu0 %v2750_v55  ;;  %7097 = vmatmul.mubr.msk.f32.gmra.mrb[22].mxu0 %vm969_vm1, %v7084_v22  ;;  %v8145_v60 = vpop.permute.xlu1 %8144 }
 0x610   : > { %7101 = vmatprep.mubr.msk.f32.mxu0 %vm969_vm1, %v9662_v43  ;;  %v9754_v53 = vpop.f32.mrb[46].mxu1  ;;  %v7713_v43 = vpack.c.bf16 %v8137_v44, %v8136_v39  ;;  %v8147_v62 = vunpack.i.h.bf16 %v8145_v60  ;;  %v8146_v11 = vunpack.i.l.bf16 %v8145_v60 }
 0x611   : > { %v9756_v23 = vpop.f32.mrb[47].mxu1  ;;  %v2762_v52 = vsel %vm1115_vm3, %v9754_v53, -inf }
 0x612   : > { %2763 = vmax.xlane.f32.xlu1 %v2762_v52  ;;  %v2759_v12 = vsel %vm1115_vm3, %v9756_v23, -inf  ;;  %v7721_v28 = vpack.c.bf16 %v8147_v62, %v8146_v11 }
 0x613   : > { %2754 = vmax.xlane.f32.xlu0 %v2753_v29  ;;  %7102 = vmatmul.mubr.msk.f32.vlgmr.msra.gmra.mrb[16].mxu0 %vm969_vm1, %v9660_v5  ;;  %v7717_v5 = vpack.c.bf16 %v8142_v54, %v8141_v26 }
 0x614   : > { %7712 = vmatpush3.bf16.msra.mxu0 %v7709_v56  ;;  %7104 = vmatprep.mubr.msk.f32.mxu0 %vm969_vm1, %v9666_v0  ;;  %v8441_v0 = vpop.eup %8440 }
 0x615   : > { %7714 = vmatprep.subr.bf16.mxu0 %v7713_v43  ;;  %v2274_v32 = vmul.f32 %v8441_v0, %v9596_v33 }
 0x617   : > { %2760 = vmax.xlane.f32.xlu0 %v2759_v12  ;;  %7105 = vmatmul.mubr.msk.f32.gmra.mrb[18].mxu0 %vm969_vm1, %v9664_v41  ;;  %v8443_v41 = vpop.eup %8442 }
 0x618   : > { %7716 = vmatpush3.bf16.msra.mxu0 %v7713_v43  ;;  %7107 = vmatprep.mubr.msk.f32.mxu0 %vm969_vm1, %v9672_v3  ;;  %v8445_v1 = vpop.eup %8444  ;;  %v2275_v3 = vmul.f32 %v8443_v41, %v9617_v46  ;;  %v8160_v46 = vpop.permute.xlu0 %8159 }
 0x619   : > { %7718 = vmatprep.subr.bf16.mxu0 %v7717_v5  ;;  %v2276_v8 = vmul.f32 %v8445_v1, %v9600_v40  ;;  %v8161_v45 = vunpack.i.l.bf16 %v8160_v46 }
 0x61b   : > { %7108 = vmatmul.mubr.msk.f32.gmra.mrb[20].mxu0 %vm969_vm1, %v9668_v48  ;;  %v8447_v48 = vpop.eup %8446 }
 0x61c   : > { %7720 = vmatpush3.bf16.msra.mxu0 %v7717_v5  ;;  %7110 = vmatprep.mubr.msk.f32.mxu0 %vm969_vm1, %v9680_v20  ;;  %v8449_v56 = vpop.eup %8448  ;;  %v2277_v33 = vmul.f32 %v8447_v48, %v9621_v19  ;;  %v8170_v29 = vpop.permute.xlu0 %8169 }
 0x61d   : > { %7722 = vmatprep.subr.bf16.mxu0 %v7721_v28  ;;  %v2278_v20 = vmul.f32 %v8449_v56, %v9604_v10  ;;  %v8172_v54 = vunpack.i.h.bf16 %v8170_v29  ;;  %v8171_v26 = vunpack.i.l.bf16 %v8170_v29 }
 0x61f   : > { %7111 = vmatmul.mubr.msk.f32.gmra.mrb[22].mxu0 %vm969_vm1, %v9674_v15  ;;  %v8451_v15 = vpop.eup %8450  ;;  %v7805_v43 = vpack.c.bf16 %v8172_v54, %v8171_v26 }
 0x620   : > { %7724 = vmatpush3.bf16.msra.mxu0 %v7721_v28  ;;  %7157 = vmatprep.mubr.msk.f32.mxu0 %vm1115_vm3, %v2274_v32  ;;  %v2279_v40 = vmul.f32 %v8451_v15, %v9627_v18  ;;  %v8162_v18 = vunpack.i.h.bf16 %v8160_v46  ;;  %v8180_v62 = vpop.permute.xlu0 %8179 }
 0x621   : > { %v8182_v11 = vunpack.i.h.bf16 %v8180_v62  ;;  %v8181_v5 = vunpack.i.l.bf16 %v8180_v62 }
 0x622   : > { %v7777_v7 = vpack.c.bf16 %v8162_v18, %v8161_v45 }
 0x623   : > { %8194 = vrot.lane.b32.xlu1 %v9054_v6, %s8718_s28  ;;  %7158 = vmatmul.mubr.msk.f32.vlgmr.msra.gmra.mrb[24].mxu0 %vm1115_vm3, %v2275_v3  ;;  %v943_v6 = vld [vmem:[%s10987_s5 + $0x10] sm:$0xff]  ;;  %v7817_v0 = vpack.c.bf16 %v8182_v11, %v8181_v5 }
 0x624   : > { %7160 = vmatprep.mubr.msk.f32.mxu0 %vm1115_vm3, %v2276_v8  ;;  %7169 = vmatprep.subr.mxu0 %v943_v6  ;;  %v3530_v41 = vpop.permute.xlu0 %3529 }
 0x625   : > { %7170 = vmatpush3.msra.mxu0 %v943_v6 }
 0x627   : > { %8204 = vrot.lane.b32.xlu1 %v9070_v14, %s8718_s28  ;;  %7161 = vmatmul.mubr.msk.f32.gmra.mrb[26].mxu0 %vm1115_vm3, %v2277_v33 }
 0x628   : > { %7163 = vmatprep.mubr.msk.f32.mxu0 %vm1115_vm3, %v2278_v20  ;;  %v3534_v8 = vpop.permute.xlu0 %3533 }
 0x62b   : > { %7164 = vmatmul.mubr.msk.f32.gmra.mrb[28].mxu0 %vm1115_vm3, %v2279_v40 }
 0x62c   : > { %v3538_v33 = vpop.permute.xlu0 %3537 }
 0x62d   : > { %8189 = vrot.lane.b32.xlu0 %v9044_v42, %s8718_s28 }
 0x630   : > { %v3542_v20 = vpop.permute.xlu0 %3541 }
 0x631   : > { %8199 = vrot.lane.b32.xlu0 %v9062_v21, %s8718_s28 }
 0x640   : > { %v2265_v14 = vpop.xlane.xlu1 %2264 }
 0x641   : > { %8452 = vrcp.f32 %v2265_v14 }
 0x644   : > { %v2262_v10 = vpop.xlane.xlu1 %2261 }
 0x645   : > { %8454 = vrcp.f32 %v2262_v10 }
 0x648   : > { %v8155_v19 = vpop.permute.xlu1 %8154 }
 0x649   : > { %v8157_v31 = vunpack.i.h.bf16 %v8155_v19  ;;  %v8156_v9 = vunpack.i.l.bf16 %v8155_v19 }
 0x64b   : > { %v7771_v22 = vpack.c.bf16 %v8157_v31, %v8156_v9  ;;  %v8453_v13 = vpop.eup %8452 }
 0x64c   : > { %v8165_v42 = vpop.permute.xlu1 %8164  ;;  %v2281_v39 = vmul.f32 %v8453_v13, %v9670_v24 }
 0x64d   : > { %7773 = vmatprep.subr.msk.bf16.mxu1 %vm9140_vm2, %v7771_v22  ;;  %v8167_v55 = vunpack.i.h.bf16 %v8165_v42  ;;  %v8166_v44 = vunpack.i.l.bf16 %v8165_v42 }
 0x64e   : > { %7776 = vmatpush3.bf16.xpose.msk.msra.mxu1 %vm9140_vm2, %v7771_v22 }
 0x64f   : > { %v8455_v21 = vpop.eup %8454  ;;  %7779 = vmatprep.subr.msk.bf16.mxu1 %vm9140_vm2, %v7777_v7  ;;  %v7783_v52 = vpack.c.bf16 %v8167_v55, %v8166_v44 }
 0x650   : > { %v2280_v59 = vmul.f32 %v8455_v21, %v9678_v34  ;;  %v8175_v34 = vpop.permute.xlu1 %8174 }
 0x651   : > { %v8177_v24 = vunpack.i.h.bf16 %v8175_v34  ;;  %v8176_v60 = vunpack.i.l.bf16 %v8175_v34 }
 0x652   : > { %7166 = vmatprep.mubr.msk.f32.mxu0 %vm1115_vm3, %v2280_v59 }
 0x653   : > { %7167 = vmatmul.mubr.msk.f32.gmra.mrb[30].mxu0 %vm1115_vm3, %v2281_v39  ;;  %v7811_v12 = vpack.c.bf16 %v8177_v24, %v8176_v60 }
 0x654   : > { %v8185_v28 = vpop.permute.xlu1 %8184 }
 0x655   : > { %v8187_v32 = vunpack.i.h.bf16 %v8185_v28  ;;  %v8186_v1 = vunpack.i.l.bf16 %v8185_v28 }
 0x656   : > { %7782 = vmatpush3.bf16.xpose.msk.msra.mxu1 %vm9140_vm2, %v7777_v7 }
 0x657   : > { %7785 = vmatprep.subr.msk.bf16.mxu1 %vm9140_vm2, %v7783_v52  ;;  %v7823_v3 = vpack.c.bf16 %v8187_v32, %v8186_v1 }
 0x658   : > { %v3532_v48 = vpop.permute.xlu1 %3531 }
 0x65c   : > { %v3536_v56 = vpop.permute.xlu1 %3535 }
 0x65e   : > { %7788 = vmatpush3.bf16.xpose.msk.msra.mxu1 %vm9140_vm2, %v7783_v52 }
 0x65f   : > { %7807 = vmatprep.subr.msk.bf16.mxu1 %vm9140_vm2, %v7805_v43 }
 0x660   : > { %v3540_v15 = vpop.permute.xlu1 %3539 }
 0x664   : > { %v3544_v40 = vpop.permute.xlu1 %3543 }
 0x665   : > { %7270 = vmatmul.mubr.msk.f32.vlgmr.msra.gmra.mrb[48].mxu1 %vm969_vm1, %v9693_v49 }
 0x666   : > { %7272 = vmatprep.mubr.msk.f32.mxu1 %vm969_vm1, %v9639_v61  ;;  %7810 = vmatpush3.bf16.xpose.msk.msra.mxu1 %vm9140_vm2, %v7805_v43 }
 0x667   : > { %7813 = vmatprep.subr.msk.bf16.mxu1 %vm9140_vm2, %v7811_v12 }
 0x669   : > { %7273 = vmatmul.mubr.msk.f32.gmra.mrb[50].mxu1 %vm969_vm1, %v9698_v27 }
 0x66a   : > { %7275 = vmatprep.mubr.msk.f32.mxu1 %vm969_vm1, %v9647_v57 }
 0x66d   : > { %7276 = vmatmul.mubr.msk.f32.gmra.mrb[52].mxu1 %vm969_vm1, %v9705_v17 }
 0x66e   : > { %7278 = vmatprep.mubr.msk.f32.mxu1 %vm969_vm1, %v9652_v36  ;;  %7816 = vmatpush3.bf16.xpose.msk.msra.mxu1 %vm9140_vm2, %v7811_v12 }
 0x66f   : > { %7819 = vmatprep.subr.msk.bf16.mxu1 %vm9140_vm2, %v7817_v0 }
 0x671   : > { %7279 = vmatmul.mubr.msk.f32.gmra.mrb[54].mxu1 %vm969_vm1, %v9712_v58 }
 0x672   : > { %7325 = vmatprep.mubr.msk.f32.mxu1 %vm969_vm1, %v3530_v41 }
 0x676   : > { %7822 = vmatpush3.bf16.xpose.msk.msra.mxu1 %vm9140_vm2, %v7817_v0 }
 0x677   : > { %7825 = vmatprep.subr.msk.bf16.mxu1 %vm9140_vm2, %v7823_v3 }
 0x67e   : > { %7828 = vmatpush3.bf16.xpose.msk.msra.mxu1 %vm9140_vm2, %v7823_v3 }
 0x685   : > { %7326 = vmatmul.mubr.msk.f32.vlgmr.msra.gmra.mrb[56].mxu1 %vm969_vm1, %v3532_v48 }
 0x686   : > { %7328 = vmatprep.mubr.msk.f32.mxu1 %vm969_vm1, %v3534_v8 }
 0x689   : > { %7329 = vmatmul.mubr.msk.f32.gmra.mrb[58].mxu1 %vm969_vm1, %v3536_v56 }
 0x68a   : > { %7331 = vmatprep.mubr.msk.f32.mxu1 %vm969_vm1, %v3538_v33 }
 0x68d   : > { %7332 = vmatmul.mubr.msk.f32.gmra.mrb[60].mxu1 %vm969_vm1, %v3540_v15 }
 0x68e   : > { %7334 = vmatprep.mubr.msk.f32.mxu1 %vm969_vm1, %v3542_v20 }
 0x691   : > { %7335 = vmatmul.mubr.msk.f32.gmra.mrb[62].mxu1 %vm969_vm1, %v3544_v40 }
 0x694   : > { %v2743_v6 = vpop.xlane.xlu0 %2742 }
 0x695   : > { %v2765_v14 = vsub.f32 %v9726_v51, %v2743_v6  ;;  %v2746_v10 = vpop.xlane.xlu1 %2745 }
 0x696   : > { %v2766_v46 = vsub.f32 %v9724_v63, %v2746_v10 }
 0x697   : > { %v2773_v19 = vmul.f32 1.442695, %v2765_v14 }
 0x698   : > { %v2775_v18 = vmul.f32 1.442695, %v2766_v46  ;;  %v2749_v45 = vpop.xlane.xlu0 %2748 }
 0x699   : > { %8456 = vpow2.f32 %v2773_v19  ;;  %v2767_v31 = vsub.f32 %v9736_v37, %v2749_v45 }
 0x69a   : > { %8458 = vpow2.f32 %v2775_v18 }
 0x69b   : > { %v2777_v9 = vmul.f32 1.442695, %v2767_v31  ;;  %v2758_v22 = vpop.xlane.xlu1 %2757 }
 0x69c   : > { %v2770_v7 = vsub.f32 %v9742_v38, %v2758_v22  ;;  %v2752_v13 = vpop.xlane.xlu0 %2751 }
 0x69d   : > { %8460 = vpow2.f32 %v2777_v9  ;;  %v2768_v42 = vsub.f32 %v9734_v47, %v2752_v13 }
 0x69e   : > { %v2783_v21 = vmul.f32 1.442695, %v2770_v7 }
 0x69f   : > { %v2779_v51 = vmul.f32 1.442695, %v2768_v42  ;;  %v2764_v5 = vpop.xlane.xlu1 %2763 }
 0x6a0   : > { %v2755_v59 = vpop.xlane.xlu0 %2754  ;;  %v2772_v0 = vsub.f32 %v9754_v53, %v2764_v5 }
 0x6a1   : > { %8462 = vpow2.f32 %v2779_v51  ;;  %v2769_v63 = vsub.f32 %v9744_v4, %v2755_v59 }
 0x6a2   : > { %8464 = vpow2.f32 %v2783_v21  ;;  %v2787_v28 = vmul.f32 1.442695, %v2772_v0 }
 0x6a3   : > { %v9865_v55 = vpop.eup %8456  ;;  %v2781_v44 = vmul.f32 1.442695, %v2769_v63  ;;  %v8195_v8 = vpop.permute.xlu1 %8194 }
 0x6a4   : > { %v9867_v37 = vpop.eup %8458  ;;  %v2761_v39 = vpop.xlane.xlu0 %2760  ;;  %v2789_v38 = vsel %vm1115_vm3, %v9865_v55, 0.0  ;;  %v8197_v56 = vunpack.i.h.bf16 %v8195_v8  ;;  %v8196_v33 = vunpack.i.l.bf16 %v8195_v8 }
 0x6a5   : > { %8466 = vpow2.f32 %v2781_v44  ;;  %2790 = vadd.xlane.f32.xlu0 %v2789_v38  ;;  %v2792_v47 = vsel %vm1115_vm3, %v9867_v37, 0.0  ;;  %v2771_v41 = vsub.f32 %v9756_v23, %v2761_v39 }
 0x6a6   : > { %2793 = vadd.xlane.f32.xlu1 %v2792_v47  ;;  %8468 = vpow2.f32 %v2787_v28  ;;  %v7753_v14 = vpack.c.bf16 %v8197_v56, %v8196_v33 }
 0x6a7   : > { %v9873_v52 = vpop.eup %8460  ;;  %v2785_v32 = vmul.f32 1.442695, %v2771_v41  ;;  %v8205_v10 = vpop.permute.xlu1 %8204 }
 0x6a8   : > { %v8190_v29 = vpop.permute.xlu0 %8189  ;;  %v2795_v4 = vsel %vm1115_vm3, %v9873_v52, 0.0  ;;  %v8207_v18 = vunpack.i.h.bf16 %v8205_v10  ;;  %v8206_v45 = vunpack.i.l.bf16 %v8205_v10 }
 0x6a9   : > { %v8192_v54 = vunpack.i.h.bf16 %v8190_v29  ;;  %v8191_v26 = vunpack.i.l.bf16 %v8190_v29  ;;  %2796 = vadd.xlane.f32.xlu0 %v2795_v4  ;;  %8470 = vpow2.f32 %v2785_v32 }
 0x6aa   : > { %v7761_v7 = vpack.c.bf16 %v8207_v18, %v8206_v45 }
 0x6ab   : > { %v9877_v43 = vpop.eup %8462  ;;  %v7749_v34 = vpack.c.bf16 %v8192_v54, %v8191_v26 }
 0x6ac   : > { %v2798_v24 = vsel %vm1115_vm3, %v9877_v43, 0.0  ;;  %v9881_v60 = vpop.eup %8464  ;;  %v8200_v15 = vpop.permute.xlu0 %8199 }
 0x6ad   : > { %2799 = vadd.xlane.f32.xlu1 %v2798_v24  ;;  %7750 = vmatprep.subr.bf16.mxu0 %v7749_v34  ;;  %v2804_v62 = vsel %vm1115_vm3, %v9881_v60, 0.0  ;;  %v8202_v40 = vunpack.i.h.bf16 %v8200_v15  ;;  %v8201_v6 = vunpack.i.l.bf16 %v8200_v15 }
 0x6af   : > { %v9883_v12 = vpop.eup %8466  ;;  %v7757_v31 = vpack.c.bf16 %v8202_v40, %v8201_v6 }
 0x6b0   : > { %v2801_v11 = vsel %vm1115_vm3, %v9883_v12, 0.0  ;;  %v9909_v1 = vpop.eup %8468 }
 0x6b1   : > { %2805 = vadd.xlane.f32.xlu1 %v2804_v62  ;;  %2802 = vadd.xlane.f32.xlu0 %v2801_v11  ;;  %v2810_v3 = vsel %vm1115_vm3, %v9909_v1, 0.0 }
 0x6b3   : > { %v9913_v48 = vpop.eup %8470 }
 0x6b4   : > { %v2807_v53 = vsel %vm1115_vm3, %v9913_v48, 0.0 }
 0x6c2   : > { %8214 = vrot.lane.b32.xlu1 %v9237_v35, %s8711_s19 }
 0x6c6   : > { %8224 = vrot.lane.b32.xlu1 %v9263_v2, %s8711_s19 }
 0x6c7   : > { %8209 = vrot.lane.b32.xlu0 %v9223_v30, %s8711_s19 }
 0x6ca   : > { %4199 = vrot.lane.b32.xlu1 %v9693_v49, %s8712_s20 }
 0x6cb   : > { %8219 = vrot.lane.b32.xlu0 %v9251_v50, %s8711_s19 }
 0x6ce   : > { %4203 = vrot.lane.b32.xlu1 %v9698_v27, %s8712_s20 }
 0x6cf   : > { %4197 = vrot.lane.b32.xlu0 %v9589_v16, %s8712_s20 }
 0x6d3   : > { %4201 = vrot.lane.b32.xlu0 %v9639_v61, %s8712_s20 }
 0x6d7   : > { %4205 = vrot.lane.b32.xlu0 %v9647_v57, %s8712_s20 }
 0x6f2   : > { %2811 = vadd.xlane.f32.xlu1 %v2810_v3 }
 0x6f6   : > { %2808 = vadd.xlane.f32.xlu1 %v2807_v53  ;;  %v7159_v23 = vpop.f32.mrb[24].mxu0 }
 0x6f7   : > { %v2396_v20 = vpop.f32.mrb[25].mxu0 }
 0x6f8   : > { %7171 = vmatprep.mubr.msk.f32.mxu0 %vm969_vm1, %v2396_v20 }
 0x6f9   : > { %7172 = vmatmul.mubr.msk.f32.vlgmr.msra.gmra.mrb[16].mxu0 %vm969_vm1, %v7159_v23 }
 0x6fa   : > { %7752 = vmatpush3.bf16.msra.mxu0 %v7749_v34  ;;  %v7162_v46 = vpop.f32.mrb[26].mxu0 }
 0x6fb   : > { %7754 = vmatprep.subr.bf16.mxu0 %v7753_v14  ;;  %v2406_v19 = vpop.f32.mrb[27].mxu0 }
 0x6fc   : > { %7174 = vmatprep.mubr.msk.f32.mxu0 %vm969_vm1, %v2406_v19 }
 0x6fd   : > { %7175 = vmatmul.mubr.msk.f32.gmra.mrb[18].mxu0 %vm969_vm1, %v7162_v46 }
 0x6fe   : > { %7756 = vmatpush3.bf16.msra.mxu0 %v7753_v14  ;;  %v7165_v9 = vpop.f32.mrb[28].mxu0 }
 0x6ff   : > { %7758 = vmatprep.subr.bf16.mxu0 %v7757_v31  ;;  %v2416_v22 = vpop.f32.mrb[29].mxu0 }
 0x700   : > { %7177 = vmatprep.mubr.msk.f32.mxu0 %vm969_vm1, %v2416_v22 }
 0x701   : > { %7178 = vmatmul.mubr.msk.f32.gmra.mrb[20].mxu0 %vm969_vm1, %v7165_v9 }
 0x702   : > { %7760 = vmatpush3.bf16.msra.mxu0 %v7757_v31 }
 0x703   : > { %7762 = vmatprep.subr.bf16.mxu0 %v7761_v7 }
 0x706   : > { %7764 = vmatpush3.bf16.msra.mxu0 %v7761_v7 }
 0x707   : > { %4207 = vrot.lane.b32.xlu1 %v9705_v17, %s8712_s20 }
 0x726   : > { %v7168_v13 = vpop.f32.mrb[30].mxu0 }
 0x727   : > { %v2426_v42 = vpop.f32.mrb[31].mxu0 }
 0x728   : > { %7180 = vmatprep.mubr.msk.f32.mxu0 %vm969_vm1, %v2426_v42 }
 0x729   : > { %7181 = vmatmul.mubr.msk.f32.gmra.mrb[22].mxu0 %vm969_vm1, %v7168_v13 }
 0x732   : > { %v2791_v21 = vpop.xlane.xlu0 %2790 }
 0x733   : > { %8472 = vrcp.f32 %v2791_v21  ;;  %v2794_v51 = vpop.xlane.xlu1 %2793 }
 0x734   : > { %8474 = vrcp.f32 %v2794_v51 }
 0x736   : > { %v2797_v59 = vpop.xlane.xlu0 %2796 }
 0x737   : > { %8476 = vrcp.f32 %v2797_v59 }
 0x738   : > { %v9927_v63 = vpop.f32.mrb[48].mxu1 }
 0x739   : > { %v9929_v44 = vpop.f32.mrb[49].mxu1  ;;  %v3291_v39 = vsel %vm1115_vm3, %v9927_v63, -inf }
 0x73a   : > { %v2800_v38 = vpop.xlane.xlu1 %2799  ;;  %3292 = vmax.xlane.f32.xlu1 %v3291_v39  ;;  %v3288_v47 = vsel %vm1115_vm3, %v9929_v44, -inf }
 0x73b   : > { %8478 = vrcp.f32 %v2800_v38  ;;  %3289 = vmax.xlane.f32.xlu0 %v3288_v47 }
 0x73c   : > { %v9935_v29 = vpop.f32.mrb[50].mxu1 }
 0x73d   : > { %v8473_v4 = vpop.eup %8472  ;;  %v9937_v54 = vpop.f32.mrb[51].mxu1 }
 0x73e   : > { %v8475_v26 = vpop.eup %8474  ;;  %v2806_v34 = vpop.xlane.xlu1 %2805  ;;  %v2821_v62 = vmul.f32 %v8473_v4, %v9865_v55 }
 0x73f   : > { %v2803_v24 = vpop.xlane.xlu0 %2802  ;;  %v2822_v11 = vmul.f32 %v8475_v26, %v9867_v37  ;;  %8480 = vrcp.f32 %v2806_v34  ;;  %v3297_v34 = vsel %vm1115_vm3, %v9935_v29, -inf }
 0x740   : > { %8482 = vrcp.f32 %v2803_v24  ;;  %7227 = vmatprep.mubr.msk.f32.mxu0 %vm1115_vm3, %v2821_v62  ;;  %v9942_v5 = vpop.f32.mrb[52].mxu1  ;;  %v3294_v24 = vsel %vm1115_vm3, %v9937_v54, -inf }
 0x741   : > { %v8477_v0 = vpop.eup %8476  ;;  %7228 = vmatmul.mubr.msk.f32.vlgmr.msra.gmra.mrb[32].mxu0 %vm1115_vm3, %v2822_v11  ;;  %v9945_v28 = vpop.f32.mrb[53].mxu1 }
 0x742   : > { %v8215_v41 = vpop.permute.xlu1 %8214  ;;  %v2823_v3 = vmul.f32 %v8477_v0, %v9873_v52  ;;  %v3300_v11 = vsel %vm1115_vm3, %v9945_v28, -inf }
 0x743   : > { %v8210_v32 = vpop.permute.xlu0 %8209  ;;  %v8217_v8 = vunpack.i.h.bf16 %v8215_v41  ;;  %v8216_v56 = vunpack.i.l.bf16 %v8215_v41  ;;  %v3303_v41 = vsel %vm1115_vm3, %v9942_v5, -inf }
 0x744   : > { %v8212_v55 = vunpack.i.h.bf16 %v8210_v32  ;;  %v8211_v33 = vunpack.i.l.bf16 %v8210_v32  ;;  %7230 = vmatprep.mubr.msk.f32.mxu0 %vm1115_vm3, %v2823_v3  ;;  %v9949_v37 = vpop.f32.mrb[54].mxu1 }
 0x745   : > { %v8479_v53 = vpop.eup %8478  ;;  %v9951_v23 = vpop.f32.mrb[55].mxu1  ;;  %v7851_v6 = vpack.c.bf16 %v8217_v8, %v8216_v56  ;;  %v3309_v62 = vsel %vm1115_vm3, %v9949_v37, -inf }
 0x746   : > { %v7845_v15 = vpack.c.bf16 %v8212_v55, %v8211_v33  ;;  %v2824_v40 = vmul.f32 %v8479_v53, %v9877_v43  ;;  %v8225_v31 = vpop.permute.xlu1 %8224  ;;  %v3306_v3 = vsel %vm1115_vm3, %v9951_v23, -inf }
 0x747   : > { %v8220_v20 = vpop.permute.xlu0 %8219  ;;  %v8226_v9 = vunpack.i.l.bf16 %v8225_v31 }
 0x748   : > { %7847 = vmatprep.subr.msk.bf16.mxu1 %vm9140_vm2, %v7845_v15  ;;  %7231 = vmatmul.mubr.msk.f32.gmra.mrb[34].mxu0 %vm1115_vm3, %v2824_v40  ;;  %v8222_v19 = vunpack.i.h.bf16 %v8220_v20  ;;  %v8221_v18 = vunpack.i.l.bf16 %v8220_v20 }
 0x749   : > { %7850 = vmatpush3.bf16.xpose.msk.msra.mxu1 %vm9140_vm2, %v7845_v15  ;;  %v8481_v52 = vpop.eup %8480 }
 0x74a   : > { %7853 = vmatprep.subr.msk.bf16.mxu1 %vm9140_vm2, %v7851_v6  ;;  %v8483_v14 = vpop.eup %8482  ;;  %v2826_v46 = vmul.f32 %v8481_v52, %v9881_v60  ;;  %v7857_v45 = vpack.c.bf16 %v8222_v19, %v8221_v18  ;;  %v8227_v60 = vunpack.i.h.bf16 %v8225_v31  ;;  %v4200_v59 = vpop.permute.xlu1 %4199  ;;  %v944_v19 = vld [vmem:[%s10987_s5 + $0x18] sm:$0xff] }
 0x74b   : > { %v4198_v10 = vpop.permute.xlu0 %4197  ;;  %4211 = vrot.lane.b32.xlu1 %v9712_v58, %s8712_s20  ;;  %v2825_v43 = vmul.f32 %v8483_v14, %v9883_v12  ;;  %7239 = vmatprep.subr.mxu0 %v944_v19 }
 0x74c   : > { %7409 = vmatprep.mubr.msk.f32.mxu1 %vm969_vm1, %v4198_v10  ;;  %v7863_v22 = vpack.c.bf16 %v8227_v60, %v8226_v9  ;;  %7240 = vmatpush3.msra.mxu0 %v944_v19 }
 0x74d   : > { %7233 = vmatprep.mubr.msk.f32.mxu0 %vm1115_vm3, %v2825_v43 }
 0x74e   : > { %7234 = vmatmul.mubr.msk.f32.gmra.mrb[36].mxu0 %vm1115_vm3, %v2826_v46  ;;  %v4204_v4 = vpop.permute.xlu1 %4203 }
 0x74f   : > { %v4202_v38 = vpop.permute.xlu0 %4201 }
 0x751   : > { %7856 = vmatpush3.bf16.xpose.msk.msra.mxu1 %vm9140_vm2, %v7851_v6  ;;  %4209 = vrot.lane.b32.xlu0 %v9652_v36, %s8712_s20 }
 0x752   : > { %7859 = vmatprep.subr.msk.bf16.mxu1 %vm9140_vm2, %v7857_v45 }
 0x753   : > { %v4206_v26 = vpop.permute.xlu0 %4205 }
 0x758   : > { %v9974_v7 = vpop.f32.mrb[56].mxu1 }
 0x759   : > { %7862 = vmatpush3.bf16.xpose.msk.msra.mxu1 %vm9140_vm2, %v7857_v45  ;;  %v9978_v12 = vpop.f32.mrb[57].mxu1  ;;  %v3701_v0 = vsel %vm1115_vm3, %v9974_v7, -inf }
 0x75a   : > { %7865 = vmatprep.subr.msk.bf16.mxu1 %vm9140_vm2, %v7863_v22  ;;  %v3698_v55 = vsel %vm1115_vm3, %v9978_v12, -inf }
 0x75c   : > { %v9982_v13 = vpop.f32.mrb[58].mxu1 }
 0x75d   : > { %v9984_v42 = vpop.f32.mrb[59].mxu1  ;;  %v3707_v32 = vsel %vm1115_vm3, %v9982_v13, -inf }
 0x75e   : > { %v3704_v15 = vsel %vm1115_vm3, %v9984_v42, -inf }
 0x760   : > { %v9986_v21 = vpop.f32.mrb[60].mxu1 }
 0x761   : > { %7868 = vmatpush3.bf16.xpose.msk.msra.mxu1 %vm9140_vm2, %v7863_v22  ;;  %v9990_v51 = vpop.f32.mrb[61].mxu1  ;;  %v3713_v8 = vsel %vm1115_vm3, %v9986_v21, -inf }
 0x762   : > { %v3710_v40 = vsel %vm1115_vm3, %v9990_v51, -inf }
 0x764   : > { %v9992_v39 = vpop.f32.mrb[62].mxu1 }
 0x765   : > { %v9994_v47 = vpop.f32.mrb[63].mxu1  ;;  %v3719_v33 = vsel %vm1115_vm3, %v9992_v39, -inf }
 0x766   : > { %v3716_v6 = vsel %vm1115_vm3, %v9994_v47, -inf }
 0x768   : > { %7410 = vmatmul.mubr.msk.f32.vlgmr.msra.gmra.mrb[64].mxu1 %vm969_vm1, %v4200_v59 }
 0x769   : > { %7412 = vmatprep.mubr.msk.f32.mxu1 %vm969_vm1, %v4202_v38 }
 0x76c   : > { %7413 = vmatmul.mubr.msk.f32.gmra.mrb[66].mxu1 %vm969_vm1, %v4204_v4 }
 0x76d   : > { %7415 = vmatprep.mubr.msk.f32.mxu1 %vm969_vm1, %v4206_v26 }
 0x76f   : > { %3298 = vmax.xlane.f32.xlu1 %v3297_v34 }
 0x770   : > { %3295 = vmax.xlane.f32.xlu0 %v3294_v24 }
 0x773   : > { %3310 = vmax.xlane.f32.xlu1 %v3309_v62 }
 0x774   : > { %3301 = vmax.xlane.f32.xlu0 %v3300_v11 }
 0x777   : > { %3702 = vmax.xlane.f32.xlu1 %v3701_v0 }
 0x778   : > { %3304 = vmax.xlane.f32.xlu0 %v3303_v41 }
 0x77b   : > { %3708 = vmax.xlane.f32.xlu1 %v3707_v32 }
 0x77c   : > { %3307 = vmax.xlane.f32.xlu0 %v3306_v3 }
 0x77f   : > { %v2812_v56 = vpop.xlane.xlu1 %2811  ;;  %3714 = vmax.xlane.f32.xlu1 %v3713_v8 }
 0x780   : > { %3699 = vmax.xlane.f32.xlu0 %v3698_v55  ;;  %8484 = vrcp.f32 %v2812_v56 }
 0x783   : > { %3720 = vmax.xlane.f32.xlu1 %v3719_v33  ;;  %v2809_v53 = vpop.xlane.xlu1 %2808 }
 0x784   : > { %8486 = vrcp.f32 %v2809_v53  ;;  %3705 = vmax.xlane.f32.xlu0 %v3704_v15 }
 0x787   : > { %v4208_v20 = vpop.permute.xlu1 %4207 }
 0x788   : > { %3711 = vmax.xlane.f32.xlu0 %v3710_v40  ;;  %7416 = vmatmul.mubr.msk.f32.gmra.mrb[68].mxu1 %vm969_vm1, %v4208_v20 }
 0x78a   : > { %v8485_v52 = vpop.eup %8484 }
 0x78b   : > { %v2828_v46 = vmul.f32 %v8485_v52, %v9909_v1 }
 0x78c   : > { %3717 = vmax.xlane.f32.xlu0 %v3716_v6 }
 0x78e   : > { %v8487_v14 = vpop.eup %8486 }
 0x78f   : > { %v2827_v10 = vmul.f32 %v8487_v14, %v9913_v48 }
 0x791   : > { %7236 = vmatprep.mubr.msk.f32.mxu0 %vm1115_vm3, %v2827_v10 }
 0x792   : > { %7237 = vmatmul.mubr.msk.f32.gmra.mrb[38].mxu0 %vm1115_vm3, %v2828_v46 }
 0x794   : > { %8234 = vrot.lane.b32.xlu1 %v9237_v35, %s8713_s21 }
 0x798   : > { %8244 = vrot.lane.b32.xlu1 %v9263_v2, %s8713_s21 }
 0x7a2   : > { %8229 = vrot.lane.b32.xlu0 %v9223_v30, %s8713_s21 }
 0x7a6   : > { %8239 = vrot.lane.b32.xlu0 %v9251_v50, %s8713_s21 }
 0x7aa   : > { %8249 = vrot.lane.b32.xlu0 %v9223_v30, %s8714_s22 }
 0x7ae   : > { %8254 = vrot.lane.b32.xlu0 %v9237_v35, %s8714_s22 }
 0x7c7   : > { %v3293_v1 = vpop.xlane.xlu1 %3292 }
 0x7c8   : > { %v3313_v48 = vsub.f32 %v9927_v63, %v3293_v1  ;;  %v3290_v18 = vpop.xlane.xlu0 %3289 }
 0x7c9   : > { %v3312_v43 = vsub.f32 %v9929_v44, %v3290_v18 }
 0x7ca   : > { %v3322_v45 = vmul.f32 1.442695, %v3313_v48 }
 0x7cb   : > { %v3320_v31 = vmul.f32 1.442695, %v3312_v43  ;;  %v4212_v9 = vpop.permute.xlu1 %4211 }
 0x7cc   : > { %8488 = vpow2.f32 %v3322_v45  ;;  %v4210_v60 = vpop.permute.xlu0 %4209 }
 0x7cd   : > { %8490 = vpow2.f32 %v3320_v31  ;;  %7418 = vmatprep.mubr.msk.f32.mxu1 %vm969_vm1, %v4210_v60 }
 0x7ce   : > { %7419 = vmatmul.mubr.msk.f32.gmra.mrb[70].mxu1 %vm969_vm1, %v4212_v9 }
 0x7d6   : > { %v10052_v22 = vpop.eup %8488 }
 0x7d7   : > { %v10054_v59 = vpop.eup %8490  ;;  %v3339_v63 = vsel %vm1115_vm3, %v10052_v22, 0.0 }
 0x7d8   : > { %3340 = vadd.xlane.f32.xlu1 %v3339_v63  ;;  %v3336_v44 = vsel %vm1115_vm3, %v10054_v59, 0.0 }
 0x7d9   : > { %3337 = vadd.xlane.f32.xlu0 %v3336_v44 }
 0x7fc   : > { %v3299_v38 = vpop.xlane.xlu1 %3298 }
 0x7fd   : > { %v3315_v4 = vsub.f32 %v9935_v29, %v3299_v38  ;;  %v3296_v26 = vpop.xlane.xlu0 %3295 }
 0x7fe   : > { %v3314_v34 = vsub.f32 %v9937_v54, %v3296_v26 }
 0x7ff   : > { %v3326_v24 = vmul.f32 1.442695, %v3315_v4 }
 0x800   : > { %v3324_v62 = vmul.f32 1.442695, %v3314_v34  ;;  %v3311_v11 = vpop.xlane.xlu1 %3310 }
 0x801   : > { %8492 = vpow2.f32 %v3326_v24  ;;  %v3302_v0 = vpop.xlane.xlu0 %3301  ;;  %v3319_v32 = vsub.f32 %v9949_v37, %v3311_v11 }
 0x802   : > { %8494 = vpow2.f32 %v3324_v62  ;;  %v3316_v41 = vsub.f32 %v9945_v28, %v3302_v0 }
 0x803   : > { %v3334_v29 = vmul.f32 1.442695, %v3319_v32 }
 0x804   : > { %v3328_v3 = vmul.f32 1.442695, %v3316_v41  ;;  %v3703_v8 = vpop.xlane.xlu1 %3702 }
 0x805   : > { %v3305_v56 = vpop.xlane.xlu0 %3304  ;;  %v3723_v28 = vsub.f32 %v9974_v7, %v3703_v8 }
 0x806   : > { %8496 = vpow2.f32 %v3328_v3  ;;  %v3317_v55 = vsub.f32 %v9942_v5, %v3305_v56 }
 0x807   : > { %v3732_v46 = vmul.f32 1.442695, %v3723_v28 }
 0x808   : > { %v3330_v33 = vmul.f32 1.442695, %v3317_v55  ;;  %v3709_v53 = vpop.xlane.xlu1 %3708 }
 0x809   : > { %v3308_v54 = vpop.xlane.xlu0 %3307  ;;  %v3725_v19 = vsub.f32 %v9982_v13, %v3709_v53 }
 0x80a   : > { %8498 = vpow2.f32 %v3330_v33  ;;  %v3318_v15 = vsub.f32 %v9951_v23, %v3308_v54 }
 0x80b   : > { %v10066_v20 = vpop.eup %8492  ;;  %8500 = vpow2.f32 %v3334_v29  ;;  %v3736_v43 = vmul.f32 1.442695, %v3725_v19 }
 0x80c   : > { %v10068_v40 = vpop.eup %8494  ;;  %v3332_v37 = vmul.f32 1.442695, %v3318_v15  ;;  %v3345_v6 = vsel %vm1115_vm3, %v10066_v20, 0.0  ;;  %v3715_v14 = vpop.xlane.xlu1 %3714 }
 0x80d   : > { %3346 = vadd.xlane.f32.xlu1 %v3345_v6  ;;  %v3700_v5 = vpop.xlane.xlu0 %3699  ;;  %v3342_v52 = vsel %vm1115_vm3, %v10068_v40, 0.0  ;;  %v3727_v38 = vsub.f32 %v9986_v21, %v3715_v14 }
 0x80e   : > { %v3722_v10 = vsub.f32 %v9978_v12, %v3700_v5  ;;  %3343 = vadd.xlane.f32.xlu0 %v3342_v52  ;;  %8502 = vpow2.f32 %v3332_v37 }
 0x80f   : > { %v3740_v0 = vmul.f32 1.442695, %v3727_v38 }
 0x810   : > { %v10076_v23 = vpop.eup %8496  ;;  %v3730_v7 = vmul.f32 1.442695, %v3722_v10  ;;  %v3721_v45 = vpop.xlane.xlu1 %3720 }
 0x811   : > { %v3706_v1 = vpop.xlane.xlu0 %3705  ;;  %v3348_v48 = vsel %vm1115_vm3, %v10076_v23, 0.0  ;;  %v3729_v41 = vsub.f32 %v9992_v39, %v3721_v45 }
 0x812   : > { %8504 = vpow2.f32 %v3730_v7  ;;  %3349 = vadd.xlane.f32.xlu0 %v3348_v48  ;;  %v3724_v12 = vsub.f32 %v9984_v42, %v3706_v1 }
 0x813   : > { %8506 = vpow2.f32 %v3732_v46  ;;  %v3744_v39 = vmul.f32 1.442695, %v3729_v41 }
 0x814   : > { %v10081_v18 = vpop.eup %8498  ;;  %v7229_v31 = vpop.f32.mrb[32].mxu0  ;;  %8508 = vpow2.f32 %v3736_v43  ;;  %v3734_v4 = vmul.f32 1.442695, %v3724_v12 }
 0x815   : > { %v3712_v60 = vpop.xlane.xlu0 %3711  ;;  %v2943_v9 = vpop.f32.mrb[33].mxu0  ;;  %v3351_v13 = vsel %vm1115_vm3, %v10081_v18, 0.0 }
 0x816   : > { %v10086_v63 = vpop.eup %8500  ;;  %v3726_v44 = vsub.f32 %v9990_v51, %v3712_v60  ;;  %3352 = vadd.xlane.f32.xlu1 %v3351_v13  ;;  %7241 = vmatprep.mubr.msk.f32.mxu0 %vm969_vm1, %v2943_v9  ;;  %v8235_v62 = vpop.permute.xlu1 %8234 }
 0x817   : > { %7242 = vmatmul.mubr.msk.f32.vlgmr.msra.gmra.mrb[16].mxu0 %vm969_vm1, %v7229_v31  ;;  %v3357_v34 = vsel %vm1115_vm3, %v10086_v63, 0.0  ;;  %v8237_v55 = vunpack.i.h.bf16 %v8235_v62  ;;  %v8236_v29 = vunpack.i.l.bf16 %v8235_v62 }
 0x818   : > { %v3738_v42 = vmul.f32 1.442695, %v3726_v44  ;;  %v10094_v24 = vpop.eup %8502 }
 0x819   : > { %v3718_v26 = vpop.xlane.xlu0 %3717  ;;  %v3354_v3 = vsel %vm1115_vm3, %v10094_v24, 0.0  ;;  %v7793_v46 = vpack.c.bf16 %v8237_v55, %v8236_v29 }
 0x81a   : > { %8510 = vpow2.f32 %v3738_v42  ;;  %3358 = vadd.xlane.f32.xlu1 %v3357_v34  ;;  %v3728_v54 = vsub.f32 %v9994_v47, %v3718_v26  ;;  %v8245_v19 = vpop.permute.xlu1 %8244 }
 0x81b   : > { %v7232_v51 = vpop.f32.mrb[34].mxu0  ;;  %8512 = vpow2.f32 %v3734_v4  ;;  %v8247_v45 = vunpack.i.h.bf16 %v8245_v19  ;;  %v8246_v12 = vunpack.i.l.bf16 %v8245_v19 }
 0x81c   : > { %v10096_v11 = vpop.eup %8504  ;;  %v2953_v32 = vpop.f32.mrb[35].mxu0  ;;  %8514 = vpow2.f32 %v3740_v0  ;;  %v3742_v47 = vmul.f32 1.442695, %v3728_v54 }
 0x81d   : > { %v8230_v21 = vpop.permute.xlu0 %8229  ;;  %7244 = vmatprep.mubr.msk.f32.mxu0 %vm969_vm1, %v2953_v32  ;;  %v3746_v8 = vsel %vm1115_vm3, %v10096_v11, 0.0  ;;  %v10104_v56 = vpop.eup %8506  ;;  %8516 = vpow2.f32 %v3744_v39  ;;  %v7801_v4 = vpack.c.bf16 %v8247_v45, %v8246_v12 }
 0x81e   : > { %v8232_v33 = vunpack.i.h.bf16 %v8230_v21  ;;  %v8231_v53 = vunpack.i.l.bf16 %v8230_v21  ;;  %3355 = vadd.xlane.f32.xlu1 %v3354_v3  ;;  %3747 = vadd.xlane.f32.xlu0 %v3746_v8  ;;  %v3749_v6 = vsel %vm1115_vm3, %v10104_v56, 0.0  ;;  %v10110_v5 = vpop.eup %8508  ;;  %8518 = vpow2.f32 %v3742_v47 }
 0x81f   : > { %7245 = vmatmul.mubr.msk.f32.gmra.mrb[18].mxu0 %vm969_vm1, %v7232_v51  ;;  %v3755_v1 = vsel %vm1115_vm3, %v10110_v5, 0.0 }
 0x820   : > { %v7789_v15 = vpack.c.bf16 %v8232_v33, %v8231_v53 }
 0x821   : > { %v7235_v28 = vpop.f32.mrb[36].mxu0  ;;  %v8240_v37 = vpop.permute.xlu0 %8239 }
 0x822   : > { %v8242_v52 = vunpack.i.h.bf16 %v8240_v37  ;;  %v8241_v14 = vunpack.i.l.bf16 %v8240_v37  ;;  %v2963_v10 = vpop.f32.mrb[37].mxu0  ;;  %3750 = vadd.xlane.f32.xlu1 %v3749_v6  ;;  %7790 = vmatprep.subr.bf16.mxu0 %v7789_v15 }
 0x823   : > { %7247 = vmatprep.mubr.msk.f32.mxu0 %vm969_vm1, %v2963_v10  ;;  %7792 = vmatpush3.bf16.msra.mxu0 %v7789_v15 }
 0x824   : > { %v10113_v7 = vpop.eup %8510  ;;  %7248 = vmatmul.mubr.msk.f32.gmra.mrb[20].mxu0 %vm969_vm1, %v7235_v28  ;;  %7794 = vmatprep.subr.bf16.mxu0 %v7793_v46  ;;  %v7797_v31 = vpack.c.bf16 %v8242_v52, %v8241_v14 }
 0x825   : > { %v3758_v48 = vsel %vm1115_vm3, %v10113_v7, 0.0  ;;  %v10120_v43 = vpop.eup %8512  ;;  %v8250_v60 = vpop.permute.xlu0 %8249 }
 0x826   : > { %3756 = vadd.xlane.f32.xlu1 %v3755_v1  ;;  %3759 = vadd.xlane.f32.xlu0 %v3758_v48  ;;  %v3752_v9 = vsel %vm1115_vm3, %v10120_v43, 0.0  ;;  %v10124_v13 = vpop.eup %8514  ;;  %v8252_v44 = vunpack.i.h.bf16 %v8250_v60  ;;  %v8251_v38 = vunpack.i.l.bf16 %v8250_v60 }
 0x827   : > { %7796 = vmatpush3.bf16.msra.mxu0 %v7793_v46  ;;  %v3761_v42 = vsel %vm1115_vm3, %v10124_v13, 0.0  ;;  %v10128_v26 = vpop.eup %8516 }
 0x828   : > { %7798 = vmatprep.subr.bf16.mxu0 %v7797_v31  ;;  %v7829_v34 = vpack.c.bf16 %v8252_v44, %v8251_v38  ;;  %v3767_v62 = vsel %vm1115_vm3, %v10128_v26, 0.0  ;;  %v10132_v51 = vpop.eup %8518 }
 0x829   : > { %v3764_v0 = vsel %vm1115_vm3, %v10132_v51, 0.0 }
 0x82a   : > { %3753 = vadd.xlane.f32.xlu1 %v3752_v9 }
 0x82b   : > { %7800 = vmatpush3.bf16.msra.mxu0 %v7797_v31 }
 0x82c   : > { %7802 = vmatprep.subr.bf16.mxu0 %v7801_v4 }
 0x82e   : > { %3762 = vadd.xlane.f32.xlu1 %v3761_v42 }
 0x82f   : > { %7804 = vmatpush3.bf16.msra.mxu0 %v7801_v4 }
 0x830   : > { %7830 = vmatprep.subr.bf16.mxu0 %v7829_v34 }
 0x832   : > { %3768 = vadd.xlane.f32.xlu1 %v3767_v62 }
 0x836   : > { %3765 = vadd.xlane.f32.xlu1 %v3764_v0 }
 0x83b   : > { %v10136_v41 = vpop.f32.mrb[64].mxu1 }
 0x83c   : > { %v10138_v32 = vpop.f32.mrb[65].mxu1  ;;  %8264 = vrot.lane.b32.xlu0 %v9263_v2, %s8714_s22 }
 0x83d   : > { %v4366_v54 = vsel %vm1115_vm3, %v10138_v32, -inf }
 0x83f   : > { %v10142_v21 = vpop.f32.mrb[66].mxu1 }
 0x840   : > { %v10144_v3 = vpop.f32.mrb[67].mxu1  ;;  %8269 = vrot.lane.b32.xlu0 %v9223_v30, %s8715_s23 }
 0x841   : > { %v4372_v15 = vsel %vm1115_vm3, %v10144_v3, -inf }
 0x844   : > { %8274 = vrot.lane.b32.xlu0 %v9237_v35, %s8715_s23 }
 0x847   : > { %8259 = vrot.lane.b32.xlu1 %v9251_v50, %s8714_s22 }
 0x848   : > { %8279 = vrot.lane.b32.xlu0 %v9251_v50, %s8715_s23 }
 0x84b   : > { %8284 = vrot.lane.b32.xlu1 %v9263_v2, %s8715_s23 }
 0x84c   : > { %4744 = vrot.lane.b32.xlu0 %v9589_v16, %s8716_s24 }
 0x84f   : > { %4746 = vrot.lane.b32.xlu1 %v9693_v49, %s8716_s24 }
 0x850   : > { %4748 = vrot.lane.b32.xlu0 %v9639_v61, %s8716_s24  ;;  %v8255_v61 = vpop.permute.xlu0 %8254 }
 0x851   : > { %v8256_v33 = vunpack.i.l.bf16 %v8255_v61 }
 0x853   : > { %4750 = vrot.lane.b32.xlu1 %v9698_v27, %s8716_s24 }
 0x854   : > { %4752 = vrot.lane.b32.xlu0 %v9647_v57, %s8716_s24 }
 0x857   : > { %4754 = vrot.lane.b32.xlu1 %v9705_v17, %s8716_s24  ;;  %v8257_v17 = vunpack.i.h.bf16 %v8255_v61 }
 0x858   : > { %4756 = vrot.lane.b32.xlu0 %v9652_v36, %s8716_s24 }
 0x859   : > { %v7833_v39 = vpack.c.bf16 %v8257_v17, %v8256_v33 }
 0x85b   : > { %4758 = vrot.lane.b32.xlu1 %v9712_v58, %s8716_s24  ;;  %v10172_v16 = vpop.f32.mrb[68].mxu1  ;;  %s10999_s24 = sshll.u32 %s11001_s27, 6 }
 0x85c   : > { %v10174_v49 = vpop.f32.mrb[69].mxu1  ;;  %v4381_v28 = vsel %vm1115_vm3, %v10172_v16, -inf  ;;  %s10929_s30 = scalar_lea.vmem %s10995_s13, %s10999_s24 }
 0x85d   : > { %v4378_v37 = vsel %vm1115_vm3, %v10174_v49, -inf }
 0x865   : > { %v3341_v8 = vpop.xlane.xlu1 %3340  ;;  %v7238_v55 = vpop.f32.mrb[38].mxu0 }
 0x866   : > { %8520 = vrcp.f32 %v3341_v8  ;;  %v3338_v27 = vpop.xlane.xlu0 %3337  ;;  %v2973_v29 = vpop.f32.mrb[39].mxu0 }
 0x867   : > { %8522 = vrcp.f32 %v3338_v27  ;;  %7250 = vmatprep.mubr.msk.f32.mxu0 %vm969_vm1, %v2973_v29 }
 0x868   : > { %7251 = vmatmul.mubr.msk.f32.gmra.mrb[22].mxu0 %vm969_vm1, %v7238_v55 }
 0x870   : > { %v8521_v57 = vpop.eup %8520 }
 0x871   : > { %v8523_v36 = vpop.eup %8522  ;;  %v3369_v53 = vmul.f32 %v8521_v57, %v10052_v22  ;;  %v4375_v22 = vsel %vm1115_vm3, %v10142_v21, -inf }
 0x872   : > { %v3368_v58 = vmul.f32 %v8523_v36, %v10054_v59  ;;  %v4369_v59 = vsel %vm1115_vm3, %v10136_v41, -inf }
 0x874   : > { %7297 = vmatprep.mubr.msk.f32.mxu0 %vm1115_vm3, %v3368_v58 }
 0x875   : > { %7298 = vmatmul.mubr.msk.f32.vlgmr.msra.gmra.mrb[40].mxu0 %vm1115_vm3, %v3369_v53 }
 0x876   : > { %7832 = vmatpush3.bf16.msra.mxu0 %v7829_v34 }
 0x877   : > { %7834 = vmatprep.subr.bf16.mxu0 %v7833_v39  ;;  %4367 = vmax.xlane.f32.xlu0 %v4366_v54 }
 0x87a   : > { %7836 = vmatpush3.bf16.msra.mxu0 %v7833_v39 }
 0x87b   : > { %4373 = vmax.xlane.f32.xlu0 %v4372_v15 }
 0x87f   : > { %4370 = vmax.xlane.f32.xlu1 %v4369_v59  ;;  %4376 = vmax.xlane.f32.xlu0 %v4375_v22 }
 0x883   : > { %4382 = vmax.xlane.f32.xlu1 %v4381_v28  ;;  %4379 = vmax.xlane.f32.xlu0 %v4378_v37 }
 0x89a   : > { %v3347_v6 = vpop.xlane.xlu1 %3346 }
 0x89b   : > { %8524 = vrcp.f32 %v3347_v6  ;;  %v3344_v52 = vpop.xlane.xlu0 %3343 }
 0x89c   : > { %8526 = vrcp.f32 %v3344_v52 }
 0x89f   : > { %v3350_v14 = vpop.xlane.xlu0 %3349 }
 0x8a0   : > { %8528 = vrcp.f32 %v3350_v14 }
 0x8a1   : > { %v10194_v10 = vpop.f32.mrb[70].mxu1 }
 0x8a2   : > { %v10196_v46 = vpop.f32.mrb[71].mxu1  ;;  %v4387_v19 = vsel %vm1115_vm3, %v10194_v10, -inf }
 0x8a3   : > { %v3353_v47 = vpop.xlane.xlu1 %3352  ;;  %4388 = vmax.xlane.f32.xlu1 %v4387_v19  ;;  %v4384_v1 = vsel %vm1115_vm3, %v10196_v46, -inf }
 0x8a4   : > { %8530 = vrcp.f32 %v3353_v47  ;;  %4385 = vmax.xlane.f32.xlu0 %v4384_v1 }
 0x8a5   : > { %v8525_v48 = vpop.eup %8524 }
 0x8a6   : > { %v8527_v45 = vpop.eup %8526  ;;  %v3371_v60 = vmul.f32 %v8525_v48, %v10066_v20 }
 0x8a7   : > { %v3359_v12 = vpop.xlane.xlu1 %3358  ;;  %v3370_v31 = vmul.f32 %v8527_v45, %v10068_v40 }
 0x8a8   : > { %8532 = vrcp.f32 %v3359_v12 }
 0x8a9   : > { %7300 = vmatprep.mubr.msk.f32.mxu0 %vm1115_vm3, %v3370_v31 }
 0x8aa   : > { %v8529_v9 = vpop.eup %8528  ;;  %7301 = vmatmul.mubr.msk.f32.gmra.mrb[42].mxu0 %vm1115_vm3, %v3371_v60 }
 0x8ab   : > { %v3356_v44 = vpop.xlane.xlu1 %3355  ;;  %v3748_v38 = vpop.xlane.xlu0 %3747  ;;  %v3372_v4 = vmul.f32 %v8529_v9, %v10076_v23 }
 0x8ac   : > { %8534 = vrcp.f32 %v3356_v44 }
 0x8ad   : > { %8536 = vrcp.f32 %v3748_v38  ;;  %7303 = vmatprep.mubr.msk.f32.mxu0 %vm1115_vm3, %v3372_v4  ;;  %v8680_v4 = vld [vmem:[%s10987_s5 + $0x8] sm:$0xff] }
 0x8ae   : > { %v8531_v42 = vpop.eup %8530 }
 0x8af   : > { %v3751_v34 = vpop.xlane.xlu1 %3750  ;;  %v3373_v40 = vmul.f32 %v8531_v42, %v10081_v18 }
 0x8b0   : > { %8538 = vrcp.f32 %v3751_v34 }
 0x8b1   : > { %7304 = vmatmul.mubr.msk.f32.gmra.mrb[44].mxu0 %vm1115_vm3, %v3373_v40 }
 0x8b2   : > { %v8533_v0 = vpop.eup %8532 }
 0x8b3   : > { %v3757_v20 = vpop.xlane.xlu1 %3756  ;;  %v3760_v62 = vpop.xlane.xlu0 %3759  ;;  %v3375_v29 = vmul.f32 %v8533_v0, %v10086_v63 }
 0x8b4   : > { %8294 = vrot.lane.b32.xlu1 %v9237_v35, %s8717_s26 }
 0x8b6   : > { %v8535_v61 = vpop.eup %8534 }
 0x8b7   : > { %v8537_v8 = vpop.eup %8536  ;;  %v3754_v55 = vpop.xlane.xlu1 %3753  ;;  %v3374_v27 = vmul.f32 %v8535_v61, %v10094_v24 }
 0x8b8   : > { %v8265_v23 = vpop.permute.xlu0 %8264  ;;  %v3778_v18 = vmul.f32 %v8537_v8, %v10096_v11  ;;  %8540 = vrcp.f32 %v3754_v55 }
 0x8b9   : > { %7306 = vmatprep.mubr.msk.f32.mxu0 %vm1115_vm3, %v3374_v27  ;;  %v8267_v28 = vunpack.i.h.bf16 %v8265_v23  ;;  %v8266_v52 = vunpack.i.l.bf16 %v8265_v23  ;;  %8542 = vrcp.f32 %v3757_v20 }
 0x8ba   : > { %8289 = vrot.lane.b32.xlu0 %v9223_v30, %s8717_s26  ;;  %7307 = vmatmul.mubr.msk.f32.gmra.mrb[46].mxu0 %vm1115_vm3, %v3375_v29  ;;  %8544 = vrcp.f32 %v3760_v62  ;;  %v8539_v60 = vpop.eup %8538 }
 0x8bb   : > { %v3763_v57 = vpop.xlane.xlu1 %3762  ;;  %7353 = vmatprep.mubr.msk.f32.mxu0 %vm1115_vm3, %v3778_v18  ;;  %v7841_v45 = vpack.c.bf16 %v8267_v28, %v8266_v52  ;;  %v3779_v38 = vmul.f32 %v8539_v60, %v10104_v56  ;;  %v10246_v56 = vld [vmem:[%s10987_s5] sm:$0xff] }
 0x8bc   : > { %v8270_v36 = vpop.permute.xlu0 %8269  ;;  %8546 = vrcp.f32 %v3763_v57 }
 0x8bd   : > { %v8272_v17 = vunpack.i.h.bf16 %v8270_v36  ;;  %v8271_v33 = vunpack.i.l.bf16 %v8270_v36 }
 0x8bf   : > { %v7885_v58 = vpack.c.bf16 %v8272_v17, %v8271_v33  ;;  %v3769_v53 = vpop.xlane.xlu1 %3768 }
 0x8c0   : > { %v8275_v24 = vpop.permute.xlu0 %8274 }
 0x8c1   : > { %v8277_v39 = vunpack.i.h.bf16 %v8275_v24  ;;  %v8276_v63 = vunpack.i.l.bf16 %v8275_v24  ;;  %7887 = vmatprep.subr.msk.bf16.mxu1 %vm9140_vm2, %v7885_v58 }
 0x8c2   : > { %7890 = vmatpush3.bf16.xpose.msk.msra.mxu1 %vm9140_vm2, %v7885_v58  ;;  %v8541_v9 = vpop.eup %8540 }
 0x8c3   : > { %v7891_v11 = vpack.c.bf16 %v8277_v39, %v8276_v63  ;;  %v3766_v54 = vpop.xlane.xlu1 %3765  ;;  %v8543_v42 = vpop.eup %8542  ;;  %v3780_v34 = vmul.f32 %v8541_v9, %v10120_v43 }
 0x8c4   : > { %v8280_v15 = vpop.permute.xlu0 %8279  ;;  %8548 = vrcp.f32 %v3766_v54  ;;  %v8545_v40 = vpop.eup %8544  ;;  %v3781_v20 = vmul.f32 %v8543_v42, %v10110_v5 }
 0x8c5   : > { %v8282_v59 = vunpack.i.h.bf16 %v8280_v15  ;;  %v8281_v22 = vunpack.i.l.bf16 %v8280_v15  ;;  %7893 = vmatprep.subr.msk.bf16.mxu1 %vm9140_vm2, %v7891_v11  ;;  %8550 = vrcp.f32 %v3769_v53  ;;  %v3782_v0 = vmul.f32 %v8545_v40, %v10113_v7 }
 0x8c6   : > { %v8547_v62 = vpop.eup %8546 }
 0x8c7   : > { %v8260_v37 = vpop.permute.xlu1 %8259  ;;  %v7897_v14 = vpack.c.bf16 %v8282_v59, %v8281_v22  ;;  %v3783_v5 = vmul.f32 %v8547_v62, %v10124_v13 }
 0x8c8   : > { %v4745_v6 = vpop.permute.xlu0 %4744  ;;  %v8262_v19 = vunpack.i.h.bf16 %v8260_v37  ;;  %v8261_v47 = vunpack.i.l.bf16 %v8260_v37 }
 0x8c9   : > { %7479 = vmatprep.mubr.msk.f32.mxu1 %vm969_vm1, %v4745_v6 }
 0x8ca   : > { %7896 = vmatpush3.bf16.xpose.msk.msra.mxu1 %vm9140_vm2, %v7891_v11  ;;  %v7837_v1 = vpack.c.bf16 %v8262_v19, %v8261_v47 }
 0x8cb   : > { %7899 = vmatprep.subr.msk.bf16.mxu1 %vm9140_vm2, %v7897_v14  ;;  %v8285_v48 = vpop.permute.xlu1 %8284 }
 0x8cc   : > { %v8287_v12 = vunpack.i.h.bf16 %v8285_v48  ;;  %v8286_v31 = vunpack.i.l.bf16 %v8285_v48  ;;  %7838 = vmatprep.subr.bf16.mxu0 %v7837_v1  ;;  %v4749_v23 = vpop.permute.xlu0 %4748 }
 0x8cd   : > { %7840 = vmatpush3.bf16.msra.mxu0 %v7837_v1 }
 0x8ce   : > { %7842 = vmatprep.subr.bf16.mxu0 %v7841_v45  ;;  %v7903_v44 = vpack.c.bf16 %v8287_v12, %v8286_v31  ;;  %v8549_v61 = vpop.eup %8548 }
 0x8cf   : > { %v4747_v43 = vpop.permute.xlu1 %4746  ;;  %v8551_v8 = vpop.eup %8550  ;;  %v3784_v55 = vmul.f32 %v8549_v61, %v10132_v51 }
 0x8d0   : > { %v3785_v7 = vmul.f32 %v8551_v8, %v10128_v26  ;;  %v4753_v25 = vpop.permute.xlu0 %4752 }
 0x8d1   : > { %7844 = vmatpush3.bf16.msra.mxu0 %v7841_v45 }
 0x8d2   : > { %7902 = vmatpush3.bf16.xpose.msk.msra.mxu1 %vm9140_vm2, %v7897_v14  ;;  %7365 = vmatprep.subr.mxu0 %v8680_v4 }
 0x8d3   : > { %7905 = vmatprep.subr.msk.bf16.mxu1 %vm9140_vm2, %v7903_v44  ;;  %v4751_v27 = vpop.permute.xlu1 %4750 }
 0x8d4   : > { %7354 = vmatmul.mubr.msk.f32.vlgmr.msra.gmra.mrb[48].mxu0 %vm1115_vm3, %v3779_v38  ;;  %v4757_v51 = vpop.permute.xlu0 %4756 }
 0x8d5   : > { %7356 = vmatprep.mubr.msk.f32.mxu0 %vm1115_vm3, %v3780_v34  ;;  %7366 = vmatpush3.msra.mxu0 %v8680_v4 }
 0x8d6   : > { %7379 = vmatprep.subr.mxu0 %v10246_v56 }
 0x8d7   : > { %v4755_v13 = vpop.permute.xlu1 %4754 }
 0x8d8   : > { %7357 = vmatmul.mubr.msk.f32.gmra.mrb[50].mxu0 %vm1115_vm3, %v3781_v20 }
 0x8d9   : > { %7359 = vmatprep.mubr.msk.f32.mxu0 %vm1115_vm3, %v3782_v0 }
 0x8da   : > { %7908 = vmatpush3.bf16.xpose.msk.msra.mxu1 %vm9140_vm2, %v7903_v44 }
 0x8db   : > { %v4759_v26 = vpop.permute.xlu1 %4758 }
 0x8dc   : > { %7360 = vmatmul.mubr.msk.f32.gmra.mrb[52].mxu0 %vm1115_vm3, %v3783_v5 }
 0x8dd   : > { %7362 = vmatprep.mubr.msk.f32.mxu0 %vm1115_vm3, %v3784_v55 }
 0x8e0   : > { %7363 = vmatmul.mubr.msk.f32.gmra.mrb[54].mxu0 %vm1115_vm3, %v3785_v7 }
 0x8e1   : > { %7480 = vmatmul.mubr.msk.f32.vlgmr.msra.gmra.mrb[72].mxu1 %vm969_vm1, %v4747_v43 }
 0x8e2   : > { %7482 = vmatprep.mubr.msk.f32.mxu1 %vm969_vm1, %v4749_v23 }
 0x8e5   : > { %7483 = vmatmul.mubr.msk.f32.gmra.mrb[74].mxu1 %vm969_vm1, %v4751_v27 }
 0x8e6   : > { %7485 = vmatprep.mubr.msk.f32.mxu1 %vm969_vm1, %v4753_v25 }
 0x8e9   : > { %7486 = vmatmul.mubr.msk.f32.gmra.mrb[76].mxu1 %vm969_vm1, %v4755_v13 }
 0x8ea   : > { %7488 = vmatprep.mubr.msk.f32.mxu1 %vm969_vm1, %v4757_v51  ;;  %v10266_v29 = vpop.f32.mrb[16].mxu0 }
 0x8eb   : > { %v10268_v18 = vpop.f32.mrb[17].mxu0 }
 0x8ed   : > { %7489 = vmatmul.mubr.msk.f32.gmra.mrb[78].mxu1 %vm969_vm1, %v4759_v26 }
 0x8f2   : > { %v10271_v57 = vpop.f32.mrb[18].mxu0 }
 0x8f3   : > { %v10273_v36 = vpop.f32.mrb[19].mxu0 }
 0x8f7   : > { %v10275_v17 = vpop.f32.mrb[20].mxu0 }
 0x8f8   : > { %v10277_v33 = vpop.f32.mrb[21].mxu0 }
 0x904   : > { %v4368_v58 = vpop.xlane.xlu0 %4367 }
 0x905   : > { %v4390_v53 = vsub.f32 %v10138_v32, %v4368_v58 }
 0x907   : > { %v4398_v24 = vmul.f32 1.442695, %v4390_v53 }
 0x908   : > { %v4374_v39 = vpop.xlane.xlu0 %4373 }
 0x909   : > { %8552 = vpow2.f32 %v4398_v24  ;;  %v4392_v63 = vsub.f32 %v10144_v3, %v4374_v39 }
 0x90b   : > { %v4402_v11 = vmul.f32 1.442695, %v4392_v63 }
 0x90c   : > { %v4371_v54 = vpop.xlane.xlu1 %4370  ;;  %v4377_v15 = vpop.xlane.xlu0 %4376 }
 0x90d   : > { %8554 = vpow2.f32 %v4402_v11  ;;  %v4391_v59 = vsub.f32 %v10136_v41, %v4371_v54  ;;  %v4393_v22 = vsub.f32 %v10142_v21, %v4377_v15 }
 0x90f   : > { %v4400_v28 = vmul.f32 1.442695, %v4391_v59  ;;  %v4404_v37 = vmul.f32 1.442695, %v4393_v22 }
 0x910   : > { %v4383_v6 = vpop.xlane.xlu1 %4382  ;;  %v4380_v52 = vpop.xlane.xlu0 %4379 }
 0x911   : > { %8556 = vpow2.f32 %v4400_v28  ;;  %v4395_v32 = vsub.f32 %v10172_v16, %v4383_v6  ;;  %v4394_v14 = vsub.f32 %v10174_v49, %v4380_v52 }
 0x912   : > { %8558 = vpow2.f32 %v4404_v37 }
 0x913   : > { %v10285_v19 = vpop.eup %8552  ;;  %v4408_v3 = vmul.f32 1.442695, %v4395_v32  ;;  %v4406_v47 = vmul.f32 1.442695, %v4394_v14 }
 0x914   : > { %v4414_v1 = vsel %vm1115_vm3, %v10285_v19, 0.0 }
 0x915   : > { %4415 = vadd.xlane.f32.xlu0 %v4414_v1  ;;  %8560 = vpow2.f32 %v4406_v47 }
 0x916   : > { %8562 = vpow2.f32 %v4408_v3 }
 0x917   : > { %v10289_v41 = vpop.eup %8554 }
 0x918   : > { %v4420_v21 = vsel %vm1115_vm3, %v10289_v41, 0.0 }
 0x919   : > { %4421 = vadd.xlane.f32.xlu0 %v4420_v21 }
 0x91b   : > { %v10293_v16 = vpop.eup %8556 }
 0x91c   : > { %v4417_v49 = vsel %vm1115_vm3, %v10293_v16, 0.0  ;;  %v10297_v48 = vpop.eup %8558 }
 0x91d   : > { %4418 = vadd.xlane.f32.xlu1 %v4417_v49  ;;  %v4423_v12 = vsel %vm1115_vm3, %v10297_v48, 0.0 }
 0x91f   : > { %v10299_v45 = vpop.eup %8560 }
 0x920   : > { %v10303_v31 = vpop.eup %8562  ;;  %v4426_v60 = vsel %vm1115_vm3, %v10299_v45, 0.0 }
 0x921   : > { %4424 = vadd.xlane.f32.xlu1 %v4423_v12  ;;  %4427 = vadd.xlane.f32.xlu0 %v4426_v60  ;;  %v4429_v9 = vsel %vm1115_vm3, %v10303_v31, 0.0 }
 0x925   : > { %4430 = vadd.xlane.f32.xlu1 %v4429_v9 }
 0x930   : > { %v4389_v44 = vpop.xlane.xlu1 %4388 }
 0x931   : > { %v4397_v38 = vsub.f32 %v10194_v10, %v4389_v44  ;;  %v4386_v4 = vpop.xlane.xlu0 %4385 }
 0x932   : > { %v4396_v42 = vsub.f32 %v10196_v46, %v4386_v4 }
 0x933   : > { %v4412_v34 = vmul.f32 1.442695, %v4397_v38 }
 0x934   : > { %v4410_v40 = vmul.f32 1.442695, %v4396_v42  ;;  %v8295_v28 = vpop.permute.xlu1 %8294 }
 0x935   : > { %8564 = vpow2.f32 %v4412_v34  ;;  %v8290_v13 = vpop.permute.xlu0 %8289  ;;  %v8297_v14 = vunpack.i.h.bf16 %v8295_v28  ;;  %v8296_v3 = vunpack.i.l.bf16 %v8295_v28 }
 0x936   : > { %8566 = vpow2.f32 %v4410_v40  ;;  %v8292_v51 = vunpack.i.h.bf16 %v8290_v13  ;;  %v8291_v26 = vunpack.i.l.bf16 %v8290_v13 }
 0x937   : > { %8299 = vrot.lane.b32.xlu0 %v9251_v50, %s8717_s26  ;;  %v7873_v60 = vpack.c.bf16 %v8297_v14, %v8296_v3 }
 0x938   : > { %v7869_v39 = vpack.c.bf16 %v8292_v51, %v8291_v26 }
 0x93b   : > { %v10313_v20 = vpop.f32.mrb[22].mxu0 }
 0x93c   : > { %v10315_v62 = vpop.f32.mrb[23].mxu0 }
 0x93f   : > { %v10317_v0 = vpop.eup %8564 }
 0x940   : > { %v4435_v61 = vsel %vm1115_vm3, %v10317_v0, 0.0  ;;  %v10321_v10 = vpop.eup %8566 }
 0x941   : > { %4436 = vadd.xlane.f32.xlu1 %v4435_v61  ;;  %v4432_v46 = vsel %vm1115_vm3, %v10321_v10, 0.0 }
 0x945   : > { %4433 = vadd.xlane.f32.xlu1 %v4432_v46 }
 0x948   : > { %v7299_v43 = vpop.f32.mrb[40].mxu0 }
 0x949   : > { %v3490_v5 = vpop.f32.mrb[41].mxu0 }
 0x956   : > { %8304 = vrot.lane.b32.xlu1 %v9263_v2, %s8717_s26 }
 0x97d   : > { %v7302_v8 = vpop.f32.mrb[42].mxu0 }
 0x97e   : > { %v3500_v55 = vpop.f32.mrb[43].mxu0 }
 0x984   : > { %v10327_v23 = vpop.f32.mrb[44].mxu0 }
 0x985   : > { %v3510_v7 = vpop.f32.mrb[45].mxu0 }
 0x98d   : > { %v10329_v27 = vpop.f32.mrb[46].mxu0 }
 0x98e   : > { %v10331_v25 = vpop.f32.mrb[47].mxu0 }
 0x9a2   : > { %v4416_v58 = vpop.xlane.xlu0 %4415 }
 0x9a3   : > { %8568 = vrcp.f32 %v4416_v58 }
 0x9a6   : > { %v10336_v54 = vpop.xlane.xlu0 %4421 }
 0x9a7   : > { %v7355_v53 = vpop.f32.mrb[48].mxu0 }
 0x9a8   : > { %v3900_v24 = vpop.f32.mrb[49].mxu0 }
 0x9a9   : > { %7367 = vmatprep.mubr.msk.f32.mxu0 %vm969_vm1, %v3900_v24 }
 0x9aa   : > { %7368 = vmatmul.mubr.msk.f32.vlgmr.msra.gmra.mrb[56].mxu0 %vm969_vm1, %v7355_v53  ;;  %v4419_v34 = vpop.xlane.xlu1 %4418 }
 0x9ab   : > { %7380 = vmatpush3.msra.mxu0 %v10246_v56  ;;  %v7358_v63 = vpop.f32.mrb[50].mxu0  ;;  %8570 = vrcp.f32 %v4419_v34 }
 0x9ac   : > { %7870 = vmatprep.subr.bf16.mxu0 %v7869_v39  ;;  %v3910_v11 = vpop.f32.mrb[51].mxu0  ;;  %8572 = vrcp.f32 %v10336_v54 }
 0x9ad   : > { %7370 = vmatprep.mubr.msk.f32.mxu0 %vm969_vm1, %v3910_v11 }
 0x9ae   : > { %7371 = vmatmul.mubr.msk.f32.gmra.mrb[58].mxu0 %vm969_vm1, %v7358_v63  ;;  %v10340_v22 = vpop.xlane.xlu0 %4427 }
 0x9af   : > { %v7361_v15 = vpop.f32.mrb[52].mxu0 }
 0x9b0   : > { %v3920_v59 = vpop.f32.mrb[53].mxu0 }
 0x9b1   : > { %7373 = vmatprep.mubr.msk.f32.mxu0 %vm969_vm1, %v3920_v59 }
 0x9b2   : > { %7374 = vmatmul.mubr.msk.f32.gmra.mrb[60].mxu0 %vm969_vm1, %v7361_v15  ;;  %v8300_v1 = vpop.permute.xlu0 %8299 }
 0x9b3   : > { %v7364_v37 = vpop.f32.mrb[54].mxu0  ;;  %v8302_v9 = vunpack.i.h.bf16 %v8300_v1  ;;  %v8301_v44 = vunpack.i.l.bf16 %v8300_v1 }
 0x9b4   : > { %v10344_v56 = vpop.f32.mrb[72].mxu1  ;;  %v3930_v6 = vpop.f32.mrb[55].mxu0 }
 0x9b5   : > { %v10346_v52 = vpop.f32.mrb[73].mxu1  ;;  %v4916_v32 = vsel %vm1115_vm3, %v10344_v56, -inf  ;;  %7376 = vmatprep.mubr.msk.f32.mxu0 %vm969_vm1, %v3930_v6  ;;  %v7877_v40 = vpack.c.bf16 %v8302_v9, %v8301_v44 }
 0x9b6   : > { %4917 = vmax.xlane.f32.xlu1 %v4916_v32  ;;  %v4913_v47 = vsel %vm1115_vm3, %v10346_v52, -inf  ;;  %7377 = vmatmul.mubr.msk.f32.gmra.mrb[62].mxu0 %vm969_vm1, %v7364_v37 }
 0x9b7   : > { %4914 = vmax.xlane.f32.xlu0 %v4913_v47  ;;  %7381 = vmatprep.mubr.msk.f32.mxu0 %vm969_vm1, %v3490_v5 }
 0x9b8   : > { %v10355_v21 = vpop.f32.mrb[74].mxu1 }
 0x9b9   : > { %v10357_v49 = vpop.f32.mrb[75].mxu1  ;;  %v4922_v61 = vsel %vm1115_vm3, %v10355_v21, -inf }
 0x9ba   : > { %v4919_v12 = vsel %vm1115_vm3, %v10357_v49, -inf  ;;  %7382 = vmatmul.mubr.msk.f32.vlgmr.msra.gmra.mrb[56].mxu0 %vm969_vm1, %v7299_v43 }
 0x9bb   : > { %4920 = vmax.xlane.f32.xlu0 %v4919_v12  ;;  %7872 = vmatpush3.bf16.msra.mxu0 %v7869_v39 }
 0x9bc   : > { %v10362_v38 = vpop.f32.mrb[76].mxu1  ;;  %7384 = vmatprep.mubr.msk.f32.mxu0 %vm969_vm1, %v3500_v55  ;;  %7874 = vmatprep.subr.bf16.mxu0 %v7873_v60  ;;  %v8569_v55 = vpop.eup %8568 }
 0x9bd   : > { %v10365_v4 = vpop.f32.mrb[77].mxu1  ;;  %v4928_v42 = vsel %vm1115_vm3, %v10362_v38, -inf  ;;  %v8571_v24 = vpop.eup %8570 }
 0x9be   : > { %4929 = vmax.xlane.f32.xlu1 %v4928_v42  ;;  %7385 = vmatmul.mubr.msk.f32.gmra.mrb[58].mxu0 %vm969_vm1, %v7302_v8  ;;  %v4925_v13 = vsel %vm1115_vm3, %v10365_v4, -inf  ;;  %v4425_v8 = vpop.xlane.xlu1 %4424  ;;  %v8573_v39 = vpop.eup %8572  ;;  %v4447_v63 = vmul.f32 %v8571_v24, %v10293_v16 }
 0x9bf   : > { %4923 = vmax.xlane.f32.xlu0 %v4922_v61  ;;  %7876 = vmatpush3.bf16.msra.mxu0 %v7873_v60  ;;  %8574 = vrcp.f32 %v4425_v8  ;;  %v4448_v54 = vmul.f32 %v8573_v39, %v10289_v41 }
 0x9c0   : > { %v10372_v46 = vpop.f32.mrb[78].mxu1  ;;  %7387 = vmatprep.mubr.msk.f32.mxu0 %vm969_vm1, %v3510_v7  ;;  %7878 = vmatprep.subr.bf16.mxu0 %v7877_v40  ;;  %v4446_v7 = vmul.f32 %v8569_v55, %v10285_v19  ;;  %8576 = vrcp.f32 %v10340_v22 }
 0x9c1   : > { %v10375_v43 = vpop.f32.mrb[79].mxu1  ;;  %v4934_v5 = vsel %vm1115_vm3, %v10372_v46, -inf }
 0x9c2   : > { %4935 = vmax.xlane.f32.xlu1 %v4934_v5  ;;  %7388 = vmatmul.mubr.msk.f32.gmra.mrb[60].mxu0 %vm969_vm1, %v10327_v23  ;;  %v4931_v51 = vsel %vm1115_vm3, %v10375_v43, -inf  ;;  %v4431_v26 = vpop.xlane.xlu1 %4430 }
 0x9c3   : > { %4926 = vmax.xlane.f32.xlu0 %v4925_v13  ;;  %7880 = vmatpush3.bf16.msra.mxu0 %v7877_v40  ;;  %8578 = vrcp.f32 %v4431_v26 }
 0x9c4   : > { %7390 = vmatprep.mubr.msk.f32.mxu0 %vm969_vm1, %v10331_v25 }
 0x9c6   : > { %7391 = vmatmul.mubr.msk.f32.gmra.mrb[62].mxu0 %vm969_vm1, %v10329_v27 }
 0x9c7   : > { %4932 = vmax.xlane.f32.xlu0 %v4931_v51  ;;  %7437 = vmatprep.mubr.msk.f32.mxu0 %vm1115_vm3, %v4446_v7 }
 0x9c9   : > { %v8575_v11 = vpop.eup %8574 }
 0x9ca   : > { %v8577_v15 = vpop.eup %8576  ;;  %v4449_v59 = vmul.f32 %v8575_v11, %v10297_v48 }
 0x9cb   : > { %v4450_v22 = vmul.f32 %v8577_v15, %v10299_v45 }
 0x9cd   : > { %v8579_v16 = vpop.eup %8578 }
 0x9ce   : > { %v4437_v58 = vpop.xlane.xlu1 %4436  ;;  %v4451_v28 = vmul.f32 %v8579_v16, %v10303_v31 }
 0x9d2   : > { %v4434_v23 = vpop.xlane.xlu1 %4433 }
 0x9d3   : > { %8314 = vrot.lane.b32.xlu1 %v9237_v35, %s8718_s28  ;;  %8580 = vrcp.f32 %v4434_v23  ;;  %v8682_v35 = vld [vmem:[%s10987_s5 + $0x10] sm:$0xff] }
 0x9d4   : > { %8582 = vrcp.f32 %v4437_v58 }
 0x9d6   : > { %v8305_v19 = vpop.permute.xlu1 %8304 }
 0x9d7   : > { %v8307_v25 = vunpack.i.h.bf16 %v8305_v19  ;;  %v8306_v53 = vunpack.i.l.bf16 %v8305_v19 }
 0x9d9   : > { %v7881_v27 = vpack.c.bf16 %v8307_v25, %v8306_v53 }
 0x9db   : > { %7882 = vmatprep.subr.bf16.mxu0 %v7881_v27 }
 0x9dc   : > { %7884 = vmatpush3.bf16.msra.mxu0 %v7881_v27 }
 0x9dd   : > { %8309 = vrot.lane.b32.xlu0 %v9223_v30, %s8718_s28  ;;  %7449 = vmatprep.subr.mxu0 %v8682_v35  ;;  %v8581_v30 = vpop.eup %8580 }
 0x9de   : > { %v8583_v37 = vpop.eup %8582  ;;  %v4452_v41 = vmul.f32 %v8581_v30, %v10321_v10  ;;  %v8684_v30 = vld [vmem:[%s8805_s14 + $0x18] sm:$0xff] }
 0x9df   : > { %7438 = vmatmul.mubr.msk.f32.vlgmr.msra.gmra.mrb[64].mxu0 %vm1115_vm3, %v4447_v63  ;;  %v4453_v6 = vmul.f32 %v8583_v37, %v10317_v0  ;;  %v8685_v37 = vld [vmem:[%s8805_s14 + $0x8] sm:$0xff] }
 0x9e0   : > { %7440 = vmatprep.mubr.msk.f32.mxu0 %vm1115_vm3, %v4448_v54  ;;  %7450 = vmatpush3.msra.mxu0 %v8682_v35  ;;  %v10464_v54 = vld [vmem:[%s10988_s6] ss:$0 sm:$0xff] }
 0x9e1   : > { %v5298_v15 = vadd.f32 %v10464_v54, %v10268_v18 }
 0x9e3   : > { %7441 = vmatmul.mubr.msk.f32.gmra.mrb[66].mxu0 %vm1115_vm3, %v4449_v59  ;;  %v8683_v59 = vld [vmem:[%s8805_s14] sm:$0xff] }
 0x9e4   : > { %7443 = vmatprep.mubr.msk.f32.mxu0 %vm1115_vm3, %v4450_v22  ;;  %v10469_v16 = vadd.f32 %v8683_v59, %v5298_v15  ;;  %v5301_v22 = vadd.f32 %v10271_v57, %v10464_v54 }
 0x9e6   : > { %v5332_v18 = vsel %vm467_vm0, %v10469_v16, 0.0 }
 0x9e7   : > { %7444 = vmatmul.mubr.msk.f32.gmra.mrb[68].mxu0 %vm1115_vm3, %v4451_v28  ;;  %v10478_v28 = vadd.f32 %v8684_v30, %v5301_v22 }
 0x9e8   : > { %7446 = vmatprep.mubr.msk.f32.mxu0 %vm1115_vm3, %v4452_v41 }
 0x9eb   : > { %7447 = vmatmul.mubr.msk.f32.gmra.mrb[70].mxu0 %vm1115_vm3, %v4453_v6  ;;  %v8686_v6 = vld [vmem:[%s8805_s14 + $0x10] sm:$0xff] }
 0xa43   : > { %v4918_v48 = vpop.xlane.xlu1 %4917 }
 0xa44   : > { %v4938_v45 = vsub.f32 %v10344_v56, %v4918_v48  ;;  %v4915_v32 = vpop.xlane.xlu0 %4914  ;;  %v5341_v48 = vsel %vm467_vm0, %v10478_v28, 0.0 }
 0xa45   : > { %v4937_v14 = vsub.f32 %v10346_v52, %v4915_v32 }
 0xa46   : > { %v4947_v3 = vmul.f32 1.442695, %v4938_v45 }
 0xa47   : > { %v4945_v47 = vmul.f32 1.442695, %v4937_v14  ;;  %v8687_v14 = vld [vmem:[%s8805_s14 + $0x28] sm:$0xff] }
 0xa48   : > { %8584 = vpow2.f32 %v4947_v3  ;;  %v4921_v31 = vpop.xlane.xlu0 %4920 }
 0xa49   : > { %8586 = vpow2.f32 %v4945_v47  ;;  %v4939_v10 = vsub.f32 %v10357_v49, %v4921_v31  ;;  %v8688_v47 = vld [vmem:[%s8805_s14 + $0x20] sm:$0xff] }
 0xa4b   : > { %v4930_v1 = vpop.xlane.xlu1 %4929  ;;  %v4949_v12 = vmul.f32 1.442695, %v4939_v10  ;;  %v8689_v10 = vld [vmem:[%s8805_s14 + $0x38] sm:$0xff] }
 0xa4c   : > { %v4942_v60 = vsub.f32 %v10362_v38, %v4930_v1  ;;  %v4924_v0 = vpop.xlane.xlu0 %4923 }
 0xa4d   : > { %8588 = vpow2.f32 %v4949_v12  ;;  %v4940_v9 = vsub.f32 %v10355_v21, %v4924_v0  ;;  %v8690_v12 = vld [vmem:[%s8805_s14 + $0x30] sm:$0xff] }
 0xa4e   : > { %v4955_v56 = vmul.f32 1.442695, %v4942_v60 }
 0xa4f   : > { %v4936_v44 = vpop.xlane.xlu1 %4935  ;;  %v4951_v42 = vmul.f32 1.442695, %v4940_v9 }
 0xa50   : > { %v4944_v52 = vsub.f32 %v10372_v46, %v4936_v44  ;;  %v4927_v34 = vpop.xlane.xlu0 %4926 }
 0xa51   : > { %8590 = vpow2.f32 %v4951_v42  ;;  %v4941_v40 = vsub.f32 %v10365_v4, %v4927_v34 }
 0xa52   : > { %v10421_v61 = vpop.eup %8584  ;;  %8592 = vpow2.f32 %v4955_v56  ;;  %v4959_v5 = vmul.f32 1.442695, %v4944_v52 }
 0xa53   : > { %v10423_v49 = vpop.eup %8586  ;;  %v4953_v38 = vmul.f32 1.442695, %v4941_v40  ;;  %v4964_v55 = vsel %vm1115_vm3, %v10421_v61, 0.0  ;;  %v8315_v44 = vpop.permute.xlu1 %8314 }
 0xa54   : > { %v4933_v21 = vpop.xlane.xlu0 %4932  ;;  %v4961_v13 = vsel %vm1115_vm3, %v10423_v49, 0.0  ;;  %4965 = vadd.xlane.f32.xlu1 %v4964_v55  ;;  %v8317_v56 = vunpack.i.h.bf16 %v8315_v44  ;;  %v8316_v42 = vunpack.i.l.bf16 %v8315_v44 }
 0xa55   : > { %8594 = vpow2.f32 %v4953_v38  ;;  %v4943_v46 = vsub.f32 %v10375_v43, %v4933_v21  ;;  %4962 = vadd.xlane.f32.xlu0 %v4961_v13 }
 0xa56   : > { %8596 = vpow2.f32 %v4959_v5  ;;  %v7913_v40 = vpack.c.bf16 %v8317_v56, %v8316_v42 }
 0xa57   : > { %v10430_v4 = vpop.eup %8588  ;;  %v4957_v8 = vmul.f32 1.442695, %v4943_v46 }
 0xa58   : > { %v8310_v7 = vpop.permute.xlu0 %8309  ;;  %v4967_v51 = vsel %vm1115_vm3, %v10430_v4, 0.0 }
 0xa59   : > { %v8312_v26 = vunpack.i.h.bf16 %v8310_v7  ;;  %v8311_v58 = vunpack.i.l.bf16 %v8310_v7  ;;  %4968 = vadd.xlane.f32.xlu0 %v4967_v51  ;;  %8598 = vpow2.f32 %v4957_v8 }
 0xa5b   : > { %v10434_v23 = vpop.eup %8590  ;;  %v10436_v19 = vpack.c.bf16 %v8312_v26, %v8311_v58 }
 0xa5c   : > { %v4970_v43 = vsel %vm1115_vm3, %v10434_v23, 0.0  ;;  %v10440_v25 = vpop.eup %8592 }
 0xa5d   : > { %4971 = vadd.xlane.f32.xlu1 %v4970_v43  ;;  %7910 = vmatprep.subr.bf16.mxu0 %v10436_v19  ;;  %v4976_v27 = vsel %vm1115_vm3, %v10440_v25, 0.0 }
 0xa5f   : > { %v10443_v53 = vpop.eup %8594 }
 0xa60   : > { %v4973_v24 = vsel %vm1115_vm3, %v10443_v53, 0.0  ;;  %v10449_v39 = vpop.eup %8596 }
 0xa61   : > { %4977 = vadd.xlane.f32.xlu1 %v4976_v27  ;;  %4974 = vadd.xlane.f32.xlu0 %v4973_v24  ;;  %v4982_v63 = vsel %vm1115_vm3, %v10449_v39, 0.0 }
 0xa63   : > { %v10453_v35 = vpop.eup %8598 }
 0xa64   : > { %v4979_v11 = vsel %vm1115_vm3, %v10453_v35, 0.0 }
 0xa65   : > { %4983 = vadd.xlane.f32.xlu1 %v4982_v63 }
 0xa69   : > { %4980 = vadd.xlane.f32.xlu1 %v4979_v11 }
 0xa77   : > { %8319 = vrot.lane.b32.xlu0 %v9251_v50, %s8718_s28  ;;  %v5299_v50 = vadd.f32 %v10266_v29, %v10464_v54  ;;  %v5303_v29 = vadd.f32 %v10275_v17, %v10464_v54  ;;  %v5305_v17 = vadd.f32 %v10313_v20, %v10464_v54 }
 0xa79   : > { %v10483_v41 = vadd.f32 %v8685_v37, %v5299_v50  ;;  %v10499_v3 = vadd.f32 %v8687_v14, %v5303_v29  ;;  %v10509_v1 = vadd.f32 %v8689_v10, %v5305_v17  ;;  %v8691_v29 = vld [vmem:[%s10987_s5 + $0x18] sm:$0xff] }
 0xa7a   : > { %8324 = vrot.lane.b32.xlu1 %v9263_v2, %s8718_s28  ;;  %v5300_v2 = vadd.f32 %v10464_v54, %v10273_v36  ;;  %v5302_v36 = vadd.f32 %v10464_v54, %v10277_v33  ;;  %v5304_v33 = vadd.f32 %v10464_v54, %v10315_v62 }
 0xa7b   : > { %v5335_v45 = vsel %vm467_vm0, %v10483_v41, 0.0  ;;  %v5347_v0 = vsel %vm467_vm0, %v10499_v3, 0.0  ;;  %v5353_v20 = vsel %vm467_vm0, %v10509_v1, 0.0 }
 0xa7c   : > { %v10486_v57 = vadd.f32 %v8686_v6, %v5300_v2  ;;  %v10502_v31 = vadd.f32 %v8688_v47, %v5302_v36  ;;  %v10512_v60 = vadd.f32 %v8690_v12, %v5304_v33 }
 0xa7e   : > { %v5338_v32 = vsel %vm467_vm0, %v10486_v57, 0.0  ;;  %v5344_v9 = vsel %vm467_vm0, %v10502_v31, 0.0  ;;  %v5350_v62 = vsel %vm467_vm0, %v10512_v60, 0.0 }
 0xa96   : > { %5333 = vadd.xlane.f32.xlu0 %v5332_v18 }
 0xa9a   : > { %5342 = vadd.xlane.f32.xlu0 %v5341_v48 }
 0xa9e   : > { %5336 = vadd.xlane.f32.xlu1 %v5335_v45  ;;  %5339 = vadd.xlane.f32.xlu0 %v5338_v32 }
 0xaa2   : > { %5348 = vadd.xlane.f32.xlu1 %v5347_v0  ;;  %5345 = vadd.xlane.f32.xlu0 %v5344_v9 }
 0xaa6   : > { %5354 = vadd.xlane.f32.xlu1 %v5353_v20  ;;  %5351 = vadd.xlane.f32.xlu0 %v5350_v62 }
 0xab2   : > { %v7439_v52 = vpop.f32.mrb[64].mxu0 }
 0xab3   : > { %v4568_v34 = vpop.f32.mrb[65].mxu0 }
 0xab4   : > { %7451 = vmatprep.mubr.msk.f32.mxu0 %vm969_vm1, %v4568_v34  ;;  %v8692_v34 = vld [vmem:[%s8805_s14 + $0x48] sm:$0xff] }
 0xab5   : > { %7452 = vmatmul.mubr.msk.f32.vlgmr.msra.gmra.mrb[56].mxu0 %vm969_vm1, %v7439_v52 }
 0xab6   : > { %7912 = vmatpush3.bf16.msra.mxu0 %v10436_v19  ;;  %v7442_v5 = vpop.f32.mrb[66].mxu0 }
 0xab7   : > { %7914 = vmatprep.subr.bf16.mxu0 %v7913_v40  ;;  %v4578_v38 = vpop.f32.mrb[67].mxu0 }
 0xab8   : > { %7454 = vmatprep.mubr.msk.f32.mxu0 %vm969_vm1, %v4578_v38 }
 0xab9   : > { %7455 = vmatmul.mubr.msk.f32.gmra.mrb[58].mxu0 %vm969_vm1, %v7442_v5  ;;  %v8693_v5 = vld [vmem:[%s8805_s14 + $0x40] sm:$0xff] }
 0xaba   : > { %7916 = vmatpush3.bf16.msra.mxu0 %v7913_v40  ;;  %v7445_v55 = vpop.f32.mrb[68].mxu0 }
 0xabb   : > { %v4588_v21 = vpop.f32.mrb[69].mxu0 }
 0xabc   : > { %7457 = vmatprep.mubr.msk.f32.mxu0 %vm969_vm1, %v4588_v21 }
 0xabd   : > { %7458 = vmatmul.mubr.msk.f32.gmra.mrb[60].mxu0 %vm969_vm1, %v7445_v55 }
 0xabe   : > { %v7448_v13 = vpop.f32.mrb[70].mxu0 }
 0xabf   : > { %v4598_v46 = vpop.f32.mrb[71].mxu0 }
 0xac0   : > { %7460 = vmatprep.mubr.msk.f32.mxu0 %vm969_vm1, %v4598_v46 }
 0xac1   : > { %7461 = vmatmul.mubr.msk.f32.gmra.mrb[62].mxu0 %vm969_vm1, %v7448_v13 }
 0xae1   : > { %v4966_v7 = vpop.xlane.xlu1 %4965 }
 0xae2   : > { %v4963_v8 = vpop.xlane.xlu0 %4962 }
 0xae3   : > { %8600 = vrcp.f32 %v4963_v8 }
 0xae4   : > { %8602 = vrcp.f32 %v4966_v7 }
 0xae6   : > { %v4969_v51 = vpop.xlane.xlu0 %4968 }
 0xae7   : > { %8604 = vrcp.f32 %v4969_v51 }
 0xaea   : > { %v4972_v26 = vpop.xlane.xlu1 %4971 }
 0xaeb   : > { %8606 = vrcp.f32 %v4972_v26 }
 0xaed   : > { %v8601_v58 = vpop.eup %8600 }
 0xaee   : > { %v4978_v19 = vpop.xlane.xlu1 %4977  ;;  %v4975_v43 = vpop.xlane.xlu0 %4974  ;;  %v4993_v27 = vmul.f32 %v8601_v58, %v10423_v49  ;;  %v8694_v58 = vld [vmem:[%s8805_s14 + $0x58] sm:$0xff] }
 0xaef   : > { %8608 = vrcp.f32 %v4975_v43  ;;  %v8603_v18 = vpop.eup %8602  ;;  %v8695_v43 = vld [vmem:[%s8805_s14 + $0x50] sm:$0xff] }
 0xaf0   : > { %7507 = vmatprep.mubr.msk.f32.mxu0 %vm1115_vm3, %v4993_v27  ;;  %8610 = vrcp.f32 %v4978_v19  ;;  %v4994_v6 = vmul.f32 %v8603_v18, %v10421_v61 }
 0xaf1   : > { %v8605_v37 = vpop.eup %8604 }
 0xaf2   : > { %v4984_v24 = vpop.xlane.xlu1 %4983  ;;  %v8320_v63 = vpop.permute.xlu0 %8319  ;;  %v4995_v48 = vmul.f32 %v8605_v37, %v10430_v4  ;;  %v8697_v37 = vld [vmem:[%s8805_s14 + $0x60] sm:$0xff] }
 0xaf3   : > { %v8322_v11 = vunpack.i.h.bf16 %v8320_v63  ;;  %v8321_v15 = vunpack.i.l.bf16 %v8320_v63 }
 0xaf5   : > { %v7917_v59 = vpack.c.bf16 %v8322_v11, %v8321_v15  ;;  %v8607_v36 = vpop.eup %8606 }
 0xaf6   : > { %v4981_v22 = vpop.xlane.xlu1 %4980  ;;  %v4996_v32 = vmul.f32 %v8607_v36, %v10434_v23 }
 0xaf7   : > { %7918 = vmatprep.subr.bf16.mxu0 %v7917_v59  ;;  %8612 = vrcp.f32 %v4981_v22 }
 0xaf8   : > { %7920 = vmatpush3.bf16.msra.mxu0 %v7917_v59  ;;  %8614 = vrcp.f32 %v4984_v24 }
 0xaf9   : > { %v8609_v45 = vpop.eup %8608 }
 0xafa   : > { %v8325_v50 = vpop.permute.xlu1 %8324  ;;  %v8611_v14 = vpop.eup %8610  ;;  %v4997_v47 = vmul.f32 %v8609_v45, %v10443_v53 }
 0xafb   : > { %v8327_v2 = vunpack.i.h.bf16 %v8325_v50  ;;  %v8326_v30 = vunpack.i.l.bf16 %v8325_v50  ;;  %v4998_v17 = vmul.f32 %v8611_v14, %v10440_v25 }
 0xafd   : > { %v7921_v49 = vpack.c.bf16 %v8327_v2, %v8326_v30  ;;  %v8696_v30 = vld [vmem:[%s8805_s14 + $0x68] sm:$0xff] }
 0xaff   : > { %7922 = vmatprep.subr.bf16.mxu0 %v7921_v49 }
 0xb00   : > { %7924 = vmatpush3.bf16.msra.mxu0 %v7921_v49 }
 0xb01   : > { %7519 = vmatprep.subr.mxu0 %v8691_v29  ;;  %v8613_v61 = vpop.eup %8612 }
 0xb02   : > { %v8615_v33 = vpop.eup %8614  ;;  %v4999_v4 = vmul.f32 %v8613_v61, %v10453_v35 }
 0xb03   : > { %7508 = vmatmul.mubr.msk.f32.vlgmr.msra.gmra.mrb[72].mxu0 %vm1115_vm3, %v4994_v6  ;;  %v5000_v10 = vmul.f32 %v8615_v33, %v10449_v39 }
 0xb04   : > { %7510 = vmatprep.mubr.msk.f32.mxu0 %vm1115_vm3, %v4995_v48  ;;  %7520 = vmatpush3.msra.mxu0 %v8691_v29 }
 0xb07   : > { %7511 = vmatmul.mubr.msk.f32.gmra.mrb[74].mxu0 %vm1115_vm3, %v4996_v32 }
 0xb08   : > { %7513 = vmatprep.mubr.msk.f32.mxu0 %vm1115_vm3, %v4997_v47 }
 0xb0b   : > { %7514 = vmatmul.mubr.msk.f32.gmra.mrb[76].mxu0 %vm1115_vm3, %v4998_v17 }
 0xb0c   : > { %7516 = vmatprep.mubr.msk.f32.mxu0 %vm1115_vm3, %v4999_v4 }
 0xb0f   : > { %7517 = vmatmul.mubr.msk.f32.gmra.mrb[78].mxu0 %vm1115_vm3, %v5000_v10  ;;  %v8698_v10 = vld [vmem:[%s8805_s14 + $0x78] sm:$0xff] }
 0xb23   : > { %v5334_v20 = vpop.xlane.xlu0 %5333 }
 0xb24   : > { %v5380_v22 = vmul.f32 0.03125, %v5334_v20 }
 0xb26   : > { %v10597_v61 = vsub.f32 %v10469_v16, %v5380_v22 }
 0xb27   : > { %v5343_v44 = vpop.xlane.xlu0 %5342 }
 0xb28   : > { %v5383_v36 = vmul.f32 0.03125, %v5343_v44  ;;  %v5412_v44 = vmul.f32 %v10597_v61, %v10597_v61 }
 0xb2b   : > { %v5337_v8 = vpop.xlane.xlu1 %5336  ;;  %v5340_v26 = vpop.xlane.xlu0 %5339 }
 0xb2c   : > { %v5381_v63 = vmul.f32 0.03125, %v5337_v8  ;;  %v5382_v17 = vmul.f32 0.03125, %v5340_v26 }
 0xb2e   : > { %v10591_v48 = vsub.f32 %v10483_v41, %v5381_v63 }
 0xb2f   : > { %v5349_v18 = vpop.xlane.xlu1 %5348  ;;  %v5346_v45 = vpop.xlane.xlu0 %5345 }
 0xb33   : > { %v5355_v20 = vpop.xlane.xlu1 %5354 }
 0xbd6   : > { %v7509_v23 = vpop.f32.mrb[72].mxu0 }
 0xbd7   : > { %v5115_v53 = vpop.f32.mrb[73].mxu0 }
 0xbd8   : > { %7521 = vmatprep.mubr.msk.f32.mxu0 %vm969_vm1, %v5115_v53  ;;  %v8699_v53 = vld [vmem:[%s8805_s14 + $0x70] sm:$0xff] }
 0xbd9   : > { %7522 = vmatmul.mubr.msk.f32.vlgmr.msra.gmra.mrb[56].mxu0 %vm969_vm1, %v7509_v23 }
 0xbda   : > { %v7512_v12 = vpop.f32.mrb[74].mxu0 }
 0xbdb   : > { %v5125_v0 = vpop.f32.mrb[75].mxu0 }
 0xbdc   : > { %7524 = vmatprep.mubr.msk.f32.mxu0 %vm969_vm1, %v5125_v0  ;;  %v10609_v0 = vsub.f32 %v10478_v28, %v5383_v36 }
 0xbdd   : > { %7525 = vmatmul.mubr.msk.f32.gmra.mrb[58].mxu0 %vm969_vm1, %v7512_v12 }
 0xbde   : > { %v7515_v25 = vpop.f32.mrb[76].mxu0 }
 0xbdf   : > { %v5135_v35 = vpop.f32.mrb[77].mxu0 }
 0xbe0   : > { %7527 = vmatprep.mubr.msk.f32.mxu0 %vm969_vm1, %v5135_v35 }
 0xbe1   : > { %7528 = vmatmul.mubr.msk.f32.gmra.mrb[60].mxu0 %vm969_vm1, %v7515_v25  ;;  %v5385_v25 = vmul.f32 0.03125, %v5349_v18  ;;  %v5586_v18 = vld [vmem:[%s10991_s9 + $0x10] sm:$0xff] }
 0xbe2   : > { %v7518_v39 = vpop.f32.mrb[78].mxu0 }
 0xbe3   : > { %v5145_v9 = vpop.f32.mrb[79].mxu0 }
 0xbe4   : > { %7530 = vmatprep.mubr.msk.f32.mxu0 %vm969_vm1, %v5145_v9  ;;  %v5384_v9 = vmul.f32 0.03125, %v5346_v45 }
 0xbe5   : > { %7531 = vmatmul.mubr.msk.f32.gmra.mrb[62].mxu0 %vm969_vm1, %v7518_v39  ;;  %v10616_v39 = vsub.f32 %v10486_v57, %v5382_v17 }
 0xcac   : > { %v7523_v62 = vpop.f32.mrb[56].mxu0 }
 0xcad   : > { %v5307_v56 = vadd.f32 %v7523_v62, %v10464_v54  ;;  %v5244_v42 = vpop.f32.mrb[57].mxu0 }
 0xcae   : > { %v5306_v52 = vadd.f32 %v10464_v54, %v5244_v42  ;;  %v10623_v42 = vsub.f32 %v10499_v3, %v5385_v25 }
 0xcaf   : > { %v10561_v40 = vadd.f32 %v8692_v34, %v5307_v56  ;;  %v5352_v56 = vpop.xlane.xlu0 %5351 }
 0xcb0   : > { %v10564_v38 = vadd.f32 %v8693_v5, %v5306_v52  ;;  %v7526_v55 = vpop.f32.mrb[58].mxu0  ;;  %v5387_v52 = vmul.f32 0.03125, %v5355_v20  ;;  %v5415_v5 = vmul.f32 %v10609_v0, %v10609_v0 }
 0xcb1   : > { %v5309_v21 = vadd.f32 %v7526_v55, %v10464_v54  ;;  %v5254_v13 = vpop.f32.mrb[59].mxu0  ;;  %v5359_v46 = vsel %vm467_vm0, %v10561_v40, 0.0  ;;  %v10629_v55 = vsub.f32 %v10502_v31, %v5384_v9 }
 0xcb2   : > { %v5308_v7 = vadd.f32 %v10464_v54, %v5254_v13  ;;  %5360 = vadd.xlane.f32.xlu1 %v5359_v46  ;;  %v5356_v51 = vsel %vm467_vm0, %v10564_v38, 0.0  ;;  %v5428_v13 = vsel %vm467_vm0, %v5412_v44, 0.0  ;;  %v5414_v46 = vmul.f32 %v10616_v39, %v10616_v39 }
 0xcb3   : > { %v10573_v19 = vadd.f32 %v8694_v58, %v5309_v21  ;;  %5357 = vadd.xlane.f32.xlu0 %v5356_v51  ;;  %v5386_v21 = vmul.f32 0.03125, %v5352_v56  ;;  %v10635_v8 = vsub.f32 %v10509_v1, %v5387_v52  ;;  %v5417_v51 = vmul.f32 %v10623_v42, %v10623_v42 }
 0xcb4   : > { %v10576_v27 = vadd.f32 %v8695_v43, %v5308_v7  ;;  %v7529_v24 = vpop.f32.mrb[60].mxu0  ;;  %v5437_v7 = vsel %vm467_vm0, %v5415_v5, 0.0  ;;  %v5434_v58 = vsel %vm467_vm0, %v5414_v46, 0.0  ;;  %v5416_v43 = vmul.f32 %v10629_v55, %v10629_v55 }
 0xcb5   : > { %v5311_v11 = vadd.f32 %v7529_v24, %v10464_v54  ;;  %v5264_v15 = vpop.f32.mrb[61].mxu0  ;;  %v5365_v59 = vsel %vm467_vm0, %v10573_v19, 0.0  ;;  %v10641_v26 = vsub.f32 %v10512_v60, %v5386_v21  ;;  %v5443_v24 = vsel %vm467_vm0, %v5417_v51, 0.0 }
 0xcb6   : > { %v5310_v50 = vadd.f32 %v10464_v54, %v5264_v15  ;;  %5366 = vadd.xlane.f32.xlu1 %v5365_v59  ;;  %v5362_v2 = vsel %vm467_vm0, %v10576_v27, 0.0  ;;  %v5419_v63 = vmul.f32 %v10635_v8, %v10635_v8 }
 0xcb7   : > { %v10585_v49 = vadd.f32 %v8696_v30, %v5311_v11  ;;  %5363 = vadd.xlane.f32.xlu0 %v5362_v2  ;;  %v5440_v11 = vsel %vm467_vm0, %v5416_v43, 0.0  ;;  %v5418_v15 = vmul.f32 %v10641_v26, %v10641_v26  ;;  %v5585_v2 = vld [vmem:[%s10991_s9 + $0x8] sm:$0xff] }
 0xcb8   : > { %v10588_v6 = vadd.f32 %v8697_v37, %v5310_v50  ;;  %v7532_v29 = vpop.f32.mrb[62].mxu0  ;;  %v5449_v59 = vsel %vm467_vm0, %v5419_v63, 0.0  ;;  %v5584_v50 = vld [vmem:[%s10991_s9] sm:$0xff]  ;;  %v5587_v37 = vld [vmem:[%s10991_s9 + $0x18] sm:$0xff] }
 0xcb9   : > { %v5313_v32 = vadd.f32 %v7532_v29, %v10464_v54  ;;  %v5274_v14 = vpop.f32.mrb[63].mxu0  ;;  %v5371_v47 = vsel %vm467_vm0, %v10585_v49, 0.0  ;;  %v5446_v22 = vsel %vm467_vm0, %v5418_v15, 0.0  ;;  %v7925_v30 = vpack.c.bf16 %v5585_v2, %v5584_v50 }
 0xcba   : > { %v5312_v33 = vadd.f32 %v10464_v54, %v5274_v14  ;;  %5372 = vadd.xlane.f32.xlu1 %v5371_v47  ;;  %v5368_v4 = vsel %vm467_vm0, %v10588_v6, 0.0  ;;  %v5413_v54 = vmul.f32 %v10591_v48, %v10591_v48  ;;  %v7929_v29 = vpack.c.bf16 %v5587_v37, %v5586_v18 }
 0xcbb   : > { %v10603_v23 = vadd.f32 %v8698_v10, %v5313_v32  ;;  %5369 = vadd.xlane.f32.xlu0 %v5368_v4  ;;  %7926 = vmatprep.subr.bf16.mxu1 %v7925_v30 }
 0xcbc   : > { %v10606_v12 = vadd.f32 %v8699_v53, %v5312_v33  ;;  %v5431_v34 = vsel %vm467_vm0, %v5413_v54, 0.0  ;;  %7928 = vmatpush3.bf16.msra.mxu1 %v7925_v30 }
 0xcbd   : > { %v5377_v35 = vsel %vm467_vm0, %v10603_v23, 0.0  ;;  %7930 = vmatprep.subr.bf16.mxu1 %v7929_v29 }
 0xcbe   : > { %5378 = vadd.xlane.f32.xlu1 %v5377_v35  ;;  %v5374_v62 = vsel %vm467_vm0, %v10606_v12, 0.0 }
 0xcbf   : > { %5375 = vadd.xlane.f32.xlu0 %v5374_v62 }
 0xcc0   : > { %7932 = vmatpush3.bf16.msra.mxu1 %v7929_v29 }
 0xcc2   : > { %5432 = vadd.xlane.f32.xlu1 %v5431_v34 }
 0xcc3   : > { %5429 = vadd.xlane.f32.xlu0 %v5428_v13 }
 0xcc6   : > { %5438 = vadd.xlane.f32.xlu1 %v5437_v7 }
 0xcc7   : > { %5435 = vadd.xlane.f32.xlu0 %v5434_v58 }
 0xcca   : > { %5444 = vadd.xlane.f32.xlu1 %v5443_v24 }
 0xccb   : > { %5441 = vadd.xlane.f32.xlu0 %v5440_v11 }
 0xcce   : > { %5450 = vadd.xlane.f32.xlu1 %v5449_v59 }
 0xccf   : > { %5447 = vadd.xlane.f32.xlu0 %v5446_v22 }
 0xd3f   : > { %v5361_v36 = vpop.xlane.xlu1 %5360 }
 0xd40   : > { %v5389_v45 = vmul.f32 0.03125, %v5361_v36  ;;  %v5358_v32 = vpop.xlane.xlu0 %5357 }
 0xd41   : > { %v5388_v14 = vmul.f32 0.03125, %v5358_v32 }
 0xd42   : > { %v10667_v47 = vsub.f32 %v10561_v40, %v5389_v45 }
 0xd43   : > { %v10670_v17 = vsub.f32 %v10564_v38, %v5388_v14  ;;  %v5367_v33 = vpop.xlane.xlu1 %5366 }
 0xd44   : > { %v5391_v4 = vmul.f32 0.03125, %v5367_v33  ;;  %v5364_v10 = vpop.xlane.xlu0 %5363  ;;  %v5421_v53 = vmul.f32 %v10667_v47, %v10667_v47 }
 0xd45   : > { %v5390_v25 = vmul.f32 0.03125, %v5364_v10  ;;  %v5420_v35 = vmul.f32 %v10670_v17, %v10670_v17 }
 0xd46   : > { %v10677_v54 = vsub.f32 %v10573_v19, %v5391_v4  ;;  %v5455_v9 = vsel %vm467_vm0, %v5421_v53, 0.0 }
 0xd47   : > { %v10681_v20 = vsub.f32 %v10576_v27, %v5390_v25  ;;  %v5373_v62 = vpop.xlane.xlu1 %5372  ;;  %5456 = vadd.xlane.f32.xlu1 %v5455_v9  ;;  %v5452_v44 = vsel %vm467_vm0, %v5420_v35, 0.0 }
 0xd48   : > { %v5393_v56 = vmul.f32 0.03125, %v5373_v62  ;;  %v5370_v52 = vpop.xlane.xlu0 %5369  ;;  %5453 = vadd.xlane.f32.xlu0 %v5452_v44  ;;  %v5423_v34 = vmul.f32 %v10677_v54, %v10677_v54 }
 0xd49   : > { %v5392_v5 = vmul.f32 0.03125, %v5370_v52  ;;  %v5422_v21 = vmul.f32 %v10681_v20, %v10681_v20 }
 0xd4a   : > { %v10689_v13 = vsub.f32 %v10585_v49, %v5393_v56  ;;  %v5461_v46 = vsel %vm467_vm0, %v5423_v34, 0.0 }
 0xd4b   : > { %v10693_v7 = vsub.f32 %v10588_v6, %v5392_v5  ;;  %5462 = vadd.xlane.f32.xlu1 %v5461_v46  ;;  %v5379_v51 = vpop.xlane.xlu1 %5378  ;;  %v5458_v58 = vsel %vm467_vm0, %v5422_v21, 0.0 }
 0xd4c   : > { %v5395_v43 = vmul.f32 0.03125, %v5379_v51  ;;  %5459 = vadd.xlane.f32.xlu0 %v5458_v58  ;;  %v5376_v24 = vpop.xlane.xlu0 %5375  ;;  %v5425_v63 = vmul.f32 %v10689_v13, %v10689_v13 }
 0xd4d   : > { %v5394_v11 = vmul.f32 0.03125, %v5376_v24  ;;  %v5424_v15 = vmul.f32 %v10693_v7, %v10693_v7 }
 0xd4e   : > { %v10701_v59 = vsub.f32 %v10603_v23, %v5395_v43  ;;  %v5467_v22 = vsel %vm467_vm0, %v5425_v63, 0.0  ;;  %v10717_v63 = vld [vmem:[%s10989_s7] ss:$0 sm:$0xff] }
 0xd4f   : > { %v10705_v50 = vsub.f32 %v10606_v12, %v5394_v11  ;;  %5468 = vadd.xlane.f32.xlu1 %v5467_v22  ;;  %v5433_v2 = vpop.xlane.xlu1 %5432  ;;  %v5464_v30 = vsel %vm467_vm0, %v5424_v15, 0.0 }
 0xd50   : > { %v5477_v18 = vmul.f32 0.03125, %v5433_v2  ;;  %5465 = vadd.xlane.f32.xlu0 %v5464_v30  ;;  %v5430_v37 = vpop.xlane.xlu0 %5429  ;;  %v5427_v29 = vmul.f32 %v10701_v59, %v10701_v59 }
 0xd51   : > { %v5476_v36 = vmul.f32 0.03125, %v5430_v37  ;;  %v5426_v45 = vmul.f32 %v10705_v50, %v10705_v50 }
 0xd52   : > { %v5493_v32 = vadd.f32 1e-05, %v5477_v18  ;;  %v5473_v14 = vsel %vm467_vm0, %v5427_v29, 0.0  ;;  %v10724_v18 = vld [vmem:[%s10990_s8] ss:$0 sm:$0xff] }
 0xd53   : > { %v5492_v33 = vadd.f32 1e-05, %v5476_v36  ;;  %5474 = vadd.xlane.f32.xlu1 %v5473_v14  ;;  %v5439_v4 = vpop.xlane.xlu1 %5438  ;;  %v5470_v10 = vsel %vm467_vm0, %v5426_v45, 0.0 }
 0xd54   : > { %8616 = vrsqrt.f32 %v5493_v32  ;;  %v5479_v53 = vmul.f32 0.03125, %v5439_v4  ;;  %5471 = vadd.xlane.f32.xlu0 %v5470_v10  ;;  %v5436_v25 = vpop.xlane.xlu0 %5435 }
 0xd55   : > { %8618 = vrsqrt.f32 %v5492_v33  ;;  %v5478_v35 = vmul.f32 0.03125, %v5436_v25 }
 0xd56   : > { %v5495_v9 = vadd.f32 1e-05, %v5479_v53 }
 0xd57   : > { %v5494_v62 = vadd.f32 1e-05, %v5478_v35  ;;  %v5445_v44 = vpop.xlane.xlu1 %5444 }
 0xd58   : > { %8620 = vrsqrt.f32 %v5495_v9  ;;  %v5481_v56 = vmul.f32 0.03125, %v5445_v44  ;;  %v5442_v52 = vpop.xlane.xlu0 %5441 }
 0xd59   : > { %8622 = vrsqrt.f32 %v5494_v62  ;;  %v5480_v34 = vmul.f32 0.03125, %v5442_v52 }
 0xd5a   : > { %v5497_v5 = vadd.f32 1e-05, %v5481_v56 }
 0xd5b   : > { %v5496_v21 = vadd.f32 1e-05, %v5480_v34  ;;  %v5451_v46 = vpop.xlane.xlu1 %5450 }
 0xd5c   : > { %8624 = vrsqrt.f32 %v5497_v5  ;;  %v5483_v51 = vmul.f32 0.03125, %v5451_v46  ;;  %v5448_v58 = vpop.xlane.xlu0 %5447 }
 0xd5d   : > { %8626 = vrsqrt.f32 %v5496_v21  ;;  %v5482_v43 = vmul.f32 0.03125, %v5448_v58 }
 0xd5e   : > { %v8617_v24 = vpop.eup %8616  ;;  %v5499_v11 = vadd.f32 1e-05, %v5483_v51 }
 0xd5f   : > { %v8619_v15 = vpop.eup %8618  ;;  %v5525_v22 = vmul.f32 %v8617_v24, %v10591_v48  ;;  %v5498_v2 = vadd.f32 1e-05, %v5482_v43  ;;  %v5934_v43 = vld [vmem:[%s10993_s11 + $0x10] sm:$0xff]  ;;  %v5935_v24 = vld [vmem:[%s10993_s11 + $0x18] sm:$0xff] }
 0xd60   : > { %8628 = vrsqrt.f32 %v5499_v11  ;;  %v5524_v30 = vmul.f32 %v8619_v15, %v10597_v61  ;;  %v7937_v11 = vpack.c.bf16 %v5935_v24, %v5934_v43 }
 0xd61   : > { %v5547_v37 = vmul.f32 %v10717_v63, %v5525_v22  ;;  %8630 = vrsqrt.f32 %v5498_v2 }
 0xd62   : > { %v8621_v29 = vpop.eup %8620  ;;  %v5546_v36 = vmul.f32 %v10717_v63, %v5524_v30 }
 0xd63   : > { %v8623_v45 = vpop.eup %8622  ;;  %v5527_v32 = vmul.f32 %v8621_v29, %v10609_v0  ;;  %v5569_v61 = vadd.f32 %v10724_v18, %v5547_v37 }
 0xd64   : > { %v5568_v48 = vadd.f32 %v10724_v18, %v5546_v36  ;;  %v5526_v14 = vmul.f32 %v8623_v45, %v10616_v39 }
 0xd65   : > { %v5549_v33 = vmul.f32 %v10717_v63, %v5527_v32 }
 0xd66   : > { %v8625_v4 = vpop.eup %8624  ;;  %7541 = vmatprep.mubr.msk.f32.mxu1 %vm467_vm0, %v5568_v48  ;;  %v5548_v10 = vmul.f32 %v10717_v63, %v5526_v14 }
 0xd67   : > { %v8627_v53 = vpop.eup %8626  ;;  %7542 = vmatmul.mubr.msk.f32.vlgmr.msra.gmra.mrb[80].mxu1 %vm467_vm0, %v5569_v61  ;;  %v5529_v25 = vmul.f32 %v8625_v4, %v10623_v42  ;;  %v5571_v39 = vadd.f32 %v10724_v18, %v5549_v33 }
 0xd68   : > { %v5570_v0 = vadd.f32 %v10724_v18, %v5548_v10  ;;  %v5528_v35 = vmul.f32 %v8627_v53, %v10629_v55 }
 0xd69   : > { %v5551_v9 = vmul.f32 %v10717_v63, %v5529_v25 }
 0xd6a   : > { %v8629_v62 = vpop.eup %8628  ;;  %7544 = vmatprep.mubr.msk.f32.mxu1 %vm467_vm0, %v5570_v0  ;;  %v5550_v44 = vmul.f32 %v10717_v63, %v5528_v35 }
 0xd6b   : > { %v8631_v56 = vpop.eup %8630  ;;  %7545 = vmatmul.mubr.msk.f32.gmra.mrb[82].mxu1 %vm467_vm0, %v5571_v39  ;;  %v5531_v52 = vmul.f32 %v8629_v62, %v10635_v8  ;;  %v5573_v55 = vadd.f32 %v10724_v18, %v5551_v9  ;;  %v5932_v8 = vld [vmem:[%s10993_s11] sm:$0xff] }
 0xd6c   : > { %v5572_v42 = vadd.f32 %v10724_v18, %v5550_v44  ;;  %v5530_v34 = vmul.f32 %v8631_v56, %v10641_v26  ;;  %v5933_v26 = vld [vmem:[%s10993_s11 + $0x8] sm:$0xff] }
 0xd6d   : > { %v5553_v5 = vmul.f32 %v10717_v63, %v5531_v52  ;;  %v7933_v58 = vpack.c.bf16 %v5933_v26, %v5932_v8 }
 0xd6e   : > { %7547 = vmatprep.mubr.msk.f32.mxu1 %vm467_vm0, %v5572_v42  ;;  %v5552_v21 = vmul.f32 %v10717_v63, %v5530_v34 }
 0xd6f   : > { %7548 = vmatmul.mubr.msk.f32.gmra.mrb[84].mxu1 %vm467_vm0, %v5573_v55  ;;  %v5575_v51 = vadd.f32 %v10724_v18, %v5553_v5  ;;  %7934 = vmatprep.subr.bf16.mxu0 %v7933_v58 }
 0xd70   : > { %v5574_v46 = vadd.f32 %v10724_v18, %v5552_v21  ;;  %7936 = vmatpush3.bf16.msra.mxu0 %v7933_v58 }
 0xd71   : > { %7938 = vmatprep.subr.bf16.mxu0 %v7937_v11 }
 0xd72   : > { %7550 = vmatprep.mubr.msk.f32.mxu1 %vm467_vm0, %v5574_v46 }
 0xd73   : > { %7551 = vmatmul.mubr.msk.f32.gmra.mrb[86].mxu1 %vm467_vm0, %v5575_v51 }
 0xd74   : > { %7940 = vmatpush3.bf16.msra.mxu0 %v7937_v11 }
 0xdd4   : > { %v5457_v15 = vpop.xlane.xlu1 %5456 }
 0xdd5   : > { %v5485_v22 = vmul.f32 0.03125, %v5457_v15  ;;  %v5454_v2 = vpop.xlane.xlu0 %5453 }
 0xdd6   : > { %v5484_v30 = vmul.f32 0.03125, %v5454_v2 }
 0xdd7   : > { %v5501_v37 = vadd.f32 1e-05, %v5485_v22 }
 0xdd8   : > { %v5500_v29 = vadd.f32 1e-05, %v5484_v30  ;;  %v5463_v36 = vpop.xlane.xlu1 %5462 }
 0xdd9   : > { %8632 = vrsqrt.f32 %v5501_v37  ;;  %v5487_v45 = vmul.f32 0.03125, %v5463_v36  ;;  %v5460_v32 = vpop.xlane.xlu0 %5459 }
 0xdda   : > { %8634 = vrsqrt.f32 %v5500_v29  ;;  %v5486_v48 = vmul.f32 0.03125, %v5460_v32 }
 0xddb   : > { %v5503_v14 = vadd.f32 1e-05, %v5487_v45 }
 0xddc   : > { %v5502_v61 = vadd.f32 1e-05, %v5486_v48  ;;  %v5469_v33 = vpop.xlane.xlu1 %5468 }
 0xddd   : > { %8636 = vrsqrt.f32 %v5503_v14  ;;  %v5489_v4 = vmul.f32 0.03125, %v5469_v33  ;;  %v5466_v10 = vpop.xlane.xlu0 %5465 }
 0xdde   : > { %8638 = vrsqrt.f32 %v5502_v61  ;;  %v5488_v53 = vmul.f32 0.03125, %v5466_v10 }
 0xddf   : > { %v5505_v25 = vadd.f32 1e-05, %v5489_v4 }
 0xde0   : > { %v5504_v0 = vadd.f32 1e-05, %v5488_v53  ;;  %v5475_v35 = vpop.xlane.xlu1 %5474 }
 0xde1   : > { %8640 = vrsqrt.f32 %v5505_v25  ;;  %v5491_v39 = vmul.f32 0.03125, %v5475_v35  ;;  %v5472_v9 = vpop.xlane.xlu0 %5471 }
 0xde2   : > { %8642 = vrsqrt.f32 %v5504_v0  ;;  %v5490_v62 = vmul.f32 0.03125, %v5472_v9 }
 0xde3   : > { %v8633_v44 = vpop.eup %8632  ;;  %v5507_v56 = vadd.f32 1e-05, %v5491_v39 }
 0xde4   : > { %v8635_v52 = vpop.eup %8634  ;;  %v5506_v42 = vadd.f32 1e-05, %v5490_v62  ;;  %v5533_v34 = vmul.f32 %v8633_v44, %v10667_v47 }
 0xde5   : > { %8644 = vrsqrt.f32 %v5507_v56  ;;  %v5532_v55 = vmul.f32 %v8635_v52, %v10670_v17 }
 0xde6   : > { %8646 = vrsqrt.f32 %v5506_v42  ;;  %v5555_v5 = vmul.f32 %v10717_v63, %v5533_v34 }
 0xde7   : > { %v8637_v21 = vpop.eup %8636  ;;  %v5554_v46 = vmul.f32 %v10717_v63, %v5532_v55 }
 0xde8   : > { %v8639_v51 = vpop.eup %8638  ;;  %v5535_v8 = vmul.f32 %v8637_v21, %v10677_v54  ;;  %v5577_v43 = vadd.f32 %v10724_v18, %v5555_v5 }
 0xde9   : > { %v5576_v26 = vadd.f32 %v10724_v18, %v5554_v46  ;;  %v5534_v58 = vmul.f32 %v8639_v51, %v10681_v20 }
 0xdea   : > { %v5557_v47 = vmul.f32 %v10717_v63, %v5535_v8 }
 0xdeb   : > { %v8641_v24 = vpop.eup %8640  ;;  %7553 = vmatprep.mubr.msk.f32.mxu1 %vm467_vm0, %v5576_v26  ;;  %v5556_v17 = vmul.f32 %v10717_v63, %v5534_v58 }
 0xdec   : > { %v8643_v11 = vpop.eup %8642  ;;  %7554 = vmatmul.mubr.msk.f32.gmra.mrb[88].mxu1 %vm467_vm0, %v5577_v43  ;;  %v5537_v15 = vmul.f32 %v8641_v24, %v10689_v13  ;;  %v5579_v20 = vadd.f32 %v10724_v18, %v5557_v47 }
 0xded   : > { %v5578_v54 = vadd.f32 %v10724_v18, %v5556_v17  ;;  %v5536_v22 = vmul.f32 %v8643_v11, %v10693_v7 }
 0xdee   : > { %v5559_v2 = vmul.f32 %v10717_v63, %v5537_v15 }
 0xdef   : > { %v8645_v30 = vpop.eup %8644  ;;  %7556 = vmatprep.mubr.msk.f32.mxu1 %vm467_vm0, %v5578_v54  ;;  %v5558_v37 = vmul.f32 %v10717_v63, %v5536_v22 }
 0xdf0   : > { %v8647_v29 = vpop.eup %8646  ;;  %7557 = vmatmul.mubr.msk.f32.gmra.mrb[90].mxu1 %vm467_vm0, %v5579_v20  ;;  %v5539_v36 = vmul.f32 %v8645_v30, %v10701_v59  ;;  %v5581_v7 = vadd.f32 %v10724_v18, %v5559_v2  ;;  %v10803_v59 = vld [vmem:[%s10992_s10] ss:$0 sm:$0xff] }
 0xdf1   : > { %v5580_v13 = vadd.f32 %v10724_v18, %v5558_v37  ;;  %v5538_v45 = vmul.f32 %v8647_v29, %v10705_v50 }
 0xdf2   : > { %v5561_v32 = vmul.f32 %v10717_v63, %v5539_v36 }
 0xdf3   : > { %7559 = vmatprep.mubr.msk.f32.mxu1 %vm467_vm0, %v5580_v13  ;;  %v5560_v48 = vmul.f32 %v10717_v63, %v5538_v45 }
 0xdf4   : > { %7560 = vmatmul.mubr.msk.f32.gmra.mrb[92].mxu1 %vm467_vm0, %v5581_v7  ;;  %v5583_v61 = vadd.f32 %v10724_v18, %v5561_v32 }
 0xdf5   : > { %v5582_v14 = vadd.f32 %v10724_v18, %v5560_v48 }
 0xdf7   : > { %7562 = vmatprep.mubr.msk.f32.mxu1 %vm467_vm0, %v5582_v14 }
 0xdf8   : > { %7563 = vmatmul.mubr.msk.f32.gmra.mrb[94].mxu1 %vm467_vm0, %v5583_v61 }
 0xe3a   : > { %v7543_v50 = vpop.f32.mrb[80].mxu1 }
 0xe3b   : > { %v10806_v33 = vadd.f32 %v7543_v50, %v10803_v59  ;;  %v5709_v63 = vpop.f32.mrb[81].mxu1 }
 0xe3c   : > { %v5710_v4 = vadd.f32 %v10803_v59, %v5709_v63 }
 0xe3d   : > { %v5805_v10 = vmul.f32 0.044715, %v10806_v33 }
 0xe3e   : > { %v5804_v53 = vmul.f32 0.044715, %v5710_v4  ;;  %v7546_v18 = vpop.f32.mrb[82].mxu1 }
 0xe3f   : > { %v5821_v25 = vmul.f32 %v5805_v10, %v10806_v33  ;;  %v10812_v0 = vadd.f32 %v7546_v18, %v10803_v59  ;;  %v5719_v35 = vpop.f32.mrb[83].mxu1 }
 0xe40   : > { %v5820_v39 = vmul.f32 %v5804_v53, %v5710_v4  ;;  %v10815_v9 = vadd.f32 %v10803_v59, %v5719_v35 }
 0xe41   : > { %v5837_v62 = vmul.f32 %v5821_v25, %v10806_v33  ;;  %v5807_v44 = vmul.f32 0.044715, %v10812_v0 }
 0xe42   : > { %v5836_v56 = vmul.f32 %v5820_v39, %v5710_v4  ;;  %v5806_v52 = vmul.f32 0.044715, %v10815_v9  ;;  %v7549_v42 = vpop.f32.mrb[84].mxu1 }
 0xe43   : > { %v5853_v34 = vadd.f32 %v5837_v62, %v10806_v33  ;;  %v5823_v55 = vmul.f32 %v5807_v44, %v10812_v0  ;;  %v10823_v5 = vadd.f32 %v7549_v42, %v10803_v59  ;;  %v5729_v21 = vpop.f32.mrb[85].mxu1  ;;  %v5788_v42 = vmul.f32 0.5, %v5710_v4 }
 0xe44   : > { %v5852_v46 = vadd.f32 %v5836_v56, %v5710_v4  ;;  %v5822_v51 = vmul.f32 %v5806_v52, %v10815_v9  ;;  %v10827_v8 = vadd.f32 %v10803_v59, %v5729_v21 }
 0xe45   : > { %v5869_v26 = vmul.f32 0.7978846, %v5853_v34  ;;  %v5839_v58 = vmul.f32 %v5823_v55, %v10812_v0  ;;  %v5809_v43 = vmul.f32 0.044715, %v10823_v5  ;;  %v5789_v55 = vmul.f32 0.5, %v10806_v33 }
 0xe46   : > { %v5838_v47 = vmul.f32 %v5822_v51, %v10815_v9  ;;  %v5808_v24 = vmul.f32 0.044715, %v10827_v8  ;;  %v7552_v17 = vpop.f32.mrb[86].mxu1  ;;  %v5868_v11 = vmul.f32 0.7978846, %v5852_v46 }
 0xe47   : > { %8648 = vtanh.f32 %v5869_v26  ;;  %v5855_v15 = vadd.f32 %v5839_v58, %v10812_v0  ;;  %v5825_v54 = vmul.f32 %v5809_v43, %v10823_v5  ;;  %v10836_v22 = vadd.f32 %v7552_v17, %v10803_v59  ;;  %v5739_v20 = vpop.f32.mrb[87].mxu1 }
 0xe48   : > { %v5854_v2 = vadd.f32 %v5838_v47, %v10815_v9  ;;  %v5824_v30 = vmul.f32 %v5808_v24, %v10827_v8  ;;  %v5740_v37 = vadd.f32 %v10803_v59, %v5739_v20  ;;  %8650 = vtanh.f32 %v5868_v11 }
 0xe49   : > { %v5841_v29 = vmul.f32 %v5825_v54, %v10823_v5  ;;  %v5811_v36 = vmul.f32 0.044715, %v10836_v22  ;;  %v5871_v13 = vmul.f32 0.7978846, %v5855_v15  ;;  %v5790_v43 = vmul.f32 0.5, %v10815_v9 }
 0xe4a   : > { %v5840_v45 = vmul.f32 %v5824_v30, %v10827_v8  ;;  %v5810_v7 = vmul.f32 0.044715, %v5740_v37  ;;  %v5870_v32 = vmul.f32 0.7978846, %v5854_v2  ;;  %v5791_v24 = vmul.f32 0.5, %v10812_v0 }
 0xe4b   : > { %v5857_v48 = vadd.f32 %v5841_v29, %v10823_v5  ;;  %v5827_v14 = vmul.f32 %v5811_v36, %v10836_v22  ;;  %8652 = vtanh.f32 %v5871_v13  ;;  %v5792_v54 = vmul.f32 0.5, %v10827_v8 }
 0xe4c   : > { %v5856_v61 = vadd.f32 %v5840_v45, %v10827_v8  ;;  %v5826_v50 = vmul.f32 %v5810_v7, %v5740_v37  ;;  %8654 = vtanh.f32 %v5870_v32  ;;  %v5793_v2 = vmul.f32 0.5, %v10823_v5 }
 0xe4d   : > { %v5843_v63 = vmul.f32 %v5827_v14, %v10836_v22  ;;  %v5873_v10 = vmul.f32 0.7978846, %v5857_v48  ;;  %v5794_v0 = vmul.f32 0.5, %v5740_v37  ;;  %v5795_v7 = vmul.f32 0.5, %v10836_v22 }
 0xe4e   : > { %v5842_v53 = vmul.f32 %v5826_v50, %v5740_v37  ;;  %v5872_v18 = vmul.f32 0.7978846, %v5856_v61 }
 0xe4f   : > { %v5859_v25 = vadd.f32 %v5843_v63, %v10836_v22  ;;  %8656 = vtanh.f32 %v5873_v10 }
 0xe50   : > { %v5858_v35 = vadd.f32 %v5842_v53, %v5740_v37  ;;  %8658 = vtanh.f32 %v5872_v18 }
 0xe51   : > { %v8649_v39 = vpop.eup %8648  ;;  %v5875_v62 = vmul.f32 0.7978846, %v5859_v25 }
 0xe52   : > { %v8651_v44 = vpop.eup %8650  ;;  %v5901_v56 = vadd.f32 1.0, %v8649_v39  ;;  %v5874_v52 = vmul.f32 0.7978846, %v5858_v35 }
 0xe53   : > { %v5900_v34 = vadd.f32 1.0, %v8651_v44  ;;  %8660 = vtanh.f32 %v5875_v62 }
 0xe54   : > { %8662 = vtanh.f32 %v5874_v52  ;;  %v5917_v26 = vmul.f32 %v5901_v56, %v5789_v55 }
 0xe55   : > { %v8653_v21 = vpop.eup %8652  ;;  %v5916_v46 = vmul.f32 %v5900_v34, %v5788_v42 }
 0xe56   : > { %v8655_v51 = vpop.eup %8654  ;;  %v5903_v58 = vadd.f32 1.0, %v8653_v21 }
 0xe57   : > { %7573 = vmatprep.mubr.msk.f32.mxu0 %vm467_vm0, %v5916_v46  ;;  %v5902_v47 = vadd.f32 1.0, %v8655_v51 }
 0xe58   : > { %7574 = vmatmul.mubr.msk.f32.vlgmr.msra.gmra.mrb[80].mxu0 %vm467_vm0, %v5917_v26  ;;  %v5919_v15 = vmul.f32 %v5903_v58, %v5791_v24 }
 0xe59   : > { %v8657_v4 = vpop.eup %8656  ;;  %v5918_v17 = vmul.f32 %v5902_v47, %v5790_v43 }
 0xe5a   : > { %v8659_v11 = vpop.eup %8658  ;;  %v5905_v33 = vadd.f32 1.0, %v8657_v4 }
 0xe5b   : > { %7576 = vmatprep.mubr.msk.f32.mxu0 %vm467_vm0, %v5918_v17  ;;  %v5904_v20 = vadd.f32 1.0, %v8659_v11 }
 0xe5c   : > { %7577 = vmatmul.mubr.msk.f32.gmra.mrb[82].mxu0 %vm467_vm0, %v5919_v15  ;;  %v5921_v36 = vmul.f32 %v5905_v33, %v5793_v2 }
 0xe5d   : > { %v8661_v9 = vpop.eup %8660  ;;  %v5920_v30 = vmul.f32 %v5904_v20, %v5792_v54 }
 0xe5e   : > { %v8663_v29 = vpop.eup %8662  ;;  %v5907_v13 = vadd.f32 1.0, %v8661_v9 }
 0xe5f   : > { %7579 = vmatprep.mubr.msk.f32.mxu0 %vm467_vm0, %v5920_v30  ;;  %v5906_v45 = vadd.f32 1.0, %v8663_v29 }
 0xe60   : > { %7580 = vmatmul.mubr.msk.f32.gmra.mrb[84].mxu0 %vm467_vm0, %v5921_v36  ;;  %v5923_v8 = vmul.f32 %v5907_v13, %v5795_v7 }
 0xe61   : > { %v5922_v32 = vmul.f32 %v5906_v45, %v5794_v0 }
 0xe63   : > { %7582 = vmatprep.mubr.msk.f32.mxu0 %vm467_vm0, %v5922_v32 }
 0xe64   : > { %7583 = vmatmul.mubr.msk.f32.gmra.mrb[86].mxu0 %vm467_vm0, %v5923_v8 }
 0xebf   : > { %v7555_v5 = vpop.f32.mrb[88].mxu1 }
 0xec0   : > { %v10864_v48 = vadd.f32 %v7555_v5, %v10803_v59  ;;  %v5749_v14 = vpop.f32.mrb[89].mxu1 }
 0xec1   : > { %v5750_v61 = vadd.f32 %v10803_v59, %v5749_v14 }
 0xec2   : > { %v5813_v37 = vmul.f32 0.044715, %v10864_v48 }
 0xec3   : > { %v5812_v50 = vmul.f32 0.044715, %v5750_v61  ;;  %v7558_v63 = vpop.f32.mrb[90].mxu1 }
 0xec4   : > { %v5829_v10 = vmul.f32 %v5813_v37, %v10864_v48  ;;  %v10870_v22 = vadd.f32 %v7558_v63, %v10803_v59  ;;  %v5759_v53 = vpop.f32.mrb[91].mxu1 }
 0xec5   : > { %v5828_v18 = vmul.f32 %v5812_v50, %v5750_v61  ;;  %v10873_v25 = vadd.f32 %v10803_v59, %v5759_v53 }
 0xec6   : > { %v5845_v35 = vmul.f32 %v5829_v10, %v10864_v48  ;;  %v5815_v39 = vmul.f32 0.044715, %v10870_v22 }
 0xec7   : > { %v5844_v62 = vmul.f32 %v5828_v18, %v5750_v61  ;;  %v5814_v44 = vmul.f32 0.044715, %v10873_v25  ;;  %v7561_v56 = vpop.f32.mrb[92].mxu1 }
 0xec8   : > { %v5861_v52 = vadd.f32 %v5845_v35, %v10864_v48  ;;  %v5831_v42 = vmul.f32 %v5815_v39, %v10870_v22  ;;  %v10881_v34 = vadd.f32 %v7561_v56, %v10803_v59  ;;  %v5769_v55 = vpop.f32.mrb[93].mxu1 }
 0xec9   : > { %v5860_v21 = vadd.f32 %v5844_v62, %v5750_v61  ;;  %v5830_v46 = vmul.f32 %v5814_v44, %v10873_v25  ;;  %v10885_v51 = vadd.f32 %v10803_v59, %v5769_v55  ;;  %v5796_v44 = vmul.f32 0.5, %v5750_v61 }
 0xeca   : > { %v5847_v26 = vmul.f32 %v5831_v42, %v10870_v22  ;;  %v5817_v58 = vmul.f32 0.044715, %v10881_v34  ;;  %v5877_v43 = vmul.f32 0.7978846, %v5861_v52  ;;  %v5797_v52 = vmul.f32 0.5, %v10864_v48 }
 0xecb   : > { %v5846_v47 = vmul.f32 %v5830_v46, %v10873_v25  ;;  %v5816_v24 = vmul.f32 0.044715, %v10885_v51  ;;  %v7564_v4 = vpop.f32.mrb[94].mxu1  ;;  %v5876_v17 = vmul.f32 0.7978846, %v5860_v21 }
 0xecc   : > { %v5863_v11 = vadd.f32 %v5847_v26, %v10870_v22  ;;  %v5833_v15 = vmul.f32 %v5817_v58, %v10881_v34  ;;  %v10894_v33 = vadd.f32 %v7564_v4, %v10803_v59  ;;  %v5779_v54 = vpop.f32.mrb[95].mxu1  ;;  %8664 = vtanh.f32 %v5877_v43 }
 0xecd   : > { %v5862_v20 = vadd.f32 %v5846_v47, %v10873_v25  ;;  %v5832_v2 = vmul.f32 %v5816_v24, %v10885_v51  ;;  %v5780_v9 = vadd.f32 %v10803_v59, %v5779_v54  ;;  %8666 = vtanh.f32 %v5876_v17 }
 0xece   : > { %v5849_v30 = vmul.f32 %v5833_v15, %v10881_v34  ;;  %v5819_v29 = vmul.f32 0.044715, %v10894_v33  ;;  %v5879_v36 = vmul.f32 0.7978846, %v5863_v11  ;;  %v5798_v58 = vmul.f32 0.5, %v10873_v25 }
 0xecf   : > { %v5848_v13 = vmul.f32 %v5832_v2, %v10885_v51  ;;  %v5818_v0 = vmul.f32 0.044715, %v5780_v9  ;;  %v5878_v45 = vmul.f32 0.7978846, %v5862_v20  ;;  %v5799_v47 = vmul.f32 0.5, %v10870_v22 }
 0xed0   : > { %v5865_v7 = vadd.f32 %v5849_v30, %v10881_v34  ;;  %v5835_v32 = vmul.f32 %v5819_v29, %v10894_v33  ;;  %8668 = vtanh.f32 %v5879_v36  ;;  %v5800_v11 = vmul.f32 0.5, %v10885_v51 }
 0xed1   : > { %v5864_v8 = vadd.f32 %v5848_v13, %v10885_v51  ;;  %v5834_v5 = vmul.f32 %v5818_v0, %v5780_v9  ;;  %8670 = vtanh.f32 %v5878_v45  ;;  %v5801_v54 = vmul.f32 0.5, %v10881_v34  ;;  %v6532_v34 = vld [vmem:[%s10994_s12] ss:$0 sm:$0xff] }
 0xed2   : > { %v5851_v59 = vmul.f32 %v5835_v32, %v10894_v33  ;;  %v5881_v14 = vmul.f32 0.7978846, %v5865_v7  ;;  %v5802_v29 = vmul.f32 0.5, %v5780_v9  ;;  %v5803_v13 = vmul.f32 0.5, %v10894_v33 }
 0xed3   : > { %v5850_v37 = vmul.f32 %v5834_v5, %v5780_v9  ;;  %v5880_v50 = vmul.f32 0.7978846, %v5864_v8 }
 0xed4   : > { %v5867_v63 = vadd.f32 %v5851_v59, %v10894_v33  ;;  %8672 = vtanh.f32 %v5881_v14 }
 0xed5   : > { %v5866_v10 = vadd.f32 %v5850_v37, %v5780_v9  ;;  %8674 = vtanh.f32 %v5880_v50 }
 0xed6   : > { %v8665_v53 = vpop.eup %8664  ;;  %v5883_v18 = vmul.f32 0.7978846, %v5867_v63 }
 0xed7   : > { %v8667_v35 = vpop.eup %8666  ;;  %v5909_v39 = vadd.f32 1.0, %v8665_v53  ;;  %v5882_v62 = vmul.f32 0.7978846, %v5866_v10 }
 0xed8   : > { %v5908_v56 = vadd.f32 1.0, %v8667_v35  ;;  %8676 = vtanh.f32 %v5883_v18 }
 0xed9   : > { %8678 = vtanh.f32 %v5882_v62  ;;  %v5925_v46 = vmul.f32 %v5909_v39, %v5797_v52 }
 0xeda   : > { %v8669_v42 = vpop.eup %8668  ;;  %v5924_v55 = vmul.f32 %v5908_v56, %v5796_v44 }
 0xedb   : > { %v8671_v21 = vpop.eup %8670  ;;  %v5911_v26 = vadd.f32 1.0, %v8669_v42 }
 0xedc   : > { %7585 = vmatprep.mubr.msk.f32.mxu0 %vm467_vm0, %v5924_v55  ;;  %v5910_v43 = vadd.f32 1.0, %v8671_v21 }
 0xedd   : > { %7586 = vmatmul.mubr.msk.f32.gmra.mrb[88].mxu0 %vm467_vm0, %v5925_v46  ;;  %v5927_v17 = vmul.f32 %v5911_v26, %v5799_v47 }
 0xede   : > { %v8673_v61 = vpop.eup %8672  ;;  %v5926_v24 = vmul.f32 %v5910_v43, %v5798_v58 }
 0xedf   : > { %v8675_v4 = vpop.eup %8674  ;;  %v5913_v48 = vadd.f32 1.0, %v8673_v61 }
 0xee0   : > { %7588 = vmatprep.mubr.msk.f32.mxu0 %vm467_vm0, %v5926_v24  ;;  %v5912_v15 = vadd.f32 1.0, %v8675_v4 }
 0xee1   : > { %7589 = vmatmul.mubr.msk.f32.gmra.mrb[90].mxu0 %vm467_vm0, %v5927_v17  ;;  %v5929_v30 = vmul.f32 %v5913_v48, %v5801_v54 }
 0xee2   : > { %v8677_v25 = vpop.eup %8676  ;;  %v5928_v20 = vmul.f32 %v5912_v15, %v5800_v11 }
 0xee3   : > { %v8679_v2 = vpop.eup %8678  ;;  %v5915_v22 = vadd.f32 1.0, %v8677_v25 }
 0xee4   : > { %7591 = vmatprep.mubr.msk.f32.mxu0 %vm467_vm0, %v5928_v20  ;;  %v5914_v36 = vadd.f32 1.0, %v8679_v2 }
 0xee5   : > { %7592 = vmatmul.mubr.msk.f32.gmra.mrb[92].mxu0 %vm467_vm0, %v5929_v30  ;;  %v5931_v0 = vmul.f32 %v5915_v22, %v5803_v13 }
 0xee6   : > { %v5930_v51 = vmul.f32 %v5914_v36, %v5802_v29 }
 0xee8   : > { %7594 = vmatprep.mubr.msk.f32.mxu0 %vm467_vm0, %v5930_v51 }
 0xee9   : > { %7595 = vmatmul.mubr.msk.f32.gmra.mrb[94].mxu0 %vm467_vm0, %v5931_v0 }
 0xf2b   : > { %v7575_v45 = vpop.f32.mrb[80].mxu0 }
 0xf2c   : > { %v6063_v7 = vadd.f32 %v7575_v45, %v6532_v34  ;;  %v6057_v32 = vpop.f32.mrb[81].mxu0 }
 0xf2d   : > { %v6058_v33 = vadd.f32 %v6532_v34, %v6057_v32 }
 0xf2e   : > { %v6137_v9 = vadd.f32 %v6063_v7, %v10483_v41 }
 0xf2f   : > { %v6136_v8 = vadd.f32 %v6058_v33, %v10469_v16  ;;  %v7578_v5 = vpop.f32.mrb[82].mxu0 }
 0xf30   : > { %6153 = vst.msk [vmem:[%s10929_s30 + $0x8] sm:$0xff] %vm467_vm0, %v6137_v9  ;;  %v6073_v59 = vadd.f32 %v7578_v5, %v6532_v34  ;;  %v6067_v14 = vpop.f32.mrb[83].mxu0 }
 0xf31   : > { %6152 = vst.msk [vmem:[%s10929_s30] sm:$0xff] %vm467_vm0, %v6136_v8  ;;  %v6068_v37 = vadd.f32 %v6532_v34, %v6067_v14 }
 0xf32   : > { %v6139_v50 = vadd.f32 %v6073_v59, %v10478_v28 }
 0xf33   : > { %v6138_v63 = vadd.f32 %v6068_v37, %v10486_v57  ;;  %v7581_v10 = vpop.f32.mrb[84].mxu0 }
 0xf34   : > { %6155 = vst.msk [vmem:[%s10929_s30 + $0x18] sm:$0xff] %vm467_vm0, %v6139_v50  ;;  %v6083_v16 = vadd.f32 %v7581_v10, %v6532_v34  ;;  %v6077_v41 = vpop.f32.mrb[85].mxu0 }
 0xf35   : > { %6154 = vst.msk [vmem:[%s10929_s30 + $0x10] sm:$0xff] %vm467_vm0, %v6138_v63  ;;  %v6078_v53 = vadd.f32 %v6532_v34, %v6077_v41 }
 0xf36   : > { %v6141_v18 = vadd.f32 %v6083_v16, %v10499_v3 }
 0xf37   : > { %v6140_v35 = vadd.f32 %v6078_v53, %v10502_v31  ;;  %v7584_v39 = vpop.f32.mrb[86].mxu0 }
 0xf38   : > { %6157 = vst.msk [vmem:[%s10929_s30 + $0x28] sm:$0xff] %vm467_vm0, %v6141_v18  ;;  %v6093_v28 = vadd.f32 %v7584_v39, %v6532_v34  ;;  %v6087_v57 = vpop.f32.mrb[87].mxu0 }
 0xf39   : > { %6156 = vst.msk [vmem:[%s10929_s30 + $0x20] sm:$0xff] %vm467_vm0, %v6140_v35  ;;  %v6088_v62 = vadd.f32 %v6532_v34, %v6087_v57 }
 0xf3a   : > { %v6143_v44 = vadd.f32 %v6093_v28, %v10509_v1 }
 0xf3b   : > { %v6142_v56 = vadd.f32 %v6088_v62, %v10512_v60 }
 0xf3c   : > { %6159 = vst.msk [vmem:[%s10929_s30 + $0x38] sm:$0xff] %vm467_vm0, %v6143_v44 }
 0xf3d   : > { %6158 = vst.msk [vmem:[%s10929_s30 + $0x30] sm:$0xff] %vm467_vm0, %v6142_v56 }
 0xfb0   : > { %v7587_v3 = vpop.f32.mrb[88].mxu0 }
 0xfb1   : > { %v6103_v31 = vadd.f32 %v7587_v3, %v6532_v34  ;;  %v6097_v52 = vpop.f32.mrb[89].mxu0 }
 0xfb2   : > { %v6098_v42 = vadd.f32 %v6532_v34, %v6097_v52 }
 0xfb3   : > { %v6145_v55 = vadd.f32 %v6103_v31, %v10561_v40 }
 0xfb4   : > { %v6144_v21 = vadd.f32 %v6098_v42, %v10564_v38  ;;  %v7590_v46 = vpop.f32.mrb[90].mxu0 }
 0xfb5   : > { %6161 = vst.msk [vmem:[%s10929_s30 + $0x48] sm:$0xff] %vm467_vm0, %v6145_v55  ;;  %v6113_v1 = vadd.f32 %v7590_v46, %v6532_v34  ;;  %v6107_v60 = vpop.f32.mrb[91].mxu0 }
 0xfb6   : > { %6160 = vst.msk [vmem:[%s10929_s30 + $0x40] sm:$0xff] %vm467_vm0, %v6144_v21  ;;  %v6108_v26 = vadd.f32 %v6532_v34, %v6107_v60 }
 0xfb7   : > { %v6147_v58 = vadd.f32 %v6113_v1, %v10573_v19 }
 0xfb8   : > { %v6146_v43 = vadd.f32 %v6108_v26, %v10576_v27  ;;  %v7593_v47 = vpop.f32.mrb[92].mxu0 }
 0xfb9   : > { %6163 = vst.msk [vmem:[%s10929_s30 + $0x58] sm:$0xff] %vm467_vm0, %v6147_v58  ;;  %v6123_v40 = vadd.f32 %v7593_v47, %v6532_v34  ;;  %v6117_v38 = vpop.f32.mrb[93].mxu0 }
 0xfba   : > { %6162 = vst.msk [vmem:[%s10929_s30 + $0x50] sm:$0xff] %vm467_vm0, %v6146_v43  ;;  %v6118_v61 = vadd.f32 %v6532_v34, %v6117_v38 }
 0xfbb   : > { %v6149_v24 = vadd.f32 %v6123_v40, %v10585_v49 }
 0xfbc   : > { %v6148_v4 = vadd.f32 %v6118_v61, %v10588_v6  ;;  %v7596_v17 = vpop.f32.mrb[94].mxu0 }
 0xfbd   : > { %6165 = vst.msk [vmem:[%s10929_s30 + $0x68] sm:$0xff] %vm467_vm0, %v6149_v24  ;;  %v6133_v19 = vadd.f32 %v7596_v17, %v6532_v34  ;;  %v6127_v48 = vpop.f32.mrb[95].mxu0 }
 0xfbe   : > { %6164 = vst.msk [vmem:[%s10929_s30 + $0x60] sm:$0xff] %vm467_vm0, %v6148_v4  ;;  %v6128_v27 = vadd.f32 %v6532_v34, %v6127_v48 }
 0xfbf   : > { %v6151_v11 = vadd.f32 %v6133_v19, %v10603_v23 }
 0xfc0   : > { %v6150_v15 = vadd.f32 %v6128_v27, %v10606_v12 }
 0xfc1   : > { %6167 = vst.msk [vmem:[%s10929_s30 + $0x78] sm:$0xff] %vm467_vm0, %v6151_v11 }
 0xfc2   : > { %6166 = vst.msk [vmem:[%s10929_s30 + $0x70] sm:$0xff] %vm467_vm0, %v6150_v15 }
 0xfc3 PF: > { %s23_s25 = sadd.s32 1, %s8706_s25  }
 0xfc4   : > { %p20_p4 = scmp.ge.s32.totalorder %s23_s25, 4  }
 0xfc6   :  { %22 = sbr.rel (!%p20_p4) target bundleno = 1 (0x1), region = 102 }

</bundles_post_ra>
